<compile_context>
chip_gen: v7x
topology: tpu7x:2x2x1
jax: 0.10.0
libtpu: 0.0.40
codegen_flags: <defaults>
</compile_context>

<pallas_src>
import numpy as np
import jax
import jax.numpy as jnp
from jax import lax
from jax.experimental import pallas as pl
from jax.experimental.pallas import tpu as pltpu


# -----------------------------------------------------------------------------
# Padded dimensions (TPU lane / sublane native widths)
# -----------------------------------------------------------------------------
D1P = 32      # conv1 im2col depth      25 -> 32
C1P = 128     # conv1 output channels   20 -> 128
C2P = 128     # conv2 output channels   50 -> 128
F1P = 512     # fc1 output features    500 -> 512
OUTP = 128    # fc2 output features     10 -> 128

NTAP = 25                 # 5x5 conv2 taps
NQ = 64                   # conv2 pre-pool positions / image: rows [pool2_off(4), ph2(4), pw2(4)]
NS = 16                   # pooled 4x4 spatial positions
CH1 = NTAP * NQ           # 1600 rows after pool1 (rows [tap, q])
ROWS1 = 4 * CH1           # 6400 expanded conv1 rows / image: [pool1_off(4), tap(25), q(64)]


# -----------------------------------------------------------------------------
# Trace-time index table: expanded-im2col row gather for conv1.
# Row (d1, t, q) of the expanded patch matrix needs the conv1 output position
#   r = 2*((2*ph2 + dh2) + kh) + dh1 ,  c = 2*((2*pw2 + dw2) + kw) + dw1
# of the standard 24x24 conv1 im2col matrix.
# -----------------------------------------------------------------------------
def _expanded_row_indices():
    d1 = np.arange(4);   dh1, dw1 = d1 // 2, d1 % 2           # pool-1 offsets
    t = np.arange(NTAP); kh, kw = t // 5, t % 5               # conv2 taps
    q = np.arange(NQ);   d2, s = q // 16, q % 16
    dh2, dw2 = d2 // 2, d2 % 2                                # pool-2 offsets
    ph2, pw2 = s // 4, s % 4                                  # pooled output position
    r = 2 * ((2 * ph2 + dh2)[None, None, :] + kh[None, :, None]) + dh1[:, None, None]
    c = 2 * ((2 * pw2 + dw2)[None, None, :] + kw[None, :, None]) + dw1[:, None, None]
    return (r * 24 + c).reshape(-1).astype(np.int32)          # (6400,)


_ROW_IDX = _expanded_row_indices()


# -----------------------------------------------------------------------------
# Fused Pallas kernel: one grid step == one image.
# -----------------------------------------------------------------------------
def _lenet_fused_kernel(p1_ref, w1_ref, b1_ref, w2_ref, b2_ref,
                        wf1_ref, bf1_ref, wf2_ref, bf2_ref,
                        out_ref, h1_scr):
    """p1_ref : (1, 6400, 32) bf16   expanded conv1 im2col patches
       w1_ref : (32, 128)      bf16  conv1 weight [tap, cout]
       b1_ref : (1, 128)       f32
       w2_ref : (25, 128, 128) bf16  conv2 weight [tap, cin, cout]
       b2_ref : (1, 128)       f32
       wf1_ref: (16, 128, 512) bf16  fc1 weight [spatial, cin, cout] (NCHW flatten folded in)
       bf1_ref: (1, 512)       f32
       wf2_ref: (512, 128)     bf16  fc2 weight
       bf2_ref: (1, 128)       f32
       out_ref: (1, 1, 128)    f32   sigmoid(fc2), first 10 lanes valid
       h1_scr : (1600, 128)    bf16  pooled conv1 activations, rows [tap, q]
    """
    w1 = w1_ref[...]
    b1 = b1_ref[...]

    # ---- conv1 (im2col matmul, MXU) + bias + ReLU + 2x2/2 max-pool ----------
    # Pool-1 offsets are the outermost row chunk: process one chunk at a time and
    # fold the pool into a running max (keeps live vreg pressure small).
    for d in range(4):
        chunk = p1_ref[0, d * CH1:(d + 1) * CH1, :]                     # (1600, 32) bf16
        y = jnp.dot(chunk, w1, preferred_element_type=jnp.float32)      # (1600, 128) f32
        y = jnp.maximum(y + b1, 0.0).astype(jnp.bfloat16)
        if d == 0:
            h1_scr[...] = y
        else:
            h1_scr[...] = jnp.maximum(h1_scr[...], y)

    # ---- conv2 as 25 shifted matmuls (tap-major rows) + bias + ReLU ---------
    acc2 = jnp.zeros((NQ, C2P), jnp.float32)
    for t in range(NTAP):
        acc2 = acc2 + jnp.dot(h1_scr[t * NQ:(t + 1) * NQ, :], w2_ref[t],
                              preferred_element_type=jnp.float32)
    acc2 = jnp.maximum(acc2 + b2_ref[...], 0.0)                         # (64, 128)

    # ---- 2x2/2 max-pool: rows are [pool2_off(4), ph2*4+pw2(16)] -------------
    h2 = jnp.max(acc2.reshape(4, NS, C2P), axis=0).astype(jnp.bfloat16)  # (16, 128)

    # ---- fc1 (x.view(-1, 800) folded into the weight layout) + ReLU ---------
    acc1 = jnp.zeros((1, F1P), jnp.float32)
    for s in range(NS):
        acc1 = acc1 + jnp.dot(h2[s:s + 1, :], wf1_ref[s],
                              preferred_element_type=jnp.float32)
    h3 = jnp.maximum(acc1 + bf1_ref[...], 0.0).astype(jnp.bfloat16)     # (1, 512)

    # ---- fc2 + sigmoid (exp / divide run on the EUP, off the MXU path) ------
    logits = jnp.dot(h3, wf2_ref[...], preferred_element_type=jnp.float32)
    logits = logits + bf2_ref[...]
    out_ref[...] = (1.0 / (1.0 + jnp.exp(-logits))).reshape(1, 1, OUTP)


def _lenet_pallas(p1, params):
    b = p1.shape[0]
    const2 = lambda i: (0, 0)
    const3 = lambda i: (0, 0, 0)
    out = pl.pallas_call(
        _lenet_fused_kernel,
        out_shape=jax.ShapeDtypeStruct((b, 1, OUTP), jnp.float32),
        grid_spec=pltpu.PrefetchScalarGridSpec(
            num_scalar_prefetch=0,
            grid=(b,),
            in_specs=[
                pl.BlockSpec((1, ROWS1, D1P), lambda i: (i, 0, 0)),   # patches: one image / step
                pl.BlockSpec((D1P, C1P), const2),                     # weights: resident in VMEM
                pl.BlockSpec((1, C1P), const2),
                pl.BlockSpec((NTAP, C1P, C2P), const3),
                pl.BlockSpec((1, C2P), const2),
                pl.BlockSpec((NS, C2P, F1P), const3),
                pl.BlockSpec((1, F1P), const2),
                pl.BlockSpec((F1P, OUTP), const2),
                pl.BlockSpec((1, OUTP), const2),
            ],
            out_specs=pl.BlockSpec((1, 1, OUTP), lambda i: (i, 0, 0)),
            scratch_shapes=[pltpu.VMEM((CH1, C1P), jnp.bfloat16)],
        ),
        compiler_params=pltpu.CompilerParams(
            dimension_semantics=("parallel",),       # megacore: images split across TCs on v7x
            vmem_limit_bytes=32 * 1024 * 1024,
        ),
    )(p1, params["w1"], params["b1"], params["w2"], params["b2"],
      params["wf1"], params["bf1"], params["wf2"], params["bf2"])
    return out.reshape(b, OUTP)[:, :10]


# -----------------------------------------------------------------------------
# Forward pass (matches Net.forward semantics); x is PyTorch NCHW (B, 1, 28, 28).
# -----------------------------------------------------------------------------
@jax.jit
def net_forward(x, params):
    b = x.shape[0]
    img = x[:, 0]                                                      # (B, 28, 28)
    # Standard conv1 im2col (25 shifted slices), then duplicate rows (one-time XLA
    # gather) so pool-1 offsets / conv2 taps / pool-2 offsets become leading row chunks.
    cols = [img[:, ih:ih + 24, iw:iw + 24] for ih in range(5) for iw in range(5)]
    pstd = jnp.stack(cols, axis=-1).reshape(b, 24 * 24, 25)            # (B, 576, 25)
    pstd = jnp.pad(pstd, ((0, 0), (0, 0), (0, D1P - 25))).astype(jnp.bfloat16)
    p1 = jnp.take(pstd, _ROW_IDX, axis=1)                              # (B, 6400, 32)
    return _lenet_pallas(p1, params)


# -----------------------------------------------------------------------------
# Parameters (deterministic, synthetic) in the PyTorch layouts + TPU packing.
# -----------------------------------------------------------------------------
def init_raw_params(key):
    ks = jax.random.split(key, 8)
    s = 0.05
    w1 = jax.random.normal(ks[0], (20, 1, 5, 5), jnp.float32) * s      # conv1.weight
    b1 = jax.random.normal(ks[1], (20,), jnp.float32) * s              # conv1.bias
    w2 = jax.random.normal(ks[2], (50, 20, 5, 5), jnp.float32) * s     # conv2.weight
    b2 = jax.random.normal(ks[3], (50,), jnp.float32) * s              # conv2.bias
    wf1 = jax.random.normal(ks[4], (500, 800), jnp.float32) * s        # fc1.weight
    bf1 = jax.random.normal(ks[5], (500,), jnp.float32) * s            # fc1.bias
    wf2 = jax.random.normal(ks[6], (10, 500), jnp.float32) * s         # fc2.weight
    bf2 = jax.random.normal(ks[7], (10,), jnp.float32) * s             # fc2.bias
    return w1, b1, w2, b2, wf1, bf1, wf2, bf2


def pack_params(w1, b1, w2, b2, wf1, bf1, wf2, bf2):
    """Zero-pad to TPU-native widths, fold layouts, cast matmul operands to bf16."""
    w1p = jnp.zeros((D1P, C1P), jnp.float32).at[:25, :20].set(w1.reshape(20, 25).T)
    b1p = jnp.zeros((1, C1P), jnp.float32).at[0, :20].set(b1)
    w2r = jnp.transpose(w2, (2, 3, 1, 0)).reshape(NTAP, 20, 50)        # [tap, cin, cout]
    w2p = jnp.zeros((NTAP, C1P, C2P), jnp.float32).at[:, :20, :50].set(w2r)
    b2p = jnp.zeros((1, C2P), jnp.float32).at[0, :50].set(b2)
    # fc1 consumes the NCHW flatten (index = c*16 + ph2*4 + pw2); fold into the layout.
    wf1r = jnp.transpose(wf1.reshape(500, 50, NS), (2, 1, 0))          # [s, cin, cout]
    wf1p = jnp.zeros((NS, C2P, F1P), jnp.float32).at[:, :50, :500].set(wf1r)
    bf1p = jnp.zeros((1, F1P), jnp.float32).at[0, :500].set(bf1)
    wf2p = jnp.zeros((F1P, OUTP), jnp.float32).at[:500, :10].set(wf2.T)
    bf2p = jnp.zeros((1, OUTP), jnp.float32).at[0, :10].set(bf2)
    return {
        "w1": w1p.astype(jnp.bfloat16), "b1": b1p,
        "w2": w2p.astype(jnp.bfloat16), "b2": b2p,
        "wf1": wf1p.astype(jnp.bfloat16), "bf1": bf1p,
        "wf2": wf2p.astype(jnp.bfloat16), "bf2": bf2p,
    }


# -----------------------------------------------------------------------------
# Pure-JAX (f32) reference of Net.forward, for a numerical sanity check.
# -----------------------------------------------------------------------------
def reference_forward(x, raw):
    w1, b1, w2, b2, wf1, bf1, wf2, bf2 = raw
    dn = ("NCHW", "OIHW", "NCHW")
    y = lax.conv_general_dilated(x, w1, (1, 1), "VALID", dimension_numbers=dn)
    y = jnp.maximum(y + b1.reshape(1, -1, 1, 1), 0.0)
    y = lax.reduce_window(y, -jnp.inf, lax.max, (1, 1, 2, 2), (1, 1, 2, 2), "VALID")
    y = lax.conv_general_dilated(y, w2, (1, 1), "VALID", dimension_numbers=dn)
    y = jnp.maximum(y + b2.reshape(1, -1, 1, 1), 0.0)
    y = lax.reduce_window(y, -jnp.inf, lax.max, (1, 1, 2, 2), (1, 1, 2, 2), "VALID")
    y = y.reshape(x.shape[0], 800)
    y = jnp.maximum(y @ wf1.T + bf1, 0.0)
    y = y @ wf2.T + bf2
    return jax.nn.sigmoid(y)


# -----------------------------------------------------------------------------
# Main
# -----------------------------------------------------------------------------
if __name__ == "__main__":
    key = jax.random.PRNGKey(0)
    pkey, xkey = jax.random.split(key)
    raw = init_raw_params(pkey)
    params = pack_params(*raw)

    # LeNet-MNIST geometry: (B, 1, 28, 28) is required so the flatten == 4*4*50.
    x = jax.random.normal(xkey, (2, 1, 28, 28), jnp.float32)

    y = net_forward(x, params)
    y = jax.block_until_ready(y)

    assert y.shape == (2, 10)
    assert bool(jnp.all(jnp.isfinite(y)))
    assert bool(jnp.all((y >= 0.0) & (y <= 1.0)))       # sigmoid range

    # Numerical check vs. the f32 reference (bf16 MXU operands -> loose tolerance).
    y_ref = reference_forward(x, raw)
    max_err = float(jnp.max(jnp.abs(y - y_ref)))
    assert max_err < 5e-2, f"max abs err vs reference: {max_err}"

    print("KERNEL_OK")
</pallas_src>

<mosaic_0001>
module attributes {stable_mosaic.version = 11 : i64} {
  func.func @_lenet_fused_kernel(%arg0: i32, %arg1: memref<1x6400x32xbf16, #tpu.memory_space<vmem>>, %arg2: memref<32x128xbf16, #tpu.memory_space<vmem>>, %arg3: memref<1x128xf32, #tpu.memory_space<vmem>>, %arg4: memref<25x128x128xbf16, #tpu.memory_space<vmem>>, %arg5: memref<1x128xf32, #tpu.memory_space<vmem>>, %arg6: memref<16x128x512xbf16, #tpu.memory_space<vmem>>, %arg7: memref<1x512xf32, #tpu.memory_space<vmem>>, %arg8: memref<512x128xbf16, #tpu.memory_space<vmem>>, %arg9: memref<1x128xf32, #tpu.memory_space<vmem>>, %arg10: memref<1x1x128xf32, #tpu.memory_space<vmem>>, %arg11: memref<1600x128xbf16, #tpu.memory_space<vmem>>) attributes {dimension_semantics = [#tpu.dimension_semantics<parallel>], iteration_bounds = array<i64: 2>, scalar_prefetch = 0 : i64, scratch_operands = 1 : i64, tpu.core_type = #tpu.core_type<tc>, window_params = [{transform_indices = @transform_0, window_bounds = array<i64: 1, 6400, 32>}, {pipeline_mode = #tpu.pipeline_mode<synchronous>, transform_indices = @transform_1, window_bounds = array<i64: 32, 128>}, {pipeline_mode = #tpu.pipeline_mode<synchronous>, transform_indices = @transform_2, window_bounds = array<i64: 1, 128>}, {pipeline_mode = #tpu.pipeline_mode<synchronous>, transform_indices = @transform_3, window_bounds = array<i64: 25, 128, 128>}, {pipeline_mode = #tpu.pipeline_mode<synchronous>, transform_indices = @transform_4, window_bounds = array<i64: 1, 128>}, {pipeline_mode = #tpu.pipeline_mode<synchronous>, transform_indices = @transform_5, window_bounds = array<i64: 16, 128, 512>}, {pipeline_mode = #tpu.pipeline_mode<synchronous>, transform_indices = @transform_6, window_bounds = array<i64: 1, 512>}, {pipeline_mode = #tpu.pipeline_mode<synchronous>, transform_indices = @transform_7, window_bounds = array<i64: 512, 128>}, {pipeline_mode = #tpu.pipeline_mode<synchronous>, transform_indices = @transform_8, window_bounds = array<i64: 1, 128>}, {transform_indices = @transform_9, window_bounds = array<i64: 1, 1, 128>}]} {
    %c0 = arith.constant 0 : index
    %c0_0 = arith.constant 0 : index
    %0 = vector.load %arg2[%c0, %c0_0] : memref<32x128xbf16, #tpu.memory_space<vmem>>, vector<32x128xbf16>
    %c0_1 = arith.constant 0 : index
    %c0_2 = arith.constant 0 : index
    %1 = vector.load %arg3[%c0_1, %c0_2] : memref<1x128xf32, #tpu.memory_space<vmem>>, vector<1x128xf32>
    %c0_3 = arith.constant 0 : index
    %c0_4 = arith.constant 0 : index
    %c0_5 = arith.constant 0 : index
    %2 = vector.load %arg1[%c0_3, %c0_4, %c0_5] : memref<1x6400x32xbf16, #tpu.memory_space<vmem>>, vector<1x1600x32xbf16>
    %3 = vector.shape_cast %2 : vector<1x1600x32xbf16> to vector<1600x32xbf16>
    %cst = arith.constant dense<0.000000e+00> : vector<1600x128xf32>
    %4 = tpu.matmul %3, %0, %cst {dimension_numbers = #tpu.dot_dimension_numbers<[1], [0], [0], [1], [0, 0, 1, 1], [], []>} : vector<1600x32xbf16>, vector<32x128xbf16>, vector<1600x128xf32> -> vector<1600x128xf32>
    %5 = vector.broadcast %1 : vector<1x128xf32> to vector<1600x128xf32>
    %6 = arith.addf %4, %5 : vector<1600x128xf32>
    %cst_6 = arith.constant 0.000000e+00 : f32
    %7 = vector.broadcast %cst_6 : f32 to vector<1600x128xf32>
    %8 = arith.maximumf %6, %7 : vector<1600x128xf32>
    %9 = arith.truncf %8 : vector<1600x128xf32> to vector<1600x128xbf16>
    %c0_7 = arith.constant 0 : index
    %c0_8 = arith.constant 0 : index
    %10 = vector.load %arg11[%c0_7, %c0_8] : memref<1600x128xbf16, #tpu.memory_space<vmem>>, vector<1600x128xbf16>
    tpu.vector_store %arg11[%c0_7, %c0_8], %9 {strides = array<i32>} : memref<1600x128xbf16, #tpu.memory_space<vmem>>, vector<1600x128xbf16>,
    %c0_9 = arith.constant 0 : index
    %c1600 = arith.constant 1600 : index
    %c0_10 = arith.constant 0 : index
    %11 = vector.load %arg1[%c0_9, %c1600, %c0_10] : memref<1x6400x32xbf16, #tpu.memory_space<vmem>>, vector<1x1600x32xbf16>
    %12 = vector.shape_cast %11 : vector<1x1600x32xbf16> to vector<1600x32xbf16>
    %cst_11 = arith.constant dense<0.000000e+00> : vector<1600x128xf32>
    %13 = tpu.matmul %12, %0, %cst_11 {dimension_numbers = #tpu.dot_dimension_numbers<[1], [0], [0], [1], [0, 0, 1, 1], [], []>} : vector<1600x32xbf16>, vector<32x128xbf16>, vector<1600x128xf32> -> vector<1600x128xf32>
    %14 = vector.broadcast %1 : vector<1x128xf32> to vector<1600x128xf32>
    %15 = arith.addf %13, %14 : vector<1600x128xf32>
    %cst_12 = arith.constant 0.000000e+00 : f32
    %16 = vector.broadcast %cst_12 : f32 to vector<1600x128xf32>
    %17 = arith.maximumf %15, %16 : vector<1600x128xf32>
    %18 = arith.truncf %17 : vector<1600x128xf32> to vector<1600x128xbf16>
    %c0_13 = arith.constant 0 : index
    %c0_14 = arith.constant 0 : index
    %19 = vector.load %arg11[%c0_13, %c0_14] : memref<1600x128xbf16, #tpu.memory_space<vmem>>, vector<1600x128xbf16>
    %20 = arith.maximumf %19, %18 : vector<1600x128xbf16>
    %c0_15 = arith.constant 0 : index
    %c0_16 = arith.constant 0 : index
    %21 = vector.load %arg11[%c0_15, %c0_16] : memref<1600x128xbf16, #tpu.memory_space<vmem>>, vector<1600x128xbf16>
    tpu.vector_store %arg11[%c0_15, %c0_16], %20 {strides = array<i32>} : memref<1600x128xbf16, #tpu.memory_space<vmem>>, vector<1600x128xbf16>,
    %c0_17 = arith.constant 0 : index
    %c3200 = arith.constant 3200 : index
    %c0_18 = arith.constant 0 : index
    %22 = vector.load %arg1[%c0_17, %c3200, %c0_18] : memref<1x6400x32xbf16, #tpu.memory_space<vmem>>, vector<1x1600x32xbf16>
    %23 = vector.shape_cast %22 : vector<1x1600x32xbf16> to vector<1600x32xbf16>
    %cst_19 = arith.constant dense<0.000000e+00> : vector<1600x128xf32>
    %24 = tpu.matmul %23, %0, %cst_19 {dimension_numbers = #tpu.dot_dimension_numbers<[1], [0], [0], [1], [0, 0, 1, 1], [], []>} : vector<1600x32xbf16>, vector<32x128xbf16>, vector<1600x128xf32> -> vector<1600x128xf32>
    %25 = vector.broadcast %1 : vector<1x128xf32> to vector<1600x128xf32>
    %26 = arith.addf %24, %25 : vector<1600x128xf32>
    %cst_20 = arith.constant 0.000000e+00 : f32
    %27 = vector.broadcast %cst_20 : f32 to vector<1600x128xf32>
    %28 = arith.maximumf %26, %27 : vector<1600x128xf32>
    %29 = arith.truncf %28 : vector<1600x128xf32> to vector<1600x128xbf16>
    %c0_21 = arith.constant 0 : index
    %c0_22 = arith.constant 0 : index
    %30 = vector.load %arg11[%c0_21, %c0_22] : memref<1600x128xbf16, #tpu.memory_space<vmem>>, vector<1600x128xbf16>
    %31 = arith.maximumf %30, %29 : vector<1600x128xbf16>
    %c0_23 = arith.constant 0 : index
    %c0_24 = arith.constant 0 : index
    %32 = vector.load %arg11[%c0_23, %c0_24] : memref<1600x128xbf16, #tpu.memory_space<vmem>>, vector<1600x128xbf16>
    tpu.vector_store %arg11[%c0_23, %c0_24], %31 {strides = array<i32>} : memref<1600x128xbf16, #tpu.memory_space<vmem>>, vector<1600x128xbf16>,
    %c0_25 = arith.constant 0 : index
    %c4800 = arith.constant 4800 : index
    %c0_26 = arith.constant 0 : index
    %33 = vector.load %arg1[%c0_25, %c4800, %c0_26] : memref<1x6400x32xbf16, #tpu.memory_space<vmem>>, vector<1x1600x32xbf16>
    %34 = vector.shape_cast %33 : vector<1x1600x32xbf16> to vector<1600x32xbf16>
    %cst_27 = arith.constant dense<0.000000e+00> : vector<1600x128xf32>
    %35 = tpu.matmul %34, %0, %cst_27 {dimension_numbers = #tpu.dot_dimension_numbers<[1], [0], [0], [1], [0, 0, 1, 1], [], []>} : vector<1600x32xbf16>, vector<32x128xbf16>, vector<1600x128xf32> -> vector<1600x128xf32>
    %36 = vector.broadcast %1 : vector<1x128xf32> to vector<1600x128xf32>
    %37 = arith.addf %35, %36 : vector<1600x128xf32>
    %cst_28 = arith.constant 0.000000e+00 : f32
    %38 = vector.broadcast %cst_28 : f32 to vector<1600x128xf32>
    %39 = arith.maximumf %37, %38 : vector<1600x128xf32>
    %40 = arith.truncf %39 : vector<1600x128xf32> to vector<1600x128xbf16>
    %c0_29 = arith.constant 0 : index
    %c0_30 = arith.constant 0 : index
    %41 = vector.load %arg11[%c0_29, %c0_30] : memref<1600x128xbf16, #tpu.memory_space<vmem>>, vector<1600x128xbf16>
    %42 = arith.maximumf %41, %40 : vector<1600x128xbf16>
    %c0_31 = arith.constant 0 : index
    %c0_32 = arith.constant 0 : index
    %43 = vector.load %arg11[%c0_31, %c0_32] : memref<1600x128xbf16, #tpu.memory_space<vmem>>, vector<1600x128xbf16>
    tpu.vector_store %arg11[%c0_31, %c0_32], %42 {strides = array<i32>} : memref<1600x128xbf16, #tpu.memory_space<vmem>>, vector<1600x128xbf16>,
    %cst_33 = arith.constant 0.000000e+00 : f32
    %44 = vector.broadcast %cst_33 : f32 to vector<64x128xf32>
    %c0_34 = arith.constant 0 : index
    %c0_35 = arith.constant 0 : index
    %45 = vector.load %arg11[%c0_34, %c0_35] : memref<1600x128xbf16, #tpu.memory_space<vmem>>, vector<64x128xbf16>
    %c0_36 = arith.constant 0 : index
    %c0_37 = arith.constant 0 : index
    %c0_38 = arith.constant 0 : index
    %46 = vector.load %arg4[%c0_36, %c0_37, %c0_38] : memref<25x128x128xbf16, #tpu.memory_space<vmem>>, vector<1x128x128xbf16>
    %47 = vector.shape_cast %46 : vector<1x128x128xbf16> to vector<128x128xbf16>
    %cst_39 = arith.constant dense<0.000000e+00> : vector<64x128xf32>
    %48 = tpu.matmul %45, %47, %cst_39 {dimension_numbers = #tpu.dot_dimension_numbers<[1], [0], [0], [1], [0, 0, 1, 1], [], []>} : vector<64x128xbf16>, vector<128x128xbf16>, vector<64x128xf32> -> vector<64x128xf32>
    %49 = arith.addf %44, %48 : vector<64x128xf32>
    %c64 = arith.constant 64 : index
    %c0_40 = arith.constant 0 : index
    %50 = vector.load %arg11[%c64, %c0_40] : memref<1600x128xbf16, #tpu.memory_space<vmem>>, vector<64x128xbf16>
    %c1 = arith.constant 1 : index
    %c0_41 = arith.constant 0 : index
    %c0_42 = arith.constant 0 : index
    %51 = vector.load %arg4[%c1, %c0_41, %c0_42] : memref<25x128x128xbf16, #tpu.memory_space<vmem>>, vector<1x128x128xbf16>
    %52 = vector.shape_cast %51 : vector<1x128x128xbf16> to vector<128x128xbf16>
    %cst_43 = arith.constant dense<0.000000e+00> : vector<64x128xf32>
    %53 = tpu.matmul %50, %52, %cst_43 {dimension_numbers = #tpu.dot_dimension_numbers<[1], [0], [0], [1], [0, 0, 1, 1], [], []>} : vector<64x128xbf16>, vector<128x128xbf16>, vector<64x128xf32> -> vector<64x128xf32>
    %54 = arith.addf %49, %53 : vector<64x128xf32>
    %c128 = arith.constant 128 : index
    %c0_44 = arith.constant 0 : index
    %55 = vector.load %arg11[%c128, %c0_44] : memref<1600x128xbf16, #tpu.memory_space<vmem>>, vector<64x128xbf16>
    %c2 = arith.constant 2 : index
    %c0_45 = arith.constant 0 : index
    %c0_46 = arith.constant 0 : index
    %56 = vector.load %arg4[%c2, %c0_45, %c0_46] : memref<25x128x128xbf16, #tpu.memory_space<vmem>>, vector<1x128x128xbf16>
    %57 = vector.shape_cast %56 : vector<1x128x128xbf16> to vector<128x128xbf16>
    %cst_47 = arith.constant dense<0.000000e+00> : vector<64x128xf32>
    %58 = tpu.matmul %55, %57, %cst_47 {dimension_numbers = #tpu.dot_dimension_numbers<[1], [0], [0], [1], [0, 0, 1, 1], [], []>} : vector<64x128xbf16>, vector<128x128xbf16>, vector<64x128xf32> -> vector<64x128xf32>
    %59 = arith.addf %54, %58 : vector<64x128xf32>
    %c192 = arith.constant 192 : index
    %c0_48 = arith.constant 0 : index
    %60 = vector.load %arg11[%c192, %c0_48] : memref<1600x128xbf16, #tpu.memory_space<vmem>>, vector<64x128xbf16>
    %c3 = arith.constant 3 : index
    %c0_49 = arith.constant 0 : index
    %c0_50 = arith.constant 0 : index
    %61 = vector.load %arg4[%c3, %c0_49, %c0_50] : memref<25x128x128xbf16, #tpu.memory_space<vmem>>, vector<1x128x128xbf16>
    %62 = vector.shape_cast %61 : vector<1x128x128xbf16> to vector<128x128xbf16>
    %cst_51 = arith.constant dense<0.000000e+00> : vector<64x128xf32>
    %63 = tpu.matmul %60, %62, %cst_51 {dimension_numbers = #tpu.dot_dimension_numbers<[1], [0], [0], [1], [0, 0, 1, 1], [], []>} : vector<64x128xbf16>, vector<128x128xbf16>, vector<64x128xf32> -> vector<64x128xf32>
    %64 = arith.addf %59, %63 : vector<64x128xf32>
    %c256 = arith.constant 256 : index
    %c0_52 = arith.constant 0 : index
    %65 = vector.load %arg11[%c256, %c0_52] : memref<1600x128xbf16, #tpu.memory_space<vmem>>, vector<64x128xbf16>
    %c4 = arith.constant 4 : index
    %c0_53 = arith.constant 0 : index
    %c0_54 = arith.constant 0 : index
    %66 = vector.load %arg4[%c4, %c0_53, %c0_54] : memref<25x128x128xbf16, #tpu.memory_space<vmem>>, vector<1x128x128xbf16>
    %67 = vector.shape_cast %66 : vector<1x128x128xbf16> to vector<128x128xbf16>
    %cst_55 = arith.constant dense<0.000000e+00> : vector<64x128xf32>
    %68 = tpu.matmul %65, %67, %cst_55 {dimension_numbers = #tpu.dot_dimension_numbers<[1], [0], [0], [1], [0, 0, 1, 1], [], []>} : vector<64x128xbf16>, vector<128x128xbf16>, vector<64x128xf32> -> vector<64x128xf32>
    %69 = arith.addf %64, %68 : vector<64x128xf32>
    %c320 = arith.constant 320 : index
    %c0_56 = arith.constant 0 : index
    %70 = vector.load %arg11[%c320, %c0_56] : memref<1600x128xbf16, #tpu.memory_space<vmem>>, vector<64x128xbf16>
    %c5 = arith.constant 5 : index
    %c0_57 = arith.constant 0 : index
    %c0_58 = arith.constant 0 : index
    %71 = vector.load %arg4[%c5, %c0_57, %c0_58] : memref<25x128x128xbf16, #tpu.memory_space<vmem>>, vector<1x128x128xbf16>
    %72 = vector.shape_cast %71 : vector<1x128x128xbf16> to vector<128x128xbf16>
    %cst_59 = arith.constant dense<0.000000e+00> : vector<64x128xf32>
    %73 = tpu.matmul %70, %72, %cst_59 {dimension_numbers = #tpu.dot_dimension_numbers<[1], [0], [0], [1], [0, 0, 1, 1], [], []>} : vector<64x128xbf16>, vector<128x128xbf16>, vector<64x128xf32> -> vector<64x128xf32>
    %74 = arith.addf %69, %73 : vector<64x128xf32>
    %c384 = arith.constant 384 : index
    %c0_60 = arith.constant 0 : index
    %75 = vector.load %arg11[%c384, %c0_60] : memref<1600x128xbf16, #tpu.memory_space<vmem>>, vector<64x128xbf16>
    %c6 = arith.constant 6 : index
    %c0_61 = arith.constant 0 : index
    %c0_62 = arith.constant 0 : index
    %76 = vector.load %arg4[%c6, %c0_61, %c0_62] : memref<25x128x128xbf16, #tpu.memory_space<vmem>>, vector<1x128x128xbf16>
    %77 = vector.shape_cast %76 : vector<1x128x128xbf16> to vector<128x128xbf16>
    %cst_63 = arith.constant dense<0.000000e+00> : vector<64x128xf32>
    %78 = tpu.matmul %75, %77, %cst_63 {dimension_numbers = #tpu.dot_dimension_numbers<[1], [0], [0], [1], [0, 0, 1, 1], [], []>} : vector<64x128xbf16>, vector<128x128xbf16>, vector<64x128xf32> -> vector<64x128xf32>
    %79 = arith.addf %74, %78 : vector<64x128xf32>
    %c448 = arith.constant 448 : index
    %c0_64 = arith.constant 0 : index
    %80 = vector.load %arg11[%c448, %c0_64] : memref<1600x128xbf16, #tpu.memory_space<vmem>>, vector<64x128xbf16>
    %c7 = arith.constant 7 : index
    %c0_65 = arith.constant 0 : index
    %c0_66 = arith.constant 0 : index
    %81 = vector.load %arg4[%c7, %c0_65, %c0_66] : memref<25x128x128xbf16, #tpu.memory_space<vmem>>, vector<1x128x128xbf16>
    %82 = vector.shape_cast %81 : vector<1x128x128xbf16> to vector<128x128xbf16>
    %cst_67 = arith.constant dense<0.000000e+00> : vector<64x128xf32>
    %83 = tpu.matmul %80, %82, %cst_67 {dimension_numbers = #tpu.dot_dimension_numbers<[1], [0], [0], [1], [0, 0, 1, 1], [], []>} : vector<64x128xbf16>, vector<128x128xbf16>, vector<64x128xf32> -> vector<64x128xf32>
    %84 = arith.addf %79, %83 : vector<64x128xf32>
    %c512 = arith.constant 512 : index
    %c0_68 = arith.constant 0 : index
    %85 = vector.load %arg11[%c512, %c0_68] : memref<1600x128xbf16, #tpu.memory_space<vmem>>, vector<64x128xbf16>
    %c8 = arith.constant 8 : index
    %c0_69 = arith.constant 0 : index
    %c0_70 = arith.constant 0 : index
    %86 = vector.load %arg4[%c8, %c0_69, %c0_70] : memref<25x128x128xbf16, #tpu.memory_space<vmem>>, vector<1x128x128xbf16>
    %87 = vector.shape_cast %86 : vector<1x128x128xbf16> to vector<128x128xbf16>
    %cst_71 = arith.constant dense<0.000000e+00> : vector<64x128xf32>
    %88 = tpu.matmul %85, %87, %cst_71 {dimension_numbers = #tpu.dot_dimension_numbers<[1], [0], [0], [1], [0, 0, 1, 1], [], []>} : vector<64x128xbf16>, vector<128x128xbf16>, vector<64x128xf32> -> vector<64x128xf32>
    %89 = arith.addf %84, %88 : vector<64x128xf32>
    %c576 = arith.constant 576 : index
    %c0_72 = arith.constant 0 : index
    %90 = vector.load %arg11[%c576, %c0_72] : memref<1600x128xbf16, #tpu.memory_space<vmem>>, vector<64x128xbf16>
    %c9 = arith.constant 9 : index
    %c0_73 = arith.constant 0 : index
    %c0_74 = arith.constant 0 : index
    %91 = vector.load %arg4[%c9, %c0_73, %c0_74] : memref<25x128x128xbf16, #tpu.memory_space<vmem>>, vector<1x128x128xbf16>
    %92 = vector.shape_cast %91 : vector<1x128x128xbf16> to vector<128x128xbf16>
    %cst_75 = arith.constant dense<0.000000e+00> : vector<64x128xf32>
    %93 = tpu.matmul %90, %92, %cst_75 {dimension_numbers = #tpu.dot_dimension_numbers<[1], [0], [0], [1], [0, 0, 1, 1], [], []>} : vector<64x128xbf16>, vector<128x128xbf16>, vector<64x128xf32> -> vector<64x128xf32>
    %94 = arith.addf %89, %93 : vector<64x128xf32>
    %c640 = arith.constant 640 : index
    %c0_76 = arith.constant 0 : index
    %95 = vector.load %arg11[%c640, %c0_76] : memref<1600x128xbf16, #tpu.memory_space<vmem>>, vector<64x128xbf16>
    %c10 = arith.constant 10 : index
    %c0_77 = arith.constant 0 : index
    %c0_78 = arith.constant 0 : index
    %96 = vector.load %arg4[%c10, %c0_77, %c0_78] : memref<25x128x128xbf16, #tpu.memory_space<vmem>>, vector<1x128x128xbf16>
    %97 = vector.shape_cast %96 : vector<1x128x128xbf16> to vector<128x128xbf16>
    %cst_79 = arith.constant dense<0.000000e+00> : vector<64x128xf32>
    %98 = tpu.matmul %95, %97, %cst_79 {dimension_numbers = #tpu.dot_dimension_numbers<[1], [0], [0], [1], [0, 0, 1, 1], [], []>} : vector<64x128xbf16>, vector<128x128xbf16>, vector<64x128xf32> -> vector<64x128xf32>
    %99 = arith.addf %94, %98 : vector<64x128xf32>
    %c704 = arith.constant 704 : index
    %c0_80 = arith.constant 0 : index
    %100 = vector.load %arg11[%c704, %c0_80] : memref<1600x128xbf16, #tpu.memory_space<vmem>>, vector<64x128xbf16>
    %c11 = arith.constant 11 : index
    %c0_81 = arith.constant 0 : index
    %c0_82 = arith.constant 0 : index
    %101 = vector.load %arg4[%c11, %c0_81, %c0_82] : memref<25x128x128xbf16, #tpu.memory_space<vmem>>, vector<1x128x128xbf16>
    %102 = vector.shape_cast %101 : vector<1x128x128xbf16> to vector<128x128xbf16>
    %cst_83 = arith.constant dense<0.000000e+00> : vector<64x128xf32>
    %103 = tpu.matmul %100, %102, %cst_83 {dimension_numbers = #tpu.dot_dimension_numbers<[1], [0], [0], [1], [0, 0, 1, 1], [], []>} : vector<64x128xbf16>, vector<128x128xbf16>, vector<64x128xf32> -> vector<64x128xf32>
    %104 = arith.addf %99, %103 : vector<64x128xf32>
    %c768 = arith.constant 768 : index
    %c0_84 = arith.constant 0 : index
    %105 = vector.load %arg11[%c768, %c0_84] : memref<1600x128xbf16, #tpu.memory_space<vmem>>, vector<64x128xbf16>
    %c12 = arith.constant 12 : index
    %c0_85 = arith.constant 0 : index
    %c0_86 = arith.constant 0 : index
    %106 = vector.load %arg4[%c12, %c0_85, %c0_86] : memref<25x128x128xbf16, #tpu.memory_space<vmem>>, vector<1x128x128xbf16>
    %107 = vector.shape_cast %106 : vector<1x128x128xbf16> to vector<128x128xbf16>
    %cst_87 = arith.constant dense<0.000000e+00> : vector<64x128xf32>
    %108 = tpu.matmul %105, %107, %cst_87 {dimension_numbers = #tpu.dot_dimension_numbers<[1], [0], [0], [1], [0, 0, 1, 1], [], []>} : vector<64x128xbf16>, vector<128x128xbf16>, vector<64x128xf32> -> vector<64x128xf32>
    %109 = arith.addf %104, %108 : vector<64x128xf32>
    %c832 = arith.constant 832 : index
    %c0_88 = arith.constant 0 : index
    %110 = vector.load %arg11[%c832, %c0_88] : memref<1600x128xbf16, #tpu.memory_space<vmem>>, vector<64x128xbf16>
    %c13 = arith.constant 13 : index
    %c0_89 = arith.constant 0 : index
    %c0_90 = arith.constant 0 : index
    %111 = vector.load %arg4[%c13, %c0_89, %c0_90] : memref<25x128x128xbf16, #tpu.memory_space<vmem>>, vector<1x128x128xbf16>
    %112 = vector.shape_cast %111 : vector<1x128x128xbf16> to vector<128x128xbf16>
    %cst_91 = arith.constant dense<0.000000e+00> : vector<64x128xf32>
    %113 = tpu.matmul %110, %112, %cst_91 {dimension_numbers = #tpu.dot_dimension_numbers<[1], [0], [0], [1], [0, 0, 1, 1], [], []>} : vector<64x128xbf16>, vector<128x128xbf16>, vector<64x128xf32> -> vector<64x128xf32>
    %114 = arith.addf %109, %113 : vector<64x128xf32>
    %c896 = arith.constant 896 : index
    %c0_92 = arith.constant 0 : index
    %115 = vector.load %arg11[%c896, %c0_92] : memref<1600x128xbf16, #tpu.memory_space<vmem>>, vector<64x128xbf16>
    %c14 = arith.constant 14 : index
    %c0_93 = arith.constant 0 : index
    %c0_94 = arith.constant 0 : index
    %116 = vector.load %arg4[%c14, %c0_93, %c0_94] : memref<25x128x128xbf16, #tpu.memory_space<vmem>>, vector<1x128x128xbf16>
    %117 = vector.shape_cast %116 : vector<1x128x128xbf16> to vector<128x128xbf16>
    %cst_95 = arith.constant dense<0.000000e+00> : vector<64x128xf32>
    %118 = tpu.matmul %115, %117, %cst_95 {dimension_numbers = #tpu.dot_dimension_numbers<[1], [0], [0], [1], [0, 0, 1, 1], [], []>} : vector<64x128xbf16>, vector<128x128xbf16>, vector<64x128xf32> -> vector<64x128xf32>
    %119 = arith.addf %114, %118 : vector<64x128xf32>
    %c960 = arith.constant 960 : index
    %c0_96 = arith.constant 0 : index
    %120 = vector.load %arg11[%c960, %c0_96] : memref<1600x128xbf16, #tpu.memory_space<vmem>>, vector<64x128xbf16>
    %c15 = arith.constant 15 : index
    %c0_97 = arith.constant 0 : index
    %c0_98 = arith.constant 0 : index
    %121 = vector.load %arg4[%c15, %c0_97, %c0_98] : memref<25x128x128xbf16, #tpu.memory_space<vmem>>, vector<1x128x128xbf16>
    %122 = vector.shape_cast %121 : vector<1x128x128xbf16> to vector<128x128xbf16>
    %cst_99 = arith.constant dense<0.000000e+00> : vector<64x128xf32>
    %123 = tpu.matmul %120, %122, %cst_99 {dimension_numbers = #tpu.dot_dimension_numbers<[1], [0], [0], [1], [0, 0, 1, 1], [], []>} : vector<64x128xbf16>, vector<128x128xbf16>, vector<64x128xf32> -> vector<64x128xf32>
    %124 = arith.addf %119, %123 : vector<64x128xf32>
    %c1024 = arith.constant 1024 : index
    %c0_100 = arith.constant 0 : index
    %125 = vector.load %arg11[%c1024, %c0_100] : memref<1600x128xbf16, #tpu.memory_space<vmem>>, vector<64x128xbf16>
    %c16 = arith.constant 16 : index
    %c0_101 = arith.constant 0 : index
    %c0_102 = arith.constant 0 : index
    %126 = vector.load %arg4[%c16, %c0_101, %c0_102] : memref<25x128x128xbf16, #tpu.memory_space<vmem>>, vector<1x128x128xbf16>
    %127 = vector.shape_cast %126 : vector<1x128x128xbf16> to vector<128x128xbf16>
    %cst_103 = arith.constant dense<0.000000e+00> : vector<64x128xf32>
    %128 = tpu.matmul %125, %127, %cst_103 {dimension_numbers = #tpu.dot_dimension_numbers<[1], [0], [0], [1], [0, 0, 1, 1], [], []>} : vector<64x128xbf16>, vector<128x128xbf16>, vector<64x128xf32> -> vector<64x128xf32>
    %129 = arith.addf %124, %128 : vector<64x128xf32>
    %c1088 = arith.constant 1088 : index
    %c0_104 = arith.constant 0 : index
    %130 = vector.load %arg11[%c1088, %c0_104] : memref<1600x128xbf16, #tpu.memory_space<vmem>>, vector<64x128xbf16>
    %c17 = arith.constant 17 : index
    %c0_105 = arith.constant 0 : index
    %c0_106 = arith.constant 0 : index
    %131 = vector.load %arg4[%c17, %c0_105, %c0_106] : memref<25x128x128xbf16, #tpu.memory_space<vmem>>, vector<1x128x128xbf16>
    %132 = vector.shape_cast %131 : vector<1x128x128xbf16> to vector<128x128xbf16>
    %cst_107 = arith.constant dense<0.000000e+00> : vector<64x128xf32>
    %133 = tpu.matmul %130, %132, %cst_107 {dimension_numbers = #tpu.dot_dimension_numbers<[1], [0], [0], [1], [0, 0, 1, 1], [], []>} : vector<64x128xbf16>, vector<128x128xbf16>, vector<64x128xf32> -> vector<64x128xf32>
    %134 = arith.addf %129, %133 : vector<64x128xf32>
    %c1152 = arith.constant 1152 : index
    %c0_108 = arith.constant 0 : index
    %135 = vector.load %arg11[%c1152, %c0_108] : memref<1600x128xbf16, #tpu.memory_space<vmem>>, vector<64x128xbf16>
    %c18 = arith.constant 18 : index
    %c0_109 = arith.constant 0 : index
    %c0_110 = arith.constant 0 : index
    %136 = vector.load %arg4[%c18, %c0_109, %c0_110] : memref<25x128x128xbf16, #tpu.memory_space<vmem>>, vector<1x128x128xbf16>
    %137 = vector.shape_cast %136 : vector<1x128x128xbf16> to vector<128x128xbf16>
    %cst_111 = arith.constant dense<0.000000e+00> : vector<64x128xf32>
    %138 = tpu.matmul %135, %137, %cst_111 {dimension_numbers = #tpu.dot_dimension_numbers<[1], [0], [0], [1], [0, 0, 1, 1], [], []>} : vector<64x128xbf16>, vector<128x128xbf16>, vector<64x128xf32> -> vector<64x128xf32>
    %139 = arith.addf %134, %138 : vector<64x128xf32>
    %c1216 = arith.constant 1216 : index
    %c0_112 = arith.constant 0 : index
    %140 = vector.load %arg11[%c1216, %c0_112] : memref<1600x128xbf16, #tpu.memory_space<vmem>>, vector<64x128xbf16>
    %c19 = arith.constant 19 : index
    %c0_113 = arith.constant 0 : index
    %c0_114 = arith.constant 0 : index
    %141 = vector.load %arg4[%c19, %c0_113, %c0_114] : memref<25x128x128xbf16, #tpu.memory_space<vmem>>, vector<1x128x128xbf16>
    %142 = vector.shape_cast %141 : vector<1x128x128xbf16> to vector<128x128xbf16>
    %cst_115 = arith.constant dense<0.000000e+00> : vector<64x128xf32>
    %143 = tpu.matmul %140, %142, %cst_115 {dimension_numbers = #tpu.dot_dimension_numbers<[1], [0], [0], [1], [0, 0, 1, 1], [], []>} : vector<64x128xbf16>, vector<128x128xbf16>, vector<64x128xf32> -> vector<64x128xf32>
    %144 = arith.addf %139, %143 : vector<64x128xf32>
    %c1280 = arith.constant 1280 : index
    %c0_116 = arith.constant 0 : index
    %145 = vector.load %arg11[%c1280, %c0_116] : memref<1600x128xbf16, #tpu.memory_space<vmem>>, vector<64x128xbf16>
    %c20 = arith.constant 20 : index
    %c0_117 = arith.constant 0 : index
    %c0_118 = arith.constant 0 : index
    %146 = vector.load %arg4[%c20, %c0_117, %c0_118] : memref<25x128x128xbf16, #tpu.memory_space<vmem>>, vector<1x128x128xbf16>
    %147 = vector.shape_cast %146 : vector<1x128x128xbf16> to vector<128x128xbf16>
    %cst_119 = arith.constant dense<0.000000e+00> : vector<64x128xf32>
    %148 = tpu.matmul %145, %147, %cst_119 {dimension_numbers = #tpu.dot_dimension_numbers<[1], [0], [0], [1], [0, 0, 1, 1], [], []>} : vector<64x128xbf16>, vector<128x128xbf16>, vector<64x128xf32> -> vector<64x128xf32>
    %149 = arith.addf %144, %148 : vector<64x128xf32>
    %c1344 = arith.constant 1344 : index
    %c0_120 = arith.constant 0 : index
    %150 = vector.load %arg11[%c1344, %c0_120] : memref<1600x128xbf16, #tpu.memory_space<vmem>>, vector<64x128xbf16>
    %c21 = arith.constant 21 : index
    %c0_121 = arith.constant 0 : index
    %c0_122 = arith.constant 0 : index
    %151 = vector.load %arg4[%c21, %c0_121, %c0_122] : memref<25x128x128xbf16, #tpu.memory_space<vmem>>, vector<1x128x128xbf16>
    %152 = vector.shape_cast %151 : vector<1x128x128xbf16> to vector<128x128xbf16>
    %cst_123 = arith.constant dense<0.000000e+00> : vector<64x128xf32>
    %153 = tpu.matmul %150, %152, %cst_123 {dimension_numbers = #tpu.dot_dimension_numbers<[1], [0], [0], [1], [0, 0, 1, 1], [], []>} : vector<64x128xbf16>, vector<128x128xbf16>, vector<64x128xf32> -> vector<64x128xf32>
    %154 = arith.addf %149, %153 : vector<64x128xf32>
    %c1408 = arith.constant 1408 : index
    %c0_124 = arith.constant 0 : index
    %155 = vector.load %arg11[%c1408, %c0_124] : memref<1600x128xbf16, #tpu.memory_space<vmem>>, vector<64x128xbf16>
    %c22 = arith.constant 22 : index
    %c0_125 = arith.constant 0 : index
    %c0_126 = arith.constant 0 : index
    %156 = vector.load %arg4[%c22, %c0_125, %c0_126] : memref<25x128x128xbf16, #tpu.memory_space<vmem>>, vector<1x128x128xbf16>
    %157 = vector.shape_cast %156 : vector<1x128x128xbf16> to vector<128x128xbf16>
    %cst_127 = arith.constant dense<0.000000e+00> : vector<64x128xf32>
    %158 = tpu.matmul %155, %157, %cst_127 {dimension_numbers = #tpu.dot_dimension_numbers<[1], [0], [0], [1], [0, 0, 1, 1], [], []>} : vector<64x128xbf16>, vector<128x128xbf16>, vector<64x128xf32> -> vector<64x128xf32>
    %159 = arith.addf %154, %158 : vector<64x128xf32>
    %c1472 = arith.constant 1472 : index
    %c0_128 = arith.constant 0 : index
    %160 = vector.load %arg11[%c1472, %c0_128] : memref<1600x128xbf16, #tpu.memory_space<vmem>>, vector<64x128xbf16>
    %c23 = arith.constant 23 : index
    %c0_129 = arith.constant 0 : index
    %c0_130 = arith.constant 0 : index
    %161 = vector.load %arg4[%c23, %c0_129, %c0_130] : memref<25x128x128xbf16, #tpu.memory_space<vmem>>, vector<1x128x128xbf16>
    %162 = vector.shape_cast %161 : vector<1x128x128xbf16> to vector<128x128xbf16>
    %cst_131 = arith.constant dense<0.000000e+00> : vector<64x128xf32>
    %163 = tpu.matmul %160, %162, %cst_131 {dimension_numbers = #tpu.dot_dimension_numbers<[1], [0], [0], [1], [0, 0, 1, 1], [], []>} : vector<64x128xbf16>, vector<128x128xbf16>, vector<64x128xf32> -> vector<64x128xf32>
    %164 = arith.addf %159, %163 : vector<64x128xf32>
    %c1536 = arith.constant 1536 : index
    %c0_132 = arith.constant 0 : index
    %165 = vector.load %arg11[%c1536, %c0_132] : memref<1600x128xbf16, #tpu.memory_space<vmem>>, vector<64x128xbf16>
    %c24 = arith.constant 24 : index
    %c0_133 = arith.constant 0 : index
    %c0_134 = arith.constant 0 : index
    %166 = vector.load %arg4[%c24, %c0_133, %c0_134] : memref<25x128x128xbf16, #tpu.memory_space<vmem>>, vector<1x128x128xbf16>
    %167 = vector.shape_cast %166 : vector<1x128x128xbf16> to vector<128x128xbf16>
    %cst_135 = arith.constant dense<0.000000e+00> : vector<64x128xf32>
    %168 = tpu.matmul %165, %167, %cst_135 {dimension_numbers = #tpu.dot_dimension_numbers<[1], [0], [0], [1], [0, 0, 1, 1], [], []>} : vector<64x128xbf16>, vector<128x128xbf16>, vector<64x128xf32> -> vector<64x128xf32>
    %169 = arith.addf %164, %168 : vector<64x128xf32>
    %c0_136 = arith.constant 0 : index
    %c0_137 = arith.constant 0 : index
    %170 = vector.load %arg5[%c0_136, %c0_137] : memref<1x128xf32, #tpu.memory_space<vmem>>, vector<1x128xf32>
    %171 = vector.broadcast %170 : vector<1x128xf32> to vector<64x128xf32>
    %172 = arith.addf %169, %171 : vector<64x128xf32>
    %cst_138 = arith.constant 0.000000e+00 : f32
    %173 = vector.broadcast %cst_138 : f32 to vector<64x128xf32>
    %174 = arith.maximumf %172, %173 : vector<64x128xf32>
    %175 = vector.shape_cast %174 : vector<64x128xf32> to vector<4x16x128xf32>
    %cst_139 = arith.constant dense<0xFF800000> : vector<16x128xf32>
    %176 = vector.multi_reduction <maximumf>, %175, %cst_139 [0] : vector<4x16x128xf32> to vector<16x128xf32>
    %177 = arith.truncf %176 : vector<16x128xf32> to vector<16x128xbf16>
    %cst_140 = arith.constant 0.000000e+00 : f32
    %178 = vector.broadcast %cst_140 : f32 to vector<1x512xf32>
    %179 = vector.extract_strided_slice %177 {offsets = [0, 0], sizes = [1, 128], strides = [1, 1]} : vector<16x128xbf16> to vector<1x128xbf16>
    %c0_141 = arith.constant 0 : index
    %c0_142 = arith.constant 0 : index
    %c0_143 = arith.constant 0 : index
    %180 = vector.load %arg6[%c0_141, %c0_142, %c0_143] : memref<16x128x512xbf16, #tpu.memory_space<vmem>>, vector<1x128x512xbf16>
    %181 = vector.shape_cast %180 : vector<1x128x512xbf16> to vector<128x512xbf16>
    %cst_144 = arith.constant dense<0.000000e+00> : vector<1x512xf32>
    %182 = tpu.matmul %179, %181, %cst_144 {dimension_numbers = #tpu.dot_dimension_numbers<[1], [0], [0], [1], [0, 0, 1, 1], [], []>} : vector<1x128xbf16>, vector<128x512xbf16>, vector<1x512xf32> -> vector<1x512xf32>
    %183 = arith.addf %178, %182 : vector<1x512xf32>
    %184 = vector.extract_strided_slice %177 {offsets = [1, 0], sizes = [1, 128], strides = [1, 1]} : vector<16x128xbf16> to vector<1x128xbf16>
    %c1_145 = arith.constant 1 : index
    %c0_146 = arith.constant 0 : index
    %c0_147 = arith.constant 0 : index
    %185 = vector.load %arg6[%c1_145, %c0_146, %c0_147] : memref<16x128x512xbf16, #tpu.memory_space<vmem>>, vector<1x128x512xbf16>
    %186 = vector.shape_cast %185 : vector<1x128x512xbf16> to vector<128x512xbf16>
    %cst_148 = arith.constant dense<0.000000e+00> : vector<1x512xf32>
    %187 = tpu.matmul %184, %186, %cst_148 {dimension_numbers = #tpu.dot_dimension_numbers<[1], [0], [0], [1], [0, 0, 1, 1], [], []>} : vector<1x128xbf16>, vector<128x512xbf16>, vector<1x512xf32> -> vector<1x512xf32>
    %188 = arith.addf %183, %187 : vector<1x512xf32>
    %189 = vector.extract_strided_slice %177 {offsets = [2, 0], sizes = [1, 128], strides = [1, 1]} : vector<16x128xbf16> to vector<1x128xbf16>
    %c2_149 = arith.constant 2 : index
    %c0_150 = arith.constant 0 : index
    %c0_151 = arith.constant 0 : index
    %190 = vector.load %arg6[%c2_149, %c0_150, %c0_151] : memref<16x128x512xbf16, #tpu.memory_space<vmem>>, vector<1x128x512xbf16>
    %191 = vector.shape_cast %190 : vector<1x128x512xbf16> to vector<128x512xbf16>
    %cst_152 = arith.constant dense<0.000000e+00> : vector<1x512xf32>
    %192 = tpu.matmul %189, %191, %cst_152 {dimension_numbers = #tpu.dot_dimension_numbers<[1], [0], [0], [1], [0, 0, 1, 1], [], []>} : vector<1x128xbf16>, vector<128x512xbf16>, vector<1x512xf32> -> vector<1x512xf32>
    %193 = arith.addf %188, %192 : vector<1x512xf32>
    %194 = vector.extract_strided_slice %177 {offsets = [3, 0], sizes = [1, 128], strides = [1, 1]} : vector<16x128xbf16> to vector<1x128xbf16>
    %c3_153 = arith.constant 3 : index
    %c0_154 = arith.constant 0 : index
    %c0_155 = arith.constant 0 : index
    %195 = vector.load %arg6[%c3_153, %c0_154, %c0_155] : memref<16x128x512xbf16, #tpu.memory_space<vmem>>, vector<1x128x512xbf16>
    %196 = vector.shape_cast %195 : vector<1x128x512xbf16> to vector<128x512xbf16>
    %cst_156 = arith.constant dense<0.000000e+00> : vector<1x512xf32>
    %197 = tpu.matmul %194, %196, %cst_156 {dimension_numbers = #tpu.dot_dimension_numbers<[1], [0], [0], [1], [0, 0, 1, 1], [], []>} : vector<1x128xbf16>, vector<128x512xbf16>, vector<1x512xf32> -> vector<1x512xf32>
    %198 = arith.addf %193, %197 : vector<1x512xf32>
    %199 = vector.extract_strided_slice %177 {offsets = [4, 0], sizes = [1, 128], strides = [1, 1]} : vector<16x128xbf16> to vector<1x128xbf16>
    %c4_157 = arith.constant 4 : index
    %c0_158 = arith.constant 0 : index
    %c0_159 = arith.constant 0 : index
    %200 = vector.load %arg6[%c4_157, %c0_158, %c0_159] : memref<16x128x512xbf16, #tpu.memory_space<vmem>>, vector<1x128x512xbf16>
    %201 = vector.shape_cast %200 : vector<1x128x512xbf16> to vector<128x512xbf16>
    %cst_160 = arith.constant dense<0.000000e+00> : vector<1x512xf32>
    %202 = tpu.matmul %199, %201, %cst_160 {dimension_numbers = #tpu.dot_dimension_numbers<[1], [0], [0], [1], [0, 0, 1, 1], [], []>} : vector<1x128xbf16>, vector<128x512xbf16>, vector<1x512xf32> -> vector<1x512xf32>
    %203 = arith.addf %198, %202 : vector<1x512xf32>
    %204 = vector.extract_strided_slice %177 {offsets = [5, 0], sizes = [1, 128], strides = [1, 1]} : vector<16x128xbf16> to vector<1x128xbf16>
    %c5_161 = arith.constant 5 : index
    %c0_162 = arith.constant 0 : index
    %c0_163 = arith.constant 0 : index
    %205 = vector.load %arg6[%c5_161, %c0_162, %c0_163] : memref<16x128x512xbf16, #tpu.memory_space<vmem>>, vector<1x128x512xbf16>
    %206 = vector.shape_cast %205 : vector<1x128x512xbf16> to vector<128x512xbf16>
    %cst_164 = arith.constant dense<0.000000e+00> : vector<1x512xf32>
    %207 = tpu.matmul %204, %206, %cst_164 {dimension_numbers = #tpu.dot_dimension_numbers<[1], [0], [0], [1], [0, 0, 1, 1], [], []>} : vector<1x128xbf16>, vector<128x512xbf16>, vector<1x512xf32> -> vector<1x512xf32>
    %208 = arith.addf %203, %207 : vector<1x512xf32>
    %209 = vector.extract_strided_slice %177 {offsets = [6, 0], sizes = [1, 128], strides = [1, 1]} : vector<16x128xbf16> to vector<1x128xbf16>
    %c6_165 = arith.constant 6 : index
    %c0_166 = arith.constant 0 : index
    %c0_167 = arith.constant 0 : index
    %210 = vector.load %arg6[%c6_165, %c0_166, %c0_167] : memref<16x128x512xbf16, #tpu.memory_space<vmem>>, vector<1x128x512xbf16>
    %211 = vector.shape_cast %210 : vector<1x128x512xbf16> to vector<128x512xbf16>
    %cst_168 = arith.constant dense<0.000000e+00> : vector<1x512xf32>
    %212 = tpu.matmul %209, %211, %cst_168 {dimension_numbers = #tpu.dot_dimension_numbers<[1], [0], [0], [1], [0, 0, 1, 1], [], []>} : vector<1x128xbf16>, vector<128x512xbf16>, vector<1x512xf32> -> vector<1x512xf32>
    %213 = arith.addf %208, %212 : vector<1x512xf32>
    %214 = vector.extract_strided_slice %177 {offsets = [7, 0], sizes = [1, 128], strides = [1, 1]} : vector<16x128xbf16> to vector<1x128xbf16>
    %c7_169 = arith.constant 7 : index
    %c0_170 = arith.constant 0 : index
    %c0_171 = arith.constant 0 : index
    %215 = vector.load %arg6[%c7_169, %c0_170, %c0_171] : memref<16x128x512xbf16, #tpu.memory_space<vmem>>, vector<1x128x512xbf16>
    %216 = vector.shape_cast %215 : vector<1x128x512xbf16> to vector<128x512xbf16>
    %cst_172 = arith.constant dense<0.000000e+00> : vector<1x512xf32>
    %217 = tpu.matmul %214, %216, %cst_172 {dimension_numbers = #tpu.dot_dimension_numbers<[1], [0], [0], [1], [0, 0, 1, 1], [], []>} : vector<1x128xbf16>, vector<128x512xbf16>, vector<1x512xf32> -> vector<1x512xf32>
    %218 = arith.addf %213, %217 : vector<1x512xf32>
    %219 = vector.extract_strided_slice %177 {offsets = [8, 0], sizes = [1, 128], strides = [1, 1]} : vector<16x128xbf16> to vector<1x128xbf16>
    %c8_173 = arith.constant 8 : index
    %c0_174 = arith.constant 0 : index
    %c0_175 = arith.constant 0 : index
    %220 = vector.load %arg6[%c8_173, %c0_174, %c0_175] : memref<16x128x512xbf16, #tpu.memory_space<vmem>>, vector<1x128x512xbf16>
    %221 = vector.shape_cast %220 : vector<1x128x512xbf16> to vector<128x512xbf16>
    %cst_176 = arith.constant dense<0.000000e+00> : vector<1x512xf32>
    %222 = tpu.matmul %219, %221, %cst_176 {dimension_numbers = #tpu.dot_dimension_numbers<[1], [0], [0], [1], [0, 0, 1, 1], [], []>} : vector<1x128xbf16>, vector<128x512xbf16>, vector<1x512xf32> -> vector<1x512xf32>
    %223 = arith.addf %218, %222 : vector<1x512xf32>
    %224 = vector.extract_strided_slice %177 {offsets = [9, 0], sizes = [1, 128], strides = [1, 1]} : vector<16x128xbf16> to vector<1x128xbf16>
    %c9_177 = arith.constant 9 : index
    %c0_178 = arith.constant 0 : index
    %c0_179 = arith.constant 0 : index
    %225 = vector.load %arg6[%c9_177, %c0_178, %c0_179] : memref<16x128x512xbf16, #tpu.memory_space<vmem>>, vector<1x128x512xbf16>
    %226 = vector.shape_cast %225 : vector<1x128x512xbf16> to vector<128x512xbf16>
    %cst_180 = arith.constant dense<0.000000e+00> : vector<1x512xf32>
    %227 = tpu.matmul %224, %226, %cst_180 {dimension_numbers = #tpu.dot_dimension_numbers<[1], [0], [0], [1], [0, 0, 1, 1], [], []>} : vector<1x128xbf16>, vector<128x512xbf16>, vector<1x512xf32> -> vector<1x512xf32>
    %228 = arith.addf %223, %227 : vector<1x512xf32>
    %229 = vector.extract_strided_slice %177 {offsets = [10, 0], sizes = [1, 128], strides = [1, 1]} : vector<16x128xbf16> to vector<1x128xbf16>
    %c10_181 = arith.constant 10 : index
    %c0_182 = arith.constant 0 : index
    %c0_183 = arith.constant 0 : index
    %230 = vector.load %arg6[%c10_181, %c0_182, %c0_183] : memref<16x128x512xbf16, #tpu.memory_space<vmem>>, vector<1x128x512xbf16>
    %231 = vector.shape_cast %230 : vector<1x128x512xbf16> to vector<128x512xbf16>
    %cst_184 = arith.constant dense<0.000000e+00> : vector<1x512xf32>
    %232 = tpu.matmul %229, %231, %cst_184 {dimension_numbers = #tpu.dot_dimension_numbers<[1], [0], [0], [1], [0, 0, 1, 1], [], []>} : vector<1x128xbf16>, vector<128x512xbf16>, vector<1x512xf32> -> vector<1x512xf32>
    %233 = arith.addf %228, %232 : vector<1x512xf32>
    %234 = vector.extract_strided_slice %177 {offsets = [11, 0], sizes = [1, 128], strides = [1, 1]} : vector<16x128xbf16> to vector<1x128xbf16>
    %c11_185 = arith.constant 11 : index
    %c0_186 = arith.constant 0 : index
    %c0_187 = arith.constant 0 : index
    %235 = vector.load %arg6[%c11_185, %c0_186, %c0_187] : memref<16x128x512xbf16, #tpu.memory_space<vmem>>, vector<1x128x512xbf16>
    %236 = vector.shape_cast %235 : vector<1x128x512xbf16> to vector<128x512xbf16>
    %cst_188 = arith.constant dense<0.000000e+00> : vector<1x512xf32>
    %237 = tpu.matmul %234, %236, %cst_188 {dimension_numbers = #tpu.dot_dimension_numbers<[1], [0], [0], [1], [0, 0, 1, 1], [], []>} : vector<1x128xbf16>, vector<128x512xbf16>, vector<1x512xf32> -> vector<1x512xf32>
    %238 = arith.addf %233, %237 : vector<1x512xf32>
    %239 = vector.extract_strided_slice %177 {offsets = [12, 0], sizes = [1, 128], strides = [1, 1]} : vector<16x128xbf16> to vector<1x128xbf16>
    %c12_189 = arith.constant 12 : index
    %c0_190 = arith.constant 0 : index
    %c0_191 = arith.constant 0 : index
    %240 = vector.load %arg6[%c12_189, %c0_190, %c0_191] : memref<16x128x512xbf16, #tpu.memory_space<vmem>>, vector<1x128x512xbf16>
    %241 = vector.shape_cast %240 : vector<1x128x512xbf16> to vector<128x512xbf16>
    %cst_192 = arith.constant dense<0.000000e+00> : vector<1x512xf32>
    %242 = tpu.matmul %239, %241, %cst_192 {dimension_numbers = #tpu.dot_dimension_numbers<[1], [0], [0], [1], [0, 0, 1, 1], [], []>} : vector<1x128xbf16>, vector<128x512xbf16>, vector<1x512xf32> -> vector<1x512xf32>
    %243 = arith.addf %238, %242 : vector<1x512xf32>
    %244 = vector.extract_strided_slice %177 {offsets = [13, 0], sizes = [1, 128], strides = [1, 1]} : vector<16x128xbf16> to vector<1x128xbf16>
    %c13_193 = arith.constant 13 : index
    %c0_194 = arith.constant 0 : index
    %c0_195 = arith.constant 0 : index
    %245 = vector.load %arg6[%c13_193, %c0_194, %c0_195] : memref<16x128x512xbf16, #tpu.memory_space<vmem>>, vector<1x128x512xbf16>
    %246 = vector.shape_cast %245 : vector<1x128x512xbf16> to vector<128x512xbf16>
    %cst_196 = arith.constant dense<0.000000e+00> : vector<1x512xf32>
    %247 = tpu.matmul %244, %246, %cst_196 {dimension_numbers = #tpu.dot_dimension_numbers<[1], [0], [0], [1], [0, 0, 1, 1], [], []>} : vector<1x128xbf16>, vector<128x512xbf16>, vector<1x512xf32> -> vector<1x512xf32>
    %248 = arith.addf %243, %247 : vector<1x512xf32>
    %249 = vector.extract_strided_slice %177 {offsets = [14, 0], sizes = [1, 128], strides = [1, 1]} : vector<16x128xbf16> to vector<1x128xbf16>
    %c14_197 = arith.constant 14 : index
    %c0_198 = arith.constant 0 : index
    %c0_199 = arith.constant 0 : index
    %250 = vector.load %arg6[%c14_197, %c0_198, %c0_199] : memref<16x128x512xbf16, #tpu.memory_space<vmem>>, vector<1x128x512xbf16>
    %251 = vector.shape_cast %250 : vector<1x128x512xbf16> to vector<128x512xbf16>
    %cst_200 = arith.constant dense<0.000000e+00> : vector<1x512xf32>
    %252 = tpu.matmul %249, %251, %cst_200 {dimension_numbers = #tpu.dot_dimension_numbers<[1], [0], [0], [1], [0, 0, 1, 1], [], []>} : vector<1x128xbf16>, vector<128x512xbf16>, vector<1x512xf32> -> vector<1x512xf32>
    %253 = arith.addf %248, %252 : vector<1x512xf32>
    %254 = vector.extract_strided_slice %177 {offsets = [15, 0], sizes = [1, 128], strides = [1, 1]} : vector<16x128xbf16> to vector<1x128xbf16>
    %c15_201 = arith.constant 15 : index
    %c0_202 = arith.constant 0 : index
    %c0_203 = arith.constant 0 : index
    %255 = vector.load %arg6[%c15_201, %c0_202, %c0_203] : memref<16x128x512xbf16, #tpu.memory_space<vmem>>, vector<1x128x512xbf16>
    %256 = vector.shape_cast %255 : vector<1x128x512xbf16> to vector<128x512xbf16>
    %cst_204 = arith.constant dense<0.000000e+00> : vector<1x512xf32>
    %257 = tpu.matmul %254, %256, %cst_204 {dimension_numbers = #tpu.dot_dimension_numbers<[1], [0], [0], [1], [0, 0, 1, 1], [], []>} : vector<1x128xbf16>, vector<128x512xbf16>, vector<1x512xf32> -> vector<1x512xf32>
    %258 = arith.addf %253, %257 : vector<1x512xf32>
    %c0_205 = arith.constant 0 : index
    %c0_206 = arith.constant 0 : index
    %259 = vector.load %arg7[%c0_205, %c0_206] : memref<1x512xf32, #tpu.memory_space<vmem>>, vector<1x512xf32>
    %260 = arith.addf %258, %259 : vector<1x512xf32>
    %cst_207 = arith.constant 0.000000e+00 : f32
    %261 = vector.broadcast %cst_207 : f32 to vector<1x512xf32>
    %262 = arith.maximumf %260, %261 : vector<1x512xf32>
    %263 = arith.truncf %262 : vector<1x512xf32> to vector<1x512xbf16>
    %c0_208 = arith.constant 0 : index
    %c0_209 = arith.constant 0 : index
    %264 = vector.load %arg8[%c0_208, %c0_209] : memref<512x128xbf16, #tpu.memory_space<vmem>>, vector<512x128xbf16>
    %cst_210 = arith.constant dense<0.000000e+00> : vector<1x128xf32>
    %265 = tpu.matmul %263, %264, %cst_210 {dimension_numbers = #tpu.dot_dimension_numbers<[1], [0], [0], [1], [0, 0, 1, 1], [], []>} : vector<1x512xbf16>, vector<512x128xbf16>, vector<1x128xf32> -> vector<1x128xf32>
    %c0_211 = arith.constant 0 : index
    %c0_212 = arith.constant 0 : index
    %266 = vector.load %arg9[%c0_211, %c0_212] : memref<1x128xf32, #tpu.memory_space<vmem>>, vector<1x128xf32>
    %267 = arith.addf %265, %266 : vector<1x128xf32>
    %cst_213 = arith.constant 0.000000e+00 : f32
    %268 = vector.broadcast %cst_213 : f32 to vector<1x128xf32>
    %269 = arith.subf %268, %267 : vector<1x128xf32>
    %270 = math.exp %269 : vector<1x128xf32>
    %cst_214 = arith.constant 1.000000e+00 : f32
    %271 = vector.broadcast %cst_214 : f32 to vector<1x128xf32>
    %272 = arith.addf %271, %270 : vector<1x128xf32>
    %cst_215 = arith.constant 1.000000e+00 : f32
    %273 = vector.broadcast %cst_215 : f32 to vector<1x128xf32>
    %274 = arith.divf %273, %272 : vector<1x128xf32>
    %275 = vector.shape_cast %274 : vector<1x128xf32> to vector<1x1x128xf32>
    %c0_216 = arith.constant 0 : index
    %c0_217 = arith.constant 0 : index
    %c0_218 = arith.constant 0 : index
    %276 = vector.load %arg10[%c0_216, %c0_217, %c0_218] : memref<1x1x128xf32, #tpu.memory_space<vmem>>, vector<1x1x128xf32>
    tpu.vector_store %arg10[%c0_216, %c0_217, %c0_218], %275 {strides = array<i32>} : memref<1x1x128xf32, #tpu.memory_space<vmem>>, vector<1x1x128xf32>,
    return
  }
  func.func @transform_0(%arg0: i32) -> (i32, i32, i32) {
    %c0_i32 = arith.constant 0 : i32
    %c0_i32_0 = arith.constant 0 : i32
    %c0_i32_1 = arith.constant 0 : i32
    return %arg0, %c0_i32, %c0_i32_0 : i32, i32, i32
  }
  func.func @transform_1(%arg0: i32) -> (i32, i32) {
    %c0_i32 = arith.constant 0 : i32
    %c0_i32_0 = arith.constant 0 : i32
    %c0_i32_1 = arith.constant 0 : i32
    return %c0_i32, %c0_i32_0 : i32, i32
  }
  func.func @transform_2(%arg0: i32) -> (i32, i32) {
    %c0_i32 = arith.constant 0 : i32
    %c0_i32_0 = arith.constant 0 : i32
    %c0_i32_1 = arith.constant 0 : i32
    return %c0_i32, %c0_i32_0 : i32, i32
  }
  func.func @transform_3(%arg0: i32) -> (i32, i32, i32) {
    %c0_i32 = arith.constant 0 : i32
    %c0_i32_0 = arith.constant 0 : i32
    %c0_i32_1 = arith.constant 0 : i32
    %c0_i32_2 = arith.constant 0 : i32
    return %c0_i32, %c0_i32_0, %c0_i32_1 : i32, i32, i32
  }
  func.func @transform_4(%arg0: i32) -> (i32, i32) {
    %c0_i32 = arith.constant 0 : i32
    %c0_i32_0 = arith.constant 0 : i32
    %c0_i32_1 = arith.constant 0 : i32
    return %c0_i32, %c0_i32_0 : i32, i32
  }
  func.func @transform_5(%arg0: i32) -> (i32, i32, i32) {
    %c0_i32 = arith.constant 0 : i32
    %c0_i32_0 = arith.constant 0 : i32
    %c0_i32_1 = arith.constant 0 : i32
    %c0_i32_2 = arith.constant 0 : i32
    return %c0_i32, %c0_i32_0, %c0_i32_1 : i32, i32, i32
  }
  func.func @transform_6(%arg0: i32) -> (i32, i32) {
    %c0_i32 = arith.constant 0 : i32
    %c0_i32_0 = arith.constant 0 : i32
    %c0_i32_1 = arith.constant 0 : i32
    return %c0_i32, %c0_i32_0 : i32, i32
  }
  func.func @transform_7(%arg0: i32) -> (i32, i32) {
    %c0_i32 = arith.constant 0 : i32
    %c0_i32_0 = arith.constant 0 : i32
    %c0_i32_1 = arith.constant 0 : i32
    return %c0_i32, %c0_i32_0 : i32, i32
  }
  func.func @transform_8(%arg0: i32) -> (i32, i32) {
    %c0_i32 = arith.constant 0 : i32
    %c0_i32_0 = arith.constant 0 : i32
    %c0_i32_1 = arith.constant 0 : i32
    return %c0_i32, %c0_i32_0 : i32, i32
  }
  func.func @transform_9(%arg0: i32) -> (i32, i32, i32) {
    %c0_i32 = arith.constant 0 : i32
    %c0_i32_0 = arith.constant 0 : i32
    %c0_i32_1 = arith.constant 0 : i32
    return %arg0, %c0_i32, %c0_i32_0 : i32, i32, i32
  }
}

</mosaic_0001>

<bundles_post_ra>
// kernel: net_forward.1
= control target key start
LH: loop header
LB: loop body
LE: loop exit
PB: predicated region body
PF: predicated region fallthrough
CT: control target
= control target key end

     0   :  { %14 = vsyncpa [#allocation4], 0  ;;  %s30771_s0 = inlined_call_operand.vmem [shape: bf16[2,6400,32], index: 0, kind: input, shape index: {}]   ;;  %s30772_s1 = inlined_call_operand.vmem [shape: bf16[32,128], index: 1, kind: input, shape index: {}]   ;;  %s30773_s2 = inlined_call_operand.vmem [shape: f32[1,128], index: 2, kind: input, shape index: {}]   ;;  %s30774_s3 = inlined_call_operand.vmem [shape: bf16[25,128,128], index: 3, kind: input, shape index: {}]   ;;  %s30775_s4 = inlined_call_operand.vmem [shape: f32[1,128], index: 4, kind: input, shape index: {}]   ;;  %s30776_s5 = inlined_call_operand.vmem [shape: bf16[16,128,512], index: 5, kind: input, shape index: {}]   ;;  %s30777_s6 = inlined_call_operand.vmem [shape: f32[1,512], index: 6, kind: input, shape index: {}]   ;;  %s30778_s7 = inlined_call_operand.vmem [shape: bf16[512,128], index: 7, kind: input, shape index: {}]   ;;  %s30779_s8 = inlined_call_operand.vmem [shape: f32[1,128], index: 8, kind: input, shape index: {}]   ;;  %s30780_s9 = inlined_call_operand.hbm [shape: f32[2,1,128], index: 9, kind: output, shape index: {}]  }
   0x1   :  { %16 = vsyncpa [#allocation4 + $0x1], 0  ;;  %s24743_s30 = smov 0   ;;  %s24745_s10 = smov 0  }
   0x2   :  { %s24747_s11 = smov 0   ;;  %s24749_s12 = smov 0  }
   0x3 LB: > { %s24764_s13 = sadd.s32 4294967295, %s24689_s12   ;;  %s18384_s14 = sadd.s32 4294967294, %s24689_s12   ;;  %s24689_s12 = sphi %s24749_s12, %s31858_s12   ;;  %s24685_s11 = sphi %s24747_s11, %s31857_s11   ;;  %s24681_s10 = sphi %s24745_s10, %s31856_s10   ;;  %s24677_s30 = sphi %s24743_s30, %s31855_s30  }
   0x4   : > { %s24768_s15 = sadd.s32 1, %s24689_s12   ;;  %s223_s16 = sadd.s32 1, %s24685_s11 }
   0x5   : > { %s220_s17 = ssub.s32 %s24689_s12, %s24768_s15  ;;  %p233_p0 = scmp.ne.s32.totalorder %s24685_s11, %s24681_s10 }
   0x6   : > { %p221_p1 = scmp.eq.s32.totalorder %s220_s17, 0  ;;  %p234_p2 = scmp.eq.s32.totalorder %s24764_s13, 1 }
   0x7   : > { %p239_p3 = scmp.ne.s32.totalorder %s24681_s10, %s24677_s30  ;;  %p240_p4 = scmp.eq.s32.totalorder %s18384_s14, 1 }
   0x8   : > { %s24779_s18 = scalar_select %p221_p1, %s24685_s11, %s223_s16  }
   0x9   : > { %p24781_p5 = por %p234_p2, %p233_p0  ;;  %p24785_p6 = por %p240_p4, %p239_p3 }
   0xa   : > { %p18387_p7 = scmp.ge.s32.totalorder %s24689_s12, 1  ;;  %p290_p8 = scmp.lt.s32.totalorder %s24689_s12, 3 }
   0xc   : > { %p291_p9 = pnand %p18387_p7, %p290_p8 }
   0xe   : > { %294 = sbr.rel (%p291_p9) target bundleno = 3166 (0xc5e), region = 56 }
  0x15   : > { %v23209_v0 = vld [vmem:[%s30772_s1] sm:$0xff]   ;;  %p325_p10 = scmp.lt.s32.totalorder %s24764_s13, 1  ;;  %v23210_v1 = vld [vmem:[%s30772_s1 + $0x8] sm:$0xff]   ;;  %vm1054_vm0 = vcmask 261120   ;;  %s323_s14 = sand.u32 1, %s24681_s10  }
  0x16   : > { %21556 = vmatprep.subr.bf16.mxu0 %v23209_v0  ;;  %22972 = vmatprep.subr.bf16.mxu1 %v23209_v0  ;;  %s20801_s16 = sshll.u32 %s24764_s13, 4  ;;  %s324_s17 = scalar_lea.vmem [#allocation3], %s323_s14 }
  0x17   : > { %s326_s25 = scalar_select %p325_p10, %s24764_s13, 1  ;;  %21557 = vmatpush3.bf16.msra.mxu0 %v23209_v0  ;;  %22974 = vmatpush3.bf16.msra.mxu1 %v23209_v0 }
  0x18   : > { %21558 = vmatprep.subr.bf16.mxu0 %v23210_v1  ;;  %22973 = vmatprep.subr.bf16.mxu1 %v23210_v1  ;;  %s18329_s21 = sshll.u32 %s324_s17, 4  ;;  %s18317_s24 = scalar_lea.sflag [#allocation4], %s323_s14  ;;  %s30731_s21 = int_to_ptr.vmem [resolvable:$true] %s18329_s21 }
  0x19   : > { %s23168_s26 = smul.u32 3200, %s326_s25  ;;  %s24627_s25 = scalar_lea.vmem %s30731_s21, 16 }
  0x1a   : > { %p24628_p11 = scmp.ne.s32.totalorder %s30731_s21, %s24627_s25  ;;  %s24692_s13 = smov [#allocation3]  }
  0x1b   : > { %s24802_s29 = scalar_lea.vmem %s30771_s0, %s23168_s26  ;;  %21559 = vmatpush3.bf16.msra.mxu0 %v23210_v1  ;;  %22975 = vmatpush3.bf16.msra.mxu1 %v23210_v1  ;;  %s24631_s26 = sshll.u32 %s24692_s13, 4  ;;  %s24632_s26 = int_to_ptr.vmem [resolvable:$false] %s24631_s26 }
  0x1c   : > { %v23211_v2 = vld [vmem:[%s24802_s29] sm:$0xff]   ;;  %21964 = vmatprep.subr.bf16.mxu0 %v23209_v0  ;;  %21760 = vmatprep.subr.bf16.mxu1 %v23209_v0  ;;  %v23213_v4 = vld [vmem:[%s24802_s29 + $0x8] sm:$0xff]   ;;  %v23215_v6 = vld [vmem:[%s24802_s29 + $0x10] sm:$0xff]   ;;  %p24629_p12 = pnand %p24628_p11, %p24781_p5  ;;  %s24633_s27 = scalar_lea.vmem %s24632_s26, 32 }
  0x1d   : > { %v23212_v3 = vld [vmem:[%s24802_s29 + $0x300] sm:$0xff]   ;;  %21560 = vmatprep.mubr.msk.bf16.mxu0 %vm1054_vm0, %v23211_v2  ;;  %v23214_v5 = vld [vmem:[%s24802_s29 + $0x308] sm:$0xff]   ;;  %v23216_v7 = vld [vmem:[%s24802_s29 + $0x310] sm:$0xff]   ;;  %p24634_p0 = scmp.lt.s32.totalorder %s30731_s21, %s24632_s26  ;;  %p24635_p1 = scmp.lt.s32.totalorder %s24633_s27, %s24627_s25 }
  0x1e   : > { %21752 = vmatprep.mubr.msk.bf16.mxu1 %vm1054_vm0, %v23212_v3  ;;  %21561 = vmatmul.mubr.msk.bf16.vlgmr.msra.gmra.mrb[0].mxu0 %vm1054_vm0, %v23213_v4  ;;  %v23217_v8 = vld [vmem:[%s24802_s29 + $0x18] sm:$0xff]   ;;  %v23219_v10 = vld [vmem:[%s24802_s29 + $0x20] sm:$0xff]   ;;  %v23221_v12 = vld [vmem:[%s24802_s29 + $0x28] sm:$0xff]   ;;  %p24630_p13 = pneg %p24629_p12 }
  0x1f   : > { %21753 = vmatmul.mubr.msk.bf16.vlgmr.msra.gmra.mrb[0].mxu1 %vm1054_vm0, %v23214_v5  ;;  %21965 = vmatpush3.bf16.msra.mxu0 %v23209_v0  ;;  %v23218_v9 = vld [vmem:[%s24802_s29 + $0x318] sm:$0xff]   ;;  %v23220_v11 = vld [vmem:[%s24802_s29 + $0x320] sm:$0xff]   ;;  %v23222_v13 = vld [vmem:[%s24802_s29 + $0x328] sm:$0xff]   ;;  %p24636_p2 = por %p24635_p1, %p24634_p0 }
  0x20   : > { %21564 = vmatprep.mubr.msk.bf16.mxu0 %vm1054_vm0, %v23215_v6  ;;  %21761 = vmatpush3.bf16.msra.mxu1 %v23209_v0  ;;  %v23223_v14 = vld [vmem:[%s24802_s29 + $0x30] sm:$0xff]   ;;  %v23225_v16 = vld [vmem:[%s24802_s29 + $0x38] sm:$0xff]   ;;  %v23227_v18 = vld [vmem:[%s24802_s29 + $0x40] sm:$0xff]  }
  0x21   : > { %21756 = vmatprep.mubr.msk.bf16.mxu1 %vm1054_vm0, %v23216_v7  ;;  %21762 = vmatprep.subr.bf16.mxu1 %v23210_v1  ;;  %v23224_v15 = vld [vmem:[%s24802_s29 + $0x330] sm:$0xff]   ;;  %v23226_v17 = vld [vmem:[%s24802_s29 + $0x338] sm:$0xff]   ;;  %v23228_v19 = vld [vmem:[%s24802_s29 + $0x340] sm:$0xff]   ;;  %p24637_p3 = pnand %p24636_p2, %p24630_p13 }
  0x22   : > { %21966 = vmatprep.subr.bf16.mxu0 %v23210_v1  ;;  %v23229_v20 = vld [vmem:[%s24802_s29 + $0x48] sm:$0xff]   ;;  %v23231_v22 = vld [vmem:[%s24802_s29 + $0x50] sm:$0xff]   ;;  %v23233_v24 = vld [vmem:[%s24802_s29 + $0x58] sm:$0xff]  }
  0x23   : > { %21967 = vmatpush3.bf16.msra.mxu0 %v23210_v1  ;;  %v23230_v21 = vld [vmem:[%s24802_s29 + $0x348] sm:$0xff]   ;;  %v23232_v23 = vld [vmem:[%s24802_s29 + $0x350] sm:$0xff]   ;;  %v23234_v25 = vld [vmem:[%s24802_s29 + $0x358] sm:$0xff]  }
  0x24   : > { %21763 = vmatpush3.bf16.msra.mxu1 %v23210_v1  ;;  %v23235_v26 = vld [vmem:[%s24802_s29 + $0x60] sm:$0xff]   ;;  %v23237_v28 = vld [vmem:[%s24802_s29 + $0x68] sm:$0xff]   ;;  %v23239_v30 = vld [vmem:[%s24802_s29 + $0x70] sm:$0xff]  }
  0x25   : > { %22168 = vmatprep.subr.bf16.mxu1 %v23209_v0  ;;  %v23236_v27 = vld [vmem:[%s24802_s29 + $0x360] sm:$0xff]   ;;  %v23238_v29 = vld [vmem:[%s24802_s29 + $0x368] sm:$0xff]   ;;  %v23240_v31 = vld [vmem:[%s24802_s29 + $0x370] sm:$0xff]  }
  0x26   : > { %21565 = vmatmul.mubr.msk.bf16.gmra.mrb[4].mxu0 %vm1054_vm0, %v23217_v8  ;;  %v23241_v32 = vld [vmem:[%s24802_s29 + $0x78] sm:$0xff]   ;;  %v23243_v34 = vld [vmem:[%s24802_s29 + $0x80] sm:$0xff]   ;;  %v23245_v36 = vld [vmem:[%s24802_s29 + $0x88] sm:$0xff]  }
  0x27   : > { %21757 = vmatmul.mubr.msk.bf16.gmra.mrb[4].mxu1 %vm1054_vm0, %v23218_v9  ;;  %21568 = vmatprep.mubr.msk.bf16.mxu0 %vm1054_vm0, %v23219_v10  ;;  %v23242_v33 = vld [vmem:[%s24802_s29 + $0x378] sm:$0xff]   ;;  %v23244_v35 = vld [vmem:[%s24802_s29 + $0x380] sm:$0xff]   ;;  %v23246_v37 = vld [vmem:[%s24802_s29 + $0x388] sm:$0xff]  }
  0x28   : > { %21764 = vmatprep.mubr.msk.bf16.mxu1 %vm1054_vm0, %v23220_v11  ;;  %v23247_v38 = vld [vmem:[%s24802_s29 + $0x90] sm:$0xff]   ;;  %v23249_v40 = vld [vmem:[%s24802_s29 + $0x98] sm:$0xff]   ;;  %v23251_v42 = vld [vmem:[%s24802_s29 + $0xa0] sm:$0xff]  }
  0x29   : > { %v23248_v39 = vld [vmem:[%s24802_s29 + $0x390] sm:$0xff]   ;;  %v23250_v41 = vld [vmem:[%s24802_s29 + $0x398] sm:$0xff]   ;;  %v23252_v43 = vld [vmem:[%s24802_s29 + $0x3a0] sm:$0xff]  }
  0x2a   : > { %v23253_v44 = vld [vmem:[%s24802_s29 + $0xa8] sm:$0xff]   ;;  %v23255_v46 = vld [vmem:[%s24802_s29 + $0xb0] sm:$0xff]   ;;  %v23257_v48 = vld [vmem:[%s24802_s29 + $0xb8] sm:$0xff]  }
  0x2b   : > { %v23254_v45 = vld [vmem:[%s24802_s29 + $0x3a8] sm:$0xff]   ;;  %v23256_v47 = vld [vmem:[%s24802_s29 + $0x3b0] sm:$0xff]   ;;  %v23258_v49 = vld [vmem:[%s24802_s29 + $0x3b8] sm:$0xff]  }
  0x2c   : > { %v23259_v50 = vld [vmem:[%s24802_s29 + $0xc0] sm:$0xff]   ;;  %v23261_v52 = vld [vmem:[%s24802_s29 + $0xc8] sm:$0xff]   ;;  %v23263_v54 = vld [vmem:[%s24802_s29 + $0xd0] sm:$0xff]  }
  0x2d   : > { %v23260_v51 = vld [vmem:[%s24802_s29 + $0x3c0] sm:$0xff]   ;;  %v23262_v53 = vld [vmem:[%s24802_s29 + $0x3c8] sm:$0xff]   ;;  %v23264_v55 = vld [vmem:[%s24802_s29 + $0x3d0] sm:$0xff]  }
  0x2e   : > { %21569 = vmatmul.mubr.msk.bf16.gmra.mrb[8].mxu0 %vm1054_vm0, %v23221_v12  ;;  %v23265_v56 = vld [vmem:[%s24802_s29 + $0xd8] sm:$0xff]   ;;  %v23267_v58 = vld [vmem:[%s24802_s29 + $0xe0] sm:$0xff]   ;;  %v23269_v60 = vld [vmem:[%s24802_s29 + $0xe8] sm:$0xff]  }
  0x2f   : > { %21765 = vmatmul.mubr.msk.bf16.vlgmr.msra.gmra.mrb[8].mxu1 %vm1054_vm0, %v23222_v13  ;;  %21572 = vmatprep.mubr.msk.bf16.mxu0 %vm1054_vm0, %v23223_v14  ;;  %v23266_v57 = vld [vmem:[%s24802_s29 + $0x3d8] sm:$0xff]   ;;  %v23268_v59 = vld [vmem:[%s24802_s29 + $0x3e0] sm:$0xff]   ;;  %v23270_v61 = vld [vmem:[%s24802_s29 + $0x3e8] sm:$0xff]  }
  0x30   : > { %21768 = vmatprep.mubr.msk.bf16.mxu1 %vm1054_vm0, %v23224_v15  ;;  %22169 = vmatpush3.bf16.msra.mxu1 %v23209_v0  ;;  %v23271_v62 = vld [vmem:[%s24802_s29 + $0xf0] sm:$0xff]   ;;  %v23273_v0 = vld [vmem:[%s24802_s29 + $0xf8] sm:$0xff]   ;;  %v23275_v2 = vld [vmem:[%s24802_s29 + $0x100] sm:$0xff]  }
  0x31   : > { %22170 = vmatprep.subr.bf16.mxu1 %v23210_v1  ;;  %v23272_v63 = vld [vmem:[%s24802_s29 + $0x3f0] sm:$0xff]   ;;  %v23276_v3 = vld [vmem:[%s24802_s29 + $0x400] sm:$0xff]   ;;  %v23277_v4 = vld [vmem:[%s24802_s29 + $0x108] sm:$0xff]  }
  0x32   : > { %v23278_v5 = vld [vmem:[%s24802_s29 + $0x408] sm:$0xff]   ;;  %v23279_v6 = vld [vmem:[%s24802_s29 + $0x110] sm:$0xff]   ;;  %v23281_v8 = vld [vmem:[%s24802_s29 + $0x118] sm:$0xff]  }
  0x33   : > { %v23280_v7 = vld [vmem:[%s24802_s29 + $0x410] sm:$0xff]   ;;  %v23282_v9 = vld [vmem:[%s24802_s29 + $0x418] sm:$0xff]   ;;  %v23283_v10 = vld [vmem:[%s24802_s29 + $0x120] sm:$0xff]  }
  0x34   : > { %22171 = vmatpush3.bf16.msra.mxu1 %v23210_v1  ;;  %v23274_v1 = vld [vmem:[%s24802_s29 + $0x3f8] sm:$0xff]   ;;  %v23284_v11 = vld [vmem:[%s24802_s29 + $0x420] sm:$0xff]   ;;  %v23285_v12 = vld [vmem:[%s24802_s29 + $0x128] sm:$0xff]  }
  0x35   : > { %v23286_v13 = vld [vmem:[%s24802_s29 + $0x428] sm:$0xff]   ;;  %v23287_v14 = vld [vmem:[%s24802_s29 + $0x130] sm:$0xff]  }
  0x36   : > { %21573 = vmatmul.mubr.msk.bf16.gmra.mrb[12].mxu0 %vm1054_vm0, %v23225_v16  ;;  %v23288_v15 = vld [vmem:[%s24802_s29 + $0x430] sm:$0xff]   ;;  %v23289_v16 = vld [vmem:[%s24802_s29 + $0x138] sm:$0xff]  }
  0x37   : > { %21769 = vmatmul.mubr.msk.bf16.gmra.mrb[12].mxu1 %vm1054_vm0, %v23226_v17  ;;  %21576 = vmatprep.mubr.msk.bf16.mxu0 %vm1054_vm0, %v23227_v18  ;;  %v23290_v17 = vld [vmem:[%s24802_s29 + $0x438] sm:$0xff]   ;;  %v23291_v18 = vld [vmem:[%s24802_s29 + $0x140] sm:$0xff]  }
  0x38   : > { %21772 = vmatprep.mubr.msk.bf16.mxu1 %vm1054_vm0, %v23228_v19  ;;  %v23292_v19 = vld [vmem:[%s24802_s29 + $0x440] sm:$0xff]  }
  0x3e   : > { %21577 = vmatmul.mubr.msk.bf16.gmra.mrb[16].mxu0 %vm1054_vm0, %v23229_v20  ;;  %v23293_v20 = vld [vmem:[%s24802_s29 + $0x148] sm:$0xff]  }
  0x3f   : > { %21773 = vmatmul.mubr.msk.bf16.gmra.mrb[16].mxu1 %vm1054_vm0, %v23230_v21  ;;  %21580 = vmatprep.mubr.msk.bf16.mxu0 %vm1054_vm0, %v23231_v22  ;;  %v23294_v21 = vld [vmem:[%s24802_s29 + $0x448] sm:$0xff]   ;;  %v23295_v22 = vld [vmem:[%s24802_s29 + $0x150] sm:$0xff]  }
  0x40   : > { %21776 = vmatprep.mubr.msk.bf16.mxu1 %vm1054_vm0, %v23232_v23  ;;  %v23296_v23 = vld [vmem:[%s24802_s29 + $0x450] sm:$0xff]  }
  0x46   : > { %21581 = vmatmul.mubr.msk.bf16.gmra.mrb[20].mxu0 %vm1054_vm0, %v23233_v24  ;;  %v23297_v24 = vld [vmem:[%s24802_s29 + $0x158] sm:$0xff]  }
  0x47   : > { %21777 = vmatmul.mubr.msk.bf16.gmra.mrb[20].mxu1 %vm1054_vm0, %v23234_v25  ;;  %21584 = vmatprep.mubr.msk.bf16.mxu0 %vm1054_vm0, %v23235_v26  ;;  %v23298_v25 = vld [vmem:[%s24802_s29 + $0x458] sm:$0xff]   ;;  %v23299_v26 = vld [vmem:[%s24802_s29 + $0x160] sm:$0xff]  }
  0x48   : > { %21780 = vmatprep.mubr.msk.bf16.mxu1 %vm1054_vm0, %v23236_v27  ;;  %v23300_v27 = vld [vmem:[%s24802_s29 + $0x460] sm:$0xff]  }
  0x4e   : > { %21585 = vmatmul.mubr.msk.bf16.gmra.mrb[24].mxu0 %vm1054_vm0, %v23237_v28  ;;  %v23301_v28 = vld [vmem:[%s24802_s29 + $0x168] sm:$0xff]  }
  0x4f   : > { %21781 = vmatmul.mubr.msk.bf16.gmra.mrb[24].mxu1 %vm1054_vm0, %v23238_v29  ;;  %21588 = vmatprep.mubr.msk.bf16.mxu0 %vm1054_vm0, %v23239_v30  ;;  %v23302_v29 = vld [vmem:[%s24802_s29 + $0x468] sm:$0xff]   ;;  %v23303_v30 = vld [vmem:[%s24802_s29 + $0x170] sm:$0xff]  }
  0x50   : > { %21784 = vmatprep.mubr.msk.bf16.mxu1 %vm1054_vm0, %v23240_v31  ;;  %v23304_v31 = vld [vmem:[%s24802_s29 + $0x470] sm:$0xff]  }
  0x56   : > { %21589 = vmatmul.mubr.msk.bf16.gmra.mrb[28].mxu0 %vm1054_vm0, %v23241_v32  ;;  %v23305_v32 = vld [vmem:[%s24802_s29 + $0x178] sm:$0xff]  }
  0x57   : > { %21785 = vmatmul.mubr.msk.bf16.gmra.mrb[28].mxu1 %vm1054_vm0, %v23242_v33  ;;  %21592 = vmatprep.mubr.msk.bf16.mxu0 %vm1054_vm0, %v23243_v34  ;;  %v23306_v33 = vld [vmem:[%s24802_s29 + $0x478] sm:$0xff]   ;;  %v23307_v34 = vld [vmem:[%s24802_s29 + $0x180] sm:$0xff]  }
  0x58   : > { %21788 = vmatprep.mubr.msk.bf16.mxu1 %vm1054_vm0, %v23244_v35  ;;  %v23308_v35 = vld [vmem:[%s24802_s29 + $0x480] sm:$0xff]  }
  0x5e   : > { %21593 = vmatmul.mubr.msk.bf16.gmra.mrb[32].mxu0 %vm1054_vm0, %v23245_v36  ;;  %v23309_v36 = vld [vmem:[%s24802_s29 + $0x188] sm:$0xff]  }
  0x5f   : > { %21789 = vmatmul.mubr.msk.bf16.gmra.mrb[32].mxu1 %vm1054_vm0, %v23246_v37  ;;  %21596 = vmatprep.mubr.msk.bf16.mxu0 %vm1054_vm0, %v23247_v38  ;;  %v23310_v37 = vld [vmem:[%s24802_s29 + $0x488] sm:$0xff]   ;;  %v23311_v38 = vld [vmem:[%s24802_s29 + $0x190] sm:$0xff]  }
  0x60   : > { %21792 = vmatprep.mubr.msk.bf16.mxu1 %vm1054_vm0, %v23248_v39  ;;  %v23312_v39 = vld [vmem:[%s24802_s29 + $0x490] sm:$0xff]  }
  0x66   : > { %21597 = vmatmul.mubr.msk.bf16.gmra.mrb[36].mxu0 %vm1054_vm0, %v23249_v40  ;;  %v23313_v40 = vld [vmem:[%s24802_s29 + $0x198] sm:$0xff]  }
  0x67   : > { %21793 = vmatmul.mubr.msk.bf16.gmra.mrb[36].mxu1 %vm1054_vm0, %v23250_v41  ;;  %21600 = vmatprep.mubr.msk.bf16.mxu0 %vm1054_vm0, %v23251_v42  ;;  %v23314_v41 = vld [vmem:[%s24802_s29 + $0x498] sm:$0xff]   ;;  %v23315_v42 = vld [vmem:[%s24802_s29 + $0x1a0] sm:$0xff]  }
  0x68   : > { %21796 = vmatprep.mubr.msk.bf16.mxu1 %vm1054_vm0, %v23252_v43  ;;  %v23316_v43 = vld [vmem:[%s24802_s29 + $0x4a0] sm:$0xff]  }
  0x6e   : > { %21601 = vmatmul.mubr.msk.bf16.gmra.mrb[40].mxu0 %vm1054_vm0, %v23253_v44  ;;  %v23317_v44 = vld [vmem:[%s24802_s29 + $0x1a8] sm:$0xff]  }
  0x6f   : > { %21797 = vmatmul.mubr.msk.bf16.gmra.mrb[40].mxu1 %vm1054_vm0, %v23254_v45  ;;  %21604 = vmatprep.mubr.msk.bf16.mxu0 %vm1054_vm0, %v23255_v46  ;;  %v23318_v45 = vld [vmem:[%s24802_s29 + $0x4a8] sm:$0xff]   ;;  %v23319_v46 = vld [vmem:[%s24802_s29 + $0x1b0] sm:$0xff]  }
  0x70   : > { %21800 = vmatprep.mubr.msk.bf16.mxu1 %vm1054_vm0, %v23256_v47  ;;  %v23320_v47 = vld [vmem:[%s24802_s29 + $0x4b0] sm:$0xff]  }
  0x76   : > { %21605 = vmatmul.mubr.msk.bf16.gmra.mrb[44].mxu0 %vm1054_vm0, %v23257_v48  ;;  %v25023_v48 = vld [vmem:[%s30773_s2] ss:$0 sm:$0xff] }
  0x77   : > { %21801 = vmatmul.mubr.msk.bf16.gmra.mrb[44].mxu1 %vm1054_vm0, %v23258_v49  ;;  %21608 = vmatprep.mubr.msk.bf16.mxu0 %vm1054_vm0, %v23259_v50  ;;  %v23321_v49 = vld [vmem:[%s24802_s29 + $0x1b8] sm:$0xff]  }
  0x78   : > { %21804 = vmatprep.mubr.msk.bf16.mxu1 %vm1054_vm0, %v23260_v51  ;;  %v23322_v51 = vld [vmem:[%s24802_s29 + $0x4b8] sm:$0xff]  }
  0x7e   : > { %21609 = vmatmul.mubr.msk.bf16.gmra.mrb[48].mxu0 %vm1054_vm0, %v23261_v52  ;;  %v23323_v52 = vld [vmem:[%s24802_s29 + $0x1c0] sm:$0xff]  }
  0x7f   : > { %21805 = vmatmul.mubr.msk.bf16.gmra.mrb[48].mxu1 %vm1054_vm0, %v23262_v53  ;;  %21612 = vmatprep.mubr.msk.bf16.mxu0 %vm1054_vm0, %v23263_v54 }
  0x80   : > { %21808 = vmatprep.mubr.msk.bf16.mxu1 %vm1054_vm0, %v23264_v55 }
  0x86   : > { %21613 = vmatmul.mubr.msk.bf16.gmra.mrb[52].mxu0 %vm1054_vm0, %v23265_v56 }
  0x87   : > { %21809 = vmatmul.mubr.msk.bf16.gmra.mrb[52].mxu1 %vm1054_vm0, %v23266_v57  ;;  %21616 = vmatprep.mubr.msk.bf16.mxu0 %vm1054_vm0, %v23267_v58 }
  0x88   : > { %21812 = vmatprep.mubr.msk.bf16.mxu1 %vm1054_vm0, %v23268_v59 }
  0x8e   : > { %21617 = vmatmul.mubr.msk.bf16.gmra.mrb[56].mxu0 %vm1054_vm0, %v23269_v60 }
  0x8f   : > { %21813 = vmatmul.mubr.msk.bf16.gmra.mrb[56].mxu1 %vm1054_vm0, %v23270_v61  ;;  %21620 = vmatprep.mubr.msk.bf16.mxu0 %vm1054_vm0, %v23271_v62 }
  0x90   : > { %21816 = vmatprep.mubr.msk.bf16.mxu1 %vm1054_vm0, %v23272_v63 }
  0x96   : > { %21621 = vmatmul.mubr.msk.bf16.gmra.mrb[60].mxu0 %vm1054_vm0, %v23273_v0 }
  0x97   : > { %21817 = vmatmul.mubr.msk.bf16.gmra.mrb[60].mxu1 %vm1054_vm0, %v23274_v1  ;;  %21624 = vmatprep.mubr.msk.bf16.mxu0 %vm1054_vm0, %v23275_v2  ;;  %v23324_v1 = vld [vmem:[%s24802_s29 + $0x4c0] sm:$0xff]  }
  0x98   : > { %21820 = vmatprep.mubr.msk.bf16.mxu1 %vm1054_vm0, %v23276_v3 }
  0x9e   : > { %21625 = vmatmul.mubr.msk.bf16.gmra.mrb[64].mxu0 %vm1054_vm0, %v23277_v4 }
  0x9f   : > { %21821 = vmatmul.mubr.msk.bf16.gmra.mrb[64].mxu1 %vm1054_vm0, %v23278_v5  ;;  %21628 = vmatprep.mubr.msk.bf16.mxu0 %vm1054_vm0, %v23279_v6 }
  0xa0   : > { %21824 = vmatprep.mubr.msk.bf16.mxu1 %vm1054_vm0, %v23280_v7 }
  0xa6   : > { %21629 = vmatmul.mubr.msk.bf16.gmra.mrb[68].mxu0 %vm1054_vm0, %v23281_v8 }
  0xa7   : > { %21825 = vmatmul.mubr.msk.bf16.gmra.mrb[68].mxu1 %vm1054_vm0, %v23282_v9  ;;  %21632 = vmatprep.mubr.msk.bf16.mxu0 %vm1054_vm0, %v23283_v10 }
  0xa8   : > { %21828 = vmatprep.mubr.msk.bf16.mxu1 %vm1054_vm0, %v23284_v11 }
  0xae   : > { %21633 = vmatmul.mubr.msk.bf16.gmra.mrb[72].mxu0 %vm1054_vm0, %v23285_v12 }
  0xaf   : > { %21829 = vmatmul.mubr.msk.bf16.gmra.mrb[72].mxu1 %vm1054_vm0, %v23286_v13  ;;  %21636 = vmatprep.mubr.msk.bf16.mxu0 %vm1054_vm0, %v23287_v14  ;;  %v23325_v14 = vld [vmem:[%s24802_s29 + $0x1c8] sm:$0xff]  }
  0xb0   : > { %21832 = vmatprep.mubr.msk.bf16.mxu1 %vm1054_vm0, %v23288_v15 }
  0xb6   : > { %21637 = vmatmul.mubr.msk.bf16.gmra.mrb[76].mxu0 %vm1054_vm0, %v23289_v16 }
  0xb7   : > { %21833 = vmatmul.mubr.msk.bf16.gmra.mrb[76].mxu1 %vm1054_vm0, %v23290_v17  ;;  %21640 = vmatprep.mubr.msk.bf16.mxu0 %vm1054_vm0, %v23291_v18  ;;  %v23326_v18 = vld [vmem:[%s24802_s29 + $0x4c8] sm:$0xff]  }
  0xb8   : > { %21836 = vmatprep.mubr.msk.bf16.mxu1 %vm1054_vm0, %v23292_v19  ;;  %v23327_v19 = vld [vmem:[%s24802_s29 + $0x1d0] sm:$0xff]  }
  0xbe   : > { %21641 = vmatmul.mubr.msk.bf16.gmra.mrb[80].mxu0 %vm1054_vm0, %v23293_v20 }
  0xbf   : > { %21837 = vmatmul.mubr.msk.bf16.gmra.mrb[80].mxu1 %vm1054_vm0, %v23294_v21  ;;  %21644 = vmatprep.mubr.msk.bf16.mxu0 %vm1054_vm0, %v23295_v22 }
  0xc0   : > { %21840 = vmatprep.mubr.msk.bf16.mxu1 %vm1054_vm0, %v23296_v23 }
  0xc6   : > { %21645 = vmatmul.mubr.msk.bf16.gmra.mrb[84].mxu0 %vm1054_vm0, %v23297_v24 }
  0xc7   : > { %21841 = vmatmul.mubr.msk.bf16.gmra.mrb[84].mxu1 %vm1054_vm0, %v23298_v25  ;;  %21648 = vmatprep.mubr.msk.bf16.mxu0 %vm1054_vm0, %v23299_v26 }
  0xc8   : > { %21844 = vmatprep.mubr.msk.bf16.mxu1 %vm1054_vm0, %v23300_v27 }
  0xce   : > { %21649 = vmatmul.mubr.msk.bf16.gmra.mrb[88].mxu0 %vm1054_vm0, %v23301_v28 }
  0xcf   : > { %21845 = vmatmul.mubr.msk.bf16.gmra.mrb[88].mxu1 %vm1054_vm0, %v23302_v29  ;;  %21652 = vmatprep.mubr.msk.bf16.mxu0 %vm1054_vm0, %v23303_v30 }
  0xd0   : > { %21848 = vmatprep.mubr.msk.bf16.mxu1 %vm1054_vm0, %v23304_v31 }
  0xd6   : > { %21653 = vmatmul.mubr.msk.bf16.gmra.mrb[92].mxu0 %vm1054_vm0, %v23305_v32 }
  0xd7   : > { %21849 = vmatmul.mubr.msk.bf16.gmra.mrb[92].mxu1 %vm1054_vm0, %v23306_v33  ;;  %21656 = vmatprep.mubr.msk.bf16.mxu0 %vm1054_vm0, %v23307_v34  ;;  %v23328_v33 = vld [vmem:[%s24802_s29 + $0x4d0] sm:$0xff]  }
  0xd8   : > { %21852 = vmatprep.mubr.msk.bf16.mxu1 %vm1054_vm0, %v23308_v35 }
  0xde   : > { %21657 = vmatmul.mubr.msk.bf16.gmra.mrb[96].mxu0 %vm1054_vm0, %v23309_v36 }
  0xdf   : > { %21853 = vmatmul.mubr.msk.bf16.gmra.mrb[96].mxu1 %vm1054_vm0, %v23310_v37  ;;  %21660 = vmatprep.mubr.msk.bf16.mxu0 %vm1054_vm0, %v23311_v38 }
  0xe0   : > { %21856 = vmatprep.mubr.msk.bf16.mxu1 %vm1054_vm0, %v23312_v39 }
  0xe6   : > { %21661 = vmatmul.mubr.msk.bf16.gmra.mrb[100].mxu0 %vm1054_vm0, %v23313_v40 }
  0xe7   : > { %21857 = vmatmul.mubr.msk.bf16.gmra.mrb[100].mxu1 %vm1054_vm0, %v23314_v41  ;;  %21664 = vmatprep.mubr.msk.bf16.mxu0 %vm1054_vm0, %v23315_v42 }
  0xe8   : > { %21860 = vmatprep.mubr.msk.bf16.mxu1 %vm1054_vm0, %v23316_v43 }
  0xee   : > { %21665 = vmatmul.mubr.msk.bf16.gmra.mrb[104].mxu0 %vm1054_vm0, %v23317_v44 }
  0xef   : > { %21861 = vmatmul.mubr.msk.bf16.gmra.mrb[104].mxu1 %vm1054_vm0, %v23318_v45  ;;  %21668 = vmatprep.mubr.msk.bf16.mxu0 %vm1054_vm0, %v23319_v46  ;;  %v23329_v46 = vld [vmem:[%s24802_s29 + $0x1d8] sm:$0xff]  }
  0xf0   : > { %21864 = vmatprep.mubr.msk.bf16.mxu1 %vm1054_vm0, %v23320_v47 }
  0xf1   : > { %v21562_v50 = vpop.f32.mrb[0].mxu0 }
  0xf2   : > { %v1398_v53 = vadd.f32 %v21562_v50, %v25023_v48  ;;  %v1389_v54 = vpop.f32.mrb[1].mxu0  ;;  %v21754_v55 = vpop.f32.mrb[0].mxu1 }
  0xf3   : > { %v1390_v56 = vadd.f32 %v25023_v48, %v1389_v54  ;;  %v21563_v57 = vpop.f32.mrb[2].mxu0  ;;  %v2166_v58 = vadd.f32 %v21754_v55, %v25023_v48  ;;  %v2157_v59 = vpop.f32.mrb[1].mxu1 }
  0xf4   : > { %v2190_v60 = vmax.f32 %v1398_v53, 0.0  ;;  %v1401_v61 = vadd.f32 %v21563_v57, %v25023_v48  ;;  %v1392_v62 = vpop.f32.mrb[3].mxu0  ;;  %v2158_v63 = vadd.f32 %v25023_v48, %v2157_v59  ;;  %v21755_v0 = vpop.f32.mrb[2].mxu1 }
  0xf5   : > { %v2188_v2 = vmax.f32 %v1390_v56, 0.0  ;;  %v1393_v3 = vadd.f32 %v25023_v48, %v1392_v62  ;;  %v2382_v4 = vmax.f32 %v2166_v58, 0.0  ;;  %v2169_v5 = vadd.f32 %v21755_v0, %v25023_v48  ;;  %v2160_v6 = vpop.f32.mrb[3].mxu1 }
  0xf6   : > { %v2191_v7 = vmax.f32 %v1401_v61, 0.0  ;;  %21669 = vmatmul.mubr.msk.bf16.gmra.mrb[108].mxu0 %vm1054_vm0, %v23321_v49  ;;  %v2380_v8 = vmax.f32 %v2158_v63, 0.0  ;;  %v2161_v9 = vadd.f32 %v25023_v48, %v2160_v6 }
  0xf7   : > { %v2189_v10 = vmax.f32 %v1393_v3, 0.0  ;;  %21865 = vmatmul.mubr.msk.bf16.gmra.mrb[108].mxu1 %vm1054_vm0, %v23322_v51  ;;  %v2383_v11 = vmax.f32 %v2169_v5, 0.0  ;;  %21672 = vmatprep.mubr.msk.bf16.mxu0 %vm1054_vm0, %v23323_v52  ;;  %v23330_v51 = vld [vmem:[%s24802_s29 + $0x4d8] sm:$0xff]   ;;  %v23331_v52 = vld [vmem:[%s24802_s29 + $0x1e0] sm:$0xff]  }
  0xf8   : > { %v25044_v12 = vpack.c.bf16 %v2191_v7, %v2190_v60  ;;  %v2381_v13 = vmax.f32 %v2161_v9, 0.0  ;;  %21868 = vmatprep.mubr.msk.bf16.mxu1 %vm1054_vm0, %v23324_v1 }
  0xf9   : > { %v25048_v15 = vpack.c.bf16 %v2189_v10, %v2188_v2  ;;  %v21566_v16 = vpop.f32.mrb[4].mxu0  ;;  %v25050_v17 = vpack.c.bf16 %v2383_v11, %v2382_v4  ;;  %v23332_v2 = vld [vmem:[%s24802_s29 + $0x4e0] sm:$0xff]  }
  0xfa   : > { %v1414_v20 = vadd.f32 %v21566_v16, %v25023_v48  ;;  %v1405_v21 = vpop.f32.mrb[5].mxu0  ;;  %v25055_v22 = vpack.c.bf16 %v2381_v13, %v2380_v8  ;;  %v21758_v23 = vpop.f32.mrb[4].mxu1 }
  0xfb   : > { %31075 = vst [vmem:[#allocation6_spill] sm:$0xff] %v25050_v17  ;;  %v1406_v24 = vadd.f32 %v25023_v48, %v1405_v21  ;;  %v21567_v25 = vpop.f32.mrb[6].mxu0  ;;  %v2182_v26 = vadd.f32 %v21758_v23, %v25023_v48  ;;  %v2173_v27 = vpop.f32.mrb[5].mxu1  ;;  %v23334_v23 = vld [vmem:[%s24802_s29 + $0x4e8] sm:$0xff]   ;;  %v23562_v17 = vld [vmem:[%s24802_s29 + $0x8a0] sm:$0xff]  }
  0xfc   : > { %31076 = vst [vmem:[#allocation7_spill] sm:$0xff] %v25055_v22  ;;  %v2194_v28 = vmax.f32 %v1414_v20, 0.0  ;;  %v1417_v29 = vadd.f32 %v21567_v25, %v25023_v48  ;;  %v1408_v30 = vpop.f32.mrb[7].mxu0  ;;  %v2174_v31 = vadd.f32 %v25023_v48, %v2173_v27  ;;  %v21759_v32 = vpop.f32.mrb[6].mxu1  ;;  %v23558_v22 = vld [vmem:[%s24802_s29 + $0xb70] sm:$0xff]  }
  0xfd   : > { %v2192_v34 = vmax.f32 %v1406_v24, 0.0  ;;  %v1409_v35 = vadd.f32 %v25023_v48, %v1408_v30  ;;  %v2386_v36 = vmax.f32 %v2182_v26, 0.0  ;;  %v2185_v37 = vadd.f32 %v21759_v32, %v25023_v48  ;;  %v2176_v38 = vpop.f32.mrb[7].mxu1  ;;  %v23335_v24 = vld [vmem:[%s24802_s29 + $0x1f0] sm:$0xff]  }
  0xfe   : > { %v2195_v39 = vmax.f32 %v1417_v29, 0.0  ;;  %21673 = vmatmul.mubr.msk.bf16.gmra.mrb[112].mxu0 %vm1054_vm0, %v23325_v14  ;;  %v2384_v40 = vmax.f32 %v2174_v31, 0.0  ;;  %v2177_v41 = vadd.f32 %v25023_v48, %v2176_v38 }
  0xff   : > { %v2193_v42 = vmax.f32 %v1409_v35, 0.0  ;;  %21869 = vmatmul.mubr.msk.bf16.gmra.mrb[112].mxu1 %vm1054_vm0, %v23326_v18  ;;  %v2387_v43 = vmax.f32 %v2185_v37, 0.0  ;;  %21676 = vmatprep.mubr.msk.bf16.mxu0 %vm1054_vm0, %v23327_v19  ;;  %v23333_v18 = vld [vmem:[%s24802_s29 + $0x1e8] sm:$0xff]  }
 0x100   : > { %v25068_v44 = vpack.c.bf16 %v2195_v39, %v2194_v28  ;;  %v2385_v45 = vmax.f32 %v2177_v41, 0.0  ;;  %21872 = vmatprep.mubr.msk.bf16.mxu1 %vm1054_vm0, %v23328_v33  ;;  %v23336_v39 = vld [vmem:[%s24802_s29 + $0x4f0] sm:$0xff]  }
 0x101   : > { %v25072_v47 = vpack.c.bf16 %v2193_v42, %v2192_v34  ;;  %v25074_v49 = vpack.c.bf16 %v2387_v43, %v2386_v36  ;;  %v21570_v50 = vpop.f32.mrb[8].mxu0 }
 0x102   : > { %v25078_v53 = vpack.c.bf16 %v2385_v45, %v2384_v40  ;;  %v1430_v54 = vadd.f32 %v21570_v50, %v25023_v48  ;;  %v21766_v55 = vpop.f32.mrb[8].mxu1  ;;  %v1421_v56 = vpop.f32.mrb[9].mxu0 }
 0x103   : > { %31077 = vst [vmem:[#allocation8_spill] sm:$0xff] %v25074_v49  ;;  %v3631_v57 = vadd.f32 %v21766_v55, %v25023_v48  ;;  %v1422_v58 = vadd.f32 %v25023_v48, %v1421_v56  ;;  %v3622_v59 = vpop.f32.mrb[9].mxu1  ;;  %v21571_v60 = vpop.f32.mrb[10].mxu0  ;;  %v23557_v49 = vld [vmem:[%s24802_s29 + $0x890] sm:$0xff]  }
 0x104   : > { %31078 = vst [vmem:[#allocation9_spill] sm:$0xff] %v25078_v53  ;;  %v2198_v61 = vmax.f32 %v1430_v54, 0.0  ;;  %v3623_v62 = vadd.f32 %v25023_v48, %v3622_v59  ;;  %v1433_v63 = vadd.f32 %v21571_v60, %v25023_v48  ;;  %v21767_v0 = vpop.f32.mrb[10].mxu1  ;;  %v1424_v1 = vpop.f32.mrb[11].mxu0  ;;  %v23554_v53 = vld [vmem:[%s24802_s29 + $0xb60] sm:$0xff]  }
 0x105   : > { %v4423_v3 = vmax.f32 %v3631_v57, 0.0  ;;  %v2196_v4 = vmax.f32 %v1422_v58, 0.0  ;;  %v3634_v5 = vadd.f32 %v21767_v0, %v25023_v48  ;;  %v1425_v6 = vadd.f32 %v25023_v48, %v1424_v1  ;;  %v3625_v7 = vpop.f32.mrb[11].mxu1  ;;  %v23337_v58 = vld [vmem:[%s24802_s29 + $0x1f8] sm:$0xff]  }
 0x106   : > { %v4421_v8 = vmax.f32 %v3623_v62, 0.0  ;;  %v2199_v9 = vmax.f32 %v1433_v63, 0.0  ;;  %v3626_v10 = vadd.f32 %v25023_v48, %v3625_v7  ;;  %21677 = vmatmul.mubr.msk.bf16.gmra.mrb[116].mxu0 %vm1054_vm0, %v23329_v46  ;;  %v23338_v62 = vld [vmem:[%s24802_s29 + $0x4f8] sm:$0xff]   ;;  %v23339_v63 = vld [vmem:[%s24802_s29 + $0x200] sm:$0xff]  }
 0x107   : > { %v4424_v11 = vmax.f32 %v3634_v5, 0.0  ;;  %v2197_v13 = vmax.f32 %v1425_v6, 0.0  ;;  %21873 = vmatmul.mubr.msk.bf16.gmra.mrb[116].mxu1 %vm1054_vm0, %v23330_v51  ;;  %21680 = vmatprep.mubr.msk.bf16.mxu0 %vm1054_vm0, %v23331_v52 }
 0x108   : > { %v25092_v14 = vpack.c.bf16 %v2199_v9, %v2198_v61  ;;  %v4422_v16 = vmax.f32 %v3626_v10, 0.0  ;;  %21876 = vmatprep.mubr.msk.bf16.mxu1 %vm1054_vm0, %v23332_v2 }
 0x109   : > { %v25096_v19 = vpack.c.bf16 %v4424_v11, %v4423_v3  ;;  %v25098_v20 = vpack.c.bf16 %v2197_v13, %v2196_v4  ;;  %v21574_v21 = vpop.f32.mrb[12].mxu0 }
 0x10a   : > { %v25102_v25 = vpack.c.bf16 %v4422_v16, %v4421_v8  ;;  %v1446_v26 = vadd.f32 %v21574_v21, %v25023_v48  ;;  %v21770_v27 = vpop.f32.mrb[12].mxu1  ;;  %v1437_v28 = vpop.f32.mrb[13].mxu0 }
 0x10b   : > { %v3647_v29 = vadd.f32 %v21770_v27, %v25023_v48  ;;  %v1438_v30 = vadd.f32 %v25023_v48, %v1437_v28  ;;  %v3638_v31 = vpop.f32.mrb[13].mxu1  ;;  %v21575_v32 = vpop.f32.mrb[14].mxu0 }
 0x10c   : > { %v2202_v34 = vmax.f32 %v1446_v26, 0.0  ;;  %v3639_v35 = vadd.f32 %v25023_v48, %v3638_v31  ;;  %v1449_v36 = vadd.f32 %v21575_v32, %v25023_v48  ;;  %v21771_v37 = vpop.f32.mrb[14].mxu1  ;;  %v1440_v38 = vpop.f32.mrb[15].mxu0 }
 0x10d   : > { %v4427_v41 = vmax.f32 %v3647_v29, 0.0  ;;  %v2200_v42 = vmax.f32 %v1438_v30, 0.0  ;;  %v3650_v43 = vadd.f32 %v21771_v37, %v25023_v48  ;;  %v1441_v45 = vadd.f32 %v25023_v48, %v1440_v38  ;;  %v3641_v46 = vpop.f32.mrb[15].mxu1  ;;  %v23341_v37 = vld [vmem:[%s24802_s29 + $0x208] sm:$0xff]  }
 0x10e   : > { %v4425_v50 = vmax.f32 %v3639_v35, 0.0  ;;  %v2203_v51 = vmax.f32 %v1449_v36, 0.0  ;;  %v3642_v52 = vadd.f32 %v25023_v48, %v3641_v46  ;;  %21681 = vmatmul.mubr.msk.bf16.gmra.mrb[120].mxu0 %vm1054_vm0, %v23333_v18  ;;  %v23340_v18 = vld [vmem:[%s24802_s29 + $0x500] sm:$0xff]  }
 0x10f   : > { %v4428_v54 = vmax.f32 %v3650_v43, 0.0  ;;  %v2201_v55 = vmax.f32 %v1441_v45, 0.0  ;;  %21877 = vmatmul.mubr.msk.bf16.gmra.mrb[120].mxu1 %vm1054_vm0, %v23334_v23  ;;  %21684 = vmatprep.mubr.msk.bf16.mxu0 %vm1054_vm0, %v23335_v24  ;;  %v23343_v43 = vld [vmem:[%s24802_s29 + $0x210] sm:$0xff]  }
 0x110   : > { %v25120_v56 = vpack.c.bf16 %v2203_v51, %v2202_v34  ;;  %v4426_v57 = vmax.f32 %v3642_v52, 0.0  ;;  %21880 = vmatprep.mubr.msk.bf16.mxu1 %vm1054_vm0, %v23336_v39 }
 0x111   : > { %v25124_v59 = vpack.c.bf16 %v4428_v54, %v4427_v41  ;;  %v25126_v60 = vpack.c.bf16 %v2201_v55, %v2200_v42  ;;  %v21578_v61 = vpop.f32.mrb[16].mxu0  ;;  %v23342_v42 = vld [vmem:[%s24802_s29 + $0x508] sm:$0xff]  }
 0x112   : > { %v25130_v0 = vpack.c.bf16 %v4426_v57, %v4425_v50  ;;  %v1462_v1 = vadd.f32 %v21578_v61, %v25023_v48  ;;  %v21774_v2 = vpop.f32.mrb[16].mxu1  ;;  %v1453_v3 = vpop.f32.mrb[17].mxu0 }
 0x113   : > { %v3663_v4 = vadd.f32 %v21774_v2, %v25023_v48  ;;  %v1454_v5 = vadd.f32 %v25023_v48, %v1453_v3  ;;  %v3654_v6 = vpop.f32.mrb[17].mxu1  ;;  %v21579_v7 = vpop.f32.mrb[18].mxu0  ;;  %v23344_v3 = vld [vmem:[%s24802_s29 + $0x510] sm:$0xff]  }
 0x114   : > { %v2206_v9 = vmax.f32 %v1462_v1, 0.0  ;;  %v3655_v10 = vadd.f32 %v25023_v48, %v3654_v6  ;;  %v1465_v11 = vadd.f32 %v21579_v7, %v25023_v48  ;;  %v21775_v13 = vpop.f32.mrb[18].mxu1  ;;  %v1456_v16 = vpop.f32.mrb[19].mxu0 }
 0x115   : > { %v4431_v23 = vmax.f32 %v3663_v4, 0.0  ;;  %v2204_v24 = vmax.f32 %v1454_v5, 0.0  ;;  %v3666_v26 = vadd.f32 %v21775_v13, %v25023_v48  ;;  %v1457_v27 = vadd.f32 %v25023_v48, %v1456_v16  ;;  %v3657_v28 = vpop.f32.mrb[19].mxu1 }
 0x116   : > { %v4429_v29 = vmax.f32 %v3655_v10, 0.0  ;;  %v2207_v30 = vmax.f32 %v1465_v11, 0.0  ;;  %v3658_v31 = vadd.f32 %v25023_v48, %v3657_v28  ;;  %21685 = vmatmul.mubr.msk.bf16.gmra.mrb[124].mxu0 %vm1054_vm0, %v23337_v58 }
 0x117   : > { %v4432_v32 = vmax.f32 %v3666_v26, 0.0  ;;  %v2205_v34 = vmax.f32 %v1457_v27, 0.0  ;;  %21881 = vmatmul.mubr.msk.bf16.gmra.mrb[124].mxu1 %vm1054_vm0, %v23338_v62  ;;  %21688 = vmatprep.mubr.msk.bf16.mxu0 %vm1054_vm0, %v23339_v63  ;;  %v23345_v27 = vld [vmem:[%s24802_s29 + $0x218] sm:$0xff]  }
 0x118   : > { %v25148_v35 = vpack.c.bf16 %v2207_v30, %v2206_v9  ;;  %v4430_v36 = vmax.f32 %v3658_v31, 0.0  ;;  %21884 = vmatprep.mubr.msk.bf16.mxu1 %vm1054_vm0, %v23340_v18  ;;  %v23346_v31 = vld [vmem:[%s24802_s29 + $0x518] sm:$0xff]  }
 0x119   : > { %v25152_v38 = vpack.c.bf16 %v4432_v32, %v4431_v23  ;;  %v25154_v39 = vpack.c.bf16 %v2205_v34, %v2204_v24  ;;  %v21582_v41 = vpop.f32.mrb[20].mxu0  ;;  %v23347_v32 = vld [vmem:[%s24802_s29 + $0x220] sm:$0xff]  }
 0x11a   : > { %v25158_v45 = vpack.c.bf16 %v4430_v36, %v4429_v29  ;;  %v1478_v46 = vadd.f32 %v21582_v41, %v25023_v48  ;;  %v21778_v50 = vpop.f32.mrb[20].mxu1  ;;  %v1469_v51 = vpop.f32.mrb[21].mxu0 }
 0x11b   : > { %v3679_v52 = vadd.f32 %v21778_v50, %v25023_v48  ;;  %v1470_v54 = vadd.f32 %v25023_v48, %v1469_v51  ;;  %v3670_v55 = vpop.f32.mrb[21].mxu1  ;;  %v21583_v57 = vpop.f32.mrb[22].mxu0 }
 0x11c   : > { %v2210_v61 = vmax.f32 %v1478_v46, 0.0  ;;  %v3671_v62 = vadd.f32 %v25023_v48, %v3670_v55  ;;  %v1481_v63 = vadd.f32 %v21583_v57, %v25023_v48  ;;  %v21779_v1 = vpop.f32.mrb[22].mxu1  ;;  %v1472_v2 = vpop.f32.mrb[23].mxu0 }
 0x11d   : > { %v4435_v5 = vmax.f32 %v3679_v52, 0.0  ;;  %v2208_v6 = vmax.f32 %v1470_v54, 0.0  ;;  %v3682_v7 = vadd.f32 %v21779_v1, %v25023_v48  ;;  %v1473_v9 = vadd.f32 %v25023_v48, %v1472_v2  ;;  %v3673_v10 = vpop.f32.mrb[23].mxu1 }
 0x11e   : > { %v4433_v11 = vmax.f32 %v3671_v62, 0.0  ;;  %v2211_v13 = vmax.f32 %v1481_v63, 0.0  ;;  %v3674_v16 = vadd.f32 %v25023_v48, %v3673_v10  ;;  %21689 = vmatmul.mubr.msk.bf16.gmra.mrb[128].mxu0 %vm1054_vm0, %v23341_v37  ;;  %v23348_v63 = vld [vmem:[%s24802_s29 + $0x520] sm:$0xff]  }
 0x11f   : > { %v4436_v18 = vmax.f32 %v3682_v7, 0.0  ;;  %v2209_v23 = vmax.f32 %v1473_v9, 0.0  ;;  %21885 = vmatmul.mubr.msk.bf16.gmra.mrb[128].mxu1 %vm1054_vm0, %v23342_v42  ;;  %21692 = vmatprep.mubr.msk.bf16.mxu0 %vm1054_vm0, %v23343_v43  ;;  %v23407_v42 = vld [vmem:[%s30774_s3 + $0x40] sm:$0xff]  }
 0x120   : > { %v25176_v24 = vpack.c.bf16 %v2211_v13, %v2210_v61  ;;  %v4434_v26 = vmax.f32 %v3674_v16, 0.0  ;;  %21888 = vmatprep.mubr.msk.bf16.mxu1 %vm1054_vm0, %v23344_v3  ;;  %22372 = vmatprep.subr.bf16.mxu0 %v23407_v42 }
 0x121   : > { %v25180_v28 = vpack.c.bf16 %v4436_v18, %v4435_v5  ;;  %v25182_v29 = vpack.c.bf16 %v2209_v23, %v2208_v6  ;;  %v21586_v30 = vpop.f32.mrb[24].mxu0 }
 0x122   : > { %v25186_v34 = vpack.c.bf16 %v4434_v26, %v4433_v11  ;;  %v1494_v36 = vadd.f32 %v21586_v30, %v25023_v48  ;;  %v21782_v37 = vpop.f32.mrb[24].mxu1  ;;  %v1485_v41 = vpop.f32.mrb[25].mxu0  ;;  %v23349_v26 = vld [vmem:[%s24802_s29 + $0x228] sm:$0xff]  }
 0x123   : > { %v3695_v43 = vadd.f32 %v21782_v37, %v25023_v48  ;;  %v1486_v46 = vadd.f32 %v25023_v48, %v1485_v41  ;;  %v3686_v50 = vpop.f32.mrb[25].mxu1  ;;  %v21587_v51 = vpop.f32.mrb[26].mxu0  ;;  %v23350_v41 = vld [vmem:[%s24802_s29 + $0x528] sm:$0xff]  }
 0x124   : > { %v2214_v54 = vmax.f32 %v1494_v36, 0.0  ;;  %v3687_v55 = vadd.f32 %v25023_v48, %v3686_v50  ;;  %v1497_v57 = vadd.f32 %v21587_v51, %v25023_v48  ;;  %v21783_v61 = vpop.f32.mrb[26].mxu1  ;;  %v1488_v62 = vpop.f32.mrb[27].mxu0 }
 0x125   : > { %v4439_v2 = vmax.f32 %v3695_v43, 0.0  ;;  %v2212_v3 = vmax.f32 %v1486_v46, 0.0  ;;  %v3698_v5 = vadd.f32 %v21783_v61, %v25023_v48  ;;  %v1489_v6 = vadd.f32 %v25023_v48, %v1488_v62  ;;  %v3689_v7 = vpop.f32.mrb[27].mxu1 }
 0x126   : > { %v4437_v9 = vmax.f32 %v3687_v55, 0.0  ;;  %v2215_v10 = vmax.f32 %v1497_v57, 0.0  ;;  %v3690_v11 = vadd.f32 %v25023_v48, %v3689_v7  ;;  %21693 = vmatmul.mubr.msk.bf16.gmra.mrb[132].mxu0 %vm1054_vm0, %v23345_v27  ;;  %v23351_v27 = vld [vmem:[%s24802_s29 + $0x230] sm:$0xff]  }
 0x127   : > { %v4440_v13 = vmax.f32 %v3698_v5, 0.0  ;;  %v2213_v16 = vmax.f32 %v1489_v6, 0.0  ;;  %21889 = vmatmul.mubr.msk.bf16.gmra.mrb[132].mxu1 %vm1054_vm0, %v23346_v31  ;;  %21696 = vmatprep.mubr.msk.bf16.mxu0 %vm1054_vm0, %v23347_v32 }
 0x128   : > { %v25207_v18 = vpack.c.bf16 %v2215_v10, %v2214_v54  ;;  %v4438_v23 = vmax.f32 %v3690_v11, 0.0  ;;  %21892 = vmatprep.mubr.msk.bf16.mxu1 %vm1054_vm0, %v23348_v63 }
 0x129   : > { %v25211_v30 = vpack.c.bf16 %v4440_v13, %v4439_v2  ;;  %v25213_v36 = vpack.c.bf16 %v2213_v16, %v2212_v3  ;;  %v21590_v37 = vpop.f32.mrb[28].mxu0  ;;  %v23352_v3 = vld [vmem:[%s24802_s29 + $0x530] sm:$0xff]  }
 0x12a   : > { %v25217_v42 = vpack.c.bf16 %v4438_v23, %v4437_v9  ;;  %v1510_v31 = vadd.f32 %v21590_v37, %v25023_v48  ;;  %v21786_v43 = vpop.f32.mrb[28].mxu1  ;;  %v1501_v32 = vpop.f32.mrb[29].mxu0 }
 0x12b   : > { %v3711_v46 = vadd.f32 %v21786_v43, %v25023_v48  ;;  %v1502_v50 = vadd.f32 %v25023_v48, %v1501_v32  ;;  %v3702_v51 = vpop.f32.mrb[29].mxu1  ;;  %v21591_v54 = vpop.f32.mrb[30].mxu0 }
 0x12c   : > { %v2218_v57 = vmax.f32 %v1510_v31, 0.0  ;;  %v3703_v61 = vadd.f32 %v25023_v48, %v3702_v51  ;;  %v1513_v62 = vadd.f32 %v21591_v54, %v25023_v48  ;;  %v21787_v63 = vpop.f32.mrb[30].mxu1  ;;  %v1504_v2 = vpop.f32.mrb[31].mxu0 }
 0x12d   : > { %v4443_v6 = vmax.f32 %v3711_v46, 0.0  ;;  %v2216_v7 = vmax.f32 %v1502_v50, 0.0  ;;  %v3714_v9 = vadd.f32 %v21787_v63, %v25023_v48  ;;  %v1505_v10 = vadd.f32 %v25023_v48, %v1504_v2  ;;  %v3705_v11 = vpop.f32.mrb[31].mxu1  ;;  %v23353_v46 = vld [vmem:[%s24802_s29 + $0x238] sm:$0xff]  }
 0x12e   : > { %v4441_v13 = vmax.f32 %v3703_v61, 0.0  ;;  %v2219_v16 = vmax.f32 %v1513_v62, 0.0  ;;  %v3706_v23 = vadd.f32 %v25023_v48, %v3705_v11  ;;  %21697 = vmatmul.mubr.msk.bf16.gmra.mrb[136].mxu0 %vm1054_vm0, %v23349_v26  ;;  %v23354_v61 = vld [vmem:[%s24802_s29 + $0x538] sm:$0xff]   ;;  %v23355_v26 = vld [vmem:[%s24802_s29 + $0x240] sm:$0xff]  }
 0x12f   : > { %v4444_v37 = vmax.f32 %v3714_v9, 0.0  ;;  %v2217_v31 = vmax.f32 %v1505_v10, 0.0  ;;  %21893 = vmatmul.mubr.msk.bf16.gmra.mrb[136].mxu1 %vm1054_vm0, %v23350_v41  ;;  %21700 = vmatprep.mubr.msk.bf16.mxu0 %vm1054_vm0, %v23351_v27 }
 0x130   : > { %v25235_v43 = vpack.c.bf16 %v2219_v16, %v2218_v57  ;;  %v4442_v32 = vmax.f32 %v3706_v23, 0.0  ;;  %21896 = vmatprep.mubr.msk.bf16.mxu1 %vm1054_vm0, %v23352_v3  ;;  %v23356_v23 = vld [vmem:[%s24802_s29 + $0x540] sm:$0xff]  }
 0x131   : > { %v25239_v50 = vpack.c.bf16 %v4444_v37, %v4443_v6  ;;  %v25241_v51 = vpack.c.bf16 %v2217_v31, %v2216_v7  ;;  %v21594_v54 = vpop.f32.mrb[32].mxu0  ;;  %v23359_v37 = vld [vmem:[%s24802_s29 + $0x250] sm:$0xff]  }
 0x132   : > { %31079 = vst [vmem:[#allocation10_spill] sm:$0xff] %v25235_v43  ;;  %v25245_v62 = vpack.c.bf16 %v4442_v32, %v4441_v13  ;;  %v1526_v41 = vadd.f32 %v21594_v54, %v25023_v48  ;;  %v21790_v63 = vpop.f32.mrb[32].mxu1  ;;  %v1517_v27 = vpop.f32.mrb[33].mxu0 }
 0x133   : > { %31080 = vst [vmem:[#allocation11_spill] sm:$0xff] %v25241_v51  ;;  %v3727_v57 = vadd.f32 %v21790_v63, %v25023_v48  ;;  %v1518_v2 = vadd.f32 %v25023_v48, %v1517_v27  ;;  %v3718_v3 = vpop.f32.mrb[33].mxu1  ;;  %v21595_v9 = vpop.f32.mrb[34].mxu0 }
 0x134   : > { %v2222_v7 = vmax.f32 %v1526_v41, 0.0  ;;  %v3719_v10 = vadd.f32 %v25023_v48, %v3718_v3  ;;  %v1529_v11 = vadd.f32 %v21595_v9, %v25023_v48  ;;  %v21791_v13 = vpop.f32.mrb[34].mxu1  ;;  %v1520_v16 = vpop.f32.mrb[35].mxu0 }
 0x135   : > { %v4447_v31 = vmax.f32 %v3727_v57, 0.0  ;;  %v2220_v32 = vmax.f32 %v1518_v2, 0.0  ;;  %v3730_v54 = vadd.f32 %v21791_v13, %v25023_v48  ;;  %v1521_v63 = vadd.f32 %v25023_v48, %v1520_v16  ;;  %v3721_v27 = vpop.f32.mrb[35].mxu1  ;;  %v23357_v13 = vld [vmem:[%s24802_s29 + $0x248] sm:$0xff]  }
 0x136   : > { %v4445_v41 = vmax.f32 %v3719_v10, 0.0  ;;  %v2223_v3 = vmax.f32 %v1529_v11, 0.0  ;;  %v3722_v9 = vadd.f32 %v25023_v48, %v3721_v27  ;;  %21701 = vmatmul.mubr.msk.bf16.gmra.mrb[140].mxu0 %vm1054_vm0, %v23353_v46  ;;  %v23358_v27 = vld [vmem:[%s24802_s29 + $0x548] sm:$0xff]  }
 0x137   : > { %v4448_v6 = vmax.f32 %v3730_v54, 0.0  ;;  %v2221_v5 = vmax.f32 %v1521_v63, 0.0  ;;  %21897 = vmatmul.mubr.msk.bf16.gmra.mrb[140].mxu1 %vm1054_vm0, %v23354_v61  ;;  %21704 = vmatprep.mubr.msk.bf16.mxu0 %vm1054_vm0, %v23355_v26 }
 0x138   : > { %v25263_v57 = vpack.c.bf16 %v2223_v3, %v2222_v7  ;;  %v4446_v2 = vmax.f32 %v3722_v9, 0.0  ;;  %21900 = vmatprep.mubr.msk.bf16.mxu1 %vm1054_vm0, %v23356_v23 }
 0x139   : > { %v25267_v16 = vpack.c.bf16 %v4448_v6, %v4447_v31  ;;  %v25269_v10 = vpack.c.bf16 %v2221_v5, %v2220_v32  ;;  %v21598_v11 = vpop.f32.mrb[36].mxu0  ;;  %v25283_v31 = vld [vmem:[%s30773_s2] ss:$0 sm:$0xff] }
 0x13a   : > { %31081 = vst [vmem:[#allocation12_spill] sm:$0xff] %v25263_v57  ;;  %v25273_v46 = vpack.c.bf16 %v4446_v2, %v4445_v41  ;;  %v1542_v61 = vadd.f32 %v21598_v11, %v25023_v48  ;;  %v21794_v54 = vpop.f32.mrb[36].mxu1  ;;  %v1533_v26 = vpop.f32.mrb[37].mxu0  ;;  %v23360_v11 = vld [vmem:[%s24802_s29 + $0x550] sm:$0xff]  }
 0x13b   : > { %31082 = vst [vmem:[#allocation13_spill] sm:$0xff] %v25269_v10  ;;  %v3743_v7 = vadd.f32 %v21794_v54, %v25023_v48  ;;  %v1534_v63 = vadd.f32 %v25023_v48, %v1533_v26  ;;  %v3734_v23 = vpop.f32.mrb[37].mxu1  ;;  %v21599_v3 = vpop.f32.mrb[38].mxu0  ;;  %v23364_v48 = vld [vmem:[%s24802_s29 + $0x560] sm:$0xff]  }
 0x13c   : > { %v2226_v6 = vmax.f32 %v1542_v61, 0.0  ;;  %v3735_v32 = vadd.f32 %v25283_v31, %v3734_v23  ;;  %v1545_v41 = vadd.f32 %v25283_v31, %v21599_v3  ;;  %v21795_v9 = vpop.f32.mrb[38].mxu1  ;;  %v1536_v2 = vpop.f32.mrb[39].mxu0 }
 0x13d   : > { %v4451_v54 = vmax.f32 %v3743_v7, 0.0  ;;  %v2224_v26 = vmax.f32 %v1534_v63, 0.0  ;;  %v3746_v61 = vadd.f32 %v25283_v31, %v21795_v9  ;;  %v1537_v5 = vadd.f32 %v25283_v31, %v1536_v2  ;;  %v3737_v55 = vpop.f32.mrb[39].mxu1  ;;  %v23361_v9 = vld [vmem:[%s24802_s29 + $0x258] sm:$0xff]  }
 0x13e   : > { %v4449_v1 = vmax.f32 %v3735_v32, 0.0  ;;  %v2227_v23 = vmax.f32 %v1545_v41, 0.0  ;;  %v3738_v3 = vadd.f32 %v25283_v31, %v3737_v55  ;;  %21705 = vmatmul.mubr.msk.bf16.gmra.mrb[144].mxu0 %vm1054_vm0, %v23357_v13  ;;  %v23362_v55 = vld [vmem:[%s24802_s29 + $0x558] sm:$0xff]   ;;  %v23363_v13 = vld [vmem:[%s24802_s29 + $0x260] sm:$0xff]  }
 0x13f   : > { %v4452_v52 = vmax.f32 %v3746_v61, 0.0  ;;  %v2225_v4 = vmax.f32 %v1537_v5, 0.0  ;;  %21901 = vmatmul.mubr.msk.bf16.gmra.mrb[144].mxu1 %vm1054_vm0, %v23358_v27  ;;  %21708 = vmatprep.mubr.msk.bf16.mxu0 %vm1054_vm0, %v23359_v37 }
 0x140   : > { %v25296_v7 = vpack.c.bf16 %v2227_v23, %v2226_v6  ;;  %v4450_v63 = vmax.f32 %v3738_v3, 0.0  ;;  %21904 = vmatprep.mubr.msk.bf16.mxu1 %vm1054_vm0, %v23360_v11 }
 0x141   : > { %v25300_v2 = vpack.c.bf16 %v4452_v52, %v4451_v54  ;;  %v25302_v32 = vpack.c.bf16 %v2225_v4, %v2224_v26  ;;  %v21602_v41 = vpop.f32.mrb[40].mxu0 }
 0x142   : > { %31083 = vst [vmem:[#allocation14_spill] sm:$0xff] %v25296_v7  ;;  %v25306_v61 = vpack.c.bf16 %v4450_v63, %v4449_v1  ;;  %v1558_v27 = vadd.f32 %v25283_v31, %v21602_v41  ;;  %v21798_v5 = vpop.f32.mrb[40].mxu1  ;;  %v1549_v37 = vpop.f32.mrb[41].mxu0  ;;  %v23368_v41 = vld [vmem:[%s24802_s29 + $0x570] sm:$0xff]  }
 0x143   : > { %31084 = vst [vmem:[#allocation15_spill] sm:$0xff] %v25302_v32  ;;  %v3759_v6 = vadd.f32 %v25283_v31, %v21798_v5  ;;  %v1550_v23 = vadd.f32 %v25283_v31, %v1549_v37  ;;  %v3750_v11 = vpop.f32.mrb[41].mxu1  ;;  %v21603_v3 = vpop.f32.mrb[42].mxu0 }
 0x144   : > { %31085 = vst [vmem:[#allocation16_spill] sm:$0xff] %v25306_v61  ;;  %v2230_v52 = vmax.f32 %v1558_v27, 0.0  ;;  %v3751_v54 = vadd.f32 %v25283_v31, %v3750_v11  ;;  %v1561_v26 = vadd.f32 %v25283_v31, %v21603_v3  ;;  %v21799_v1 = vpop.f32.mrb[42].mxu1  ;;  %v1552_v63 = vpop.f32.mrb[43].mxu0 }
 0x145   : > { %v4455_v58 = vmax.f32 %v3759_v6, 0.0  ;;  %v2228_v5 = vmax.f32 %v1550_v23, 0.0  ;;  %v3762_v37 = vadd.f32 %v25283_v31, %v21799_v1  ;;  %v1553_v21 = vadd.f32 %v25283_v31, %v1552_v63  ;;  %v3753_v8 = vpop.f32.mrb[43].mxu1  ;;  %v23365_v1 = vld [vmem:[%s24802_s29 + $0x268] sm:$0xff]  }
 0x146   : > { %v4453_v27 = vmax.f32 %v3751_v54, 0.0  ;;  %v2231_v11 = vmax.f32 %v1561_v26, 0.0  ;;  %v3754_v3 = vadd.f32 %v25283_v31, %v3753_v8  ;;  %21709 = vmatmul.mubr.msk.bf16.gmra.mrb[148].mxu0 %vm1054_vm0, %v23361_v9  ;;  %v23366_v8 = vld [vmem:[%s24802_s29 + $0x568] sm:$0xff]   ;;  %v23367_v9 = vld [vmem:[%s24802_s29 + $0x270] sm:$0xff]  }
 0x147   : > { %v4456_v4 = vmax.f32 %v3762_v37, 0.0  ;;  %v2229_v40 = vmax.f32 %v1553_v21, 0.0  ;;  %21905 = vmatmul.mubr.msk.bf16.gmra.mrb[148].mxu1 %vm1054_vm0, %v23362_v55  ;;  %21712 = vmatprep.mubr.msk.bf16.mxu0 %vm1054_vm0, %v23363_v13 }
 0x148   : > { %v25324_v6 = vpack.c.bf16 %v2231_v11, %v2230_v52  ;;  %v4454_v23 = vmax.f32 %v3754_v3, 0.0  ;;  %21908 = vmatprep.mubr.msk.bf16.mxu1 %vm1054_vm0, %v23364_v48 }
 0x149   : > { %v25328_v63 = vpack.c.bf16 %v4456_v4, %v4455_v58  ;;  %v25330_v54 = vpack.c.bf16 %v2229_v40, %v2228_v5  ;;  %v21606_v26 = vpop.f32.mrb[44].mxu0 }
 0x14a   : > { %31086 = vst [vmem:[#allocation17_spill] sm:$0xff] %v25324_v6  ;;  %v25334_v37 = vpack.c.bf16 %v4454_v23, %v4453_v27  ;;  %v1574_v21 = vadd.f32 %v25283_v31, %v21606_v26  ;;  %v21802_v55 = vpop.f32.mrb[44].mxu1  ;;  %v1565_v13 = vpop.f32.mrb[45].mxu0  ;;  %v23376_v26 = vld [vmem:[%s24802_s29 + $0x590] sm:$0xff]  }
 0x14b   : > { %31087 = vst [vmem:[#allocation18_spill] sm:$0xff] %v25328_v63  ;;  %31088 = vst [vmem:[#allocation19_spill] sm:$0xff] %v25330_v54  ;;  %v3775_v52 = vadd.f32 %v25283_v31, %v21802_v55  ;;  %v1566_v11 = vadd.f32 %v25283_v31, %v1565_v13  ;;  %v3766_v48 = vpop.f32.mrb[45].mxu1  ;;  %v21607_v3 = vpop.f32.mrb[46].mxu0 }
 0x14c   : > { %31089 = vst [vmem:[#allocation20_spill] sm:$0xff] %v25334_v37  ;;  %v2234_v58 = vmax.f32 %v1574_v21, 0.0  ;;  %v3767_v4 = vadd.f32 %v25283_v31, %v3766_v48  ;;  %v1577_v5 = vadd.f32 %v25283_v31, %v21607_v3  ;;  %v21803_v27 = vpop.f32.mrb[46].mxu1  ;;  %v1568_v23 = vpop.f32.mrb[47].mxu0 }
 0x14d   : > { %v4459_v33 = vmax.f32 %v3775_v52, 0.0  ;;  %v2232_v55 = vmax.f32 %v1566_v11, 0.0  ;;  %v3778_v13 = vadd.f32 %v25283_v31, %v21803_v27  ;;  %v1569_v51 = vadd.f32 %v25283_v31, %v1568_v23  ;;  %v3769_v61 = vpop.f32.mrb[47].mxu1  ;;  %v23369_v27 = vld [vmem:[%s24802_s29 + $0x278] sm:$0xff]  }
 0x14e   : > { %v4457_v21 = vmax.f32 %v3767_v4, 0.0  ;;  %v2235_v40 = vmax.f32 %v1577_v5, 0.0  ;;  %v3770_v48 = vadd.f32 %v25283_v31, %v3769_v61  ;;  %21713 = vmatmul.mubr.msk.bf16.gmra.mrb[152].mxu0 %vm1054_vm0, %v23365_v1  ;;  %v23370_v5 = vld [vmem:[%s24802_s29 + $0x578] sm:$0xff]  }
 0x14f   : > { %v4460_v3 = vmax.f32 %v3778_v13, 0.0  ;;  %v2233_v57 = vmax.f32 %v1569_v51, 0.0  ;;  %21909 = vmatmul.mubr.msk.bf16.gmra.mrb[152].mxu1 %vm1054_vm0, %v23366_v8  ;;  %21716 = vmatprep.mubr.msk.bf16.mxu0 %vm1054_vm0, %v23367_v9  ;;  %v23371_v9 = vld [vmem:[%s24802_s29 + $0x280] sm:$0xff]  }
 0x150   : > { %v25352_v52 = vpack.c.bf16 %v2235_v40, %v2234_v58  ;;  %v4458_v11 = vmax.f32 %v3770_v48, 0.0  ;;  %21912 = vmatprep.mubr.msk.bf16.mxu1 %vm1054_vm0, %v23368_v41 }
 0x151   : > { %v25356_v23 = vpack.c.bf16 %v4460_v3, %v4459_v33  ;;  %v25358_v4 = vpack.c.bf16 %v2233_v57, %v2232_v55  ;;  %v21610_v61 = vpop.f32.mrb[48].mxu0 }
 0x152   : > { %31090 = vst [vmem:[#allocation21_spill] sm:$0xff] %v25352_v52  ;;  %v25361_v1 = vpack.c.bf16 %v4458_v11, %v4457_v21  ;;  %v1590_v51 = vadd.f32 %v25283_v31, %v21610_v61  ;;  %v21806_v8 = vpop.f32.mrb[48].mxu1  ;;  %v1581_v13 = vpop.f32.mrb[49].mxu0  ;;  %v23372_v61 = vld [vmem:[%s24802_s29 + $0x580] sm:$0xff]  }
 0x153   : > { %31091 = vst [vmem:[#allocation22_spill] sm:$0xff] %v25356_v23  ;;  %31092 = vst [vmem:[#allocation23_spill] sm:$0xff] %v25358_v4  ;;  %v3791_v40 = vadd.f32 %v25283_v31, %v21806_v8  ;;  %v1582_v58 = vadd.f32 %v25283_v31, %v1581_v13  ;;  %v3782_v41 = vpop.f32.mrb[49].mxu1  ;;  %v21611_v48 = vpop.f32.mrb[50].mxu0 }
 0x154   : > { %31093 = vst [vmem:[#allocation24_spill] sm:$0xff] %v25361_v1  ;;  %v2238_v57 = vmax.f32 %v1590_v51, 0.0  ;;  %v3783_v55 = vadd.f32 %v25283_v31, %v3782_v41  ;;  %v1593_v21 = vadd.f32 %v25283_v31, %v21611_v48  ;;  %v21807_v3 = vpop.f32.mrb[50].mxu1  ;;  %v1584_v11 = vpop.f32.mrb[51].mxu0 }
 0x155   : > { %v4463_v10 = vmax.f32 %v3791_v40, 0.0  ;;  %v2236_v8 = vmax.f32 %v1582_v58, 0.0  ;;  %v3794_v13 = vadd.f32 %v25283_v31, %v21807_v3  ;;  %v1585_v37 = vadd.f32 %v25283_v31, %v1584_v11  ;;  %v3785_v63 = vpop.f32.mrb[51].mxu1  ;;  %v23373_v3 = vld [vmem:[%s24802_s29 + $0x288] sm:$0xff]  }
 0x156   : > { %v4461_v51 = vmax.f32 %v3783_v55, 0.0  ;;  %v2239_v41 = vmax.f32 %v1593_v21, 0.0  ;;  %v3786_v48 = vadd.f32 %v25283_v31, %v3785_v63  ;;  %21717 = vmatmul.mubr.msk.bf16.gmra.mrb[156].mxu0 %vm1054_vm0, %v23369_v27  ;;  %v23374_v63 = vld [vmem:[%s24802_s29 + $0x588] sm:$0xff]   ;;  %v23375_v27 = vld [vmem:[%s24802_s29 + $0x290] sm:$0xff]  }
 0x157   : > { %v4464_v33 = vmax.f32 %v3794_v13, 0.0  ;;  %v2237_v7 = vmax.f32 %v1585_v37, 0.0  ;;  %21913 = vmatmul.mubr.msk.bf16.gmra.mrb[156].mxu1 %vm1054_vm0, %v23370_v5  ;;  %21720 = vmatprep.mubr.msk.bf16.mxu0 %vm1054_vm0, %v23371_v9 }
 0x158   : > { %v25380_v40 = vpack.c.bf16 %v2239_v41, %v2238_v57  ;;  %v4462_v58 = vmax.f32 %v3786_v48, 0.0  ;;  %21916 = vmatprep.mubr.msk.bf16.mxu1 %vm1054_vm0, %v23372_v61 }
 0x159   : > { %v25384_v11 = vpack.c.bf16 %v4464_v33, %v4463_v10  ;;  %v25386_v55 = vpack.c.bf16 %v2237_v7, %v2236_v8  ;;  %v21614_v21 = vpop.f32.mrb[52].mxu0 }
 0x15a   : > { %31094 = vst [vmem:[#allocation25_spill] sm:$0xff] %v25380_v40  ;;  %v25390_v13 = vpack.c.bf16 %v4462_v58, %v4461_v51  ;;  %v1606_v37 = vadd.f32 %v25283_v31, %v21614_v21  ;;  %v21810_v5 = vpop.f32.mrb[52].mxu1  ;;  %v1597_v9 = vpop.f32.mrb[53].mxu0  ;;  %v23380_v21 = vld [vmem:[%s24802_s29 + $0x5a0] sm:$0xff]  }
 0x15b   : > { %31095 = vst [vmem:[#allocation26_spill] sm:$0xff] %v25384_v11  ;;  %31096 = vst [vmem:[#allocation27_spill] sm:$0xff] %v25386_v55  ;;  %v3807_v57 = vadd.f32 %v25283_v31, %v21810_v5  ;;  %v1598_v41 = vadd.f32 %v25283_v31, %v1597_v9  ;;  %v3798_v61 = vpop.f32.mrb[53].mxu1  ;;  %v21615_v48 = vpop.f32.mrb[54].mxu0 }
 0x15c   : > { %31097 = vst [vmem:[#allocation28_spill] sm:$0xff] %v25390_v13  ;;  %v2242_v7 = vmax.f32 %v1606_v37, 0.0  ;;  %v3799_v33 = vadd.f32 %v25283_v31, %v3798_v61  ;;  %v1609_v8 = vadd.f32 %v25283_v31, %v21615_v48  ;;  %v21811_v51 = vpop.f32.mrb[54].mxu1  ;;  %v1600_v58 = vpop.f32.mrb[55].mxu0 }
 0x15d   : > { %v4467_v32 = vmax.f32 %v3807_v57, 0.0  ;;  %v2240_v5 = vmax.f32 %v1598_v41, 0.0  ;;  %v3810_v9 = vadd.f32 %v25283_v31, %v21811_v51  ;;  %v1601_v1 = vadd.f32 %v25283_v31, %v1600_v58  ;;  %v3801_v23 = vpop.f32.mrb[55].mxu1  ;;  %v23377_v51 = vld [vmem:[%s24802_s29 + $0x298] sm:$0xff]  }
 0x15e   : > { %v4465_v37 = vmax.f32 %v3799_v33, 0.0  ;;  %v2243_v61 = vmax.f32 %v1609_v8, 0.0  ;;  %v3802_v48 = vadd.f32 %v25283_v31, %v3801_v23  ;;  %21721 = vmatmul.mubr.msk.bf16.gmra.mrb[160].mxu0 %vm1054_vm0, %v23373_v3  ;;  %v23378_v23 = vld [vmem:[%s24802_s29 + $0x598] sm:$0xff]   ;;  %v23379_v3 = vld [vmem:[%s24802_s29 + $0x2a0] sm:$0xff]  }
 0x15f   : > { %v4468_v10 = vmax.f32 %v3810_v9, 0.0  ;;  %v2241_v6 = vmax.f32 %v1601_v1, 0.0  ;;  %21917 = vmatmul.mubr.msk.bf16.gmra.mrb[160].mxu1 %vm1054_vm0, %v23374_v63  ;;  %21724 = vmatprep.mubr.msk.bf16.mxu0 %vm1054_vm0, %v23375_v27 }
 0x160   : > { %v25408_v57 = vpack.c.bf16 %v2243_v61, %v2242_v7  ;;  %v4466_v41 = vmax.f32 %v3802_v48, 0.0  ;;  %21920 = vmatprep.mubr.msk.bf16.mxu1 %vm1054_vm0, %v23376_v26 }
 0x161   : > { %v25412_v58 = vpack.c.bf16 %v4468_v10, %v4467_v32  ;;  %v25414_v33 = vpack.c.bf16 %v2241_v6, %v2240_v5  ;;  %v21618_v8 = vpop.f32.mrb[56].mxu0 }
 0x162   : > { %31098 = vst [vmem:[#allocation29_spill] sm:$0xff] %v25408_v57  ;;  %v25418_v9 = vpack.c.bf16 %v4466_v41, %v4465_v37  ;;  %v1622_v1 = vadd.f32 %v25283_v31, %v21618_v8  ;;  %v21814_v63 = vpop.f32.mrb[56].mxu1  ;;  %v1613_v27 = vpop.f32.mrb[57].mxu0  ;;  %v23384_v8 = vld [vmem:[%s24802_s29 + $0x5b0] sm:$0xff]  }
 0x163   : > { %31099 = vst [vmem:[#allocation30_spill] sm:$0xff] %v25412_v58  ;;  %31100 = vst [vmem:[#allocation31_spill] sm:$0xff] %v25414_v33  ;;  %v3823_v7 = vadd.f32 %v25283_v31, %v21814_v63  ;;  %v1614_v61 = vadd.f32 %v25283_v31, %v1613_v27  ;;  %v3814_v26 = vpop.f32.mrb[57].mxu1  ;;  %v21619_v48 = vpop.f32.mrb[58].mxu0 }
 0x164   : > { %31101 = vst [vmem:[#allocation32_spill] sm:$0xff] %v25418_v9  ;;  %v2246_v6 = vmax.f32 %v1622_v1, 0.0  ;;  %v3815_v10 = vadd.f32 %v25283_v31, %v3814_v26  ;;  %v1625_v5 = vadd.f32 %v25283_v31, %v21619_v48  ;;  %v21815_v37 = vpop.f32.mrb[58].mxu1  ;;  %v1616_v41 = vpop.f32.mrb[59].mxu0 }
 0x165   : > { %v4471_v54 = vmax.f32 %v3823_v7, 0.0  ;;  %v2244_v63 = vmax.f32 %v1614_v61, 0.0  ;;  %v3826_v27 = vadd.f32 %v25283_v31, %v21815_v37  ;;  %v1617_v13 = vadd.f32 %v25283_v31, %v1616_v41  ;;  %v3817_v11 = vpop.f32.mrb[59].mxu1  ;;  %v23381_v37 = vld [vmem:[%s24802_s29 + $0x2a8] sm:$0xff]  }
 0x166   : > { %v4469_v1 = vmax.f32 %v3815_v10, 0.0  ;;  %v2247_v26 = vmax.f32 %v1625_v5, 0.0  ;;  %v3818_v48 = vadd.f32 %v25283_v31, %v3817_v11  ;;  %21725 = vmatmul.mubr.msk.bf16.gmra.mrb[164].mxu0 %vm1054_vm0, %v23377_v51  ;;  %v23382_v11 = vld [vmem:[%s24802_s29 + $0x5a8] sm:$0xff]   ;;  %v23383_v51 = vld [vmem:[%s24802_s29 + $0x2b0] sm:$0xff]  }
 0x167   : > { %v4472_v32 = vmax.f32 %v3826_v27, 0.0  ;;  %v2245_v52 = vmax.f32 %v1617_v13, 0.0  ;;  %21921 = vmatmul.mubr.msk.bf16.gmra.mrb[164].mxu1 %vm1054_vm0, %v23378_v23  ;;  %21728 = vmatprep.mubr.msk.bf16.mxu0 %vm1054_vm0, %v23379_v3 }
 0x168   : > { %v25436_v7 = vpack.c.bf16 %v2247_v26, %v2246_v6  ;;  %v4470_v61 = vmax.f32 %v3818_v48, 0.0  ;;  %21924 = vmatprep.mubr.msk.bf16.mxu1 %vm1054_vm0, %v23380_v21 }
 0x169   : > { %v25440_v41 = vpack.c.bf16 %v4472_v32, %v4471_v54  ;;  %v25442_v10 = vpack.c.bf16 %v2245_v52, %v2244_v63  ;;  %v21622_v5 = vpop.f32.mrb[60].mxu0 }
 0x16a   : > { %31102 = vst [vmem:[#allocation33_spill] sm:$0xff] %v25436_v7  ;;  %v25446_v27 = vpack.c.bf16 %v4470_v61, %v4469_v1  ;;  %v1638_v13 = vadd.f32 %v25283_v31, %v21622_v5  ;;  %v21818_v23 = vpop.f32.mrb[60].mxu1  ;;  %v1629_v3 = vpop.f32.mrb[61].mxu0  ;;  %v23388_v5 = vld [vmem:[%s24802_s29 + $0x5c0] sm:$0xff]  }
 0x16b   : > { %31103 = vst [vmem:[#allocation34_spill] sm:$0xff] %v25440_v41  ;;  %31104 = vst [vmem:[#allocation35_spill] sm:$0xff] %v25442_v10  ;;  %v3839_v6 = vadd.f32 %v25283_v31, %v21818_v23  ;;  %v1630_v26 = vadd.f32 %v25283_v31, %v1629_v3  ;;  %v3830_v21 = vpop.f32.mrb[61].mxu1  ;;  %v21623_v48 = vpop.f32.mrb[62].mxu0 }
 0x16c   : > { %31105 = vst [vmem:[#allocation36_spill] sm:$0xff] %v25446_v27  ;;  %v2250_v52 = vmax.f32 %v1638_v13, 0.0  ;;  %v3831_v32 = vadd.f32 %v25283_v31, %v3830_v21  ;;  %v1641_v63 = vadd.f32 %v25283_v31, %v21623_v48  ;;  %v21819_v1 = vpop.f32.mrb[62].mxu1  ;;  %v1632_v61 = vpop.f32.mrb[63].mxu0 }
 0x16d   : > { %v4475_v4 = vmax.f32 %v3839_v6, 0.0  ;;  %v2248_v23 = vmax.f32 %v1630_v26, 0.0  ;;  %v3842_v3 = vadd.f32 %v25283_v31, %v21819_v1  ;;  %v1633_v9 = vadd.f32 %v25283_v31, %v1632_v61  ;;  %v3833_v58 = vpop.f32.mrb[63].mxu1  ;;  %v23385_v1 = vld [vmem:[%s24802_s29 + $0x2b8] sm:$0xff]  }
 0x16e   : > { %v4473_v13 = vmax.f32 %v3831_v32, 0.0  ;;  %v2251_v21 = vmax.f32 %v1641_v63, 0.0  ;;  %v3834_v48 = vadd.f32 %v25283_v31, %v3833_v58  ;;  %21729 = vmatmul.mubr.msk.bf16.gmra.mrb[168].mxu0 %vm1054_vm0, %v23381_v37  ;;  %v23386_v58 = vld [vmem:[%s24802_s29 + $0x5b8] sm:$0xff]   ;;  %v23387_v37 = vld [vmem:[%s24802_s29 + $0x2c0] sm:$0xff]  }
 0x16f   : > { %v4476_v54 = vmax.f32 %v3842_v3, 0.0  ;;  %v2249_v40 = vmax.f32 %v1633_v9, 0.0  ;;  %21925 = vmatmul.mubr.msk.bf16.gmra.mrb[168].mxu1 %vm1054_vm0, %v23382_v11  ;;  %21732 = vmatprep.mubr.msk.bf16.mxu0 %vm1054_vm0, %v23383_v51 }
 0x170   : > { %v25464_v6 = vpack.c.bf16 %v2251_v21, %v2250_v52  ;;  %v4474_v26 = vmax.f32 %v3834_v48, 0.0  ;;  %21928 = vmatprep.mubr.msk.bf16.mxu1 %vm1054_vm0, %v23384_v8 }
 0x171   : > { %v25468_v61 = vpack.c.bf16 %v4476_v54, %v4475_v4  ;;  %v25470_v32 = vpack.c.bf16 %v2249_v40, %v2248_v23  ;;  %v21626_v63 = vpop.f32.mrb[64].mxu0 }
 0x172   : > { %31106 = vst [vmem:[#allocation37_spill] sm:$0xff] %v25464_v6  ;;  %v25474_v3 = vpack.c.bf16 %v4474_v26, %v4473_v13  ;;  %v1654_v9 = vadd.f32 %v25283_v31, %v21626_v63  ;;  %v21822_v11 = vpop.f32.mrb[64].mxu1  ;;  %v1645_v51 = vpop.f32.mrb[65].mxu0  ;;  %v23392_v63 = vld [vmem:[%s24802_s29 + $0x5d0] sm:$0xff]  }
 0x173   : > { %31107 = vst [vmem:[#allocation38_spill] sm:$0xff] %v25468_v61  ;;  %31108 = vst [vmem:[#allocation39_spill] sm:$0xff] %v25470_v32  ;;  %v3855_v52 = vadd.f32 %v25283_v31, %v21822_v11  ;;  %v1646_v21 = vadd.f32 %v25283_v31, %v1645_v51  ;;  %v3846_v8 = vpop.f32.mrb[65].mxu1  ;;  %v21627_v48 = vpop.f32.mrb[66].mxu0 }
 0x174   : > { %31109 = vst [vmem:[#allocation40_spill] sm:$0xff] %v25474_v3  ;;  %v2254_v40 = vmax.f32 %v1654_v9, 0.0  ;;  %v3847_v54 = vadd.f32 %v25283_v31, %v3846_v8  ;;  %v1657_v23 = vadd.f32 %v25283_v31, %v21627_v48  ;;  %v21823_v13 = vpop.f32.mrb[66].mxu1  ;;  %v1648_v26 = vpop.f32.mrb[67].mxu0 }
 0x175   : > { %v4479_v55 = vmax.f32 %v3855_v52, 0.0  ;;  %v2252_v11 = vmax.f32 %v1646_v21, 0.0  ;;  %v3858_v51 = vadd.f32 %v25283_v31, %v21823_v13  ;;  %v1649_v27 = vadd.f32 %v25283_v31, %v1648_v26  ;;  %v3849_v41 = vpop.f32.mrb[67].mxu1  ;;  %v23389_v13 = vld [vmem:[%s24802_s29 + $0x2c8] sm:$0xff]  }
 0x176   : > { %v4477_v9 = vmax.f32 %v3847_v54, 0.0  ;;  %v2255_v8 = vmax.f32 %v1657_v23, 0.0  ;;  %v3850_v48 = vadd.f32 %v25283_v31, %v3849_v41  ;;  %21733 = vmatmul.mubr.msk.bf16.gmra.mrb[172].mxu0 %vm1054_vm0, %v23385_v1  ;;  %v23390_v41 = vld [vmem:[%s24802_s29 + $0x5c8] sm:$0xff]   ;;  %v23391_v1 = vld [vmem:[%s24802_s29 + $0x2d0] sm:$0xff]  }
 0x177   : > { %v4480_v4 = vmax.f32 %v3858_v51, 0.0  ;;  %v2253_v57 = vmax.f32 %v1649_v27, 0.0  ;;  %21929 = vmatmul.mubr.msk.bf16.gmra.mrb[172].mxu1 %vm1054_vm0, %v23386_v58  ;;  %21736 = vmatprep.mubr.msk.bf16.mxu0 %vm1054_vm0, %v23387_v37 }
 0x178   : > { %v25492_v52 = vpack.c.bf16 %v2255_v8, %v2254_v40  ;;  %v4478_v21 = vmax.f32 %v3850_v48, 0.0  ;;  %21932 = vmatprep.mubr.msk.bf16.mxu1 %vm1054_vm0, %v23388_v5 }
 0x179   : > { %v25496_v26 = vpack.c.bf16 %v4480_v4, %v4479_v55  ;;  %v25498_v54 = vpack.c.bf16 %v2253_v57, %v2252_v11  ;;  %v21630_v23 = vpop.f32.mrb[68].mxu0 }
 0x17a   : > { %31110 = vst [vmem:[#allocation41_spill] sm:$0xff] %v25492_v52  ;;  %v25502_v51 = vpack.c.bf16 %v4478_v21, %v4477_v9  ;;  %v1670_v27 = vadd.f32 %v25283_v31, %v21630_v23  ;;  %v21826_v58 = vpop.f32.mrb[68].mxu1  ;;  %v1661_v37 = vpop.f32.mrb[69].mxu0 }
 0x17b   : > { %31111 = vst [vmem:[#allocation42_spill] sm:$0xff] %v25496_v26  ;;  %31112 = vst [vmem:[#allocation43_spill] sm:$0xff] %v25498_v54  ;;  %v3871_v40 = vadd.f32 %v25283_v31, %v21826_v58  ;;  %v1662_v8 = vadd.f32 %v25283_v31, %v1661_v37  ;;  %v3862_v5 = vpop.f32.mrb[69].mxu1  ;;  %v21631_v48 = vpop.f32.mrb[70].mxu0 }
 0x17c   : > { %31113 = vst [vmem:[#allocation44_spill] sm:$0xff] %v25502_v51  ;;  %v2258_v57 = vmax.f32 %v1670_v27, 0.0  ;;  %v3863_v4 = vadd.f32 %v25283_v31, %v3862_v5  ;;  %v1673_v11 = vadd.f32 %v25283_v31, %v21631_v48  ;;  %v21827_v9 = vpop.f32.mrb[70].mxu1  ;;  %v1664_v21 = vpop.f32.mrb[71].mxu0 }
 0x17d   : > { %v4483_v33 = vmax.f32 %v3871_v40, 0.0  ;;  %v2256_v58 = vmax.f32 %v1662_v8, 0.0  ;;  %v3874_v37 = vadd.f32 %v25283_v31, %v21827_v9  ;;  %v1665_v3 = vadd.f32 %v25283_v31, %v1664_v21  ;;  %v3865_v61 = vpop.f32.mrb[71].mxu1  ;;  %v23393_v9 = vld [vmem:[%s24802_s29 + $0x2d8] sm:$0xff]  }
 0x17e   : > { %v4481_v27 = vmax.f32 %v3863_v4, 0.0  ;;  %v2259_v5 = vmax.f32 %v1673_v11, 0.0  ;;  %v3866_v48 = vadd.f32 %v25283_v31, %v3865_v61  ;;  %21737 = vmatmul.mubr.msk.bf16.gmra.mrb[176].mxu0 %vm1054_vm0, %v23389_v13  ;;  %v23394_v61 = vld [vmem:[%s24802_s29 + $0x5d8] sm:$0xff]   ;;  %v23395_v13 = vld [vmem:[%s24802_s29 + $0x2e0] sm:$0xff]  }
 0x17f   : > { %v4484_v55 = vmax.f32 %v3874_v37, 0.0  ;;  %v2257_v7 = vmax.f32 %v1665_v3, 0.0  ;;  %21933 = vmatmul.mubr.msk.bf16.gmra.mrb[176].mxu1 %vm1054_vm0, %v23390_v41  ;;  %21740 = vmatprep.mubr.msk.bf16.mxu0 %vm1054_vm0, %v23391_v1 }
 0x180   : > { %v25520_v40 = vpack.c.bf16 %v2259_v5, %v2258_v57  ;;  %v4482_v8 = vmax.f32 %v3866_v48, 0.0  ;;  %21936 = vmatprep.mubr.msk.bf16.mxu1 %vm1054_vm0, %v23392_v63 }
 0x181   : > { %v25524_v21 = vpack.c.bf16 %v4484_v55, %v4483_v33  ;;  %v25526_v4 = vpack.c.bf16 %v2257_v7, %v2256_v58  ;;  %v21634_v11 = vpop.f32.mrb[72].mxu0 }
 0x182   : > { %31114 = vst [vmem:[#allocation45_spill] sm:$0xff] %v25520_v40  ;;  %v25530_v37 = vpack.c.bf16 %v4482_v8, %v4481_v27  ;;  %v1686_v3 = vadd.f32 %v25283_v31, %v21634_v11  ;;  %v21830_v41 = vpop.f32.mrb[72].mxu1  ;;  %v1677_v1 = vpop.f32.mrb[73].mxu0  ;;  %v23396_v8 = vld [vmem:[%s24802_s29 + $0x5e0] sm:$0xff]  }
 0x183   : > { %31115 = vst [vmem:[#allocation46_spill] sm:$0xff] %v25524_v21  ;;  %31116 = vst [vmem:[#allocation47_spill] sm:$0xff] %v25526_v4  ;;  %v3887_v57 = vadd.f32 %v25283_v31, %v21830_v41  ;;  %v1678_v5 = vadd.f32 %v25283_v31, %v1677_v1  ;;  %v3878_v63 = vpop.f32.mrb[73].mxu1  ;;  %v21635_v48 = vpop.f32.mrb[74].mxu0 }
 0x184   : > { %31117 = vst [vmem:[#allocation48_spill] sm:$0xff] %v25530_v37  ;;  %v3879_v7 = vadd.f32 %v25283_v31, %v3878_v63  ;;  %v1689_v55 = vadd.f32 %v25283_v31, %v21635_v48  ;;  %v21831_v58 = vpop.f32.mrb[74].mxu1  ;;  %v1680_v27 = vpop.f32.mrb[75].mxu0  ;;  %v2262_v23 = vmax.f32 %v1686_v3, 0.0 }
 0x185   : > { %v4487_v10 = vmax.f32 %v3887_v57, 0.0  ;;  %v3890_v41 = vadd.f32 %v25283_v31, %v21831_v58  ;;  %v1681_v1 = vadd.f32 %v25283_v31, %v1680_v27  ;;  %v3881_v51 = vpop.f32.mrb[75].mxu1  ;;  %v2260_v26 = vmax.f32 %v1678_v5, 0.0  ;;  %v23397_v5 = vld [vmem:[%s24802_s29 + $0x2e8] sm:$0xff]  }
 0x186   : > { %v4485_v33 = vmax.f32 %v3879_v7, 0.0  ;;  %v2263_v63 = vmax.f32 %v1689_v55, 0.0  ;;  %v3882_v48 = vadd.f32 %v25283_v31, %v3881_v51  ;;  %21741 = vmatmul.mubr.msk.bf16.gmra.mrb[180].mxu0 %vm1054_vm0, %v23393_v9  ;;  %v23398_v31 = vld [vmem:[%s24802_s29 + $0x5e8] sm:$0xff]   ;;  %v23399_v51 = vld [vmem:[%s24802_s29 + $0x2f0] sm:$0xff]  }
 0x187   : > { %v4488_v6 = vmax.f32 %v3890_v41, 0.0  ;;  %v2261_v21 = vmax.f32 %v1681_v1, 0.0  ;;  %21937 = vmatmul.mubr.msk.bf16.gmra.mrb[180].mxu1 %vm1054_vm0, %v23394_v61  ;;  %21744 = vmatprep.mubr.msk.bf16.mxu0 %vm1054_vm0, %v23395_v13  ;;  %v25563_v61 = vld [vmem:[%s30773_s2] ss:$0 sm:$0xff] }
 0x188   : > { %v25548_v3 = vpack.c.bf16 %v2263_v63, %v2262_v23  ;;  %v4486_v57 = vmax.f32 %v3882_v48, 0.0  ;;  %21940 = vmatprep.mubr.msk.bf16.mxu1 %vm1054_vm0, %v23396_v8 }
 0x189   : > { %v25552_v58 = vpack.c.bf16 %v4488_v6, %v4487_v10  ;;  %v25554_v7 = vpack.c.bf16 %v2261_v21, %v2260_v26  ;;  %v21638_v55 = vpop.f32.mrb[76].mxu0 }
 0x18a   : > { %31118 = vst [vmem:[#allocation49_spill] sm:$0xff] %v25548_v3  ;;  %v25558_v9 = vpack.c.bf16 %v4486_v57, %v4485_v33  ;;  %v1702_v23 = vadd.f32 %v25563_v61, %v21638_v55  ;;  %v21834_v13 = vpop.f32.mrb[76].mxu1  ;;  %v1693_v27 = vpop.f32.mrb[77].mxu0  ;;  %v23400_v57 = vld [vmem:[%s24802_s29 + $0x5f0] sm:$0xff]   ;;  %v23403_v55 = vld [vmem:[%s24802_s29 + $0x600] sm:$0xff]  }
 0x18b   : > { %31119 = vst [vmem:[#allocation50_spill] sm:$0xff] %v25552_v58  ;;  %31120 = vst [vmem:[#allocation51_spill] sm:$0xff] %v25554_v7  ;;  %v3903_v10 = vadd.f32 %v25563_v61, %v21834_v13  ;;  %v1694_v6 = vadd.f32 %v25563_v61, %v1693_v27  ;;  %v3894_v26 = vpop.f32.mrb[77].mxu1  ;;  %v21639_v21 = vpop.f32.mrb[78].mxu0 }
 0x18c   : > { %31121 = vst [vmem:[#allocation52_spill] sm:$0xff] %v25558_v9  ;;  %v2266_v33 = vmax.f32 %v1702_v23, 0.0  ;;  %v3895_v41 = vadd.f32 %v25563_v61, %v3894_v26  ;;  %v1705_v1 = vadd.f32 %v25563_v61, %v21639_v21  ;;  %v21835_v63 = vpop.f32.mrb[78].mxu1  ;;  %v1696_v48 = vpop.f32.mrb[79].mxu0 }
 0x18d   : > { %v4491_v11 = vmax.f32 %v3903_v10, 0.0  ;;  %v2264_v13 = vmax.f32 %v1694_v6, 0.0  ;;  %v3906_v27 = vadd.f32 %v25563_v61, %v21835_v63  ;;  %v1697_v32 = vadd.f32 %v25563_v61, %v1696_v48  ;;  %v3897_v37 = vpop.f32.mrb[79].mxu1  ;;  %v23401_v63 = vld [vmem:[%s24802_s29 + $0x2f8] sm:$0xff]  }
 0x18e   : > { %v4489_v23 = vmax.f32 %v3895_v41, 0.0  ;;  %v2267_v26 = vmax.f32 %v1705_v1, 0.0  ;;  %v3898_v21 = vadd.f32 %v25563_v61, %v3897_v37  ;;  %21745 = vmatmul.mubr.msk.bf16.gmra.mrb[184].mxu0 %vm1054_vm0, %v23397_v5  ;;  %v23402_v37 = vld [vmem:[%s24802_s29 + $0x5f8] sm:$0xff]   ;;  %v23404_v5 = vld [vmem:[%s24802_s29 + $0x640] sm:$0xff]  }
 0x18f   : > { %v4492_v8 = vmax.f32 %v3906_v27, 0.0  ;;  %v2265_v52 = vmax.f32 %v1697_v32, 0.0  ;;  %21941 = vmatmul.mubr.msk.bf16.gmra.mrb[184].mxu1 %vm1054_vm0, %v23398_v31  ;;  %21748 = vmatprep.mubr.msk.bf16.mxu0 %vm1054_vm0, %v23399_v51 }
 0x190   : > { %v25581_v10 = vpack.c.bf16 %v2267_v26, %v2266_v33  ;;  %v4490_v6 = vmax.f32 %v3898_v21, 0.0  ;;  %21944 = vmatprep.mubr.msk.bf16.mxu1 %vm1054_vm0, %v23400_v57 }
 0x191   : > { %v25585_v48 = vpack.c.bf16 %v4492_v8, %v4491_v11  ;;  %v25587_v41 = vpack.c.bf16 %v2265_v52, %v2264_v13  ;;  %v21642_v1 = vpop.f32.mrb[80].mxu0 }
 0x192   : > { %31122 = vst [vmem:[#allocation53_spill] sm:$0xff] %v25581_v10  ;;  %v25591_v27 = vpack.c.bf16 %v4490_v6, %v4489_v23  ;;  %v1718_v32 = vadd.f32 %v25563_v61, %v21642_v1  ;;  %v21838_v31 = vpop.f32.mrb[80].mxu1  ;;  %v1709_v51 = vpop.f32.mrb[81].mxu0 }
 0x193   : > { %31123 = vst [vmem:[#allocation54_spill] sm:$0xff] %v25585_v48  ;;  %31124 = vst [vmem:[#allocation55_spill] sm:$0xff] %v25587_v41  ;;  %v3919_v33 = vadd.f32 %v25563_v61, %v21838_v31  ;;  %v1710_v26 = vadd.f32 %v25563_v61, %v1709_v51  ;;  %v3910_v57 = vpop.f32.mrb[81].mxu1  ;;  %v21643_v21 = vpop.f32.mrb[82].mxu0 }
 0x194   : > { %31125 = vst [vmem:[#allocation56_spill] sm:$0xff] %v25591_v27  ;;  %v2270_v11 = vmax.f32 %v1718_v32, 0.0  ;;  %v3911_v8 = vadd.f32 %v25563_v61, %v3910_v57  ;;  %v1721_v13 = vadd.f32 %v25563_v61, %v21643_v21  ;;  %v21839_v23 = vpop.f32.mrb[82].mxu1  ;;  %v1712_v6 = vpop.f32.mrb[83].mxu0 }
 0x195   : > { %v4495_v54 = vmax.f32 %v3919_v33, 0.0  ;;  %v2268_v31 = vmax.f32 %v1710_v26, 0.0  ;;  %v3922_v51 = vadd.f32 %v25563_v61, %v21839_v23  ;;  %v1713_v9 = vadd.f32 %v25563_v61, %v1712_v6  ;;  %v3913_v58 = vpop.f32.mrb[83].mxu1  ;;  %v23406_v23 = vld [vmem:[%s24802_s29 + $0x648] sm:$0xff]  }
 0x196   : > { %v4493_v32 = vmax.f32 %v3911_v8, 0.0  ;;  %v2271_v52 = vmax.f32 %v1721_v13, 0.0  ;;  %v3914_v57 = vadd.f32 %v25563_v61, %v3913_v58  ;;  %21749 = vmatmul.mubr.msk.bf16.gmra.mrb[188].mxu0 %vm1054_vm0, %v23401_v63  ;;  %v23405_v58 = vld [vmem:[%s24802_s29 + $0x608] sm:$0xff]  }
 0x197   : > { %v4496_v21 = vmax.f32 %v3922_v51, 0.0  ;;  %v2269_v40 = vmax.f32 %v1713_v9, 0.0  ;;  %21945 = vmatmul.mubr.msk.bf16.gmra.mrb[188].mxu1 %vm1054_vm0, %v23402_v37  ;;  %21968 = vmatprep.mubr.msk.bf16.mxu0 %vm1054_vm0, %v23404_v5 }
 0x198   : > { %v25609_v33 = vpack.c.bf16 %v2271_v52, %v2270_v11  ;;  %v4494_v26 = vmax.f32 %v3914_v57, 0.0  ;;  %21948 = vmatprep.mubr.msk.bf16.mxu1 %vm1054_vm0, %v23403_v55 }
 0x199   : > { %v25613_v6 = vpack.c.bf16 %v4496_v21, %v4495_v54  ;;  %v25615_v8 = vpack.c.bf16 %v2269_v40, %v2268_v31  ;;  %v21646_v13 = vpop.f32.mrb[84].mxu0 }
 0x19a   : > { %31126 = vst [vmem:[#allocation57_spill] sm:$0xff] %v25609_v33  ;;  %v25618_v63 = vpack.c.bf16 %v4494_v26, %v4493_v32  ;;  %v1734_v9 = vadd.f32 %v25563_v61, %v21646_v13  ;;  %v21842_v37 = vpop.f32.mrb[84].mxu1  ;;  %v1725_v5 = vpop.f32.mrb[85].mxu0  ;;  %v23408_v26 = vld [vmem:[%s24802_s29 + $0x610] sm:$0xff]  }
 0x19b   : > { %31127 = vst [vmem:[#allocation58_spill] sm:$0xff] %v25613_v6  ;;  %31128 = vst [vmem:[#allocation59_spill] sm:$0xff] %v25615_v8  ;;  %v3935_v52 = vadd.f32 %v25563_v61, %v21842_v37  ;;  %v1726_v11 = vadd.f32 %v25563_v61, %v1725_v5  ;;  %v3926_v55 = vpop.f32.mrb[85].mxu1  ;;  %v21647_v51 = vpop.f32.mrb[86].mxu0  ;;  %v23409_v13 = vld [vmem:[%s24802_s29 + $0x650] sm:$0xff]  }
 0x19c   : > { %31129 = vst [vmem:[#allocation60_spill] sm:$0xff] %v25618_v63  ;;  %v2274_v40 = vmax.f32 %v1734_v9, 0.0  ;;  %v3927_v31 = vadd.f32 %v25563_v61, %v3926_v55  ;;  %v1737_v57 = vadd.f32 %v25563_v61, %v21647_v51  ;;  %v21843_v32 = vpop.f32.mrb[86].mxu1  ;;  %v1728_v21 = vpop.f32.mrb[87].mxu0  ;;  %v23432_v9 = vld [vmem:[%s30774_s3 + $0x48] sm:$0xff]  }
 0x19d   : > { %v4499_v37 = vmax.f32 %v3935_v52, 0.0  ;;  %v2272_v4 = vmax.f32 %v1726_v11, 0.0  ;;  %v3938_v5 = vadd.f32 %v25563_v61, %v21843_v32  ;;  %v1729_v27 = vadd.f32 %v25563_v61, %v1728_v21  ;;  %v3929_v48 = vpop.f32.mrb[87].mxu1  ;;  %v23457_v52 = vld [vmem:[%s30774_s3 + $0x50] sm:$0xff]   ;;  %v24617_v21 = vld [vmem:[%s30774_s3 + $0x40] sm:$0xff]  }
 0x19e   : > { %v4497_v55 = vmax.f32 %v3927_v31, 0.0  ;;  %v2275_v51 = vmax.f32 %v1737_v57, 0.0  ;;  %v3930_v54 = vadd.f32 %v25563_v61, %v3929_v48  ;;  %21969 = vmatmul.mubr.msk.bf16.vlgmr.msra.gmra.mrb[192].mxu0 %vm1054_vm0, %v23406_v23  ;;  %v23411_v23 = vld [vmem:[%s24802_s29 + $0x658] sm:$0xff]  }
 0x19f   : > { %v4500_v11 = vmax.f32 %v3938_v5, 0.0  ;;  %v2273_v32 = vmax.f32 %v1729_v27, 0.0  ;;  %21949 = vmatmul.mubr.msk.bf16.gmra.mrb[192].mxu1 %vm1054_vm0, %v23405_v58  ;;  %22373 = vmatpush3.bf16.msra.mxu0 %v24617_v21  ;;  %v23410_v5 = vld [vmem:[%s24802_s29 + $0x618] sm:$0xff]   ;;  %v23413_v58 = vld [vmem:[%s24802_s29 + $0x660] sm:$0xff]  }
 0x1a0   : > { %v25645_v31 = vpack.c.bf16 %v2275_v51, %v2274_v40  ;;  %v4498_v48 = vmax.f32 %v3930_v54, 0.0  ;;  %21952 = vmatprep.mubr.msk.bf16.mxu1 %vm1054_vm0, %v23408_v26  ;;  %21972 = vmatprep.mubr.msk.bf16.mxu0 %vm1054_vm0, %v23409_v13 }
 0x1a1   : > { %v25650_v57 = vpack.c.bf16 %v4500_v11, %v4499_v37  ;;  %v25652_v1 = vpack.c.bf16 %v2273_v32, %v2272_v4  ;;  %v21650_v27 = vpop.f32.mrb[88].mxu0  ;;  %22374 = vmatprep.subr.bf16.mxu0 %v23432_v9 }
 0x1a2   : > { %31130 = vst [vmem:[#allocation61_spill] sm:$0xff] %v25645_v31  ;;  %v25656_v7 = vpack.c.bf16 %v4498_v48, %v4497_v55  ;;  %v1750_v40 = vadd.f32 %v25563_v61, %v21650_v27  ;;  %v21846_v51 = vpop.f32.mrb[88].mxu1  ;;  %v1741_v54 = vpop.f32.mrb[89].mxu0  ;;  %v23412_v27 = vld [vmem:[%s24802_s29 + $0x620] sm:$0xff]  }
 0x1a3   : > { %31131 = vst [vmem:[#allocation62_spill] sm:$0xff] %v25650_v57  ;;  %31132 = vst [vmem:[#allocation63_spill] sm:$0xff] %v25652_v1  ;;  %v3951_v26 = vadd.f32 %v25563_v61, %v21846_v51  ;;  %v1742_v13 = vadd.f32 %v25563_v61, %v1741_v54  ;;  %v3942_v21 = vpop.f32.mrb[89].mxu1  ;;  %v21651_v37 = vpop.f32.mrb[90].mxu0  ;;  %22375 = vmatpush3.bf16.msra.mxu0 %v23432_v9 }
 0x1a4   : > { %31133 = vst [vmem:[#allocation64_spill] sm:$0xff] %v25656_v7  ;;  %v2278_v11 = vmax.f32 %v1750_v40, 0.0  ;;  %v3943_v32 = vadd.f32 %v25563_v61, %v3942_v21  ;;  %v1753_v55 = vadd.f32 %v25563_v61, %v21651_v37  ;;  %v21847_v48 = vpop.f32.mrb[90].mxu1  ;;  %v1744_v63 = vpop.f32.mrb[91].mxu0  ;;  %22376 = vmatprep.subr.bf16.mxu0 %v23457_v52 }
 0x1a5   : > { %v4503_v3 = vmax.f32 %v3951_v26, 0.0  ;;  %v2276_v54 = vmax.f32 %v1742_v13, 0.0  ;;  %v3954_v9 = vadd.f32 %v25563_v61, %v21847_v48  ;;  %v1745_v6 = vadd.f32 %v25563_v61, %v1744_v63  ;;  %v3945_v4 = vpop.f32.mrb[91].mxu1  ;;  %v23415_v63 = vld [vmem:[%s24802_s29 + $0x668] sm:$0xff]  }
 0x1a6   : > { %v4501_v40 = vmax.f32 %v3943_v32, 0.0  ;;  %v2279_v21 = vmax.f32 %v1753_v55, 0.0  ;;  %v3946_v37 = vadd.f32 %v25563_v61, %v3945_v4  ;;  %21973 = vmatmul.mubr.msk.bf16.gmra.mrb[196].mxu0 %vm1054_vm0, %v23411_v23  ;;  %v23414_v48 = vld [vmem:[%s24802_s29 + $0x628] sm:$0xff]   ;;  %v23417_v23 = vld [vmem:[%s24802_s29 + $0x670] sm:$0xff]  }
 0x1a7   : > { %v4504_v10 = vmax.f32 %v3954_v9, 0.0  ;;  %v2277_v57 = vmax.f32 %v1745_v6, 0.0  ;;  %21953 = vmatmul.mubr.msk.bf16.gmra.mrb[196].mxu1 %vm1054_vm0, %v23410_v5  ;;  %21976 = vmatprep.mubr.msk.bf16.mxu0 %vm1054_vm0, %v23413_v58 }
 0x1a8   : > { %v25674_v26 = vpack.c.bf16 %v2279_v21, %v2278_v11  ;;  %v4502_v13 = vmax.f32 %v3946_v37, 0.0  ;;  %21956 = vmatprep.mubr.msk.bf16.mxu1 %vm1054_vm0, %v23412_v27  ;;  %22377 = vmatpush3.bf16.msra.mxu0 %v23457_v52 }
 0x1a9   : > { %v25678_v32 = vpack.c.bf16 %v4504_v10, %v4503_v3  ;;  %v25680_v55 = vpack.c.bf16 %v2277_v57, %v2276_v54  ;;  %v21654_v4 = vpop.f32.mrb[92].mxu0 }
 0x1aa   : > { %31134 = vst [vmem:[#allocation65_spill] sm:$0xff] %v25674_v26  ;;  %v25684_v6 = vpack.c.bf16 %v4502_v13, %v4501_v40  ;;  %v1766_v5 = vadd.f32 %v25563_v61, %v21654_v4  ;;  %v21850_v58 = vpop.f32.mrb[92].mxu1  ;;  %v1757_v11 = vpop.f32.mrb[93].mxu0  ;;  %v23416_v13 = vld [vmem:[%s24802_s29 + $0x630] sm:$0xff]   ;;  %v23421_v4 = vld [vmem:[%s24802_s29 + $0x960] sm:$0xff]  }
 0x1ab   : > { %31135 = vst [vmem:[#allocation66_spill] sm:$0xff] %v25678_v32  ;;  %31136 = vst [vmem:[#allocation67_spill] sm:$0xff] %v25680_v55  ;;  %v3967_v9 = vadd.f32 %v25563_v61, %v21850_v58  ;;  %v1758_v27 = vadd.f32 %v25563_v61, %v1757_v11  ;;  %v3958_v21 = vpop.f32.mrb[93].mxu1  ;;  %v21655_v52 = vpop.f32.mrb[94].mxu0 }
 0x1ac   : > { %31137 = vst [vmem:[#allocation68_spill] sm:$0xff] %v25684_v6  ;;  %v2282_v10 = vmax.f32 %v1766_v5, 0.0  ;;  %v3959_v57 = vadd.f32 %v25563_v61, %v3958_v21  ;;  %v1769_v54 = vadd.f32 %v25563_v61, %v21655_v52  ;;  %v21851_v40 = vpop.f32.mrb[94].mxu1  ;;  %v1760_v37 = vpop.f32.mrb[95].mxu0 }
 0x1ad   : > { %v4507_v51 = vmax.f32 %v3967_v9, 0.0  ;;  %v2280_v58 = vmax.f32 %v1758_v27, 0.0  ;;  %v3970_v11 = vadd.f32 %v25563_v61, %v21851_v40  ;;  %v1761_v41 = vadd.f32 %v25563_v61, %v1760_v37  ;;  %v3961_v7 = vpop.f32.mrb[95].mxu1  ;;  %v23419_v40 = vld [vmem:[%s24802_s29 + $0x678] sm:$0xff]  }
 0x1ae   : > { %v4505_v5 = vmax.f32 %v3959_v57, 0.0  ;;  %v2283_v21 = vmax.f32 %v1769_v54, 0.0  ;;  %v3962_v52 = vadd.f32 %v25563_v61, %v3961_v7  ;;  %21977 = vmatmul.mubr.msk.bf16.gmra.mrb[200].mxu0 %vm1054_vm0, %v23415_v63  ;;  %v23418_v7 = vld [vmem:[%s24802_s29 + $0x638] sm:$0xff]   ;;  %v23420_v63 = vld [vmem:[%s24802_s29 + $0x680] sm:$0xff]  }
 0x1af   : > { %v4508_v3 = vmax.f32 %v3970_v11, 0.0  ;;  %v2281_v33 = vmax.f32 %v1761_v41, 0.0  ;;  %21957 = vmatmul.mubr.msk.bf16.gmra.mrb[200].mxu1 %vm1054_vm0, %v23414_v48  ;;  %21980 = vmatprep.mubr.msk.bf16.mxu0 %vm1054_vm0, %v23417_v23 }
 0x1b0   : > { %v25702_v9 = vpack.c.bf16 %v2283_v21, %v2282_v10  ;;  %v4506_v27 = vmax.f32 %v3962_v52, 0.0  ;;  %21960 = vmatprep.mubr.msk.bf16.mxu1 %vm1054_vm0, %v23416_v13 }
 0x1b1   : > { %v25706_v37 = vpack.c.bf16 %v4508_v3, %v4507_v51  ;;  %v25708_v57 = vpack.c.bf16 %v2281_v33, %v2280_v58  ;;  %v21658_v54 = vpop.f32.mrb[96].mxu0 }
 0x1b2   : > { %31138 = vst [vmem:[#allocation69_spill] sm:$0xff] %v25702_v9  ;;  %v25712_v11 = vpack.c.bf16 %v4506_v27, %v4505_v5  ;;  %v1782_v41 = vadd.f32 %v25563_v61, %v21658_v54  ;;  %v21854_v48 = vpop.f32.mrb[96].mxu1  ;;  %v1773_v23 = vpop.f32.mrb[97].mxu0  ;;  %v23424_v54 = vld [vmem:[%s24802_s29 + $0x690] sm:$0xff]  }
 0x1b3   : > { %31139 = vst [vmem:[#allocation70_spill] sm:$0xff] %v25706_v37  ;;  %31140 = vst [vmem:[#allocation71_spill] sm:$0xff] %v25708_v57  ;;  %v3983_v10 = vadd.f32 %v25563_v61, %v21854_v48  ;;  %v1774_v21 = vadd.f32 %v25563_v61, %v1773_v23  ;;  %v3974_v13 = vpop.f32.mrb[97].mxu1  ;;  %v21659_v52 = vpop.f32.mrb[98].mxu0 }
 0x1b4   : > { %31141 = vst [vmem:[#allocation72_spill] sm:$0xff] %v25712_v11  ;;  %v2286_v51 = vmax.f32 %v1782_v41, 0.0  ;;  %v3975_v3 = vadd.f32 %v25563_v61, %v3974_v13  ;;  %v1785_v58 = vadd.f32 %v25563_v61, %v21659_v52  ;;  %v21855_v5 = vpop.f32.mrb[98].mxu1  ;;  %v1776_v27 = vpop.f32.mrb[99].mxu0 }
 0x1b5   : > { %v4511_v8 = vmax.f32 %v3983_v10, 0.0  ;;  %v2284_v48 = vmax.f32 %v1774_v21, 0.0  ;;  %v3986_v23 = vadd.f32 %v25563_v61, %v21855_v5  ;;  %v1777_v6 = vadd.f32 %v25563_v61, %v1776_v27  ;;  %v3977_v32 = vpop.f32.mrb[99].mxu1  ;;  %v23422_v5 = vld [vmem:[%s24802_s29 + $0x688] sm:$0xff]  }
 0x1b6   : > { %v4509_v41 = vmax.f32 %v3975_v3, 0.0  ;;  %v2287_v13 = vmax.f32 %v1785_v58, 0.0  ;;  %v3978_v52 = vadd.f32 %v25563_v61, %v3977_v32  ;;  %21981 = vmatmul.mubr.msk.bf16.gmra.mrb[204].mxu0 %vm1054_vm0, %v23419_v40  ;;  %v23423_v32 = vld [vmem:[%s24802_s29 + $0x968] sm:$0xff]  }
 0x1b7   : > { %v4512_v33 = vmax.f32 %v3986_v23, 0.0  ;;  %v2285_v31 = vmax.f32 %v1777_v6, 0.0  ;;  %21961 = vmatmul.mubr.msk.bf16.gmra.mrb[204].mxu1 %vm1054_vm0, %v23418_v7  ;;  %21984 = vmatprep.mubr.msk.bf16.mxu0 %vm1054_vm0, %v23420_v63 }
 0x1b8   : > { %v25730_v10 = vpack.c.bf16 %v2287_v13, %v2286_v51  ;;  %v4510_v21 = vmax.f32 %v3978_v52, 0.0  ;;  %22172 = vmatprep.mubr.msk.bf16.mxu1 %vm1054_vm0, %v23421_v4  ;;  %v23482_v51 = vld [vmem:[%s30774_s3 + $0x58] sm:$0xff]  }
 0x1b9   : > { %v25734_v27 = vpack.c.bf16 %v4512_v33, %v4511_v8  ;;  %v25736_v3 = vpack.c.bf16 %v2285_v31, %v2284_v48  ;;  %v21662_v58 = vpop.f32.mrb[100].mxu0  ;;  %22378 = vmatprep.subr.bf16.mxu0 %v23482_v51 }
 0x1ba   : > { %31142 = vst [vmem:[#allocation73_spill] sm:$0xff] %v25730_v10  ;;  %v25740_v40 = vpack.c.bf16 %v4510_v21, %v4509_v41  ;;  %v1798_v6 = vadd.f32 %v25563_v61, %v21662_v58  ;;  %v21858_v7 = vpop.f32.mrb[100].mxu1  ;;  %v1789_v63 = vpop.f32.mrb[101].mxu0  ;;  %v23425_v58 = vld [vmem:[%s24802_s29 + $0x970] sm:$0xff]   ;;  %22379 = vmatpush3.bf16.msra.mxu0 %v23482_v51  ;;  %v23426_v51 = vld [vmem:[%s24802_s29 + $0x698] sm:$0xff]  }
 0x1bb   : > { %31143 = vst [vmem:[#allocation74_spill] sm:$0xff] %v25734_v27  ;;  %31144 = vst [vmem:[#allocation75_spill] sm:$0xff] %v25736_v3  ;;  %v3999_v4 = vadd.f32 %v25563_v61, %v21858_v7  ;;  %v1790_v8 = vadd.f32 %v25563_v61, %v1789_v63  ;;  %v3990_v31 = vpop.f32.mrb[101].mxu1  ;;  %v21663_v33 = vpop.f32.mrb[102].mxu0 }
 0x1bc   : > { %31145 = vst [vmem:[#allocation76_spill] sm:$0xff] %v25740_v40  ;;  %v2290_v23 = vmax.f32 %v1798_v6, 0.0  ;;  %v3991_v41 = vadd.f32 %v25563_v61, %v3990_v31  ;;  %v1801_v13 = vadd.f32 %v25563_v61, %v21663_v33  ;;  %v21859_v52 = vpop.f32.mrb[102].mxu1  ;;  %v1792_v21 = vpop.f32.mrb[103].mxu0 }
 0x1bd   : > { %v4515_v7 = vmax.f32 %v3999_v4, 0.0  ;;  %v2288_v11 = vmax.f32 %v1790_v8, 0.0  ;;  %v4002_v63 = vadd.f32 %v25563_v61, %v21859_v52  ;;  %v1793_v37 = vadd.f32 %v25563_v61, %v1792_v21  ;;  %v3993_v48 = vpop.f32.mrb[103].mxu1 }
 0x1be   : > { %v4513_v6 = vmax.f32 %v3991_v41, 0.0  ;;  %v2291_v31 = vmax.f32 %v1801_v13, 0.0  ;;  %v3994_v33 = vadd.f32 %v25563_v61, %v3993_v48  ;;  %21985 = vmatmul.mubr.msk.bf16.gmra.mrb[208].mxu0 %vm1054_vm0, %v23422_v5  ;;  %v23427_v48 = vld [vmem:[%s24802_s29 + $0x978] sm:$0xff]   ;;  %v23428_v5 = vld [vmem:[%s24802_s29 + $0x6a0] sm:$0xff]  }
 0x1bf   : > { %v4516_v26 = vmax.f32 %v4002_v63, 0.0  ;;  %v2289_v27 = vmax.f32 %v1793_v37, 0.0  ;;  %22173 = vmatmul.mubr.msk.bf16.vlgmr.msra.gmra.mrb[208].mxu1 %vm1054_vm0, %v23423_v32  ;;  %21988 = vmatprep.mubr.msk.bf16.mxu0 %vm1054_vm0, %v23424_v54 }
 0x1c0   : > { %v25761_v4 = vpack.c.bf16 %v2291_v31, %v2290_v23  ;;  %v4514_v8 = vmax.f32 %v3994_v33, 0.0  ;;  %22176 = vmatprep.mubr.msk.bf16.mxu1 %vm1054_vm0, %v23425_v58 }
 0x1c1   : > { %v25765_v52 = vpack.c.bf16 %v4516_v26, %v4515_v7  ;;  %v25767_v41 = vpack.c.bf16 %v2289_v27, %v2288_v11  ;;  %v21666_v13 = vpop.f32.mrb[104].mxu0 }
 0x1c2   : > { %31146 = vst [vmem:[#allocation77_spill] sm:$0xff] %v25761_v4  ;;  %v25771_v21 = vpack.c.bf16 %v4514_v8, %v4513_v6  ;;  %v1814_v37 = vadd.f32 %v25563_v61, %v21666_v13  ;;  %v21862_v32 = vpop.f32.mrb[104].mxu1  ;;  %v1805_v54 = vpop.f32.mrb[105].mxu0  ;;  %v23429_v8 = vld [vmem:[%s24802_s29 + $0x980] sm:$0xff]   ;;  %v23434_v13 = vld [vmem:[%s24802_s29 + $0x990] sm:$0xff]  }
 0x1c3   : > { %31147 = vst [vmem:[#allocation78_spill] sm:$0xff] %v25765_v52  ;;  %31148 = vst [vmem:[#allocation79_spill] sm:$0xff] %v25767_v41  ;;  %v4015_v23 = vadd.f32 %v25563_v61, %v21862_v32  ;;  %v1806_v63 = vadd.f32 %v25563_v61, %v1805_v54  ;;  %v4006_v58 = vpop.f32.mrb[105].mxu1  ;;  %v21667_v31 = vpop.f32.mrb[106].mxu0 }
 0x1c4   : > { %31149 = vst [vmem:[#allocation80_spill] sm:$0xff] %v25771_v21  ;;  %v2294_v11 = vmax.f32 %v1814_v37, 0.0  ;;  %v4007_v27 = vadd.f32 %v25563_v61, %v4006_v58  ;;  %v1817_v7 = vadd.f32 %v25563_v61, %v21667_v31  ;;  %v21863_v6 = vpop.f32.mrb[106].mxu1  ;;  %v1808_v33 = vpop.f32.mrb[107].mxu0 }
 0x1c5   : > { %v4519_v1 = vmax.f32 %v4015_v23, 0.0  ;;  %v2292_v32 = vmax.f32 %v1806_v63, 0.0  ;;  %v4018_v54 = vadd.f32 %v25563_v61, %v21863_v6  ;;  %v1809_v55 = vadd.f32 %v25563_v61, %v1808_v33  ;;  %v4009_v40 = vpop.f32.mrb[107].mxu1  ;;  %v23430_v6 = vld [vmem:[%s24802_s29 + $0x6a8] sm:$0xff]  }
 0x1c6   : > { %v4517_v37 = vmax.f32 %v4007_v27, 0.0  ;;  %v2295_v58 = vmax.f32 %v1817_v7, 0.0  ;;  %v4010_v31 = vadd.f32 %v25563_v61, %v4009_v40  ;;  %21989 = vmatmul.mubr.msk.bf16.gmra.mrb[212].mxu0 %vm1054_vm0, %v23426_v51  ;;  %v23431_v40 = vld [vmem:[%s24802_s29 + $0x988] sm:$0xff]   ;;  %v23433_v51 = vld [vmem:[%s24802_s29 + $0x6b0] sm:$0xff]  }
 0x1c7   : > { %v4520_v26 = vmax.f32 %v4018_v54, 0.0  ;;  %v2293_v9 = vmax.f32 %v1809_v55, 0.0  ;;  %22177 = vmatmul.mubr.msk.bf16.gmra.mrb[212].mxu1 %vm1054_vm0, %v23427_v48  ;;  %21992 = vmatprep.mubr.msk.bf16.mxu0 %vm1054_vm0, %v23428_v5 }
 0x1c8   : > { %v25789_v23 = vpack.c.bf16 %v2295_v58, %v2294_v11  ;;  %v4518_v63 = vmax.f32 %v4010_v31, 0.0  ;;  %22180 = vmatprep.mubr.msk.bf16.mxu1 %vm1054_vm0, %v23429_v8 }
 0x1c9   : > { %v25793_v33 = vpack.c.bf16 %v4520_v26, %v4519_v1  ;;  %v25795_v27 = vpack.c.bf16 %v2293_v9, %v2292_v32  ;;  %v21670_v7 = vpop.f32.mrb[108].mxu0 }
 0x1ca   : > { %31150 = vst [vmem:[#allocation81_spill] sm:$0xff] %v25789_v23  ;;  %v25799_v54 = vpack.c.bf16 %v4518_v63, %v4517_v37  ;;  %v1830_v55 = vadd.f32 %v25563_v61, %v21670_v7  ;;  %v21866_v48 = vpop.f32.mrb[108].mxu1  ;;  %v1821_v5 = vpop.f32.mrb[109].mxu0  ;;  %v23438_v7 = vld [vmem:[%s24802_s29 + $0x9a0] sm:$0xff]  }
 0x1cb   : > { %31151 = vst [vmem:[#allocation82_spill] sm:$0xff] %v25793_v33  ;;  %31152 = vst [vmem:[#allocation83_spill] sm:$0xff] %v25795_v27  ;;  %v4031_v11 = vadd.f32 %v25563_v61, %v21866_v48  ;;  %v1822_v58 = vadd.f32 %v25563_v61, %v1821_v5  ;;  %v4022_v8 = vpop.f32.mrb[109].mxu1  ;;  %v21671_v31 = vpop.f32.mrb[110].mxu0 }
 0x1cc   : > { %31153 = vst [vmem:[#allocation84_spill] sm:$0xff] %v25799_v54  ;;  %v2298_v9 = vmax.f32 %v1830_v55, 0.0  ;;  %v4023_v26 = vadd.f32 %v25563_v61, %v4022_v8  ;;  %v1833_v32 = vadd.f32 %v25563_v61, %v21671_v31  ;;  %v21867_v37 = vpop.f32.mrb[110].mxu1  ;;  %v1824_v63 = vpop.f32.mrb[111].mxu0 }
 0x1cd   : > { %v4523_v57 = vmax.f32 %v4031_v11, 0.0  ;;  %v2296_v48 = vmax.f32 %v1822_v58, 0.0  ;;  %v4034_v5 = vadd.f32 %v25563_v61, %v21867_v37  ;;  %v1825_v21 = vadd.f32 %v25563_v61, %v1824_v63  ;;  %v4025_v52 = vpop.f32.mrb[111].mxu1  ;;  %v23435_v37 = vld [vmem:[%s24802_s29 + $0x6b8] sm:$0xff]  }
 0x1ce   : > { %v4521_v55 = vmax.f32 %v4023_v26, 0.0  ;;  %v2299_v8 = vmax.f32 %v1833_v32, 0.0  ;;  %v4026_v31 = vadd.f32 %v25563_v61, %v4025_v52  ;;  %21993 = vmatmul.mubr.msk.bf16.gmra.mrb[216].mxu0 %vm1054_vm0, %v23430_v6  ;;  %v23436_v52 = vld [vmem:[%s24802_s29 + $0x998] sm:$0xff]   ;;  %v23437_v6 = vld [vmem:[%s24802_s29 + $0x6c0] sm:$0xff]  }
 0x1cf   : > { %v4524_v1 = vmax.f32 %v4034_v5, 0.0  ;;  %v2297_v10 = vmax.f32 %v1825_v21, 0.0  ;;  %22181 = vmatmul.mubr.msk.bf16.gmra.mrb[216].mxu1 %vm1054_vm0, %v23431_v40  ;;  %21996 = vmatprep.mubr.msk.bf16.mxu0 %vm1054_vm0, %v23433_v51 }
 0x1d0   : > { %v25817_v11 = vpack.c.bf16 %v2299_v8, %v2298_v9  ;;  %v4522_v58 = vmax.f32 %v4026_v31, 0.0  ;;  %22184 = vmatprep.mubr.msk.bf16.mxu1 %vm1054_vm0, %v23434_v13 }
 0x1d1   : > { %v25821_v63 = vpack.c.bf16 %v4524_v1, %v4523_v57  ;;  %v25823_v26 = vpack.c.bf16 %v2297_v10, %v2296_v48  ;;  %v21674_v32 = vpop.f32.mrb[112].mxu0 }
 0x1d2   : > { %31154 = vst [vmem:[#allocation85_spill] sm:$0xff] %v25817_v11  ;;  %v25827_v5 = vpack.c.bf16 %v4522_v58, %v4521_v55  ;;  %v1846_v21 = vadd.f32 %v25563_v61, %v21674_v32  ;;  %v21870_v40 = vpop.f32.mrb[112].mxu1  ;;  %v1837_v51 = vpop.f32.mrb[113].mxu0 }
 0x1d3   : > { %31155 = vst [vmem:[#allocation86_spill] sm:$0xff] %v25821_v63  ;;  %31156 = vst [vmem:[#allocation87_spill] sm:$0xff] %v25823_v26  ;;  %v4047_v9 = vadd.f32 %v25563_v61, %v21870_v40  ;;  %v1838_v8 = vadd.f32 %v25563_v61, %v1837_v51  ;;  %v4038_v13 = vpop.f32.mrb[113].mxu1  ;;  %v21675_v31 = vpop.f32.mrb[114].mxu0  ;;  %v25842_v51 = vld [vmem:[%s30773_s2] ss:$0 sm:$0xff] }
 0x1d4   : > { %31157 = vst [vmem:[#allocation88_spill] sm:$0xff] %v25827_v5  ;;  %v2302_v10 = vmax.f32 %v1846_v21, 0.0  ;;  %v4039_v1 = vadd.f32 %v25563_v61, %v4038_v13  ;;  %v1849_v48 = vadd.f32 %v25563_v61, %v21675_v31  ;;  %v21871_v55 = vpop.f32.mrb[114].mxu1  ;;  %v1840_v58 = vpop.f32.mrb[115].mxu0  ;;  %v23442_v5 = vld [vmem:[%s24802_s29 + $0x9b0] sm:$0xff]  }
 0x1d5   : > { %v4527_v3 = vmax.f32 %v4047_v9, 0.0  ;;  %v2300_v40 = vmax.f32 %v1838_v8, 0.0  ;;  %v4050_v21 = vadd.f32 %v25842_v51, %v21871_v55  ;;  %v1841_v13 = vadd.f32 %v25842_v51, %v1840_v58  ;;  %v4041_v57 = vpop.f32.mrb[115].mxu1  ;;  %v23439_v58 = vld [vmem:[%s24802_s29 + $0x6c8] sm:$0xff]  }
 0x1d6   : > { %v4525_v61 = vmax.f32 %v4039_v1, 0.0  ;;  %v2303_v31 = vmax.f32 %v1849_v48, 0.0  ;;  %v4042_v4 = vadd.f32 %v25842_v51, %v4041_v57  ;;  %21997 = vmatmul.mubr.msk.bf16.gmra.mrb[220].mxu0 %vm1054_vm0, %v23435_v37  ;;  %v23440_v57 = vld [vmem:[%s24802_s29 + $0x9a8] sm:$0xff]   ;;  %v23441_v37 = vld [vmem:[%s24802_s29 + $0x6d0] sm:$0xff]  }
 0x1d7   : > { %v4528_v9 = vmax.f32 %v4050_v21, 0.0  ;;  %v2301_v8 = vmax.f32 %v1841_v13, 0.0  ;;  %22185 = vmatmul.mubr.msk.bf16.gmra.mrb[220].mxu1 %vm1054_vm0, %v23436_v52  ;;  %22000 = vmatprep.mubr.msk.bf16.mxu0 %vm1054_vm0, %v23437_v6 }
 0x1d8   : > { %v25850_v32 = vpack.c.bf16 %v2303_v31, %v2302_v10  ;;  %v4526_v55 = vmax.f32 %v4042_v4, 0.0  ;;  %22188 = vmatprep.mubr.msk.bf16.mxu1 %vm1054_vm0, %v23438_v7 }
 0x1d9   : > { %v25854_v41 = vpack.c.bf16 %v4528_v9, %v4527_v3  ;;  %v25856_v1 = vpack.c.bf16 %v2301_v8, %v2300_v40  ;;  %v21678_v48 = vpop.f32.mrb[116].mxu0 }
 0x1da   : > { %31158 = vst [vmem:[#allocation89_spill] sm:$0xff] %v25850_v32  ;;  %v25860_v21 = vpack.c.bf16 %v4526_v55, %v4525_v61  ;;  %v1862_v52 = vadd.f32 %v25842_v51, %v21678_v48  ;;  %v21874_v13 = vpop.f32.mrb[116].mxu1  ;;  %v1853_v6 = vpop.f32.mrb[117].mxu0  ;;  %v23446_v48 = vld [vmem:[%s24802_s29 + $0x9c0] sm:$0xff]  }
 0x1db   : > { %31159 = vst [vmem:[#allocation90_spill] sm:$0xff] %v25854_v41  ;;  %31160 = vst [vmem:[#allocation91_spill] sm:$0xff] %v25856_v1  ;;  %v4063_v10 = vadd.f32 %v25842_v51, %v21874_v13  ;;  %v1854_v4 = vadd.f32 %v25842_v51, %v1853_v6  ;;  %v4054_v7 = vpop.f32.mrb[117].mxu1  ;;  %v21679_v31 = vpop.f32.mrb[118].mxu0 }
 0x1dc   : > { %31161 = vst [vmem:[#allocation92_spill] sm:$0xff] %v25860_v21  ;;  %v2306_v40 = vmax.f32 %v1862_v52, 0.0  ;;  %v4055_v9 = vadd.f32 %v25842_v51, %v4054_v7  ;;  %v1865_v8 = vadd.f32 %v25842_v51, %v21679_v31  ;;  %v21875_v61 = vpop.f32.mrb[118].mxu1  ;;  %v1856_v55 = vpop.f32.mrb[119].mxu0 }
 0x1dd   : > { %v4531_v63 = vmax.f32 %v4063_v10, 0.0  ;;  %v2304_v13 = vmax.f32 %v1854_v4, 0.0  ;;  %v4066_v6 = vadd.f32 %v25842_v51, %v21875_v61  ;;  %v1857_v54 = vadd.f32 %v25842_v51, %v1856_v55  ;;  %v4057_v33 = vpop.f32.mrb[119].mxu1  ;;  %v23443_v61 = vld [vmem:[%s24802_s29 + $0x6d8] sm:$0xff]  }
 0x1de   : > { %v4529_v52 = vmax.f32 %v4055_v9, 0.0  ;;  %v2307_v7 = vmax.f32 %v1865_v8, 0.0  ;;  %v4058_v31 = vadd.f32 %v25842_v51, %v4057_v33  ;;  %22001 = vmatmul.mubr.msk.bf16.gmra.mrb[224].mxu0 %vm1054_vm0, %v23439_v58  ;;  %v23444_v33 = vld [vmem:[%s24802_s29 + $0x9b8] sm:$0xff]   ;;  %v23445_v58 = vld [vmem:[%s24802_s29 + $0x6e0] sm:$0xff]  }
 0x1df   : > { %v4532_v3 = vmax.f32 %v4066_v6, 0.0  ;;  %v2305_v23 = vmax.f32 %v1857_v54, 0.0  ;;  %22189 = vmatmul.mubr.msk.bf16.gmra.mrb[224].mxu1 %vm1054_vm0, %v23440_v57  ;;  %22004 = vmatprep.mubr.msk.bf16.mxu0 %vm1054_vm0, %v23441_v37 }
 0x1e0   : > { %v25878_v10 = vpack.c.bf16 %v2307_v7, %v2306_v40  ;;  %v4530_v4 = vmax.f32 %v4058_v31, 0.0  ;;  %22192 = vmatprep.mubr.msk.bf16.mxu1 %vm1054_vm0, %v23442_v5 }
 0x1e1   : > { %v25882_v55 = vpack.c.bf16 %v4532_v3, %v4531_v63  ;;  %v25884_v9 = vpack.c.bf16 %v2305_v23, %v2304_v13  ;;  %v21682_v8 = vpop.f32.mrb[120].mxu0 }
 0x1e2   : > { %31162 = vst [vmem:[#allocation93_spill] sm:$0xff] %v25878_v10  ;;  %v25888_v6 = vpack.c.bf16 %v4530_v4, %v4529_v52  ;;  %v1878_v54 = vadd.f32 %v25842_v51, %v21682_v8  ;;  %v21878_v57 = vpop.f32.mrb[120].mxu1  ;;  %v1869_v37 = vpop.f32.mrb[121].mxu0  ;;  %v23449_v8 = vld [vmem:[%s24802_s29 + $0x6f0] sm:$0xff]  }
 0x1e3   : > { %31163 = vst [vmem:[#allocation94_spill] sm:$0xff] %v25882_v55  ;;  %31164 = vst [vmem:[#allocation95_spill] sm:$0xff] %v25884_v9  ;;  %v4079_v40 = vadd.f32 %v25842_v51, %v21878_v57  ;;  %v1870_v7 = vadd.f32 %v25842_v51, %v1869_v37  ;;  %v4070_v5 = vpop.f32.mrb[121].mxu1  ;;  %v21683_v31 = vpop.f32.mrb[122].mxu0 }
 0x1e4   : > { %31165 = vst [vmem:[#allocation96_spill] sm:$0xff] %v25888_v6  ;;  %v2310_v63 = vmax.f32 %v1878_v54, 0.0  ;;  %v4071_v3 = vadd.f32 %v25842_v51, %v4070_v5  ;;  %v1881_v13 = vadd.f32 %v25842_v51, %v21683_v31  ;;  %v21879_v52 = vpop.f32.mrb[122].mxu1  ;;  %v1872_v4 = vpop.f32.mrb[123].mxu0 }
 0x1e5   : > { %v4535_v27 = vmax.f32 %v4079_v40, 0.0  ;;  %v2308_v57 = vmax.f32 %v1870_v7, 0.0  ;;  %v4082_v37 = vadd.f32 %v25842_v51, %v21879_v52  ;;  %v1873_v21 = vadd.f32 %v25842_v51, %v1872_v4  ;;  %v4073_v41 = vpop.f32.mrb[123].mxu1  ;;  %v23447_v52 = vld [vmem:[%s24802_s29 + $0x6e8] sm:$0xff]  }
 0x1e6   : > { %v4533_v54 = vmax.f32 %v4071_v3, 0.0  ;;  %v2311_v5 = vmax.f32 %v1881_v13, 0.0  ;;  %v4074_v31 = vadd.f32 %v25842_v51, %v4073_v41  ;;  %22005 = vmatmul.mubr.msk.bf16.gmra.mrb[228].mxu0 %vm1054_vm0, %v23443_v61  ;;  %v23448_v41 = vld [vmem:[%s24802_s29 + $0x9c8] sm:$0xff]  }
 0x1e7   : > { %v4536_v23 = vmax.f32 %v4082_v37, 0.0  ;;  %v2309_v11 = vmax.f32 %v1873_v21, 0.0  ;;  %22193 = vmatmul.mubr.msk.bf16.gmra.mrb[228].mxu1 %vm1054_vm0, %v23444_v33  ;;  %22008 = vmatprep.mubr.msk.bf16.mxu0 %vm1054_vm0, %v23445_v58 }
 0x1e8   : > { %v25906_v40 = vpack.c.bf16 %v2311_v5, %v2310_v63  ;;  %v4534_v7 = vmax.f32 %v4074_v31, 0.0  ;;  %22196 = vmatprep.mubr.msk.bf16.mxu1 %vm1054_vm0, %v23446_v48  ;;  %v23511_v63 = vld [vmem:[%s30774_s3 + $0x60] sm:$0xff]  }
 0x1e9   : > { %v25910_v4 = vpack.c.bf16 %v4536_v23, %v4535_v27  ;;  %v25912_v3 = vpack.c.bf16 %v2309_v11, %v2308_v57  ;;  %v21686_v13 = vpop.f32.mrb[124].mxu0  ;;  %22380 = vmatprep.subr.bf16.mxu0 %v23511_v63 }
 0x1ea   : > { %31166 = vst [vmem:[#allocation97_spill] sm:$0xff] %v25906_v40  ;;  %v25916_v61 = vpack.c.bf16 %v4534_v7, %v4533_v54  ;;  %v1894_v21 = vadd.f32 %v25842_v51, %v21686_v13  ;;  %v21882_v33 = vpop.f32.mrb[124].mxu1  ;;  %v1885_v58 = vpop.f32.mrb[125].mxu0  ;;  %v23450_v13 = vld [vmem:[%s24802_s29 + $0x9d0] sm:$0xff]   ;;  %22381 = vmatpush3.bf16.msra.mxu0 %v23511_v63  ;;  %v23451_v63 = vld [vmem:[%s24802_s29 + $0x6f8] sm:$0xff]  }
 0x1eb   : > { %31167 = vst [vmem:[#allocation98_spill] sm:$0xff] %v25910_v4  ;;  %31168 = vst [vmem:[#allocation99_spill] sm:$0xff] %v25912_v3  ;;  %v4095_v48 = vadd.f32 %v25842_v51, %v21882_v33  ;;  %v1886_v27 = vadd.f32 %v25842_v51, %v1885_v58  ;;  %v4086_v11 = vpop.f32.mrb[125].mxu1  ;;  %v21687_v23 = vpop.f32.mrb[126].mxu0 }
 0x1ec   : > { %31169 = vst [vmem:[#allocation100_spill] sm:$0xff] %v25916_v61  ;;  %v2314_v37 = vmax.f32 %v1894_v21, 0.0  ;;  %v4087_v54 = vadd.f32 %v25842_v51, %v4086_v11  ;;  %v1897_v5 = vadd.f32 %v25842_v51, %v21687_v23  ;;  %v21883_v31 = vpop.f32.mrb[126].mxu1  ;;  %v1888_v7 = vpop.f32.mrb[127].mxu0 }
 0x1ed   : > { %v4539_v33 = vmax.f32 %v4095_v48, 0.0  ;;  %v2312_v6 = vmax.f32 %v1886_v27, 0.0  ;;  %v4098_v58 = vadd.f32 %v25842_v51, %v21883_v31  ;;  %v1889_v55 = vadd.f32 %v25842_v51, %v1888_v7  ;;  %v4089_v57 = vpop.f32.mrb[127].mxu1 }
 0x1ee   : > { %v4537_v21 = vmax.f32 %v4087_v54, 0.0  ;;  %v2315_v11 = vmax.f32 %v1897_v5, 0.0  ;;  %v4090_v23 = vadd.f32 %v25842_v51, %v4089_v57  ;;  %22009 = vmatmul.mubr.msk.bf16.gmra.mrb[232].mxu0 %vm1054_vm0, %v23447_v52  ;;  %v23452_v57 = vld [vmem:[%s24802_s29 + $0x9d8] sm:$0xff]   ;;  %v23453_v52 = vld [vmem:[%s24802_s29 + $0x700] sm:$0xff]  }
 0x1ef   : > { %v4540_v32 = vmax.f32 %v4098_v58, 0.0  ;;  %v2313_v4 = vmax.f32 %v1889_v55, 0.0  ;;  %22197 = vmatmul.mubr.msk.bf16.gmra.mrb[232].mxu1 %vm1054_vm0, %v23448_v41  ;;  %22012 = vmatprep.mubr.msk.bf16.mxu0 %vm1054_vm0, %v23449_v8 }
 0x1f0   : > { %v25937_v48 = vpack.c.bf16 %v2315_v11, %v2314_v37  ;;  %v4538_v27 = vmax.f32 %v4090_v23, 0.0  ;;  %22200 = vmatprep.mubr.msk.bf16.mxu1 %vm1054_vm0, %v23450_v13 }
 0x1f1   : > { %v25941_v31 = vpack.c.bf16 %v4540_v32, %v4539_v33  ;;  %v25943_v54 = vpack.c.bf16 %v2313_v4, %v2312_v6  ;;  %v21690_v5 = vpop.f32.mrb[128].mxu0 }
 0x1f2   : > { %31170 = vst [vmem:[#allocation101_spill] sm:$0xff] %v25937_v48  ;;  %v25947_v7 = vpack.c.bf16 %v4538_v27, %v4537_v21  ;;  %v1910_v55 = vadd.f32 %v25842_v51, %v21690_v5  ;;  %v21886_v41 = vpop.f32.mrb[128].mxu1  ;;  %v1901_v8 = vpop.f32.mrb[129].mxu0  ;;  %v23454_v27 = vld [vmem:[%s24802_s29 + $0x9e0] sm:$0xff]   ;;  %v23459_v5 = vld [vmem:[%s24802_s29 + $0x9f0] sm:$0xff]  }
 0x1f3   : > { %31171 = vst [vmem:[#allocation102_spill] sm:$0xff] %v25941_v31  ;;  %31172 = vst [vmem:[#allocation103_spill] sm:$0xff] %v25943_v54  ;;  %v4111_v37 = vadd.f32 %v25842_v51, %v21886_v41  ;;  %v1902_v58 = vadd.f32 %v25842_v51, %v1901_v8  ;;  %v4102_v13 = vpop.f32.mrb[129].mxu1  ;;  %v21691_v11 = vpop.f32.mrb[130].mxu0 }
 0x1f4   : > { %31173 = vst [vmem:[#allocation104_spill] sm:$0xff] %v25947_v7  ;;  %v2318_v6 = vmax.f32 %v1910_v55, 0.0  ;;  %v4103_v4 = vadd.f32 %v25842_v51, %v4102_v13  ;;  %v1913_v33 = vadd.f32 %v25842_v51, %v21691_v11  ;;  %v21887_v21 = vpop.f32.mrb[130].mxu1  ;;  %v1904_v23 = vpop.f32.mrb[131].mxu0 }
 0x1f5   : > { %v4543_v26 = vmax.f32 %v4111_v37, 0.0  ;;  %v2316_v41 = vmax.f32 %v1902_v58, 0.0  ;;  %v4114_v8 = vadd.f32 %v25842_v51, %v21887_v21  ;;  %v1905_v1 = vadd.f32 %v25842_v51, %v1904_v23  ;;  %v4105_v61 = vpop.f32.mrb[131].mxu1  ;;  %v23455_v21 = vld [vmem:[%s24802_s29 + $0x708] sm:$0xff]  }
 0x1f6   : > { %v4541_v55 = vmax.f32 %v4103_v4, 0.0  ;;  %v2319_v13 = vmax.f32 %v1913_v33, 0.0  ;;  %v4106_v11 = vadd.f32 %v25842_v51, %v4105_v61  ;;  %22013 = vmatmul.mubr.msk.bf16.gmra.mrb[236].mxu0 %vm1054_vm0, %v23451_v63  ;;  %v23456_v61 = vld [vmem:[%s24802_s29 + $0x9e8] sm:$0xff]   ;;  %v23458_v63 = vld [vmem:[%s24802_s29 + $0x710] sm:$0xff]  }
 0x1f7   : > { %v4544_v32 = vmax.f32 %v4114_v8, 0.0  ;;  %v2317_v10 = vmax.f32 %v1905_v1, 0.0  ;;  %22201 = vmatmul.mubr.msk.bf16.gmra.mrb[236].mxu1 %vm1054_vm0, %v23452_v57  ;;  %22016 = vmatprep.mubr.msk.bf16.mxu0 %vm1054_vm0, %v23453_v52 }
 0x1f8   : > { %v25965_v37 = vpack.c.bf16 %v2319_v13, %v2318_v6  ;;  %v4542_v58 = vmax.f32 %v4106_v11, 0.0  ;;  %22204 = vmatprep.mubr.msk.bf16.mxu1 %vm1054_vm0, %v23454_v27 }
 0x1f9   : > { %v25969_v23 = vpack.c.bf16 %v4544_v32, %v4543_v26  ;;  %v25971_v4 = vpack.c.bf16 %v2317_v10, %v2316_v41  ;;  %v21694_v33 = vpop.f32.mrb[132].mxu0 }
 0x1fa   : > { %31174 = vst [vmem:[#allocation105_spill] sm:$0xff] %v25965_v37  ;;  %v25975_v8 = vpack.c.bf16 %v4542_v58, %v4541_v55  ;;  %v1926_v1 = vadd.f32 %v25842_v51, %v21694_v33  ;;  %v21890_v57 = vpop.f32.mrb[132].mxu1  ;;  %v1917_v52 = vpop.f32.mrb[133].mxu0  ;;  %v23463_v33 = vld [vmem:[%s24802_s29 + $0xa00] sm:$0xff]  }
 0x1fb   : > { %31175 = vst [vmem:[#allocation106_spill] sm:$0xff] %v25969_v23  ;;  %31176 = vst [vmem:[#allocation107_spill] sm:$0xff] %v25971_v4  ;;  %v4127_v6 = vadd.f32 %v25842_v51, %v21890_v57  ;;  %v1918_v13 = vadd.f32 %v25842_v51, %v1917_v52  ;;  %v4118_v27 = vpop.f32.mrb[133].mxu1  ;;  %v21695_v11 = vpop.f32.mrb[134].mxu0 }
 0x1fc   : > { %31177 = vst [vmem:[#allocation108_spill] sm:$0xff] %v25975_v8  ;;  %v2322_v10 = vmax.f32 %v1926_v1, 0.0  ;;  %v4119_v32 = vadd.f32 %v25842_v51, %v4118_v27  ;;  %v1929_v41 = vadd.f32 %v25842_v51, %v21695_v11  ;;  %v21891_v55 = vpop.f32.mrb[134].mxu1  ;;  %v1920_v58 = vpop.f32.mrb[135].mxu0 }
 0x1fd   : > { %v4547_v9 = vmax.f32 %v4127_v6, 0.0  ;;  %v2320_v57 = vmax.f32 %v1918_v13, 0.0  ;;  %v4130_v52 = vadd.f32 %v25842_v51, %v21891_v55  ;;  %v1921_v7 = vadd.f32 %v25842_v51, %v1920_v58  ;;  %v4121_v31 = vpop.f32.mrb[135].mxu1  ;;  %v23460_v55 = vld [vmem:[%s24802_s29 + $0x718] sm:$0xff]  }
 0x1fe   : > { %v4545_v1 = vmax.f32 %v4119_v32, 0.0  ;;  %v2323_v27 = vmax.f32 %v1929_v41, 0.0  ;;  %v4122_v11 = vadd.f32 %v25842_v51, %v4121_v31  ;;  %22017 = vmatmul.mubr.msk.bf16.gmra.mrb[240].mxu0 %vm1054_vm0, %v23455_v21  ;;  %v23461_v41 = vld [vmem:[%s24802_s29 + $0x9f8] sm:$0xff]   ;;  %v23462_v21 = vld [vmem:[%s24802_s29 + $0x720] sm:$0xff]  }
 0x1ff   : > { %v4548_v26 = vmax.f32 %v4130_v52, 0.0  ;;  %v2321_v40 = vmax.f32 %v1921_v7, 0.0  ;;  %22205 = vmatmul.mubr.msk.bf16.gmra.mrb[240].mxu1 %vm1054_vm0, %v23456_v61  ;;  %22020 = vmatprep.mubr.msk.bf16.mxu0 %vm1054_vm0, %v23458_v63 }
 0x200   : > { %v25993_v6 = vpack.c.bf16 %v2323_v27, %v2322_v10  ;;  %v4546_v13 = vmax.f32 %v4122_v11, 0.0  ;;  %22208 = vmatprep.mubr.msk.bf16.mxu1 %vm1054_vm0, %v23459_v5 }
 0x201   : > { %v25997_v58 = vpack.c.bf16 %v4548_v26, %v4547_v9  ;;  %v25999_v32 = vpack.c.bf16 %v2321_v40, %v2320_v57  ;;  %v21698_v31 = vpop.f32.mrb[136].mxu0 }
 0x202   : > { %31178 = vst [vmem:[#allocation109_spill] sm:$0xff] %v25993_v6  ;;  %v26003_v52 = vpack.c.bf16 %v4546_v13, %v4545_v1  ;;  %v21894_v7 = vpop.f32.mrb[136].mxu1  ;;  %v1933_v61 = vpop.f32.mrb[137].mxu0  ;;  %v1942_v63 = vadd.f32 %v25842_v51, %v21698_v31 }
 0x203   : > { %31179 = vst [vmem:[#allocation110_spill] sm:$0xff] %v25997_v58  ;;  %31180 = vst [vmem:[#allocation111_spill] sm:$0xff] %v25999_v32  ;;  %v4143_v10 = vadd.f32 %v25842_v51, %v21894_v7  ;;  %v4134_v27 = vpop.f32.mrb[137].mxu1  ;;  %v21699_v11 = vpop.f32.mrb[138].mxu0  ;;  %v1934_v40 = vadd.f32 %v25842_v51, %v1933_v61 }
 0x204   : > { %31181 = vst [vmem:[#allocation112_spill] sm:$0xff] %v26003_v52  ;;  %v4135_v5 = vadd.f32 %v25842_v51, %v4134_v27  ;;  %v21895_v26 = vpop.f32.mrb[138].mxu1  ;;  %v1936_v57 = vpop.f32.mrb[139].mxu0  ;;  %v1945_v13 = vadd.f32 %v25842_v51, %v21699_v11  ;;  %v2326_v31 = vmax.f32 %v1942_v63, 0.0  ;;  %v23464_v11 = vld [vmem:[%s24802_s29 + $0x728] sm:$0xff]  }
 0x205   : > { %v4551_v7 = vmax.f32 %v4143_v10, 0.0  ;;  %v4146_v3 = vadd.f32 %v25842_v51, %v21895_v26  ;;  %v4137_v8 = vpop.f32.mrb[139].mxu1  ;;  %v1937_v9 = vadd.f32 %v25842_v51, %v1936_v57  ;;  %v2324_v61 = vmax.f32 %v1934_v40, 0.0  ;;  %v23466_v57 = vld [vmem:[%s24802_s29 + $0x730] sm:$0xff]  }
 0x206   : > { %v4549_v27 = vmax.f32 %v4135_v5, 0.0  ;;  %v4138_v48 = vadd.f32 %v25842_v51, %v4137_v8  ;;  %22021 = vmatmul.mubr.msk.bf16.gmra.mrb[244].mxu0 %vm1054_vm0, %v23460_v55  ;;  %v2327_v58 = vmax.f32 %v1945_v13, 0.0  ;;  %v23465_v8 = vld [vmem:[%s24802_s29 + $0xa08] sm:$0xff]  }
 0x207   : > { %v4552_v1 = vmax.f32 %v4146_v3, 0.0  ;;  %22209 = vmatmul.mubr.msk.bf16.gmra.mrb[244].mxu1 %vm1054_vm0, %v23461_v41  ;;  %22024 = vmatprep.mubr.msk.bf16.mxu0 %vm1054_vm0, %v23462_v21  ;;  %v2325_v63 = vmax.f32 %v1937_v9, 0.0 }
 0x208   : > { %v4550_v10 = vmax.f32 %v4138_v48, 0.0  ;;  %22212 = vmatprep.mubr.msk.bf16.mxu1 %vm1054_vm0, %v23463_v33  ;;  %v26023_v26 = vpack.c.bf16 %v2327_v58, %v2326_v31 }
 0x209   : > { %v26025_v40 = vpack.c.bf16 %v4552_v1, %v4551_v7  ;;  %v21702_v5 = vpop.f32.mrb[140].mxu0  ;;  %v26029_v55 = vpack.c.bf16 %v2325_v63, %v2324_v61  ;;  %v23467_v63 = vld [vmem:[%s24802_s29 + $0xa10] sm:$0xff]  }
 0x20a   : > { %31182 = vst [vmem:[#allocation113_spill] sm:$0xff] %v26023_v26  ;;  %v26031_v3 = vpack.c.bf16 %v4550_v10, %v4549_v27  ;;  %v21898_v41 = vpop.f32.mrb[140].mxu1  ;;  %v1949_v13 = vpop.f32.mrb[141].mxu0  ;;  %v1958_v21 = vadd.f32 %v25842_v51, %v21702_v5 }
 0x20b   : > { %31183 = vst [vmem:[#allocation114_spill] sm:$0xff] %v26025_v40  ;;  %31184 = vst [vmem:[#allocation115_spill] sm:$0xff] %v26029_v55  ;;  %v4159_v48 = vadd.f32 %v25842_v51, %v21898_v41  ;;  %v4150_v33 = vpop.f32.mrb[141].mxu1  ;;  %v21703_v9 = vpop.f32.mrb[142].mxu0  ;;  %v1950_v1 = vadd.f32 %v25842_v51, %v1949_v13 }
 0x20c   : > { %31185 = vst [vmem:[#allocation116_spill] sm:$0xff] %v26031_v3  ;;  %v4151_v31 = vadd.f32 %v25842_v51, %v4150_v33  ;;  %v21899_v7 = vpop.f32.mrb[142].mxu1  ;;  %v1952_v61 = vpop.f32.mrb[143].mxu0  ;;  %v1961_v10 = vadd.f32 %v25842_v51, %v21703_v9  ;;  %v2330_v5 = vmax.f32 %v1958_v21, 0.0  ;;  %v23468_v9 = vld [vmem:[%s24802_s29 + $0x738] sm:$0xff]  }
 0x20d   : > { %v4555_v41 = vmax.f32 %v4159_v48, 0.0  ;;  %v4162_v54 = vadd.f32 %v25842_v51, %v21899_v7  ;;  %v4153_v52 = vpop.f32.mrb[143].mxu1  ;;  %v1953_v58 = vadd.f32 %v25842_v51, %v1952_v61  ;;  %v2328_v13 = vmax.f32 %v1950_v1, 0.0  ;;  %v23469_v61 = vld [vmem:[%s24802_s29 + $0xa18] sm:$0xff]  }
 0x20e   : > { %v4553_v33 = vmax.f32 %v4151_v31, 0.0  ;;  %v4154_v37 = vadd.f32 %v25842_v51, %v4153_v52  ;;  %22025 = vmatmul.mubr.msk.bf16.gmra.mrb[248].mxu0 %vm1054_vm0, %v23464_v11  ;;  %v2331_v40 = vmax.f32 %v1961_v10, 0.0  ;;  %v23470_v52 = vld [vmem:[%s24802_s29 + $0x740] sm:$0xff]  }
 0x20f   : > { %v4556_v27 = vmax.f32 %v4162_v54, 0.0  ;;  %22213 = vmatmul.mubr.msk.bf16.gmra.mrb[248].mxu1 %vm1054_vm0, %v23465_v8  ;;  %22028 = vmatprep.mubr.msk.bf16.mxu0 %vm1054_vm0, %v23466_v57  ;;  %v2329_v21 = vmax.f32 %v1953_v58, 0.0 }
 0x210   : > { %v4554_v48 = vmax.f32 %v4154_v37, 0.0  ;;  %22216 = vmatprep.mubr.msk.bf16.mxu1 %vm1054_vm0, %v23467_v63  ;;  %v26051_v7 = vpack.c.bf16 %v2331_v40, %v2330_v5 }
 0x211   : > { %v26053_v1 = vpack.c.bf16 %v4556_v27, %v4555_v41  ;;  %v21706_v31 = vpop.f32.mrb[144].mxu0  ;;  %v26057_v11 = vpack.c.bf16 %v2329_v21, %v2328_v13 }
 0x212   : > { %31186 = vst [vmem:[#allocation117_spill] sm:$0xff] %v26051_v7  ;;  %v26059_v54 = vpack.c.bf16 %v4554_v48, %v4553_v33  ;;  %v1974_v8 = vadd.f32 %v25842_v51, %v21706_v31  ;;  %v21902_v57 = vpop.f32.mrb[144].mxu1  ;;  %v1965_v58 = vpop.f32.mrb[145].mxu0  ;;  %v23471_v48 = vld [vmem:[%s24802_s29 + $0xa20] sm:$0xff]   ;;  %v23474_v31 = vld [vmem:[%s24802_s29 + $0x750] sm:$0xff]  }
 0x213   : > { %31187 = vst [vmem:[#allocation118_spill] sm:$0xff] %v26053_v1  ;;  %31188 = vst [vmem:[#allocation119_spill] sm:$0xff] %v26057_v11  ;;  %v4175_v37 = vadd.f32 %v25842_v51, %v21902_v57  ;;  %v1966_v63 = vadd.f32 %v25842_v51, %v1965_v58  ;;  %v4166_v40 = vpop.f32.mrb[145].mxu1  ;;  %v21707_v10 = vpop.f32.mrb[146].mxu0 }
 0x214   : > { %31189 = vst [vmem:[#allocation120_spill] sm:$0xff] %v26059_v54  ;;  %v2334_v5 = vmax.f32 %v1974_v8, 0.0  ;;  %v4167_v41 = vadd.f32 %v25842_v51, %v4166_v40  ;;  %v1977_v13 = vadd.f32 %v25842_v51, %v21707_v10  ;;  %v21903_v33 = vpop.f32.mrb[146].mxu1  ;;  %v1968_v21 = vpop.f32.mrb[147].mxu0 }
 0x215   : > { %v4559_v4 = vmax.f32 %v4175_v37, 0.0  ;;  %v2332_v57 = vmax.f32 %v1966_v63, 0.0  ;;  %v4178_v58 = vadd.f32 %v25842_v51, %v21903_v33  ;;  %v1969_v3 = vadd.f32 %v25842_v51, %v1968_v21  ;;  %v4169_v23 = vpop.f32.mrb[147].mxu1  ;;  %v23472_v33 = vld [vmem:[%s24802_s29 + $0x748] sm:$0xff]  }
 0x216   : > { %v4557_v8 = vmax.f32 %v4167_v41, 0.0  ;;  %v2335_v40 = vmax.f32 %v1977_v13, 0.0  ;;  %v4170_v10 = vadd.f32 %v25842_v51, %v4169_v23  ;;  %22029 = vmatmul.mubr.msk.bf16.gmra.mrb[252].mxu0 %vm1054_vm0, %v23468_v9  ;;  %v23473_v23 = vld [vmem:[%s24802_s29 + $0xa28] sm:$0xff]  }
 0x217   : > { %v4560_v27 = vmax.f32 %v4178_v58, 0.0  ;;  %v2333_v6 = vmax.f32 %v1969_v3, 0.0  ;;  %22217 = vmatmul.mubr.msk.bf16.gmra.mrb[252].mxu1 %vm1054_vm0, %v23469_v61  ;;  %22032 = vmatprep.mubr.msk.bf16.mxu0 %vm1054_vm0, %v23470_v52 }
 0x218   : > { %v26077_v37 = vpack.c.bf16 %v2335_v40, %v2334_v5  ;;  %v4558_v63 = vmax.f32 %v4170_v10, 0.0  ;;  %22220 = vmatprep.mubr.msk.bf16.mxu1 %vm1054_vm0, %v23471_v48 }
 0x219   : > { %v26081_v21 = vpack.c.bf16 %v4560_v27, %v4559_v4  ;;  %v26083_v41 = vpack.c.bf16 %v2333_v6, %v2332_v57  ;;  %v21710_v13 = vpop.f32.mrb[148].mxu0  ;;  %v23536_v4 = vld [vmem:[%s30774_s3 + $0x68] sm:$0xff]  }
 0x21a   : > { %31190 = vst [vmem:[#allocation121_spill] sm:$0xff] %v26077_v37  ;;  %v26087_v9 = vpack.c.bf16 %v4558_v63, %v4557_v8  ;;  %v1990_v3 = vadd.f32 %v25842_v51, %v21710_v13  ;;  %v21906_v61 = vpop.f32.mrb[148].mxu1  ;;  %v1981_v52 = vpop.f32.mrb[149].mxu0  ;;  %v23475_v13 = vld [vmem:[%s24802_s29 + $0xa30] sm:$0xff]   ;;  %22382 = vmatprep.subr.bf16.mxu0 %v23536_v4 }
 0x21b   : > { %31191 = vst [vmem:[#allocation122_spill] sm:$0xff] %v26083_v41  ;;  %v4191_v5 = vadd.f32 %v25842_v51, %v21906_v61  ;;  %v1982_v58 = vadd.f32 %v25842_v51, %v1981_v52  ;;  %v4182_v48 = vpop.f32.mrb[149].mxu1  ;;  %v21711_v40 = vpop.f32.mrb[150].mxu0  ;;  %22383 = vmatpush3.bf16.msra.mxu0 %v23536_v4 }
 0x21c   : > { %31192 = vst [vmem:[#allocation123_spill] sm:$0xff] %v26087_v9  ;;  %v2338_v27 = vmax.f32 %v1990_v3, 0.0  ;;  %v4183_v57 = vadd.f32 %v25842_v51, %v4182_v48  ;;  %v1993_v8 = vadd.f32 %v25842_v51, %v21711_v40  ;;  %v21907_v10 = vpop.f32.mrb[150].mxu1  ;;  %v1984_v63 = vpop.f32.mrb[151].mxu0 }
 0x21d   : > { %v4563_v52 = vmax.f32 %v4191_v5, 0.0  ;;  %v2336_v32 = vmax.f32 %v1982_v58, 0.0  ;;  %v4194_v54 = vadd.f32 %v25842_v51, %v21907_v10  ;;  %v1985_v1 = vadd.f32 %v25842_v51, %v1984_v63  ;;  %v4185_v43 = vpop.f32.mrb[151].mxu1  ;;  %v23476_v10 = vld [vmem:[%s24802_s29 + $0x758] sm:$0xff]  }
 0x21e   : > { %v4561_v3 = vmax.f32 %v4183_v57, 0.0  ;;  %v2339_v48 = vmax.f32 %v1993_v8, 0.0  ;;  %v4186_v40 = vadd.f32 %v25842_v51, %v4185_v43  ;;  %22033 = vmatmul.mubr.msk.bf16.gmra.mrb[0].mxu0 %vm1054_vm0, %v23472_v33  ;;  %v23477_v51 = vld [vmem:[%s24802_s29 + $0xa38] sm:$0xff]   ;;  %v23478_v33 = vld [vmem:[%s24802_s29 + $0x760] sm:$0xff]  }
 0x21f   : > { %v4564_v6 = vmax.f32 %v4194_v54, 0.0  ;;  %v2337_v26 = vmax.f32 %v1985_v1, 0.0  ;;  %22221 = vmatmul.mubr.msk.bf16.gmra.mrb[0].mxu1 %vm1054_vm0, %v23473_v23  ;;  %22036 = vmatprep.mubr.msk.bf16.mxu0 %vm1054_vm0, %v23474_v31  ;;  %v26123_v54 = vld [vmem:[%s30773_s2] ss:$0 sm:$0xff] }
 0x220   : > { %v26108_v5 = vpack.c.bf16 %v2339_v48, %v2338_v27  ;;  %v4562_v58 = vmax.f32 %v4186_v40, 0.0  ;;  %22224 = vmatprep.mubr.msk.bf16.mxu1 %vm1054_vm0, %v23475_v13 }
 0x221   : > { %v26112_v57 = vpack.c.bf16 %v4564_v6, %v4563_v52  ;;  %v26114_v8 = vpack.c.bf16 %v2337_v26, %v2336_v32  ;;  %v21714_v43 = vpop.f32.mrb[152].mxu0 }
 0x222   : > { %31193 = vst [vmem:[#allocation124_spill] sm:$0xff] %v26108_v5  ;;  %v26118_v1 = vpack.c.bf16 %v4562_v58, %v4561_v3  ;;  %v2006_v31 = vadd.f32 %v26123_v54, %v21714_v43  ;;  %v21910_v23 = vpop.f32.mrb[152].mxu1  ;;  %v1997_v27 = vpop.f32.mrb[153].mxu0  ;;  %v23479_v58 = vld [vmem:[%s24802_s29 + $0xa40] sm:$0xff]   ;;  %v23484_v43 = vld [vmem:[%s24802_s29 + $0xa50] sm:$0xff]  }
 0x223   : > { %31194 = vst [vmem:[#allocation125_spill] sm:$0xff] %v26112_v57  ;;  %31195 = vst [vmem:[#allocation126_spill] sm:$0xff] %v26114_v8  ;;  %v4207_v4 = vadd.f32 %v26123_v54, %v21910_v23  ;;  %v1998_v32 = vadd.f32 %v26123_v54, %v1997_v27  ;;  %v4198_v26 = vpop.f32.mrb[153].mxu1  ;;  %v21715_v6 = vpop.f32.mrb[154].mxu0 }
 0x224   : > { %31196 = vst [vmem:[#allocation127_spill] sm:$0xff] %v26118_v1  ;;  %v2342_v13 = vmax.f32 %v2006_v31, 0.0  ;;  %v4199_v52 = vadd.f32 %v26123_v54, %v4198_v26  ;;  %v2009_v3 = vadd.f32 %v26123_v54, %v21715_v6  ;;  %v21911_v48 = vpop.f32.mrb[154].mxu1  ;;  %v2000_v40 = vpop.f32.mrb[155].mxu0 }
 0x225   : > { %v4567_v61 = vmax.f32 %v4207_v4, 0.0  ;;  %v2340_v23 = vmax.f32 %v1998_v32, 0.0  ;;  %v4210_v27 = vadd.f32 %v26123_v54, %v21911_v48  ;;  %v2001_v55 = vadd.f32 %v26123_v54, %v2000_v40  ;;  %v4201_v9 = vpop.f32.mrb[155].mxu1  ;;  %v23480_v48 = vld [vmem:[%s24802_s29 + $0x768] sm:$0xff]  }
 0x226   : > { %v4565_v31 = vmax.f32 %v4199_v52, 0.0  ;;  %v2343_v26 = vmax.f32 %v2009_v3, 0.0  ;;  %v4202_v6 = vadd.f32 %v26123_v54, %v4201_v9  ;;  %22037 = vmatmul.mubr.msk.bf16.gmra.mrb[4].mxu0 %vm1054_vm0, %v23476_v10  ;;  %v23481_v9 = vld [vmem:[%s24802_s29 + $0xa48] sm:$0xff]   ;;  %v23483_v10 = vld [vmem:[%s24802_s29 + $0x770] sm:$0xff]  }
 0x227   : > { %v4568_v63 = vmax.f32 %v4210_v27, 0.0  ;;  %v2341_v7 = vmax.f32 %v2001_v55, 0.0  ;;  %22225 = vmatmul.mubr.msk.bf16.gmra.mrb[4].mxu1 %vm1054_vm0, %v23477_v51  ;;  %22040 = vmatprep.mubr.msk.bf16.mxu0 %vm1054_vm0, %v23478_v33 }
 0x228   : > { %v26141_v4 = vpack.c.bf16 %v2343_v26, %v2342_v13  ;;  %v4566_v32 = vmax.f32 %v4202_v6, 0.0  ;;  %22228 = vmatprep.mubr.msk.bf16.mxu1 %vm1054_vm0, %v23479_v58 }
 0x229   : > { %v26145_v40 = vpack.c.bf16 %v4568_v63, %v4567_v61  ;;  %v26147_v52 = vpack.c.bf16 %v2341_v7, %v2340_v23  ;;  %v21718_v3 = vpop.f32.mrb[156].mxu0 }
 0x22a   : > { %31197 = vst [vmem:[#allocation128_spill] sm:$0xff] %v26141_v4  ;;  %v26151_v27 = vpack.c.bf16 %v4566_v32, %v4565_v31  ;;  %v2022_v55 = vadd.f32 %v26123_v54, %v21718_v3  ;;  %v21914_v51 = vpop.f32.mrb[156].mxu1  ;;  %v2013_v33 = vpop.f32.mrb[157].mxu0  ;;  %v23488_v3 = vld [vmem:[%s24802_s29 + $0xa60] sm:$0xff]  }
 0x22b   : > { %31198 = vst [vmem:[#allocation129_spill] sm:$0xff] %v26145_v40  ;;  %31199 = vst [vmem:[#allocation130_spill] sm:$0xff] %v26147_v52  ;;  %v4223_v13 = vadd.f32 %v26123_v54, %v21914_v51  ;;  %v2014_v26 = vadd.f32 %v26123_v54, %v2013_v33  ;;  %v4214_v58 = vpop.f32.mrb[157].mxu1  ;;  %v21719_v6 = vpop.f32.mrb[158].mxu0 }
 0x22c   : > { %31200 = vst [vmem:[#allocation131_spill] sm:$0xff] %v26151_v27  ;;  %v2346_v61 = vmax.f32 %v2022_v55, 0.0  ;;  %v4215_v63 = vadd.f32 %v26123_v54, %v4214_v58  ;;  %v2025_v23 = vadd.f32 %v26123_v54, %v21719_v6  ;;  %v21915_v31 = vpop.f32.mrb[158].mxu1  ;;  %v2016_v32 = vpop.f32.mrb[159].mxu0 }
 0x22d   : > { %v4571_v11 = vmax.f32 %v4223_v13, 0.0  ;;  %v2344_v51 = vmax.f32 %v2014_v26, 0.0  ;;  %v4226_v33 = vadd.f32 %v26123_v54, %v21915_v31  ;;  %v2017_v1 = vadd.f32 %v26123_v54, %v2016_v32  ;;  %v4217_v57 = vpop.f32.mrb[159].mxu1  ;;  %v23485_v31 = vld [vmem:[%s24802_s29 + $0x778] sm:$0xff]  }
 0x22e   : > { %v4569_v55 = vmax.f32 %v4215_v63, 0.0  ;;  %v2347_v58 = vmax.f32 %v2025_v23, 0.0  ;;  %v4218_v6 = vadd.f32 %v26123_v54, %v4217_v57  ;;  %22041 = vmatmul.mubr.msk.bf16.gmra.mrb[8].mxu0 %vm1054_vm0, %v23480_v48  ;;  %v23486_v57 = vld [vmem:[%s24802_s29 + $0xa58] sm:$0xff]   ;;  %v23487_v48 = vld [vmem:[%s24802_s29 + $0x780] sm:$0xff]  }
 0x22f   : > { %v4572_v7 = vmax.f32 %v4226_v33, 0.0  ;;  %v2345_v37 = vmax.f32 %v2017_v1, 0.0  ;;  %22229 = vmatmul.mubr.msk.bf16.gmra.mrb[8].mxu1 %vm1054_vm0, %v23481_v9  ;;  %22044 = vmatprep.mubr.msk.bf16.mxu0 %vm1054_vm0, %v23483_v10 }
 0x230   : > { %v26169_v13 = vpack.c.bf16 %v2347_v58, %v2346_v61  ;;  %v4570_v26 = vmax.f32 %v4218_v6, 0.0  ;;  %22232 = vmatprep.mubr.msk.bf16.mxu1 %vm1054_vm0, %v23484_v43 }
 0x231   : > { %v26173_v32 = vpack.c.bf16 %v4572_v7, %v4571_v11  ;;  %v26175_v63 = vpack.c.bf16 %v2345_v37, %v2344_v51  ;;  %v21722_v23 = vpop.f32.mrb[160].mxu0 }
 0x232   : > { %31201 = vst [vmem:[#allocation132_spill] sm:$0xff] %v26169_v13  ;;  %v26179_v33 = vpack.c.bf16 %v4570_v26, %v4569_v55  ;;  %v2038_v1 = vadd.f32 %v26123_v54, %v21722_v23  ;;  %v21918_v9 = vpop.f32.mrb[160].mxu1  ;;  %v2029_v10 = vpop.f32.mrb[161].mxu0  ;;  %v23492_v23 = vld [vmem:[%s24802_s29 + $0xa70] sm:$0xff]  }
 0x233   : > { %31202 = vst [vmem:[#allocation133_spill] sm:$0xff] %v26173_v32  ;;  %31203 = vst [vmem:[#allocation134_spill] sm:$0xff] %v26175_v63  ;;  %v4239_v61 = vadd.f32 %v26123_v54, %v21918_v9  ;;  %v2030_v58 = vadd.f32 %v26123_v54, %v2029_v10  ;;  %v4230_v43 = vpop.f32.mrb[161].mxu1  ;;  %v21723_v6 = vpop.f32.mrb[162].mxu0 }
 0x234   : > { %31204 = vst [vmem:[#allocation135_spill] sm:$0xff] %v26179_v33  ;;  %v2350_v37 = vmax.f32 %v2038_v1, 0.0  ;;  %v4231_v7 = vadd.f32 %v26123_v54, %v4230_v43  ;;  %v2041_v51 = vadd.f32 %v26123_v54, %v21723_v6  ;;  %v21919_v55 = vpop.f32.mrb[162].mxu1  ;;  %v2032_v26 = vpop.f32.mrb[163].mxu0 }
 0x235   : > { %v4575_v41 = vmax.f32 %v4239_v61, 0.0  ;;  %v2348_v9 = vmax.f32 %v2030_v58, 0.0  ;;  %v4242_v10 = vadd.f32 %v26123_v54, %v21919_v55  ;;  %v2033_v27 = vadd.f32 %v26123_v54, %v2032_v26  ;;  %v4233_v40 = vpop.f32.mrb[163].mxu1  ;;  %v23489_v55 = vld [vmem:[%s24802_s29 + $0x788] sm:$0xff]  }
 0x236   : > { %v4573_v1 = vmax.f32 %v4231_v7, 0.0  ;;  %v2351_v43 = vmax.f32 %v2041_v51, 0.0  ;;  %v4234_v6 = vadd.f32 %v26123_v54, %v4233_v40  ;;  %22045 = vmatmul.mubr.msk.bf16.gmra.mrb[12].mxu0 %vm1054_vm0, %v23485_v31  ;;  %v23490_v40 = vld [vmem:[%s24802_s29 + $0xa68] sm:$0xff]   ;;  %v23491_v31 = vld [vmem:[%s24802_s29 + $0x790] sm:$0xff]  }
 0x237   : > { %v4576_v11 = vmax.f32 %v4242_v10, 0.0  ;;  %v2349_v5 = vmax.f32 %v2033_v27, 0.0  ;;  %22233 = vmatmul.mubr.msk.bf16.gmra.mrb[12].mxu1 %vm1054_vm0, %v23486_v57  ;;  %22048 = vmatprep.mubr.msk.bf16.mxu0 %vm1054_vm0, %v23487_v48 }
 0x238   : > { %v26197_v61 = vpack.c.bf16 %v2351_v43, %v2350_v37  ;;  %v4574_v58 = vmax.f32 %v4234_v6, 0.0  ;;  %22236 = vmatprep.mubr.msk.bf16.mxu1 %vm1054_vm0, %v23488_v3 }
 0x239   : > { %v26201_v26 = vpack.c.bf16 %v4576_v11, %v4575_v41  ;;  %v26203_v7 = vpack.c.bf16 %v2349_v5, %v2348_v9  ;;  %v21726_v51 = vpop.f32.mrb[164].mxu0 }
 0x23a   : > { %31205 = vst [vmem:[#allocation136_spill] sm:$0xff] %v26197_v61  ;;  %v26207_v10 = vpack.c.bf16 %v4574_v58, %v4573_v1  ;;  %v2054_v27 = vadd.f32 %v26123_v54, %v21726_v51  ;;  %v21922_v57 = vpop.f32.mrb[164].mxu1  ;;  %v2045_v48 = vpop.f32.mrb[165].mxu0  ;;  %v23496_v51 = vld [vmem:[%s24802_s29 + $0xa80] sm:$0xff]  }
 0x23b   : > { %31206 = vst [vmem:[#allocation137_spill] sm:$0xff] %v26201_v26  ;;  %31207 = vst [vmem:[#allocation138_spill] sm:$0xff] %v26203_v7  ;;  %v4255_v37 = vadd.f32 %v26123_v54, %v21922_v57  ;;  %v2046_v43 = vadd.f32 %v26123_v54, %v2045_v48  ;;  %v4246_v3 = vpop.f32.mrb[165].mxu1  ;;  %v21727_v6 = vpop.f32.mrb[166].mxu0  ;;  %v23503_v7 = vld [vmem:[%s24802_s29 + $0x7c0] sm:$0xff]  }
 0x23c   : > { %31208 = vst [vmem:[#allocation139_spill] sm:$0xff] %v26207_v10  ;;  %v2354_v5 = vmax.f32 %v2054_v27, 0.0  ;;  %v4247_v11 = vadd.f32 %v26123_v54, %v4246_v3  ;;  %v2057_v9 = vadd.f32 %v26123_v54, %v21727_v6  ;;  %v21923_v1 = vpop.f32.mrb[166].mxu1  ;;  %v2048_v58 = vpop.f32.mrb[167].mxu0 }
 0x23d   : > { %v4579_v8 = vmax.f32 %v4255_v37, 0.0  ;;  %v2352_v57 = vmax.f32 %v2046_v43, 0.0  ;;  %v4258_v48 = vadd.f32 %v26123_v54, %v21923_v1  ;;  %v2049_v33 = vadd.f32 %v26123_v54, %v2048_v58  ;;  %v4249_v32 = vpop.f32.mrb[167].mxu1  ;;  %v23493_v1 = vld [vmem:[%s24802_s29 + $0x798] sm:$0xff]  }
 0x23e   : > { %v4577_v27 = vmax.f32 %v4247_v11, 0.0  ;;  %v2355_v3 = vmax.f32 %v2057_v9, 0.0  ;;  %v4250_v6 = vadd.f32 %v26123_v54, %v4249_v32  ;;  %22049 = vmatmul.mubr.msk.bf16.gmra.mrb[16].mxu0 %vm1054_vm0, %v23489_v55  ;;  %v23494_v32 = vld [vmem:[%s24802_s29 + $0xa78] sm:$0xff]   ;;  %v23495_v55 = vld [vmem:[%s24802_s29 + $0x7a0] sm:$0xff]  }
 0x23f   : > { %v4580_v41 = vmax.f32 %v4258_v48, 0.0  ;;  %v2353_v4 = vmax.f32 %v2049_v33, 0.0  ;;  %22237 = vmatmul.mubr.msk.bf16.gmra.mrb[16].mxu1 %vm1054_vm0, %v23490_v40  ;;  %22052 = vmatprep.mubr.msk.bf16.mxu0 %vm1054_vm0, %v23491_v31 }
 0x240   : > { %v26225_v37 = vpack.c.bf16 %v2355_v3, %v2354_v5  ;;  %v4578_v43 = vmax.f32 %v4250_v6, 0.0  ;;  %22240 = vmatprep.mubr.msk.bf16.mxu1 %vm1054_vm0, %v23492_v23 }
 0x241   : > { %v26229_v58 = vpack.c.bf16 %v4580_v41, %v4579_v8  ;;  %v26231_v11 = vpack.c.bf16 %v2353_v4, %v2352_v57  ;;  %v21730_v9 = vpop.f32.mrb[168].mxu0 }
 0x242   : > { %31209 = vst [vmem:[#allocation140_spill] sm:$0xff] %v26225_v37  ;;  %v26235_v48 = vpack.c.bf16 %v4578_v43, %v4577_v27  ;;  %v2070_v33 = vadd.f32 %v26123_v54, %v21730_v9  ;;  %v21926_v40 = vpop.f32.mrb[168].mxu1  ;;  %v2061_v31 = vpop.f32.mrb[169].mxu0  ;;  %v23500_v9 = vld [vmem:[%s24802_s29 + $0xa90] sm:$0xff]  }
 0x243   : > { %31210 = vst [vmem:[#allocation141_spill] sm:$0xff] %v26229_v58  ;;  %31211 = vst [vmem:[#allocation142_spill] sm:$0xff] %v26231_v11  ;;  %v4271_v5 = vadd.f32 %v26123_v54, %v21926_v40  ;;  %v2062_v3 = vadd.f32 %v26123_v54, %v2061_v31  ;;  %v4262_v23 = vpop.f32.mrb[169].mxu1  ;;  %v21731_v6 = vpop.f32.mrb[170].mxu0 }
 0x244   : > { %31212 = vst [vmem:[#allocation143_spill] sm:$0xff] %v26235_v48  ;;  %v2358_v4 = vmax.f32 %v2070_v33, 0.0  ;;  %v4263_v41 = vadd.f32 %v26123_v54, %v4262_v23  ;;  %v2073_v57 = vadd.f32 %v26123_v54, %v21731_v6  ;;  %v21927_v27 = vpop.f32.mrb[170].mxu1  ;;  %v2064_v43 = vpop.f32.mrb[171].mxu0 }
 0x245   : > { %v4583_v52 = vmax.f32 %v4271_v5, 0.0  ;;  %v2356_v40 = vmax.f32 %v2062_v3, 0.0  ;;  %v4274_v31 = vadd.f32 %v26123_v54, %v21927_v27  ;;  %v2065_v10 = vadd.f32 %v26123_v54, %v2064_v43  ;;  %v4265_v26 = vpop.f32.mrb[171].mxu1  ;;  %v23497_v27 = vld [vmem:[%s24802_s29 + $0x7a8] sm:$0xff]  }
 0x246   : > { %v4581_v33 = vmax.f32 %v4263_v41, 0.0  ;;  %v2359_v23 = vmax.f32 %v2073_v57, 0.0  ;;  %v4266_v6 = vadd.f32 %v26123_v54, %v4265_v26  ;;  %22053 = vmatmul.mubr.msk.bf16.gmra.mrb[20].mxu0 %vm1054_vm0, %v23493_v1  ;;  %v23498_v26 = vld [vmem:[%s24802_s29 + $0xa88] sm:$0xff]   ;;  %v23499_v1 = vld [vmem:[%s24802_s29 + $0x7b0] sm:$0xff]  }
 0x247   : > { %v4584_v8 = vmax.f32 %v4274_v31, 0.0  ;;  %v2357_v13 = vmax.f32 %v2065_v10, 0.0  ;;  %22241 = vmatmul.mubr.msk.bf16.gmra.mrb[20].mxu1 %vm1054_vm0, %v23494_v32  ;;  %22056 = vmatprep.mubr.msk.bf16.mxu0 %vm1054_vm0, %v23495_v55 }
 0x248   : > { %v26253_v5 = vpack.c.bf16 %v2359_v23, %v2358_v4  ;;  %v4582_v3 = vmax.f32 %v4266_v6, 0.0  ;;  %22244 = vmatprep.mubr.msk.bf16.mxu1 %vm1054_vm0, %v23496_v51 }
 0x249   : > { %v26257_v43 = vpack.c.bf16 %v4584_v8, %v4583_v52  ;;  %v26259_v41 = vpack.c.bf16 %v2357_v13, %v2356_v40  ;;  %v21734_v57 = vpop.f32.mrb[172].mxu0 }
 0x24a   : > { %31213 = vst [vmem:[#allocation144_spill] sm:$0xff] %v26253_v5  ;;  %v26263_v31 = vpack.c.bf16 %v4582_v3, %v4581_v33  ;;  %v2086_v10 = vadd.f32 %v26123_v54, %v21734_v57  ;;  %v21930_v32 = vpop.f32.mrb[172].mxu1  ;;  %v2077_v55 = vpop.f32.mrb[173].mxu0  ;;  %v23502_v57 = vld [vmem:[%s24802_s29 + $0xa98] sm:$0xff]  }
 0x24b   : > { %31214 = vst [vmem:[#allocation145_spill] sm:$0xff] %v26257_v43  ;;  %31215 = vst [vmem:[#allocation146_spill] sm:$0xff] %v26259_v41  ;;  %v4287_v4 = vadd.f32 %v26123_v54, %v21930_v32  ;;  %v2078_v23 = vadd.f32 %v26123_v54, %v2077_v55  ;;  %v4278_v51 = vpop.f32.mrb[173].mxu1  ;;  %v21735_v6 = vpop.f32.mrb[174].mxu0 }
 0x24c   : > { %31216 = vst [vmem:[#allocation147_spill] sm:$0xff] %v26263_v31  ;;  %v2362_v13 = vmax.f32 %v2086_v10, 0.0  ;;  %v4279_v8 = vadd.f32 %v26123_v54, %v4278_v51  ;;  %v2089_v40 = vadd.f32 %v26123_v54, %v21735_v6  ;;  %v21931_v33 = vpop.f32.mrb[174].mxu1  ;;  %v2080_v3 = vpop.f32.mrb[175].mxu0  ;;  %v23561_v6 = vld [vmem:[%s30774_s3 + $0x70] sm:$0xff]  }
 0x24d   : > { %v4587_v63 = vmax.f32 %v4287_v4, 0.0  ;;  %v2360_v32 = vmax.f32 %v2078_v23, 0.0  ;;  %v4290_v55 = vadd.f32 %v26123_v54, %v21931_v33  ;;  %v2081_v48 = vadd.f32 %v26123_v54, %v2080_v3  ;;  %v4281_v58 = vpop.f32.mrb[175].mxu1  ;;  %22384 = vmatprep.subr.bf16.mxu0 %v23561_v6 }
 0x24e   : > { %v4585_v52 = vmax.f32 %v4279_v8, 0.0  ;;  %v2363_v10 = vmax.f32 %v2089_v40, 0.0  ;;  %v4282_v51 = vadd.f32 %v26123_v54, %v4281_v58  ;;  %22057 = vmatmul.mubr.msk.bf16.gmra.mrb[24].mxu0 %vm1054_vm0, %v23497_v27  ;;  %v23501_v40 = vld [vmem:[%s24802_s29 + $0x7b8] sm:$0xff]  }
 0x24f   : > { %v4588_v4 = vmax.f32 %v4290_v55, 0.0  ;;  %v2361_v23 = vmax.f32 %v2081_v48, 0.0  ;;  %22245 = vmatmul.mubr.msk.bf16.gmra.mrb[24].mxu1 %vm1054_vm0, %v23498_v26  ;;  %22060 = vmatprep.mubr.msk.bf16.mxu0 %vm1054_vm0, %v23499_v1 }
 0x250   : > { %v26284_v33 = vpack.c.bf16 %v2363_v10, %v2362_v13  ;;  %v4586_v8 = vmax.f32 %v4282_v51, 0.0  ;;  %22248 = vmatprep.mubr.msk.bf16.mxu1 %vm1054_vm0, %v23500_v9  ;;  %22385 = vmatpush3.bf16.msra.mxu0 %v23561_v6 }
 0x251   : > { %v26288_v58 = vpack.c.bf16 %v4588_v4, %v4587_v63  ;;  %v26290_v27 = vpack.c.bf16 %v2361_v23, %v2360_v32  ;;  %v21738_v3 = vpop.f32.mrb[176].mxu0 }
 0x252   : > { %31217 = vst [vmem:[#allocation148_spill] sm:$0xff] %v26284_v33  ;;  %v26294_v48 = vpack.c.bf16 %v4586_v8, %v4585_v52  ;;  %v2102_v26 = vadd.f32 %v26123_v54, %v21738_v3  ;;  %v21934_v1 = vpop.f32.mrb[176].mxu1  ;;  %v2093_v13 = vpop.f32.mrb[177].mxu0  ;;  %v23504_v8 = vld [vmem:[%s24802_s29 + $0xaa0] sm:$0xff]   ;;  %v23508_v3 = vld [vmem:[%s24802_s29 + $0xab0] sm:$0xff]  }
 0x253   : > { %31218 = vst [vmem:[#allocation149_spill] sm:$0xff] %v26288_v58  ;;  %31219 = vst [vmem:[#allocation150_spill] sm:$0xff] %v26290_v27  ;;  %v4303_v55 = vadd.f32 %v26123_v54, %v21934_v1  ;;  %v2094_v9 = vadd.f32 %v26123_v54, %v2093_v13  ;;  %v4294_v10 = vpop.f32.mrb[177].mxu1  ;;  %v21739_v63 = vpop.f32.mrb[178].mxu0 }
 0x254   : > { %31220 = vst [vmem:[#allocation151_spill] sm:$0xff] %v26294_v48  ;;  %v2366_v51 = vmax.f32 %v2102_v26, 0.0  ;;  %v4295_v4 = vadd.f32 %v26123_v54, %v4294_v10  ;;  %v2105_v6 = vadd.f32 %v26123_v54, %v21739_v63  ;;  %v21935_v52 = vpop.f32.mrb[178].mxu1  ;;  %v2096_v23 = vpop.f32.mrb[179].mxu0 }
 0x255   : > { %v4591_v31 = vmax.f32 %v4303_v55, 0.0  ;;  %v2364_v1 = vmax.f32 %v2094_v9, 0.0  ;;  %v4306_v13 = vadd.f32 %v26123_v54, %v21935_v52  ;;  %v2097_v61 = vadd.f32 %v26123_v54, %v2096_v23  ;;  %v4297_v43 = vpop.f32.mrb[179].mxu1  ;;  %v23505_v52 = vld [vmem:[%s24802_s29 + $0x7c8] sm:$0xff]  }
 0x256   : > { %v4589_v26 = vmax.f32 %v4295_v4, 0.0  ;;  %v2367_v10 = vmax.f32 %v2105_v6, 0.0  ;;  %v4298_v63 = vadd.f32 %v26123_v54, %v4297_v43  ;;  %22061 = vmatmul.mubr.msk.bf16.gmra.mrb[28].mxu0 %vm1054_vm0, %v23501_v40  ;;  %v23506_v43 = vld [vmem:[%s24802_s29 + $0xaa8] sm:$0xff]   ;;  %v23507_v40 = vld [vmem:[%s24802_s29 + $0x7d0] sm:$0xff]  }
 0x257   : > { %v4592_v32 = vmax.f32 %v4306_v13, 0.0  ;;  %v2365_v37 = vmax.f32 %v2097_v61, 0.0  ;;  %22249 = vmatmul.mubr.msk.bf16.gmra.mrb[28].mxu1 %vm1054_vm0, %v23502_v57  ;;  %22064 = vmatprep.mubr.msk.bf16.mxu0 %vm1054_vm0, %v23503_v7 }
 0x258   : > { %v26312_v55 = vpack.c.bf16 %v2367_v10, %v2366_v51  ;;  %v4590_v9 = vmax.f32 %v4298_v63, 0.0  ;;  %22252 = vmatprep.mubr.msk.bf16.mxu1 %vm1054_vm0, %v23504_v8 }
 0x259   : > { %v26316_v23 = vpack.c.bf16 %v4592_v32, %v4591_v31  ;;  %v26318_v4 = vpack.c.bf16 %v2365_v37, %v2364_v1  ;;  %v21742_v6 = vpop.f32.mrb[180].mxu0 }
 0x25a   : > { %31221 = vst [vmem:[#allocation152_spill] sm:$0xff] %v26312_v55  ;;  %v26322_v13 = vpack.c.bf16 %v4590_v9, %v4589_v26  ;;  %v2118_v61 = vadd.f32 %v26123_v54, %v21742_v6  ;;  %v21938_v57 = vpop.f32.mrb[180].mxu1  ;;  %v2109_v7 = vpop.f32.mrb[181].mxu0  ;;  %v23513_v6 = vld [vmem:[%s24802_s29 + $0xac0] sm:$0xff]  }
 0x25b   : > { %31222 = vst [vmem:[#allocation153_spill] sm:$0xff] %v26316_v23  ;;  %31223 = vst [vmem:[#allocation154_spill] sm:$0xff] %v26318_v4  ;;  %v4319_v51 = vadd.f32 %v26123_v54, %v21938_v57  ;;  %v2110_v10 = vadd.f32 %v26123_v54, %v2109_v7  ;;  %v4310_v8 = vpop.f32.mrb[181].mxu1  ;;  %v21743_v63 = vpop.f32.mrb[182].mxu0  ;;  %v23521_v4 = vld [vmem:[%s24802_s29 + $0xae0] sm:$0xff]  }
 0x25c   : > { %31224 = vst [vmem:[#allocation155_spill] sm:$0xff] %v26322_v13  ;;  %v2370_v31 = vmax.f32 %v2118_v61, 0.0  ;;  %v4311_v32 = vadd.f32 %v26123_v54, %v4310_v8  ;;  %v2121_v1 = vadd.f32 %v26123_v54, %v21743_v63  ;;  %v21939_v26 = vpop.f32.mrb[182].mxu1  ;;  %v2112_v9 = vpop.f32.mrb[183].mxu0 }
 0x25d   : > { %v4595_v11 = vmax.f32 %v4319_v51, 0.0  ;;  %v2368_v57 = vmax.f32 %v2110_v10, 0.0  ;;  %v4322_v7 = vadd.f32 %v26123_v54, %v21939_v26  ;;  %v2113_v48 = vadd.f32 %v26123_v54, %v2112_v9  ;;  %v4313_v58 = vpop.f32.mrb[183].mxu1  ;;  %v23509_v26 = vld [vmem:[%s24802_s29 + $0x7d8] sm:$0xff]  }
 0x25e   : > { %v4593_v61 = vmax.f32 %v4311_v32, 0.0  ;;  %v2371_v8 = vmax.f32 %v2121_v1, 0.0  ;;  %v4314_v63 = vadd.f32 %v26123_v54, %v4313_v58  ;;  %22065 = vmatmul.mubr.msk.bf16.gmra.mrb[32].mxu0 %vm1054_vm0, %v23505_v52  ;;  %v23510_v58 = vld [vmem:[%s24802_s29 + $0xab8] sm:$0xff]   ;;  %v23512_v52 = vld [vmem:[%s24802_s29 + $0x7e0] sm:$0xff]  }
 0x25f   : > { %v4596_v37 = vmax.f32 %v4322_v7, 0.0  ;;  %v2369_v5 = vmax.f32 %v2113_v48, 0.0  ;;  %22253 = vmatmul.mubr.msk.bf16.gmra.mrb[32].mxu1 %vm1054_vm0, %v23506_v43  ;;  %22068 = vmatprep.mubr.msk.bf16.mxu0 %vm1054_vm0, %v23507_v40 }
 0x260   : > { %v26340_v51 = vpack.c.bf16 %v2371_v8, %v2370_v31  ;;  %v4594_v10 = vmax.f32 %v4314_v63, 0.0  ;;  %22256 = vmatprep.mubr.msk.bf16.mxu1 %vm1054_vm0, %v23508_v3 }
 0x261   : > { %v26344_v9 = vpack.c.bf16 %v4596_v37, %v4595_v11  ;;  %v26346_v32 = vpack.c.bf16 %v2369_v5, %v2368_v57  ;;  %v21746_v1 = vpop.f32.mrb[184].mxu0 }
 0x262   : > { %31225 = vst [vmem:[#allocation156_spill] sm:$0xff] %v26340_v51  ;;  %v26350_v7 = vpack.c.bf16 %v4594_v10, %v4593_v61  ;;  %v2134_v48 = vadd.f32 %v26123_v54, %v21746_v1  ;;  %v21942_v43 = vpop.f32.mrb[184].mxu1  ;;  %v2125_v40 = vpop.f32.mrb[185].mxu0  ;;  %v23517_v1 = vld [vmem:[%s24802_s29 + $0xad0] sm:$0xff]  }
 0x263   : > { %31226 = vst [vmem:[#allocation157_spill] sm:$0xff] %v26344_v9  ;;  %31227 = vst [vmem:[#allocation158_spill] sm:$0xff] %v26346_v32  ;;  %v4335_v31 = vadd.f32 %v26123_v54, %v21942_v43  ;;  %v2126_v8 = vadd.f32 %v26123_v54, %v2125_v40  ;;  %v4326_v3 = vpop.f32.mrb[185].mxu1  ;;  %v21747_v63 = vpop.f32.mrb[186].mxu0  ;;  %v23524_v32 = vld [vmem:[%s24802_s29 + $0x810] sm:$0xff]  }
 0x264   : > { %31228 = vst [vmem:[#allocation159_spill] sm:$0xff] %v26350_v7  ;;  %v2374_v5 = vmax.f32 %v2134_v48, 0.0  ;;  %v4327_v37 = vadd.f32 %v26123_v54, %v4326_v3  ;;  %v2137_v57 = vadd.f32 %v26123_v54, %v21747_v63  ;;  %v21943_v61 = vpop.f32.mrb[186].mxu1  ;;  %v2128_v10 = vpop.f32.mrb[187].mxu0 }
 0x265   : > { %v4599_v41 = vmax.f32 %v4335_v31, 0.0  ;;  %v2372_v43 = vmax.f32 %v2126_v8, 0.0  ;;  %v4338_v40 = vadd.f32 %v26123_v54, %v21943_v61  ;;  %v2129_v13 = vadd.f32 %v26123_v54, %v2128_v10  ;;  %v4329_v23 = vpop.f32.mrb[187].mxu1  ;;  %v23514_v61 = vld [vmem:[%s24802_s29 + $0x7e8] sm:$0xff]  }
 0x266   : > { %v4597_v48 = vmax.f32 %v4327_v37, 0.0  ;;  %v2375_v3 = vmax.f32 %v2137_v57, 0.0  ;;  %v4330_v63 = vadd.f32 %v26123_v54, %v4329_v23  ;;  %22069 = vmatmul.mubr.msk.bf16.gmra.mrb[36].mxu0 %vm1054_vm0, %v23509_v26  ;;  %v23515_v23 = vld [vmem:[%s24802_s29 + $0xac8] sm:$0xff]   ;;  %v23516_v26 = vld [vmem:[%s24802_s29 + $0x7f0] sm:$0xff]  }
 0x267   : > { %v4600_v11 = vmax.f32 %v4338_v40, 0.0  ;;  %v2373_v33 = vmax.f32 %v2129_v13, 0.0  ;;  %22257 = vmatmul.mubr.msk.bf16.gmra.mrb[36].mxu1 %vm1054_vm0, %v23510_v58  ;;  %22072 = vmatprep.mubr.msk.bf16.mxu0 %vm1054_vm0, %v23512_v52 }
 0x268   : > { %v26368_v31 = vpack.c.bf16 %v2375_v3, %v2374_v5  ;;  %v4598_v8 = vmax.f32 %v4330_v63, 0.0  ;;  %22260 = vmatprep.mubr.msk.bf16.mxu1 %vm1054_vm0, %v23513_v6 }
 0x269   : > { %v26372_v10 = vpack.c.bf16 %v4600_v11, %v4599_v41  ;;  %v26374_v37 = vpack.c.bf16 %v2373_v33, %v2372_v43  ;;  %v21750_v57 = vpop.f32.mrb[188].mxu0  ;;  %v26394_v41 = vld [vmem:[%s30773_s2] ss:$0 sm:$0xff] }
 0x26a   : > { %31229 = vst [vmem:[#allocation160_spill] sm:$0xff] %v26368_v31  ;;  %v26378_v40 = vpack.c.bf16 %v4598_v8, %v4597_v48  ;;  %v2150_v13 = vadd.f32 %v26123_v54, %v21750_v57  ;;  %v21946_v58 = vpop.f32.mrb[188].mxu1  ;;  %v2141_v52 = vpop.f32.mrb[189].mxu0  ;;  %v23570_v31 = vld [vmem:[%s24802_s29 + $0x8c0] sm:$0xff]  }
 0x26b   : > { %31230 = vst [vmem:[#allocation161_spill] sm:$0xff] %v26372_v10  ;;  %31231 = vst [vmem:[#allocation162_spill] sm:$0xff] %v26374_v37  ;;  %v4351_v5 = vadd.f32 %v26123_v54, %v21946_v58  ;;  %v2142_v3 = vadd.f32 %v26123_v54, %v2141_v52  ;;  %v4342_v6 = vpop.f32.mrb[189].mxu1  ;;  %v21751_v63 = vpop.f32.mrb[190].mxu0  ;;  %v23567_v37 = vld [vmem:[%s24802_s29 + $0xb90] sm:$0xff]  }
 0x26c   : > { %31232 = vst [vmem:[#allocation163_spill] sm:$0xff] %v26378_v40  ;;  %v2378_v33 = vmax.f32 %v2150_v13, 0.0  ;;  %v4343_v11 = vadd.f32 %v26123_v54, %v4342_v6  ;;  %v2153_v43 = vadd.f32 %v26123_v54, %v21751_v63  ;;  %v21947_v48 = vpop.f32.mrb[190].mxu1  ;;  %v2144_v8 = vpop.f32.mrb[191].mxu0 }
 0x26d   : > { %v4603_v27 = vmax.f32 %v4351_v5, 0.0  ;;  %v2376_v58 = vmax.f32 %v2142_v3, 0.0  ;;  %v4354_v52 = vadd.f32 %v26123_v54, %v21947_v48  ;;  %v2145_v13 = vadd.f32 %v26394_v41, %v2144_v8  ;;  %v4345_v6 = vpop.f32.mrb[191].mxu1  ;;  %v23518_v8 = vld [vmem:[%s24802_s29 + $0x7f8] sm:$0xff]  }
 0x26e   : > { %v4601_v63 = vmax.f32 %v4343_v11, 0.0  ;;  %v2379_v55 = vmax.f32 %v2153_v43, 0.0  ;;  %v4346_v10 = vadd.f32 %v26394_v41, %v4345_v6  ;;  %22073 = vmatmul.mubr.msk.bf16.gmra.mrb[40].mxu0 %vm1054_vm0, %v23514_v61  ;;  %v23519_v6 = vld [vmem:[%s24802_s29 + $0xad8] sm:$0xff]   ;;  %v23520_v61 = vld [vmem:[%s24802_s29 + $0x800] sm:$0xff]  }
 0x26f   : > { %v4604_v5 = vmax.f32 %v4354_v52, 0.0  ;;  %v2377_v3 = vmax.f32 %v2145_v13, 0.0  ;;  %22261 = vmatmul.mubr.msk.bf16.gmra.mrb[40].mxu1 %vm1054_vm0, %v23515_v23  ;;  %22076 = vmatprep.mubr.msk.bf16.mxu0 %vm1054_vm0, %v23516_v26 }
 0x270   : > { %v26401_v54 = vpack.c.bf16 %v2379_v55, %v2378_v33  ;;  %v4602_v48 = vmax.f32 %v4346_v10, 0.0  ;;  %22264 = vmatprep.mubr.msk.bf16.mxu1 %vm1054_vm0, %v23517_v1 }
 0x271   : > { %v26405_v57 = vpack.c.bf16 %v4604_v5, %v4603_v27  ;;  %v26407_v11 = vpack.c.bf16 %v2377_v3, %v2376_v58  ;;  %v21970_v43 = vpop.f32.mrb[192].mxu0 }
 0x272   : > { %31233 = vst [vmem:[#allocation164_spill] sm:$0xff] %v26401_v54  ;;  %v26411_v52 = vpack.c.bf16 %v4602_v48, %v4601_v63  ;;  %v21950_v13 = vpop.f32.mrb[192].mxu1  ;;  %v6064_v23 = vadd.f32 %v26394_v41, %v21970_v43  ;;  %v6055_v26 = vpop.f32.mrb[193].mxu0  ;;  %v23566_v54 = vld [vmem:[%s24802_s29 + $0x8b0] sm:$0xff]  }
 0x273   : > { %31234 = vst [vmem:[#allocation165_spill] sm:$0xff] %v26405_v57  ;;  %31235 = vst [vmem:[#allocation166_spill] sm:$0xff] %v26407_v11  ;;  %v4367_v55 = vadd.f32 %v26394_v41, %v21950_v13  ;;  %v4358_v10 = vpop.f32.mrb[193].mxu1  ;;  %v6056_v1 = vadd.f32 %v26394_v41, %v6055_v26  ;;  %v21971_v33 = vpop.f32.mrb[194].mxu0  ;;  %v23563_v11 = vld [vmem:[%s24802_s29 + $0xb80] sm:$0xff]  }
 0x274   : > { %31236 = vst [vmem:[#allocation167_spill] sm:$0xff] %v26411_v52  ;;  %v6856_v58 = vmax.f32 %v6064_v23, 0.0  ;;  %v4359_v5 = vadd.f32 %v26394_v41, %v4358_v10  ;;  %v21951_v3 = vpop.f32.mrb[194].mxu1  ;;  %v6067_v63 = vadd.f32 %v26394_v41, %v21971_v33  ;;  %v6058_v48 = vpop.f32.mrb[195].mxu0 }
 0x275   : > { %v4607_v40 = vmax.f32 %v4367_v55, 0.0  ;;  %v6854_v13 = vmax.f32 %v6056_v1, 0.0  ;;  %v4370_v26 = vadd.f32 %v26394_v41, %v21951_v3  ;;  %v4361_v7 = vpop.f32.mrb[195].mxu1  ;;  %v6059_v9 = vadd.f32 %v26394_v41, %v6058_v48  ;;  %v23522_v3 = vld [vmem:[%s24802_s29 + $0x808] sm:$0xff]  }
 0x276   : > { %v4605_v23 = vmax.f32 %v4359_v5, 0.0  ;;  %v6857_v10 = vmax.f32 %v6067_v63, 0.0  ;;  %v4362_v27 = vadd.f32 %v26394_v41, %v4361_v7  ;;  %22077 = vmatmul.mubr.msk.bf16.gmra.mrb[44].mxu0 %vm1054_vm0, %v23518_v8  ;;  %v23523_v63 = vld [vmem:[%s24802_s29 + $0xae8] sm:$0xff]   ;;  %v31238_v7 = vmax.bf16 %v25096_v19, %v25044_v12  ;;  %v23528_v19 = vld [vmem:[%s24802_s29 + $0x820] sm:$0xff]  }
 0x277   : > { %v4608_v33 = vmax.f32 %v4370_v26, 0.0  ;;  %v6855_v51 = vmax.f32 %v6059_v9, 0.0  ;;  %22265 = vmatmul.mubr.msk.bf16.gmra.mrb[44].mxu1 %vm1054_vm0, %v23519_v6  ;;  %22080 = vmatprep.mubr.msk.bf16.mxu0 %vm1054_vm0, %v23520_v61 }
 0x278   : > { %v7055_v55 = vpack.c.bf16 %v6857_v10, %v6856_v58  ;;  %v4606_v1 = vmax.f32 %v4362_v27, 0.0  ;;  %22268 = vmatprep.mubr.msk.bf16.mxu1 %vm1054_vm0, %v23521_v4  ;;  %v31240_v4 = vmax.bf16 %v25102_v25, %v25048_v15 }
 0x279   : > { %v26431_v48 = vpack.c.bf16 %v4608_v33, %v4607_v40  ;;  %v7054_v5 = vpack.c.bf16 %v6855_v51, %v6854_v13  ;;  %v21974_v43 = vpop.f32.mrb[196].mxu0 }
 0x27a   : > { %v26438_v8 = vmax.bf16 %v7055_v55, %v31238_v7  ;;  %v26440_v9 = vpack.c.bf16 %v4606_v1, %v4605_v23  ;;  %v21954_v6 = vpop.f32.mrb[196].mxu1  ;;  %v6080_v61 = vadd.f32 %v26394_v41, %v21974_v43  ;;  %v6071_v27 = vpop.f32.mrb[197].mxu0  ;;  %v23525_v55 = vld [vmem:[%s24802_s29 + $0xaf0] sm:$0xff]  }
 0x27b   : > { %31237 = vst [vmem:[#allocation168_spill] sm:$0xff] %v26431_v48  ;;  %v26446_v40 = vmax.bf16 %v7054_v5, %v31240_v4  ;;  %v4383_v51 = vadd.f32 %v26394_v41, %v21954_v6  ;;  %v4374_v58 = vpop.f32.mrb[197].mxu1  ;;  %v6072_v13 = vadd.f32 %v26394_v41, %v6071_v27  ;;  %v21975_v12 = vpop.f32.mrb[198].mxu0  ;;  %v31292_v48 = vld [vmem:[#allocation21_spill] sm:$0xff] }
 0x27c   : > { %31239 = vst [vmem:[#allocation169_spill] sm:$0xff] %v26440_v9  ;;  %v6860_v26 = vmax.f32 %v6080_v61, 0.0  ;;  %v4375_v23 = vadd.f32 %v26394_v41, %v4374_v58  ;;  %v21955_v10 = vpop.f32.mrb[198].mxu1  ;;  %v6083_v43 = vadd.f32 %v26394_v41, %v21975_v12  ;;  %v6074_v33 = vpop.f32.mrb[199].mxu0 }
 0x27d   : > { %v4611_v25 = vmax.f32 %v4383_v51, 0.0  ;;  %v6858_v1 = vmax.f32 %v6072_v13, 0.0  ;;  %v4386_v5 = vadd.f32 %v26394_v41, %v21955_v10  ;;  %v4377_v7 = vpop.f32.mrb[199].mxu1  ;;  %v6075_v6 = vadd.f32 %v26394_v41, %v6074_v33  ;;  %v23526_v10 = vld [vmem:[%s24802_s29 + $0x818] sm:$0xff]  }
 0x27e   : > { %v4609_v61 = vmax.f32 %v4375_v23, 0.0  ;;  %v6861_v27 = vmax.f32 %v6083_v43, 0.0  ;;  %v4378_v4 = vadd.f32 %v26394_v41, %v4377_v7  ;;  %22081 = vmatmul.mubr.msk.bf16.gmra.mrb[48].mxu0 %vm1054_vm0, %v23522_v3  ;;  %v23527_v43 = vld [vmem:[%s24802_s29 + $0xaf8] sm:$0xff]   ;;  %v31242_v3 = vmax.bf16 %v25124_v59, %v25068_v44 }
 0x27f   : > { %v4612_v58 = vmax.f32 %v4386_v5, 0.0  ;;  %v6859_v12 = vmax.f32 %v6075_v6, 0.0  ;;  %22269 = vmatmul.mubr.msk.bf16.gmra.mrb[48].mxu1 %vm1054_vm0, %v23523_v63  ;;  %22084 = vmatprep.mubr.msk.bf16.mxu0 %vm1054_vm0, %v23524_v32  ;;  %v23586_v59 = vld [vmem:[%s30774_s3 + $0x78] sm:$0xff]  }
 0x280   : > { %v7057_v51 = vpack.c.bf16 %v6861_v27, %v6860_v26  ;;  %v4610_v13 = vmax.f32 %v4378_v4, 0.0  ;;  %22272 = vmatprep.mubr.msk.bf16.mxu1 %vm1054_vm0, %v23525_v55  ;;  %v31244_v55 = vmax.bf16 %v25130_v0, %v25072_v47  ;;  %22386 = vmatprep.subr.bf16.mxu0 %v23586_v59 }
 0x281   : > { %v26465_v33 = vpack.c.bf16 %v4612_v58, %v4611_v25  ;;  %v7056_v23 = vpack.c.bf16 %v6859_v12, %v6858_v1  ;;  %v21978_v15 = vpop.f32.mrb[200].mxu0  ;;  %v23529_v12 = vld [vmem:[%s24802_s29 + $0xb00] sm:$0xff]   ;;  %22387 = vmatpush3.bf16.msra.mxu0 %v23586_v59  ;;  %v31248_v59 = vmax.bf16 %v25158_v45, %v25098_v20 }
 0x282   : > { %v26472_v5 = vmax.bf16 %v7057_v51, %v31242_v3  ;;  %v26474_v7 = vpack.c.bf16 %v4610_v13, %v4609_v61  ;;  %v21958_v32 = vpop.f32.mrb[200].mxu1  ;;  %v6096_v63 = vadd.f32 %v26394_v41, %v21978_v15  ;;  %v6087_v26 = vpop.f32.mrb[201].mxu0  ;;  %v23531_v51 = vld [vmem:[%s24802_s29 + $0xb08] sm:$0xff]  }
 0x283   : > { %31241 = vst [vmem:[#allocation170_spill] sm:$0xff] %v26465_v33  ;;  %v26480_v25 = vmax.bf16 %v7056_v23, %v31244_v55  ;;  %v4399_v1 = vadd.f32 %v26394_v41, %v21958_v32  ;;  %v4390_v6 = vpop.f32.mrb[201].mxu1  ;;  %v6088_v27 = vadd.f32 %v26394_v41, %v6087_v26  ;;  %v21979_v44 = vpop.f32.mrb[202].mxu0  ;;  %v31283_v33 = vld [vmem:[#allocation17_spill] sm:$0xff] }
 0x284   : > { %31243 = vst [vmem:[#allocation171_spill] sm:$0xff] %v26474_v7  ;;  %v6864_v15 = vmax.f32 %v6096_v63, 0.0  ;;  %v4391_v4 = vadd.f32 %v26394_v41, %v4390_v6  ;;  %v21959_v58 = vpop.f32.mrb[202].mxu1  ;;  %v6099_v47 = vadd.f32 %v26394_v41, %v21979_v44  ;;  %v6090_v0 = vpop.f32.mrb[203].mxu0 }
 0x285   : > { %v4615_v13 = vmax.f32 %v4399_v1, 0.0  ;;  %v6862_v23 = vmax.f32 %v6088_v27, 0.0  ;;  %v4402_v3 = vadd.f32 %v26394_v41, %v21959_v58  ;;  %v4393_v32 = vpop.f32.mrb[203].mxu1  ;;  %v6091_v26 = vadd.f32 %v26394_v41, %v6090_v0  ;;  %v23530_v58 = vld [vmem:[%s24802_s29 + $0x828] sm:$0xff]  }
 0x286   : > { %v4613_v63 = vmax.f32 %v4391_v4, 0.0  ;;  %v6865_v55 = vmax.f32 %v6099_v47, 0.0  ;;  %v4394_v6 = vadd.f32 %v26394_v41, %v4393_v32  ;;  %22085 = vmatmul.mubr.msk.bf16.gmra.mrb[52].mxu0 %vm1054_vm0, %v23526_v10  ;;  %v23532_v32 = vld [vmem:[%s24802_s29 + $0x830] sm:$0xff]   ;;  %v31246_v10 = vmax.bf16 %v25152_v38, %v25092_v14  ;;  %v23537_v38 = vld [vmem:[%s24802_s29 + $0x840] sm:$0xff]  }
 0x287   : > { %v4616_v44 = vmax.f32 %v4402_v3, 0.0  ;;  %v6863_v61 = vmax.f32 %v6091_v26, 0.0  ;;  %22273 = vmatmul.mubr.msk.bf16.gmra.mrb[52].mxu1 %vm1054_vm0, %v23527_v43  ;;  %22088 = vmatprep.mubr.msk.bf16.mxu0 %vm1054_vm0, %v23528_v19 }
 0x288   : > { %v7059_v1 = vpack.c.bf16 %v6865_v55, %v6864_v15  ;;  %v4614_v27 = vmax.f32 %v4394_v6, 0.0  ;;  %22276 = vmatprep.mubr.msk.bf16.mxu1 %vm1054_vm0, %v23529_v12 }
 0x289   : > { %v26502_v4 = vpack.c.bf16 %v4616_v44, %v4615_v13  ;;  %v7058_v47 = vpack.c.bf16 %v6863_v61, %v6862_v23  ;;  %v21982_v0 = vpop.f32.mrb[204].mxu0 }
 0x28a   : > { %v26509_v3 = vmax.bf16 %v7059_v1, %v31246_v10  ;;  %v26511_v43 = vpack.c.bf16 %v4614_v27, %v4613_v63  ;;  %v21962_v19 = vpop.f32.mrb[204].mxu1  ;;  %v6112_v15 = vadd.f32 %v26394_v41, %v21982_v0  ;;  %v6103_v12 = vpop.f32.mrb[205].mxu0  ;;  %v23533_v27 = vld [vmem:[%s24802_s29 + $0xb10] sm:$0xff]  }
 0x28b   : > { %31245 = vst [vmem:[#allocation172_spill] sm:$0xff] %v26502_v4  ;;  %v26517_v13 = vmax.bf16 %v7058_v47, %v31248_v59  ;;  %v4415_v61 = vadd.f32 %v26394_v41, %v21962_v19  ;;  %v4406_v23 = vpop.f32.mrb[205].mxu1  ;;  %v6104_v26 = vadd.f32 %v26394_v41, %v6103_v12  ;;  %v21983_v14 = vpop.f32.mrb[206].mxu0  ;;  %v31275_v4 = vld [vmem:[#allocation14_spill] sm:$0xff] }
 0x28c   : > { %31247 = vst [vmem:[#allocation173_spill] sm:$0xff] %v26511_v43  ;;  %v6868_v63 = vmax.f32 %v6112_v15, 0.0  ;;  %v4407_v55 = vadd.f32 %v26394_v41, %v4406_v23  ;;  %v21963_v6 = vpop.f32.mrb[206].mxu1  ;;  %v6115_v44 = vadd.f32 %v26394_v41, %v21983_v14  ;;  %v6106_v1 = vpop.f32.mrb[207].mxu0 }
 0x28d   : > { %v4619_v45 = vmax.f32 %v4415_v61, 0.0  ;;  %v6866_v47 = vmax.f32 %v6104_v26, 0.0  ;;  %v4418_v0 = vadd.f32 %v26394_v41, %v21963_v6  ;;  %v4409_v10 = vpop.f32.mrb[207].mxu1  ;;  %v6107_v19 = vadd.f32 %v26394_v41, %v6106_v1  ;;  %v23534_v6 = vld [vmem:[%s24802_s29 + $0x838] sm:$0xff]  }
 0x28e   : > { %v4617_v15 = vmax.f32 %v4407_v55, 0.0  ;;  %v6869_v12 = vmax.f32 %v6115_v44, 0.0  ;;  %v4410_v59 = vadd.f32 %v26394_v41, %v4409_v10  ;;  %22089 = vmatmul.mubr.msk.bf16.gmra.mrb[56].mxu0 %vm1054_vm0, %v23530_v58  ;;  %v23535_v44 = vld [vmem:[%s24802_s29 + $0xb18] sm:$0xff]   ;;  %v31250_v58 = vmax.bf16 %v25180_v28, %v25120_v56  ;;  %v23541_v28 = vld [vmem:[%s24802_s29 + $0x850] sm:$0xff]  }
 0x28f   : > { %v4620_v23 = vmax.f32 %v4418_v0, 0.0  ;;  %v6867_v14 = vmax.f32 %v6107_v19, 0.0  ;;  %22277 = vmatmul.mubr.msk.bf16.gmra.mrb[56].mxu1 %vm1054_vm0, %v23531_v51  ;;  %22092 = vmatprep.mubr.msk.bf16.mxu0 %vm1054_vm0, %v23532_v32 }
 0x290   : > { %v7061_v61 = vpack.c.bf16 %v6869_v12, %v6868_v63  ;;  %v4618_v26 = vmax.f32 %v4410_v59, 0.0  ;;  %22280 = vmatprep.mubr.msk.bf16.mxu1 %vm1054_vm0, %v23533_v27  ;;  %v31252_v27 = vmax.bf16 %v25186_v34, %v25126_v60 }
 0x291   : > { %v26536_v1 = vpack.c.bf16 %v4620_v23, %v4619_v45  ;;  %v7060_v55 = vpack.c.bf16 %v6867_v14, %v6866_v47  ;;  %v21986_v20 = vpop.f32.mrb[208].mxu0 }
 0x292   : > { %v26543_v0 = vmax.bf16 %v7061_v61, %v31250_v58  ;;  %v26545_v51 = vpack.c.bf16 %v4618_v26, %v4617_v15  ;;  %v6128_v32 = vadd.f32 %v26394_v41, %v21986_v20  ;;  %v22174_v63 = vpop.f32.mrb[208].mxu1  ;;  %v6119_v10 = vpop.f32.mrb[209].mxu0  ;;  %v23538_v61 = vld [vmem:[%s24802_s29 + $0xb20] sm:$0xff]  }
 0x293   : > { %31249 = vst [vmem:[#allocation174_spill] sm:$0xff] %v26536_v1  ;;  %v26551_v45 = vmax.bf16 %v7060_v55, %v31252_v27  ;;  %v8497_v47 = vadd.f32 %v26394_v41, %v22174_v63  ;;  %v6120_v19 = vadd.f32 %v26394_v41, %v6119_v10  ;;  %v8488_v12 = vpop.f32.mrb[209].mxu1  ;;  %v21987_v56 = vpop.f32.mrb[210].mxu0 }
 0x294   : > { %31251 = vst [vmem:[#allocation175_spill] sm:$0xff] %v26545_v51  ;;  %v6872_v15 = vmax.f32 %v6128_v32, 0.0  ;;  %v8489_v59 = vadd.f32 %v26394_v41, %v8488_v12  ;;  %v6131_v20 = vadd.f32 %v26394_v41, %v21987_v56  ;;  %v22175_v23 = vpop.f32.mrb[210].mxu1  ;;  %v6122_v14 = vpop.f32.mrb[211].mxu0 }
 0x295   : > { %v9289_v34 = vmax.f32 %v8497_v47, 0.0  ;;  %v6870_v26 = vmax.f32 %v6120_v19, 0.0  ;;  %v8500_v55 = vadd.f32 %v26394_v41, %v22175_v23  ;;  %v6123_v58 = vadd.f32 %v26394_v41, %v6122_v14  ;;  %v8491_v63 = vpop.f32.mrb[211].mxu1  ;;  %v23539_v23 = vld [vmem:[%s24802_s29 + $0x848] sm:$0xff]  }
 0x296   : > { %v9287_v32 = vmax.f32 %v8489_v59, 0.0  ;;  %v6873_v10 = vmax.f32 %v6131_v20, 0.0  ;;  %v8492_v27 = vadd.f32 %v26394_v41, %v8491_v63  ;;  %22093 = vmatmul.mubr.msk.bf16.gmra.mrb[60].mxu0 %vm1054_vm0, %v23534_v6  ;;  %v23540_v20 = vld [vmem:[%s24802_s29 + $0xb28] sm:$0xff]   ;;  %v31253_v6 = vmax.bf16 %v25211_v30, %v25148_v35 }
 0x297   : > { %v9290_v12 = vmax.f32 %v8500_v55, 0.0  ;;  %v6871_v56 = vmax.f32 %v6123_v58, 0.0  ;;  %22281 = vmatmul.mubr.msk.bf16.gmra.mrb[60].mxu1 %vm1054_vm0, %v23535_v44  ;;  %22096 = vmatprep.mubr.msk.bf16.mxu0 %vm1054_vm0, %v23537_v38 }
 0x298   : > { %v7063_v47 = vpack.c.bf16 %v6873_v10, %v6872_v15  ;;  %v9288_v19 = vmax.f32 %v8492_v27, 0.0  ;;  %22284 = vmatprep.mubr.msk.bf16.mxu1 %vm1054_vm0, %v23538_v61 }
 0x299   : > { %v26570_v14 = vpack.c.bf16 %v9290_v12, %v9289_v34  ;;  %v7062_v59 = vpack.c.bf16 %v6871_v56, %v6870_v26  ;;  %v21990_v60 = vpop.f32.mrb[212].mxu0  ;;  %v31254_v34 = vmax.bf16 %v25217_v42, %v25154_v39 }
 0x29a   : > { %v26577_v55 = vmax.bf16 %v7063_v47, %v31253_v6  ;;  %v6144_v44 = vadd.f32 %v26394_v41, %v21990_v60  ;;  %v22178_v38 = vpop.f32.mrb[212].mxu1  ;;  %v6135_v15 = vpop.f32.mrb[213].mxu0  ;;  %v26580_v58 = vpack.c.bf16 %v9288_v19, %v9287_v32  ;;  %v23542_v47 = vld [vmem:[%s24802_s29 + $0xb30] sm:$0xff]   ;;  %v23545_v19 = vld [vmem:[%s24802_s29 + $0x860] sm:$0xff]  }
 0x29b   : > { %v26587_v26 = vmax.bf16 %v7062_v59, %v31254_v34  ;;  %v8513_v63 = vadd.f32 %v26394_v41, %v22178_v38  ;;  %v6136_v35 = vadd.f32 %v26394_v41, %v6135_v15  ;;  %v8504_v30 = vpop.f32.mrb[213].mxu1  ;;  %v21991_v10 = vpop.f32.mrb[214].mxu0 }
 0x29c   : > { %v6876_v27 = vmax.f32 %v6144_v44, 0.0  ;;  %v8505_v60 = vadd.f32 %v26394_v41, %v8504_v30  ;;  %v6147_v32 = vadd.f32 %v26394_v41, %v21991_v10  ;;  %v22179_v12 = vpop.f32.mrb[214].mxu1  ;;  %v6138_v56 = vpop.f32.mrb[215].mxu0 }
 0x29d   : > { %v9293_v39 = vmax.f32 %v8513_v63, 0.0  ;;  %v6874_v42 = vmax.f32 %v6136_v35, 0.0  ;;  %v8516_v59 = vadd.f32 %v26394_v41, %v22179_v12  ;;  %v6139_v6 = vadd.f32 %v26394_v41, %v6138_v56  ;;  %v8507_v38 = vpop.f32.mrb[215].mxu1  ;;  %v23543_v12 = vld [vmem:[%s24802_s29 + $0x858] sm:$0xff]  }
 0x29e   : > { %v9291_v44 = vmax.f32 %v8505_v60, 0.0  ;;  %v6877_v15 = vmax.f32 %v6147_v32, 0.0  ;;  %v8508_v34 = vadd.f32 %v26394_v41, %v8507_v38  ;;  %22097 = vmatmul.mubr.msk.bf16.gmra.mrb[64].mxu0 %vm1054_vm0, %v23539_v23  ;;  %v23544_v32 = vld [vmem:[%s24802_s29 + $0xb38] sm:$0xff]   ;;  %v31255_v23 = vmax.bf16 %v25239_v50, %v25176_v24 }
 0x29f   : > { %v9294_v30 = vmax.f32 %v8516_v59, 0.0  ;;  %v6875_v10 = vmax.f32 %v6139_v6, 0.0  ;;  %22285 = vmatmul.mubr.msk.bf16.gmra.mrb[64].mxu1 %vm1054_vm0, %v23540_v20  ;;  %22100 = vmatprep.mubr.msk.bf16.mxu0 %vm1054_vm0, %v23541_v28 }
 0x2a0   : > { %v7065_v63 = vpack.c.bf16 %v6877_v15, %v6876_v27  ;;  %v9292_v35 = vmax.f32 %v8508_v34, 0.0  ;;  %22288 = vmatprep.mubr.msk.bf16.mxu1 %vm1054_vm0, %v23542_v47 }
 0x2a1   : > { %v26604_v56 = vpack.c.bf16 %v9294_v30, %v9293_v39  ;;  %v7064_v60 = vpack.c.bf16 %v6875_v10, %v6874_v42  ;;  %v21994_v61 = vpop.f32.mrb[216].mxu0  ;;  %v31256_v39 = vmax.bf16 %v25245_v62, %v25182_v29 }
 0x2a2   : > { %v26611_v59 = vmax.bf16 %v7065_v63, %v31255_v23  ;;  %v6160_v20 = vadd.f32 %v26394_v41, %v21994_v61  ;;  %v22182_v28 = vpop.f32.mrb[216].mxu1  ;;  %v6151_v27 = vpop.f32.mrb[217].mxu0  ;;  %v26614_v6 = vpack.c.bf16 %v9292_v35, %v9291_v44  ;;  %v23546_v63 = vld [vmem:[%s24802_s29 + $0xb40] sm:$0xff]   ;;  %v23549_v35 = vld [vmem:[%s24802_s29 + $0x870] sm:$0xff]  }
 0x2a3   : > { %v26621_v42 = vmax.bf16 %v7064_v60, %v31256_v39  ;;  %v8529_v38 = vadd.f32 %v26394_v41, %v22182_v28  ;;  %v6152_v24 = vadd.f32 %v26394_v41, %v6151_v27  ;;  %v8520_v50 = vpop.f32.mrb[217].mxu1  ;;  %v21995_v15 = vpop.f32.mrb[218].mxu0 }
 0x2a4   : > { %v6880_v34 = vmax.f32 %v6160_v20, 0.0  ;;  %v8521_v61 = vadd.f32 %v26394_v41, %v8520_v50  ;;  %v6163_v44 = vadd.f32 %v26394_v41, %v21995_v15  ;;  %v22183_v30 = vpop.f32.mrb[218].mxu1  ;;  %v6154_v10 = vpop.f32.mrb[219].mxu0 }
 0x2a5   : > { %v9297_v29 = vmax.f32 %v8529_v38, 0.0  ;;  %v6878_v62 = vmax.f32 %v6152_v24, 0.0  ;;  %v8532_v60 = vadd.f32 %v26394_v41, %v22183_v30  ;;  %v6155_v23 = vadd.f32 %v26394_v41, %v6154_v10  ;;  %v8523_v28 = vpop.f32.mrb[219].mxu1  ;;  %v23547_v30 = vld [vmem:[%s24802_s29 + $0x868] sm:$0xff]  }
 0x2a6   : > { %v9295_v20 = vmax.f32 %v8521_v61, 0.0  ;;  %v6881_v27 = vmax.f32 %v6163_v44, 0.0  ;;  %v8524_v39 = vadd.f32 %v26394_v41, %v8523_v28  ;;  %22101 = vmatmul.mubr.msk.bf16.gmra.mrb[68].mxu0 %vm1054_vm0, %v23543_v12  ;;  %v23548_v44 = vld [vmem:[%s24802_s29 + $0xb48] sm:$0xff]   ;;  %v31257_v12 = vmax.bf16 %v25267_v16, %v25207_v18 }
 0x2a7   : > { %v9298_v50 = vmax.f32 %v8532_v60, 0.0  ;;  %v6879_v15 = vmax.f32 %v6155_v23, 0.0  ;;  %22289 = vmatmul.mubr.msk.bf16.gmra.mrb[68].mxu1 %vm1054_vm0, %v23544_v32  ;;  %22104 = vmatprep.mubr.msk.bf16.mxu0 %vm1054_vm0, %v23545_v19 }
 0x2a8   : > { %v7067_v38 = vpack.c.bf16 %v6881_v27, %v6880_v34  ;;  %v9296_v24 = vmax.f32 %v8524_v39, 0.0  ;;  %22292 = vmatprep.mubr.msk.bf16.mxu1 %vm1054_vm0, %v23546_v63 }
 0x2a9   : > { %v26638_v10 = vpack.c.bf16 %v9298_v50, %v9297_v29  ;;  %v7066_v61 = vpack.c.bf16 %v6879_v15, %v6878_v62  ;;  %v21998_v47 = vpop.f32.mrb[220].mxu0  ;;  %v31258_v29 = vmax.bf16 %v25273_v46, %v25213_v36  ;;  %v23612_v36 = vld [vmem:[%s30774_s3] sm:$0xff]  }
 0x2aa   : > { %v26645_v60 = vmax.bf16 %v7067_v38, %v31257_v12  ;;  %v6176_v32 = vadd.f32 %v26394_v41, %v21998_v47  ;;  %v22186_v19 = vpop.f32.mrb[220].mxu1  ;;  %v6167_v34 = vpop.f32.mrb[221].mxu0  ;;  %v26648_v23 = vpack.c.bf16 %v9296_v24, %v9295_v20  ;;  %v23550_v38 = vld [vmem:[%s24802_s29 + $0xb50] sm:$0xff]   ;;  %22396 = vmatprep.subr.bf16.mxu0 %v23612_v36  ;;  %v23552_v24 = vld [vmem:[%s24802_s29 + $0xb58] sm:$0xff]  }
 0x2ab   : > { %v26655_v62 = vmax.bf16 %v7066_v61, %v31258_v29  ;;  %v8545_v28 = vadd.f32 %v26394_v41, %v22186_v19  ;;  %v6168_v18 = vadd.f32 %v26394_v41, %v6167_v34  ;;  %v8536_v16 = vpop.f32.mrb[221].mxu1  ;;  %v21999_v27 = vpop.f32.mrb[222].mxu0 }
 0x2ac   : > { %v6884_v39 = vmax.f32 %v6176_v32, 0.0  ;;  %v8537_v47 = vadd.f32 %v26394_v41, %v8536_v16  ;;  %v6179_v20 = vadd.f32 %v26394_v41, %v21999_v27  ;;  %v22187_v50 = vpop.f32.mrb[222].mxu1  ;;  %v6170_v15 = vpop.f32.mrb[223].mxu0 }
 0x2ad   : > { %v9301_v46 = vmax.f32 %v8545_v28, 0.0  ;;  %v6882_v61 = vmax.f32 %v6168_v18, 0.0  ;;  %v8548_v12 = vadd.f32 %v26394_v41, %v22187_v50  ;;  %v6171_v32 = vadd.f32 %v26394_v41, %v6170_v15  ;;  %v8539_v19 = vpop.f32.mrb[223].mxu1  ;;  %v23551_v50 = vld [vmem:[%s24802_s29 + $0x878] sm:$0xff]  }
 0x2ae   : > { %v9299_v34 = vmax.f32 %v8537_v47, 0.0  ;;  %v6885_v29 = vmax.f32 %v6179_v20, 0.0  ;;  %v8540_v16 = vadd.f32 %v26394_v41, %v8539_v19  ;;  %22105 = vmatmul.mubr.msk.bf16.gmra.mrb[72].mxu0 %vm1054_vm0, %v23547_v30  ;;  %v23553_v19 = vld [vmem:[%s24802_s29 + $0x880] sm:$0xff]  }
 0x2af   : > { %v9302_v27 = vmax.f32 %v8548_v12, 0.0  ;;  %v6883_v63 = vmax.f32 %v6171_v32, 0.0  ;;  %22293 = vmatmul.mubr.msk.bf16.gmra.mrb[72].mxu1 %vm1054_vm0, %v23548_v44  ;;  %22108 = vmatprep.mubr.msk.bf16.mxu0 %vm1054_vm0, %v23549_v35  ;;  %v31259_v30 = vld [vmem:[#allocation10_spill] sm:$0xff] }
 0x2b0   : > { %v7069_v28 = vpack.c.bf16 %v6885_v29, %v6884_v39  ;;  %v9300_v18 = vmax.f32 %v8540_v16, 0.0  ;;  %22296 = vmatprep.mubr.msk.bf16.mxu1 %vm1054_vm0, %v23550_v38  ;;  %v31260_v36 = vmax.bf16 %v25300_v2, %v31259_v30 }
 0x2b1   : > { %v26675_v47 = vpack.c.bf16 %v9302_v27, %v9301_v46  ;;  %v7068_v20 = vpack.c.bf16 %v6883_v63, %v6882_v61  ;;  %v22002_v15 = vpop.f32.mrb[224].mxu0  ;;  %v31262_v46 = vld [vmem:[#allocation16_spill] sm:$0xff]  ;;  %v31263_v63 = vld [vmem:[#allocation11_spill] sm:$0xff] }
 0x2b2   : > { %v26682_v12 = vmax.bf16 %v7069_v28, %v31260_v36  ;;  %v6192_v44 = vadd.f32 %v26394_v41, %v22002_v15  ;;  %v22190_v35 = vpop.f32.mrb[224].mxu1  ;;  %v6183_v39 = vpop.f32.mrb[225].mxu0  ;;  %v26685_v32 = vpack.c.bf16 %v9300_v18, %v9299_v34  ;;  %v31264_v61 = vmax.bf16 %v31262_v46, %v31263_v63 }
 0x2b3   : > { %v8561_v16 = vadd.f32 %v26394_v41, %v22190_v35  ;;  %v6184_v2 = vadd.f32 %v26394_v41, %v6183_v39  ;;  %v8552_v27 = vpop.f32.mrb[225].mxu1  ;;  %v22003_v28 = vpop.f32.mrb[226].mxu0 }
 0x2b4   : > { %31261 = vst [vmem:[#allocation10_spill] sm:$0xff] %v26682_v12  ;;  %v26692_v29 = vmax.bf16 %v7068_v20, %v31264_v61  ;;  %v6888_v30 = vmax.f32 %v6192_v44, 0.0  ;;  %v8553_v15 = vadd.f32 %v26394_v41, %v8552_v27  ;;  %v6195_v34 = vadd.f32 %v26394_v41, %v22003_v28  ;;  %v22191_v18 = vpop.f32.mrb[226].mxu1  ;;  %v6186_v36 = vpop.f32.mrb[227].mxu0 }
 0x2b5   : > { %v9305_v46 = vmax.f32 %v8561_v16, 0.0  ;;  %v6886_v20 = vmax.f32 %v6184_v2, 0.0  ;;  %v8564_v35 = vadd.f32 %v26394_v41, %v22191_v18  ;;  %v6187_v39 = vadd.f32 %v26394_v41, %v6186_v36  ;;  %v8555_v63 = vpop.f32.mrb[227].mxu1  ;;  %v23555_v18 = vld [vmem:[%s24802_s29 + $0x888] sm:$0xff]  }
 0x2b6   : > { %31265 = vst [vmem:[#allocation16_spill] sm:$0xff] %v26692_v29  ;;  %v9303_v44 = vmax.f32 %v8553_v15, 0.0  ;;  %v6889_v61 = vmax.f32 %v6195_v34, 0.0  ;;  %v8556_v27 = vadd.f32 %v26394_v41, %v8555_v63  ;;  %22109 = vmatmul.mubr.msk.bf16.gmra.mrb[76].mxu0 %vm1054_vm0, %v23551_v50  ;;  %v23556_v34 = vld [vmem:[%s24802_s29 + $0xb68] sm:$0xff]   ;;  %v31266_v41 = vld [vmem:[#allocation18_spill] sm:$0xff] }
 0x2b7   : > { %v9306_v28 = vmax.f32 %v8564_v35, 0.0  ;;  %v6887_v51 = vmax.f32 %v6187_v39, 0.0  ;;  %22297 = vmatmul.mubr.msk.bf16.gmra.mrb[76].mxu1 %vm1054_vm0, %v23552_v24  ;;  %22112 = vmatprep.mubr.msk.bf16.mxu0 %vm1054_vm0, %v23553_v19  ;;  %v31267_v63 = vld [vmem:[#allocation12_spill] sm:$0xff]  ;;  %v26721_v24 = vld [vmem:[%s30773_s2] ss:$0 sm:$0xff]  ;;  %v31271_v39 = vld [vmem:[#allocation13_spill] sm:$0xff] }
 0x2b8   : > { %v7071_v16 = vpack.c.bf16 %v6889_v61, %v6888_v30  ;;  %v9304_v2 = vmax.f32 %v8556_v27, 0.0  ;;  %22300 = vmatprep.mubr.msk.bf16.mxu1 %vm1054_vm0, %v23554_v53  ;;  %v31268_v50 = vmax.bf16 %v31266_v41, %v31267_v63 }
 0x2b9   : > { %v26709_v36 = vpack.c.bf16 %v9306_v28, %v9305_v46  ;;  %v7070_v15 = vpack.c.bf16 %v6887_v51, %v6886_v20  ;;  %v22006_v38 = vpop.f32.mrb[228].mxu0  ;;  %v31270_v20 = vld [vmem:[#allocation20_spill] sm:$0xff] }
 0x2ba   : > { %v26716_v35 = vmax.bf16 %v7071_v16, %v31268_v50  ;;  %v6208_v53 = vadd.f32 %v26721_v24, %v22006_v38  ;;  %v22194_v19 = vpop.f32.mrb[228].mxu1  ;;  %v6199_v30 = vpop.f32.mrb[229].mxu0  ;;  %v26724_v46 = vpack.c.bf16 %v9304_v2, %v9303_v44  ;;  %v31272_v61 = vmax.bf16 %v31270_v20, %v31271_v39 }
 0x2bb   : > { %v8577_v28 = vadd.f32 %v26721_v24, %v22194_v19  ;;  %v6200_v16 = vadd.f32 %v26721_v24, %v6199_v30  ;;  %v8568_v41 = vpop.f32.mrb[229].mxu1  ;;  %v22007_v63 = vpop.f32.mrb[230].mxu0 }
 0x2bc   : > { %31269 = vst [vmem:[#allocation11_spill] sm:$0xff] %v26716_v35  ;;  %v26731_v27 = vmax.bf16 %v7070_v15, %v31272_v61  ;;  %v6892_v50 = vmax.f32 %v6208_v53, 0.0  ;;  %v8569_v38 = vadd.f32 %v26721_v24, %v8568_v41  ;;  %v6211_v44 = vadd.f32 %v26721_v24, %v22007_v63  ;;  %v22195_v2 = vpop.f32.mrb[230].mxu1  ;;  %v6202_v1 = vpop.f32.mrb[231].mxu0 }
 0x2bd   : > { %v9309_v20 = vmax.f32 %v8577_v28, 0.0  ;;  %v6890_v15 = vmax.f32 %v6200_v16, 0.0  ;;  %v8580_v19 = vadd.f32 %v26721_v24, %v22195_v2  ;;  %v6203_v30 = vadd.f32 %v26721_v24, %v6202_v1  ;;  %v8571_v39 = vpop.f32.mrb[231].mxu1  ;;  %v23559_v1 = vld [vmem:[%s24802_s29 + $0x898] sm:$0xff]  }
 0x2be   : > { %31273 = vst [vmem:[#allocation18_spill] sm:$0xff] %v26731_v27  ;;  %v9307_v53 = vmax.f32 %v8569_v38, 0.0  ;;  %v6893_v61 = vmax.f32 %v6211_v44, 0.0  ;;  %v8572_v41 = vadd.f32 %v26721_v24, %v8571_v39  ;;  %22113 = vmatmul.mubr.msk.bf16.gmra.mrb[80].mxu0 %vm1054_vm0, %v23555_v18  ;;  %v23560_v44 = vld [vmem:[%s24802_s29 + $0xb78] sm:$0xff]  }
 0x2bf   : > { %v9310_v63 = vmax.f32 %v8580_v19, 0.0  ;;  %v6891_v43 = vmax.f32 %v6203_v30, 0.0  ;;  %22301 = vmatmul.mubr.msk.bf16.gmra.mrb[80].mxu1 %vm1054_vm0, %v23556_v34  ;;  %22116 = vmatprep.mubr.msk.bf16.mxu0 %vm1054_vm0, %v23557_v49  ;;  %v31274_v39 = vld [vmem:[#allocation22_spill] sm:$0xff] }
 0x2c0   : > { %v7073_v28 = vpack.c.bf16 %v6893_v61, %v6892_v50  ;;  %v9308_v16 = vmax.f32 %v8572_v41, 0.0  ;;  %22304 = vmatprep.mubr.msk.bf16.mxu1 %vm1054_vm0, %v23558_v22  ;;  %v31276_v18 = vmax.bf16 %v31274_v39, %v31275_v4  ;;  %v31310_v27 = vld [vmem:[#allocation38_spill] sm:$0xff] }
 0x2c1   : > { %v26748_v2 = vpack.c.bf16 %v9310_v63, %v9309_v20  ;;  %v7072_v38 = vpack.c.bf16 %v6891_v43, %v6890_v15  ;;  %v22010_v51 = vpop.f32.mrb[232].mxu0  ;;  %v31278_v20 = vld [vmem:[#allocation24_spill] sm:$0xff]  ;;  %v31279_v43 = vld [vmem:[#allocation15_spill] sm:$0xff] }
 0x2c2   : > { %v26755_v19 = vmax.bf16 %v7073_v28, %v31276_v18  ;;  %v6224_v34 = vadd.f32 %v26721_v24, %v22010_v51  ;;  %v22198_v49 = vpop.f32.mrb[232].mxu1  ;;  %v6215_v50 = vpop.f32.mrb[233].mxu0  ;;  %v26758_v30 = vpack.c.bf16 %v9308_v16, %v9307_v53  ;;  %v31280_v15 = vmax.bf16 %v31278_v20, %v31279_v43 }
 0x2c3   : > { %v8593_v41 = vadd.f32 %v26721_v24, %v22198_v49  ;;  %v6216_v4 = vadd.f32 %v26721_v24, %v6215_v50  ;;  %v8584_v63 = vpop.f32.mrb[233].mxu1  ;;  %v22011_v28 = vpop.f32.mrb[234].mxu0 }
 0x2c4   : > { %31277 = vst [vmem:[#allocation12_spill] sm:$0xff] %v26755_v19  ;;  %v26765_v61 = vmax.bf16 %v7072_v38, %v31280_v15  ;;  %v6896_v39 = vmax.f32 %v6224_v34, 0.0  ;;  %v8585_v51 = vadd.f32 %v26721_v24, %v8584_v63  ;;  %v6227_v53 = vadd.f32 %v26721_v24, %v22011_v28  ;;  %v22199_v16 = vpop.f32.mrb[234].mxu1  ;;  %v6218_v18 = vpop.f32.mrb[235].mxu0 }
 0x2c5   : > { %v9313_v20 = vmax.f32 %v8593_v41, 0.0  ;;  %v6894_v38 = vmax.f32 %v6216_v4, 0.0  ;;  %v8596_v49 = vadd.f32 %v26721_v24, %v22199_v16  ;;  %v6219_v50 = vadd.f32 %v26721_v24, %v6218_v18  ;;  %v8587_v43 = vpop.f32.mrb[235].mxu1  ;;  %v23564_v16 = vld [vmem:[%s24802_s29 + $0x8a8] sm:$0xff]  }
 0x2c6   : > { %31281 = vst [vmem:[#allocation20_spill] sm:$0xff] %v26765_v61  ;;  %v9311_v34 = vmax.f32 %v8585_v51, 0.0  ;;  %v6897_v15 = vmax.f32 %v6227_v53, 0.0  ;;  %v8588_v63 = vadd.f32 %v26721_v24, %v8587_v43  ;;  %22117 = vmatmul.mubr.msk.bf16.gmra.mrb[84].mxu0 %vm1054_vm0, %v23559_v1  ;;  %v23565_v53 = vld [vmem:[%s24802_s29 + $0xb88] sm:$0xff]   ;;  %v31282_v43 = vld [vmem:[#allocation26_spill] sm:$0xff] }
 0x2c7   : > { %v9314_v28 = vmax.f32 %v8596_v49, 0.0  ;;  %v6895_v7 = vmax.f32 %v6219_v50, 0.0  ;;  %22305 = vmatmul.mubr.msk.bf16.gmra.mrb[84].mxu1 %vm1054_vm0, %v23560_v44  ;;  %22120 = vmatprep.mubr.msk.bf16.mxu0 %vm1054_vm0, %v23562_v17  ;;  %v31284_v1 = vmax.bf16 %v31282_v43, %v31283_v33  ;;  %v31320_v61 = vld [vmem:[#allocation42_spill] sm:$0xff] }
 0x2c8   : > { %v7075_v41 = vpack.c.bf16 %v6897_v15, %v6896_v39  ;;  %v9312_v4 = vmax.f32 %v8588_v63, 0.0  ;;  %22308 = vmatprep.mubr.msk.bf16.mxu1 %vm1054_vm0, %v23563_v11 }
 0x2c9   : > { %v26782_v18 = vpack.c.bf16 %v9314_v28, %v9313_v20  ;;  %v7074_v51 = vpack.c.bf16 %v6895_v7, %v6894_v38  ;;  %v22014_v22 = vpop.f32.mrb[236].mxu0  ;;  %v31286_v20 = vld [vmem:[#allocation28_spill] sm:$0xff]  ;;  %v31287_v7 = vld [vmem:[#allocation19_spill] sm:$0xff] }
 0x2ca   : > { %v26789_v49 = vmax.bf16 %v7075_v41, %v31284_v1  ;;  %v6240_v44 = vadd.f32 %v26721_v24, %v22014_v22  ;;  %v22202_v17 = vpop.f32.mrb[236].mxu1  ;;  %v6231_v39 = vpop.f32.mrb[237].mxu0  ;;  %v26792_v50 = vpack.c.bf16 %v9312_v4, %v9311_v34  ;;  %v31288_v38 = vmax.bf16 %v31286_v20, %v31287_v7 }
 0x2cb   : > { %v8609_v63 = vadd.f32 %v26721_v24, %v22202_v17  ;;  %v6232_v33 = vadd.f32 %v26721_v24, %v6231_v39  ;;  %v8600_v28 = vpop.f32.mrb[237].mxu1  ;;  %v22015_v41 = vpop.f32.mrb[238].mxu0 }
 0x2cc   : > { %31285 = vst [vmem:[#allocation13_spill] sm:$0xff] %v26789_v49  ;;  %v26799_v15 = vmax.bf16 %v7074_v51, %v31288_v38  ;;  %v6900_v43 = vmax.f32 %v6240_v44, 0.0  ;;  %v8601_v22 = vadd.f32 %v26721_v24, %v8600_v28  ;;  %v6243_v34 = vadd.f32 %v26721_v24, %v22015_v41  ;;  %v22203_v4 = vpop.f32.mrb[238].mxu1  ;;  %v6234_v1 = vpop.f32.mrb[239].mxu0 }
 0x2cd   : > { %v9317_v20 = vmax.f32 %v8609_v63, 0.0  ;;  %v6898_v51 = vmax.f32 %v6232_v33, 0.0  ;;  %v8612_v17 = vadd.f32 %v26721_v24, %v22203_v4  ;;  %v6235_v39 = vadd.f32 %v26721_v24, %v6234_v1  ;;  %v8603_v7 = vpop.f32.mrb[239].mxu1  ;;  %v23568_v4 = vld [vmem:[%s24802_s29 + $0x8b8] sm:$0xff]  }
 0x2ce   : > { %31289 = vst [vmem:[#allocation22_spill] sm:$0xff] %v26799_v15  ;;  %v9315_v44 = vmax.f32 %v8601_v22, 0.0  ;;  %v6901_v38 = vmax.f32 %v6243_v34, 0.0  ;;  %v8604_v28 = vadd.f32 %v26721_v24, %v8603_v7  ;;  %22121 = vmatmul.mubr.msk.bf16.gmra.mrb[88].mxu0 %vm1054_vm0, %v23564_v16  ;;  %v23569_v34 = vld [vmem:[%s24802_s29 + $0xb98] sm:$0xff]  }
 0x2cf   : > { %v9318_v41 = vmax.f32 %v8612_v17, 0.0  ;;  %v6899_v9 = vmax.f32 %v6235_v39, 0.0  ;;  %22309 = vmatmul.mubr.msk.bf16.gmra.mrb[88].mxu1 %vm1054_vm0, %v23565_v53  ;;  %22124 = vmatprep.mubr.msk.bf16.mxu0 %vm1054_vm0, %v23566_v54  ;;  %v31291_v7 = vld [vmem:[#allocation30_spill] sm:$0xff] }
 0x2d0   : > { %v7077_v63 = vpack.c.bf16 %v6901_v38, %v6900_v43  ;;  %v9316_v33 = vmax.f32 %v8604_v28, 0.0  ;;  %22312 = vmatprep.mubr.msk.bf16.mxu1 %vm1054_vm0, %v23567_v37  ;;  %v31293_v16 = vmax.bf16 %v31291_v7, %v31292_v48  ;;  %v23573_v37 = vld [vmem:[%s24802_s29 + $0xba8] sm:$0xff]   ;;  %v31330_v15 = vld [vmem:[#allocation46_spill] sm:$0xff] }
 0x2d1   : > { %v26816_v1 = vpack.c.bf16 %v9318_v41, %v9317_v20  ;;  %v7076_v22 = vpack.c.bf16 %v6899_v9, %v6898_v51  ;;  %v22018_v11 = vpop.f32.mrb[240].mxu0  ;;  %v31295_v20 = vld [vmem:[#allocation32_spill] sm:$0xff]  ;;  %v31296_v9 = vld [vmem:[#allocation23_spill] sm:$0xff] }
 0x2d2   : > { %v26823_v17 = vmax.bf16 %v7077_v63, %v31293_v16  ;;  %v6256_v53 = vadd.f32 %v26721_v24, %v22018_v11  ;;  %v22206_v54 = vpop.f32.mrb[240].mxu1  ;;  %v6247_v43 = vpop.f32.mrb[241].mxu0  ;;  %v26826_v39 = vpack.c.bf16 %v9316_v33, %v9315_v44  ;;  %v31297_v51 = vmax.bf16 %v31295_v20, %v31296_v9  ;;  %v23571_v16 = vld [vmem:[%s24802_s29 + $0xba0] sm:$0xff]  }
 0x2d3   : > { %31290 = vst [vmem:[#allocation14_spill] sm:$0xff] %v26816_v1  ;;  %v8625_v28 = vadd.f32 %v26721_v24, %v22206_v54  ;;  %v6248_v48 = vadd.f32 %v26721_v24, %v6247_v43  ;;  %v8616_v41 = vpop.f32.mrb[241].mxu1  ;;  %v22019_v63 = vpop.f32.mrb[242].mxu0  ;;  %v31300_v1 = vld [vmem:[#allocation34_spill] sm:$0xff] }
 0x2d4   : > { %31294 = vst [vmem:[#allocation24_spill] sm:$0xff] %v26823_v17  ;;  %v26833_v38 = vmax.bf16 %v7076_v22, %v31297_v51  ;;  %v8617_v11 = vadd.f32 %v26721_v24, %v8616_v41  ;;  %v6259_v7 = vadd.f32 %v26721_v24, %v22019_v63  ;;  %v22207_v44 = vpop.f32.mrb[242].mxu1  ;;  %v6250_v33 = vpop.f32.mrb[243].mxu0  ;;  %v6904_v43 = vmax.f32 %v6256_v53, 0.0  ;;  %v23572_v53 = vld [vmem:[%s24802_s29 + $0x8c8] sm:$0xff]  }
 0x2d5   : > { %v9321_v52 = vmax.f32 %v8625_v28, 0.0  ;;  %v8628_v22 = vadd.f32 %v26721_v24, %v22207_v44  ;;  %v6251_v54 = vadd.f32 %v26721_v24, %v6250_v33  ;;  %v8619_v20 = vpop.f32.mrb[243].mxu1  ;;  %v6902_v63 = vmax.f32 %v6248_v48, 0.0 }
 0x2d6   : > { %31298 = vst [vmem:[#allocation15_spill] sm:$0xff] %v26833_v38  ;;  %v9319_v9 = vmax.f32 %v8617_v11, 0.0  ;;  %v6905_v51 = vmax.f32 %v6259_v7, 0.0  ;;  %v8620_v41 = vadd.f32 %v26721_v24, %v8619_v20  ;;  %22125 = vmatmul.mubr.msk.bf16.gmra.mrb[92].mxu0 %vm1054_vm0, %v23568_v4  ;;  %v23574_v20 = vld [vmem:[%s24802_s29 + $0x8d0] sm:$0xff]   ;;  %v31340_v38 = vld [vmem:[#allocation50_spill] sm:$0xff] }
 0x2d7   : > { %v9322_v57 = vmax.f32 %v8628_v22, 0.0  ;;  %v6903_v12 = vmax.f32 %v6251_v54, 0.0  ;;  %22313 = vmatmul.mubr.msk.bf16.gmra.mrb[92].mxu1 %vm1054_vm0, %v23569_v34  ;;  %22128 = vmatprep.mubr.msk.bf16.mxu0 %vm1054_vm0, %v23570_v31  ;;  %v31301_v4 = vld [vmem:[#allocation25_spill] sm:$0xff] }
 0x2d8   : > { %v7079_v28 = vpack.c.bf16 %v6905_v51, %v6904_v43  ;;  %v9320_v44 = vmax.f32 %v8620_v41, 0.0  ;;  %22316 = vmatprep.mubr.msk.bf16.mxu1 %vm1054_vm0, %v23571_v16  ;;  %v31302_v48 = vmax.bf16 %v31300_v1, %v31301_v4 }
 0x2d9   : > { %v26850_v11 = vpack.c.bf16 %v9322_v57, %v9321_v52  ;;  %v7078_v7 = vpack.c.bf16 %v6903_v12, %v6902_v63  ;;  %v22022_v33 = vpop.f32.mrb[244].mxu0  ;;  %v31305_v52 = vld [vmem:[#allocation36_spill] sm:$0xff]  ;;  %v31306_v12 = vld [vmem:[#allocation27_spill] sm:$0xff]  ;;  %v23577_v57 = vld [vmem:[%s24802_s29 + $0xbb8] sm:$0xff]  }
 0x2da   : > { %v26857_v22 = vmax.bf16 %v7079_v28, %v31302_v48  ;;  %v6272_v34 = vadd.f32 %v26721_v24, %v22022_v33  ;;  %v22210_v31 = vpop.f32.mrb[244].mxu1  ;;  %v6263_v54 = vpop.f32.mrb[245].mxu0  ;;  %v26860_v43 = vpack.c.bf16 %v9320_v44, %v9319_v9  ;;  %v31307_v16 = vmax.bf16 %v31305_v52, %v31306_v12  ;;  %v23575_v48 = vld [vmem:[%s24802_s29 + $0xbb0] sm:$0xff]  }
 0x2db   : > { %31299 = vst [vmem:[#allocation26_spill] sm:$0xff] %v26850_v11  ;;  %v8641_v41 = vadd.f32 %v26721_v24, %v22210_v31  ;;  %v6264_v1 = vadd.f32 %v26721_v24, %v6263_v54  ;;  %v8632_v63 = vpop.f32.mrb[245].mxu1  ;;  %v22023_v28 = vpop.f32.mrb[246].mxu0 }
 0x2dc   : > { %31303 = vst [vmem:[#allocation17_spill] sm:$0xff] %v26857_v22  ;;  %31304 = vst [vmem:[#allocation28_spill] sm:$0xff] %v26860_v43  ;;  %v26867_v51 = vmax.bf16 %v7078_v7, %v31307_v16  ;;  %v8633_v33 = vadd.f32 %v26721_v24, %v8632_v63  ;;  %v6275_v4 = vadd.f32 %v26721_v24, %v22023_v28  ;;  %v22211_v9 = vpop.f32.mrb[246].mxu1  ;;  %v6266_v44 = vpop.f32.mrb[247].mxu0  ;;  %v6908_v54 = vmax.f32 %v6272_v34, 0.0  ;;  %v23576_v34 = vld [vmem:[%s24802_s29 + $0x8d8] sm:$0xff]  }
 0x2dd   : > { %v9325_v35 = vmax.f32 %v8641_v41, 0.0  ;;  %v8644_v7 = vadd.f32 %v26721_v24, %v22211_v9  ;;  %v6267_v31 = vadd.f32 %v26721_v24, %v6266_v44  ;;  %v8635_v52 = vpop.f32.mrb[247].mxu1  ;;  %v6906_v28 = vmax.f32 %v6264_v1, 0.0 }
 0x2de   : > { %31308 = vst [vmem:[#allocation19_spill] sm:$0xff] %v26867_v51  ;;  %v9323_v12 = vmax.f32 %v8633_v33, 0.0  ;;  %v6909_v16 = vmax.f32 %v6275_v4, 0.0  ;;  %v8636_v63 = vadd.f32 %v26721_v24, %v8635_v52  ;;  %22129 = vmatmul.mubr.msk.bf16.gmra.mrb[96].mxu0 %vm1054_vm0, %v23572_v53  ;;  %v23578_v52 = vld [vmem:[%s24802_s29 + $0x8e0] sm:$0xff]   ;;  %v31311_v53 = vld [vmem:[#allocation29_spill] sm:$0xff] }
 0x2df   : > { %v9326_v11 = vmax.f32 %v8644_v7, 0.0  ;;  %v6907_v29 = vmax.f32 %v6267_v31, 0.0  ;;  %22317 = vmatmul.mubr.msk.bf16.gmra.mrb[96].mxu1 %vm1054_vm0, %v23573_v37  ;;  %22132 = vmatprep.mubr.msk.bf16.mxu0 %vm1054_vm0, %v23574_v20  ;;  %v31312_v1 = vmax.bf16 %v31310_v27, %v31311_v53  ;;  %v23596_v51 = vld [vmem:[%s24802_s29 + $0xc00] sm:$0xff]  }
 0x2e0   : > { %v7081_v41 = vpack.c.bf16 %v6909_v16, %v6908_v54  ;;  %v9324_v9 = vmax.f32 %v8636_v63, 0.0  ;;  %22320 = vmatprep.mubr.msk.bf16.mxu1 %vm1054_vm0, %v23575_v48 }
 0x2e1   : > { %v26884_v33 = vpack.c.bf16 %v9326_v11, %v9325_v35  ;;  %v7080_v4 = vpack.c.bf16 %v6907_v29, %v6906_v28  ;;  %v22026_v44 = vpop.f32.mrb[248].mxu0  ;;  %v31315_v11 = vld [vmem:[#allocation40_spill] sm:$0xff]  ;;  %v31316_v29 = vld [vmem:[#allocation31_spill] sm:$0xff] }
 0x2e2   : > { %v26891_v7 = vmax.bf16 %v7081_v41, %v31312_v1  ;;  %v6288_v37 = vadd.f32 %v26721_v24, %v22026_v44  ;;  %v22214_v20 = vpop.f32.mrb[248].mxu1  ;;  %v6279_v31 = vpop.f32.mrb[249].mxu0  ;;  %v26894_v54 = vpack.c.bf16 %v9324_v9, %v9323_v12  ;;  %v31317_v48 = vmax.bf16 %v31315_v11, %v31316_v29  ;;  %v23579_v1 = vld [vmem:[%s24802_s29 + $0xbc0] sm:$0xff]   ;;  %v23581_v35 = vld [vmem:[%s24802_s29 + $0xbc8] sm:$0xff]  }
 0x2e3   : > { %31309 = vst [vmem:[#allocation30_spill] sm:$0xff] %v26884_v33  ;;  %v8657_v63 = vadd.f32 %v26721_v24, %v22214_v20  ;;  %v6280_v27 = vadd.f32 %v26721_v24, %v6279_v31  ;;  %v8648_v28 = vpop.f32.mrb[249].mxu1  ;;  %v22027_v41 = vpop.f32.mrb[250].mxu0 }
 0x2e4   : > { %31313 = vst [vmem:[#allocation21_spill] sm:$0xff] %v26891_v7  ;;  %31314 = vst [vmem:[#allocation32_spill] sm:$0xff] %v26894_v54  ;;  %v26901_v16 = vmax.bf16 %v7080_v4, %v31317_v48  ;;  %v8649_v44 = vadd.f32 %v26721_v24, %v8648_v28  ;;  %v6291_v53 = vadd.f32 %v26721_v24, %v22027_v41  ;;  %v22215_v12 = vpop.f32.mrb[250].mxu1  ;;  %v6282_v9 = vpop.f32.mrb[251].mxu0  ;;  %v6912_v31 = vmax.f32 %v6288_v37, 0.0  ;;  %v23580_v37 = vld [vmem:[%s24802_s29 + $0x8e8] sm:$0xff]  }
 0x2e5   : > { %v9329_v19 = vmax.f32 %v8657_v63, 0.0  ;;  %v8660_v4 = vadd.f32 %v26721_v24, %v22215_v12  ;;  %v6283_v20 = vadd.f32 %v26721_v24, %v6282_v9  ;;  %v8651_v11 = vpop.f32.mrb[251].mxu1  ;;  %v6910_v41 = vmax.f32 %v6280_v27, 0.0 }
 0x2e6   : > { %31318 = vst [vmem:[#allocation23_spill] sm:$0xff] %v26901_v16  ;;  %v9327_v29 = vmax.f32 %v8649_v44, 0.0  ;;  %v6913_v48 = vmax.f32 %v6291_v53, 0.0  ;;  %v8652_v28 = vadd.f32 %v26721_v24, %v8651_v11  ;;  %22133 = vmatmul.mubr.msk.bf16.gmra.mrb[100].mxu0 %vm1054_vm0, %v23576_v34  ;;  %v23582_v11 = vld [vmem:[%s24802_s29 + $0x8f0] sm:$0xff]   ;;  %v31360_v16 = vld [vmem:[#allocation58_spill] sm:$0xff] }
 0x2e7   : > { %v9330_v33 = vmax.f32 %v8660_v4, 0.0  ;;  %v6911_v43 = vmax.f32 %v6283_v20, 0.0  ;;  %22321 = vmatmul.mubr.msk.bf16.gmra.mrb[100].mxu1 %vm1054_vm0, %v23577_v57  ;;  %22136 = vmatprep.mubr.msk.bf16.mxu0 %vm1054_vm0, %v23578_v52  ;;  %v31321_v34 = vld [vmem:[#allocation33_spill] sm:$0xff] }
 0x2e8   : > { %v7083_v63 = vpack.c.bf16 %v6913_v48, %v6912_v31  ;;  %v9328_v12 = vmax.f32 %v8652_v28, 0.0  ;;  %22324 = vmatprep.mubr.msk.bf16.mxu1 %vm1054_vm0, %v23579_v1  ;;  %v31322_v27 = vmax.bf16 %v31320_v61, %v31321_v34 }
 0x2e9   : > { %v26918_v44 = vpack.c.bf16 %v9330_v33, %v9329_v19  ;;  %v7082_v53 = vpack.c.bf16 %v6911_v43, %v6910_v41  ;;  %v22030_v9 = vpop.f32.mrb[252].mxu0  ;;  %v31325_v33 = vld [vmem:[#allocation44_spill] sm:$0xff]  ;;  %v31326_v43 = vld [vmem:[#allocation35_spill] sm:$0xff]  ;;  %v23585_v19 = vld [vmem:[%s24802_s29 + $0xbd8] sm:$0xff]  }
 0x2ea   : > { %v26925_v4 = vmax.bf16 %v7083_v63, %v31322_v27  ;;  %v6304_v57 = vadd.f32 %v26721_v24, %v22030_v9  ;;  %v22218_v52 = vpop.f32.mrb[252].mxu1  ;;  %v6295_v20 = vpop.f32.mrb[253].mxu0  ;;  %v26928_v31 = vpack.c.bf16 %v9328_v12, %v9327_v29  ;;  %v31327_v1 = vmax.bf16 %v31325_v33, %v31326_v43  ;;  %v23583_v27 = vld [vmem:[%s24802_s29 + $0xbd0] sm:$0xff]  }
 0x2eb   : > { %31319 = vst [vmem:[#allocation34_spill] sm:$0xff] %v26918_v44  ;;  %v8673_v28 = vadd.f32 %v26721_v24, %v22218_v52  ;;  %v6296_v61 = vadd.f32 %v26721_v24, %v6295_v20  ;;  %v8664_v41 = vpop.f32.mrb[253].mxu1  ;;  %v22031_v63 = vpop.f32.mrb[254].mxu0 }
 0x2ec   : > { %31323 = vst [vmem:[#allocation25_spill] sm:$0xff] %v26925_v4  ;;  %31324 = vst [vmem:[#allocation36_spill] sm:$0xff] %v26928_v31  ;;  %v26935_v48 = vmax.bf16 %v7082_v53, %v31327_v1  ;;  %v8665_v9 = vadd.f32 %v26721_v24, %v8664_v41  ;;  %v6307_v34 = vadd.f32 %v26721_v24, %v22031_v63  ;;  %v22219_v29 = vpop.f32.mrb[254].mxu1  ;;  %v6298_v12 = vpop.f32.mrb[255].mxu0  ;;  %v6916_v20 = vmax.f32 %v6304_v57, 0.0  ;;  %v23584_v57 = vld [vmem:[%s24802_s29 + $0x8f8] sm:$0xff]  }
 0x2ed   : > { %v9333_v49 = vmax.f32 %v8673_v28, 0.0  ;;  %v8676_v53 = vadd.f32 %v26721_v24, %v22219_v29  ;;  %v6299_v52 = vadd.f32 %v26721_v24, %v6298_v12  ;;  %v8667_v33 = vpop.f32.mrb[255].mxu1  ;;  %v6914_v63 = vmax.f32 %v6296_v61, 0.0 }
 0x2ee   : > { %31328 = vst [vmem:[#allocation27_spill] sm:$0xff] %v26935_v48  ;;  %v9331_v43 = vmax.f32 %v8665_v9, 0.0  ;;  %v6917_v1 = vmax.f32 %v6307_v34, 0.0  ;;  %v8668_v41 = vadd.f32 %v26721_v24, %v8667_v33  ;;  %22137 = vmatmul.mubr.msk.bf16.gmra.mrb[104].mxu0 %vm1054_vm0, %v23580_v37  ;;  %v23587_v33 = vld [vmem:[%s24802_s29 + $0x900] sm:$0xff]   ;;  %v31331_v37 = vld [vmem:[#allocation37_spill] sm:$0xff] }
 0x2ef   : > { %v9334_v44 = vmax.f32 %v8676_v53, 0.0  ;;  %v6915_v54 = vmax.f32 %v6299_v52, 0.0  ;;  %22325 = vmatmul.mubr.msk.bf16.gmra.mrb[104].mxu1 %vm1054_vm0, %v23581_v35  ;;  %22140 = vmatprep.mubr.msk.bf16.mxu0 %vm1054_vm0, %v23582_v11  ;;  %v31332_v61 = vmax.bf16 %v31330_v15, %v31331_v37  ;;  %v31369_v48 = vld [vmem:[#allocation62_spill] sm:$0xff] }
 0x2f0   : > { %v7085_v28 = vpack.c.bf16 %v6917_v1, %v6916_v20  ;;  %v9332_v29 = vmax.f32 %v8668_v41, 0.0  ;;  %22328 = vmatprep.mubr.msk.bf16.mxu1 %vm1054_vm0, %v23583_v27 }
 0x2f1   : > { %v26952_v9 = vpack.c.bf16 %v9334_v44, %v9333_v49  ;;  %v7084_v34 = vpack.c.bf16 %v6915_v54, %v6914_v63  ;;  %v22034_v12 = vpop.f32.mrb[0].mxu0  ;;  %v31335_v44 = vld [vmem:[#allocation48_spill] sm:$0xff]  ;;  %v31336_v54 = vld [vmem:[#allocation39_spill] sm:$0xff] }
 0x2f2   : > { %v26959_v53 = vmax.bf16 %v7085_v28, %v31332_v61  ;;  %v6320_v35 = vadd.f32 %v26721_v24, %v22034_v12  ;;  %v22222_v11 = vpop.f32.mrb[0].mxu1  ;;  %v6311_v52 = vpop.f32.mrb[1].mxu0  ;;  %v26962_v20 = vpack.c.bf16 %v9332_v29, %v9331_v43  ;;  %v31337_v27 = vmax.bf16 %v31335_v44, %v31336_v54  ;;  %v23588_v61 = vld [vmem:[%s24802_s29 + $0xbe0] sm:$0xff]   ;;  %v23590_v49 = vld [vmem:[%s24802_s29 + $0xbe8] sm:$0xff]  }
 0x2f3   : > { %31329 = vst [vmem:[#allocation38_spill] sm:$0xff] %v26952_v9  ;;  %v8689_v41 = vadd.f32 %v26721_v24, %v22222_v11  ;;  %v6312_v15 = vadd.f32 %v26721_v24, %v6311_v52  ;;  %v8680_v63 = vpop.f32.mrb[1].mxu1  ;;  %v22035_v28 = vpop.f32.mrb[2].mxu0 }
 0x2f4   : > { %31333 = vst [vmem:[#allocation29_spill] sm:$0xff] %v26959_v53  ;;  %31334 = vst [vmem:[#allocation40_spill] sm:$0xff] %v26962_v20  ;;  %v26969_v1 = vmax.bf16 %v7084_v34, %v31337_v27  ;;  %v8681_v12 = vadd.f32 %v26721_v24, %v8680_v63  ;;  %v6323_v37 = vadd.f32 %v26721_v24, %v22035_v28  ;;  %v22223_v43 = vpop.f32.mrb[2].mxu1  ;;  %v6314_v29 = vpop.f32.mrb[3].mxu0  ;;  %v6920_v52 = vmax.f32 %v6320_v35, 0.0  ;;  %v23589_v35 = vld [vmem:[%s24802_s29 + $0x908] sm:$0xff]  }
 0x2f5   : > { %v9337_v17 = vmax.f32 %v8689_v41, 0.0  ;;  %v8692_v34 = vadd.f32 %v26721_v24, %v22223_v43  ;;  %v6315_v11 = vadd.f32 %v26721_v24, %v6314_v29  ;;  %v8683_v44 = vpop.f32.mrb[3].mxu1  ;;  %v6918_v28 = vmax.f32 %v6312_v15, 0.0 }
 0x2f6   : > { %31338 = vst [vmem:[#allocation31_spill] sm:$0xff] %v26969_v1  ;;  %v9335_v54 = vmax.f32 %v8681_v12, 0.0  ;;  %v6921_v27 = vmax.f32 %v6323_v37, 0.0  ;;  %v8684_v63 = vadd.f32 %v26721_v24, %v8683_v44  ;;  %22141 = vmatmul.mubr.msk.bf16.gmra.mrb[108].mxu0 %vm1054_vm0, %v23584_v57  ;;  %v23591_v44 = vld [vmem:[%s24802_s29 + $0x910] sm:$0xff]   ;;  %v31377_v1 = vld [vmem:[#allocation66_spill] sm:$0xff] }
 0x2f7   : > { %v9338_v9 = vmax.f32 %v8692_v34, 0.0  ;;  %v6919_v31 = vmax.f32 %v6315_v11, 0.0  ;;  %22329 = vmatmul.mubr.msk.bf16.gmra.mrb[108].mxu1 %vm1054_vm0, %v23585_v19  ;;  %22144 = vmatprep.mubr.msk.bf16.mxu0 %vm1054_vm0, %v23587_v33  ;;  %v31341_v57 = vld [vmem:[#allocation41_spill] sm:$0xff] }
 0x2f8   : > { %v7087_v41 = vpack.c.bf16 %v6921_v27, %v6920_v52  ;;  %v9336_v43 = vmax.f32 %v8684_v63, 0.0  ;;  %22332 = vmatprep.mubr.msk.bf16.mxu1 %vm1054_vm0, %v23588_v61  ;;  %v31342_v15 = vmax.bf16 %v31340_v38, %v31341_v57 }
 0x2f9   : > { %v26986_v12 = vpack.c.bf16 %v9338_v9, %v9337_v17  ;;  %v7086_v37 = vpack.c.bf16 %v6919_v31, %v6918_v28  ;;  %v22038_v29 = vpop.f32.mrb[4].mxu0  ;;  %v31345_v9 = vld [vmem:[#allocation52_spill] sm:$0xff]  ;;  %v31346_v31 = vld [vmem:[#allocation43_spill] sm:$0xff]  ;;  %v23594_v17 = vld [vmem:[%s24802_s29 + $0xbf8] sm:$0xff]  }
 0x2fa   : > { %v26993_v34 = vmax.bf16 %v7087_v41, %v31342_v15  ;;  %v6336_v19 = vadd.f32 %v26721_v24, %v22038_v29  ;;  %v22226_v33 = vpop.f32.mrb[4].mxu1  ;;  %v6327_v11 = vpop.f32.mrb[5].mxu0  ;;  %v26996_v52 = vpack.c.bf16 %v9336_v43, %v9335_v54  ;;  %v31347_v61 = vmax.bf16 %v31345_v9, %v31346_v31  ;;  %v23592_v15 = vld [vmem:[%s24802_s29 + $0xbf0] sm:$0xff]  }
 0x2fb   : > { %31339 = vst [vmem:[#allocation42_spill] sm:$0xff] %v26986_v12  ;;  %v8705_v63 = vadd.f32 %v26721_v24, %v22226_v33  ;;  %v6328_v38 = vadd.f32 %v26721_v24, %v6327_v11  ;;  %v8696_v28 = vpop.f32.mrb[5].mxu1  ;;  %v22039_v41 = vpop.f32.mrb[6].mxu0 }
 0x2fc   : > { %31343 = vst [vmem:[#allocation33_spill] sm:$0xff] %v26993_v34  ;;  %31344 = vst [vmem:[#allocation44_spill] sm:$0xff] %v26996_v52  ;;  %v27003_v27 = vmax.bf16 %v7086_v37, %v31347_v61  ;;  %v8697_v29 = vadd.f32 %v26721_v24, %v8696_v28  ;;  %v6339_v57 = vadd.f32 %v26721_v24, %v22039_v41  ;;  %v22227_v54 = vpop.f32.mrb[6].mxu1  ;;  %v6330_v43 = vpop.f32.mrb[7].mxu0  ;;  %v6924_v11 = vmax.f32 %v6336_v19, 0.0  ;;  %v23593_v19 = vld [vmem:[%s24802_s29 + $0x918] sm:$0xff]  }
 0x2fd   : > { %v9341_v22 = vmax.f32 %v8705_v63, 0.0  ;;  %v8708_v37 = vadd.f32 %v26721_v24, %v22227_v54  ;;  %v6331_v33 = vadd.f32 %v26721_v24, %v6330_v43  ;;  %v8699_v9 = vpop.f32.mrb[7].mxu1  ;;  %v6922_v41 = vmax.f32 %v6328_v38, 0.0 }
 0x2fe   : > { %31348 = vst [vmem:[#allocation35_spill] sm:$0xff] %v27003_v27  ;;  %v9339_v31 = vmax.f32 %v8697_v29, 0.0  ;;  %v6925_v61 = vmax.f32 %v6339_v57, 0.0  ;;  %v8700_v28 = vadd.f32 %v26721_v24, %v8699_v9  ;;  %22145 = vmatmul.mubr.msk.bf16.gmra.mrb[112].mxu0 %vm1054_vm0, %v23589_v35  ;;  %v23595_v24 = vld [vmem:[%s24802_s29 + $0x920] sm:$0xff]   ;;  %v31351_v35 = vld [vmem:[#allocation45_spill] sm:$0xff] }
 0x2ff   : > { %v9342_v12 = vmax.f32 %v8708_v37, 0.0  ;;  %v6923_v20 = vmax.f32 %v6331_v33, 0.0  ;;  %22333 = vmatmul.mubr.msk.bf16.gmra.mrb[112].mxu1 %vm1054_vm0, %v23590_v49  ;;  %22148 = vmatprep.mubr.msk.bf16.mxu0 %vm1054_vm0, %v23591_v44  ;;  %v31350_v9 = vld [vmem:[#allocation54_spill] sm:$0xff]  ;;  %v31355_v33 = vld [vmem:[#allocation56_spill] sm:$0xff]  ;;  %v31386_v27 = vld [vmem:[#allocation61_spill] sm:$0xff] }
 0x300   : > { %v7089_v63 = vpack.c.bf16 %v6925_v61, %v6924_v11  ;;  %v9340_v54 = vmax.f32 %v8700_v28, 0.0  ;;  %22336 = vmatprep.mubr.msk.bf16.mxu1 %vm1054_vm0, %v23592_v15  ;;  %v31352_v38 = vmax.bf16 %v31350_v9, %v31351_v35  ;;  %v27032_v49 = vld [vmem:[%s30773_s2] ss:$0 sm:$0xff]  ;;  %v31356_v11 = vld [vmem:[#allocation47_spill] sm:$0xff] }
 0x301   : > { %v27020_v29 = vpack.c.bf16 %v9342_v12, %v9341_v22  ;;  %v7088_v57 = vpack.c.bf16 %v6923_v20, %v6922_v41  ;;  %v22042_v43 = vpop.f32.mrb[8].mxu0  ;;  %v31357_v61 = vmax.bf16 %v31355_v33, %v31356_v11  ;;  %v23598_v20 = vld [vmem:[%s24802_s29 + $0xc08] sm:$0xff]  }
 0x302   : > { %v27027_v37 = vmax.bf16 %v7089_v63, %v31352_v38  ;;  %v6352_v44 = vadd.f32 %v27032_v49, %v22042_v43  ;;  %v22230_v15 = vpop.f32.mrb[8].mxu1  ;;  %v6343_v22 = vpop.f32.mrb[9].mxu0  ;;  %v27035_v12 = vpack.c.bf16 %v9340_v54, %v9339_v31 }
 0x303   : > { %31349 = vst [vmem:[#allocation46_spill] sm:$0xff] %v27020_v29  ;;  %v27042_v28 = vmax.bf16 %v7088_v57, %v31357_v61  ;;  %v8721_v41 = vadd.f32 %v27032_v49, %v22230_v15  ;;  %v6344_v63 = vadd.f32 %v27032_v49, %v6343_v22  ;;  %v8712_v9 = vpop.f32.mrb[9].mxu1  ;;  %v22043_v35 = vpop.f32.mrb[10].mxu0 }
 0x304   : > { %31353 = vst [vmem:[#allocation37_spill] sm:$0xff] %v27027_v37  ;;  %31354 = vst [vmem:[#allocation48_spill] sm:$0xff] %v27035_v12  ;;  %v8713_v43 = vadd.f32 %v27032_v49, %v8712_v9  ;;  %v6355_v38 = vadd.f32 %v27032_v49, %v22043_v35  ;;  %v22231_v31 = vpop.f32.mrb[10].mxu1  ;;  %v6346_v54 = vpop.f32.mrb[11].mxu0  ;;  %v6928_v22 = vmax.f32 %v6352_v44, 0.0  ;;  %v23597_v44 = vld [vmem:[%s24802_s29 + $0x928] sm:$0xff]  }
 0x305   : > { %31358 = vst [vmem:[#allocation39_spill] sm:$0xff] %v27042_v28  ;;  %v9345_v7 = vmax.f32 %v8721_v41, 0.0  ;;  %v8724_v57 = vadd.f32 %v27032_v49, %v22231_v31  ;;  %v6347_v15 = vadd.f32 %v27032_v49, %v6346_v54  ;;  %v8715_v33 = vpop.f32.mrb[11].mxu1  ;;  %v6926_v35 = vmax.f32 %v6344_v63, 0.0 }
 0x306   : > { %v9343_v11 = vmax.f32 %v8713_v43, 0.0  ;;  %v6929_v61 = vmax.f32 %v6355_v38, 0.0  ;;  %v8716_v9 = vadd.f32 %v27032_v49, %v8715_v33  ;;  %22149 = vmatmul.mubr.msk.bf16.gmra.mrb[116].mxu0 %vm1054_vm0, %v23593_v19  ;;  %v23599_v33 = vld [vmem:[%s24802_s29 + $0x930] sm:$0xff]  }
 0x307   : > { %v9346_v29 = vmax.f32 %v8724_v57, 0.0  ;;  %v6927_v52 = vmax.f32 %v6347_v15, 0.0  ;;  %22337 = vmatmul.mubr.msk.bf16.gmra.mrb[116].mxu1 %vm1054_vm0, %v23594_v17  ;;  %22152 = vmatprep.mubr.msk.bf16.mxu0 %vm1054_vm0, %v23595_v24  ;;  %v31361_v19 = vld [vmem:[#allocation49_spill] sm:$0xff] }
 0x308   : > { %v7091_v41 = vpack.c.bf16 %v6929_v61, %v6928_v22  ;;  %v9344_v31 = vmax.f32 %v8716_v9, 0.0  ;;  %22340 = vmatprep.mubr.msk.bf16.mxu1 %vm1054_vm0, %v23596_v51  ;;  %v31362_v63 = vmax.bf16 %v31360_v16, %v31361_v19  ;;  %v23602_v51 = vld [vmem:[%s24802_s29 + $0xc18] sm:$0xff]  }
 0x309   : > { %v27059_v43 = vpack.c.bf16 %v9346_v29, %v9345_v7  ;;  %v7090_v38 = vpack.c.bf16 %v6927_v52, %v6926_v35  ;;  %v22046_v54 = vpop.f32.mrb[12].mxu0  ;;  %v31365_v7 = vld [vmem:[#allocation60_spill] sm:$0xff]  ;;  %v31366_v52 = vld [vmem:[#allocation51_spill] sm:$0xff] }
 0x30a   : > { %v27066_v57 = vmax.bf16 %v7091_v41, %v31362_v63  ;;  %v6368_v17 = vadd.f32 %v27032_v49, %v22046_v54  ;;  %v22234_v24 = vpop.f32.mrb[12].mxu1  ;;  %v6359_v15 = vpop.f32.mrb[13].mxu0  ;;  %v27069_v22 = vpack.c.bf16 %v9344_v31, %v9343_v11  ;;  %v31367_v29 = vmax.bf16 %v31365_v7, %v31366_v52  ;;  %v23600_v63 = vld [vmem:[%s24802_s29 + $0xc10] sm:$0xff]  }
 0x30b   : > { %31359 = vst [vmem:[#allocation50_spill] sm:$0xff] %v27059_v43  ;;  %v8737_v9 = vadd.f32 %v27032_v49, %v22234_v24  ;;  %v6360_v16 = vadd.f32 %v27032_v49, %v6359_v15  ;;  %v8728_v35 = vpop.f32.mrb[13].mxu1  ;;  %v22047_v41 = vpop.f32.mrb[14].mxu0 }
 0x30c   : > { %31363 = vst [vmem:[#allocation41_spill] sm:$0xff] %v27066_v57  ;;  %31364 = vst [vmem:[#allocation52_spill] sm:$0xff] %v27069_v22  ;;  %v27076_v61 = vmax.bf16 %v7090_v38, %v31367_v29  ;;  %v8729_v54 = vadd.f32 %v27032_v49, %v8728_v35  ;;  %v6371_v19 = vadd.f32 %v27032_v49, %v22047_v41  ;;  %v22235_v11 = vpop.f32.mrb[14].mxu1  ;;  %v6362_v31 = vpop.f32.mrb[15].mxu0  ;;  %v6932_v15 = vmax.f32 %v6368_v17, 0.0  ;;  %v23601_v17 = vld [vmem:[%s24802_s29 + $0x938] sm:$0xff]  }
 0x30d   : > { %v9349_v4 = vmax.f32 %v8737_v9, 0.0  ;;  %v8740_v38 = vadd.f32 %v27032_v49, %v22235_v11  ;;  %v6363_v24 = vadd.f32 %v27032_v49, %v6362_v31  ;;  %v8731_v7 = vpop.f32.mrb[15].mxu1  ;;  %v6930_v41 = vmax.f32 %v6360_v16, 0.0 }
 0x30e   : > { %v9347_v52 = vmax.f32 %v8729_v54, 0.0  ;;  %v6933_v29 = vmax.f32 %v6371_v19, 0.0  ;;  %v8732_v35 = vadd.f32 %v27032_v49, %v8731_v7  ;;  %22153 = vmatmul.mubr.msk.bf16.gmra.mrb[120].mxu0 %vm1054_vm0, %v23597_v44  ;;  %v23603_v7 = vld [vmem:[%s24802_s29 + $0x940] sm:$0xff]   ;;  %v31370_v44 = vld [vmem:[#allocation53_spill] sm:$0xff] }
 0x30f   : > { %v9350_v43 = vmax.f32 %v8740_v38, 0.0  ;;  %v6931_v12 = vmax.f32 %v6363_v24, 0.0  ;;  %22341 = vmatmul.mubr.msk.bf16.gmra.mrb[120].mxu1 %vm1054_vm0, %v23598_v20  ;;  %22156 = vmatprep.mubr.msk.bf16.mxu0 %vm1054_vm0, %v23599_v33  ;;  %v31371_v16 = vmax.bf16 %v31369_v48, %v31370_v44 }
 0x310   : > { %v7093_v9 = vpack.c.bf16 %v6933_v29, %v6932_v15  ;;  %v9348_v11 = vmax.f32 %v8732_v35, 0.0  ;;  %22344 = vmatprep.mubr.msk.bf16.mxu1 %vm1054_vm0, %v23600_v63 }
 0x311   : > { %v27093_v54 = vpack.c.bf16 %v9350_v43, %v9349_v4  ;;  %v7092_v19 = vpack.c.bf16 %v6931_v12, %v6930_v41  ;;  %v22050_v31 = vpop.f32.mrb[16].mxu0  ;;  %v31373_v43 = vld [vmem:[#allocation64_spill] sm:$0xff]  ;;  %v31374_v12 = vld [vmem:[#allocation55_spill] sm:$0xff] }
 0x312   : > { %v27100_v38 = vmax.bf16 %v7093_v9, %v31371_v16  ;;  %v27102_v20 = vpack.c.bf16 %v9348_v11, %v9347_v52  ;;  %v6384_v33 = vadd.f32 %v27032_v49, %v22050_v31  ;;  %v22238_v24 = vpop.f32.mrb[16].mxu1  ;;  %v6375_v15 = vpop.f32.mrb[17].mxu0  ;;  %v31375_v63 = vmax.bf16 %v31373_v43, %v31374_v12  ;;  %v23604_v16 = vld [vmem:[%s24802_s29 + $0xc20] sm:$0xff]   ;;  %v23606_v4 = vld [vmem:[%s24802_s29 + $0xc28] sm:$0xff]  }
 0x313   : > { %31368 = vst [vmem:[#allocation43_spill] sm:$0xff] %v27093_v54  ;;  %v8753_v35 = vadd.f32 %v27032_v49, %v22238_v24  ;;  %v6376_v48 = vadd.f32 %v27032_v49, %v6375_v15  ;;  %v8744_v41 = vpop.f32.mrb[17].mxu1  ;;  %v22051_v9 = vpop.f32.mrb[18].mxu0 }
 0x314   : > { %31372 = vst [vmem:[#allocation54_spill] sm:$0xff] %v27102_v20  ;;  %v27110_v29 = vmax.bf16 %v7092_v19, %v31375_v63  ;;  %v8745_v52 = vadd.f32 %v27032_v49, %v8744_v41  ;;  %v6387_v11 = vadd.f32 %v27032_v49, %v22051_v9  ;;  %v22239_v31 = vpop.f32.mrb[18].mxu1  ;;  %v6378_v44 = vpop.f32.mrb[19].mxu0  ;;  %v6936_v15 = vmax.f32 %v6384_v33, 0.0  ;;  %v23605_v33 = vld [vmem:[%s24802_s29 + $0x948] sm:$0xff]  }
 0x315   : > { %v9353_v53 = vmax.f32 %v8753_v35, 0.0  ;;  %v8756_v19 = vadd.f32 %v27032_v49, %v22239_v31  ;;  %v6379_v24 = vadd.f32 %v27032_v49, %v6378_v44  ;;  %v8747_v43 = vpop.f32.mrb[19].mxu1  ;;  %v6934_v9 = vmax.f32 %v6376_v48, 0.0 }
 0x316   : > { %v9351_v12 = vmax.f32 %v8745_v52, 0.0  ;;  %v6937_v63 = vmax.f32 %v6387_v11, 0.0  ;;  %v8748_v41 = vadd.f32 %v27032_v49, %v8747_v43  ;;  %22157 = vmatmul.mubr.msk.bf16.gmra.mrb[124].mxu0 %vm1054_vm0, %v23601_v17  ;;  %v23607_v43 = vld [vmem:[%s24802_s29 + $0x950] sm:$0xff]  }
 0x317   : > { %v9354_v54 = vmax.f32 %v8756_v19, 0.0  ;;  %v6935_v22 = vmax.f32 %v6379_v24, 0.0  ;;  %22345 = vmatmul.mubr.msk.bf16.gmra.mrb[124].mxu1 %vm1054_vm0, %v23602_v51  ;;  %22160 = vmatprep.mubr.msk.bf16.mxu0 %vm1054_vm0, %v23603_v7  ;;  %v31378_v17 = vld [vmem:[#allocation57_spill] sm:$0xff] }
 0x318   : > { %v7095_v35 = vpack.c.bf16 %v6937_v63, %v6936_v15  ;;  %v9352_v31 = vmax.f32 %v8748_v41, 0.0  ;;  %22348 = vmatprep.mubr.msk.bf16.mxu1 %vm1054_vm0, %v23604_v16  ;;  %v31379_v48 = vmax.bf16 %v31377_v1, %v31378_v17 }
 0x319   : > { %v27127_v52 = vpack.c.bf16 %v9354_v54, %v9353_v53  ;;  %v7094_v11 = vpack.c.bf16 %v6935_v22, %v6934_v9  ;;  %v22054_v44 = vpop.f32.mrb[20].mxu0  ;;  %v31381_v54 = vld [vmem:[#allocation68_spill] sm:$0xff]  ;;  %v31382_v22 = vld [vmem:[#allocation59_spill] sm:$0xff]  ;;  %v23610_v53 = vld [vmem:[%s24802_s29 + $0xc38] sm:$0xff]  }
 0x31a   : > { %v27134_v19 = vmax.bf16 %v7095_v35, %v31379_v48  ;;  %v27136_v51 = vpack.c.bf16 %v9352_v31, %v9351_v12  ;;  %v6400_v7 = vadd.f32 %v27032_v49, %v22054_v44  ;;  %v22242_v24 = vpop.f32.mrb[20].mxu1  ;;  %v6391_v15 = vpop.f32.mrb[21].mxu0  ;;  %v31383_v16 = vmax.bf16 %v31381_v54, %v31382_v22  ;;  %v23608_v48 = vld [vmem:[%s24802_s29 + $0xc30] sm:$0xff]  }
 0x31b   : > { %31376 = vst [vmem:[#allocation45_spill] sm:$0xff] %v27127_v52  ;;  %v8769_v41 = vadd.f32 %v27032_v49, %v22242_v24  ;;  %v6392_v1 = vadd.f32 %v27032_v49, %v6391_v15  ;;  %v8760_v9 = vpop.f32.mrb[21].mxu1  ;;  %v22055_v35 = vpop.f32.mrb[22].mxu0 }
 0x31c   : > { %31380 = vst [vmem:[#allocation56_spill] sm:$0xff] %v27134_v19  ;;  %v27144_v63 = vmax.bf16 %v7094_v11, %v31383_v16  ;;  %v8761_v12 = vadd.f32 %v27032_v49, %v8760_v9  ;;  %v6403_v31 = vadd.f32 %v27032_v49, %v22055_v35  ;;  %v22243_v44 = vpop.f32.mrb[22].mxu1  ;;  %v6394_v17 = vpop.f32.mrb[23].mxu0  ;;  %v6940_v15 = vmax.f32 %v6400_v7, 0.0 }
 0x31d   : > { %v9357_v34 = vmax.f32 %v8769_v41, 0.0  ;;  %v8772_v11 = vadd.f32 %v27032_v49, %v22243_v44  ;;  %v6395_v24 = vadd.f32 %v27032_v49, %v6394_v17  ;;  %v8763_v54 = vpop.f32.mrb[23].mxu1  ;;  %v6938_v35 = vmax.f32 %v6392_v1, 0.0  ;;  %v23609_v17 = vld [vmem:[%s24802_s29 + $0x958] sm:$0xff]  }
 0x31e   : > { %v9355_v22 = vmax.f32 %v8761_v12, 0.0  ;;  %v6941_v16 = vmax.f32 %v6403_v31, 0.0  ;;  %v8764_v9 = vadd.f32 %v27032_v49, %v8763_v54  ;;  %22161 = vmatmul.mubr.msk.bf16.gmra.mrb[128].mxu0 %vm1054_vm0, %v23605_v33  ;;  %v31385_v54 = vld [vmem:[#allocation70_spill] sm:$0xff] }
 0x31f   : > { %v9358_v52 = vmax.f32 %v8772_v11, 0.0  ;;  %v6939_v20 = vmax.f32 %v6395_v24, 0.0  ;;  %22349 = vmatmul.mubr.msk.bf16.gmra.mrb[128].mxu1 %vm1054_vm0, %v23606_v4  ;;  %22164 = vmatprep.mubr.msk.bf16.mxu0 %vm1054_vm0, %v23607_v43  ;;  %v31387_v33 = vmax.bf16 %v31385_v54, %v31386_v27  ;;  %v23611_v54 = vld [vmem:[%s24802_s29 + $0xc40] sm:$0xff]  }
 0x320   : > { %v7097_v41 = vpack.c.bf16 %v6941_v16, %v6940_v15  ;;  %v9356_v44 = vmax.f32 %v8764_v9, 0.0  ;;  %22352 = vmatprep.mubr.msk.bf16.mxu1 %vm1054_vm0, %v23608_v48 }
 0x321   : > { %v27161_v7 = vpack.c.bf16 %v9358_v52, %v9357_v34  ;;  %v7096_v12 = vpack.c.bf16 %v6939_v20, %v6938_v35  ;;  %v22058_v31 = vpop.f32.mrb[24].mxu0  ;;  %v31389_v34 = vld [vmem:[#allocation72_spill] sm:$0xff]  ;;  %v31390_v52 = vld [vmem:[#allocation63_spill] sm:$0xff] }
 0x322   : > { %v27167_v1 = vmax.bf16 %v7097_v41, %v31387_v33  ;;  %v27169_v11 = vpack.c.bf16 %v9356_v44, %v9355_v22  ;;  %v6416_v4 = vadd.f32 %v27032_v49, %v22058_v31  ;;  %v22246_v43 = vpop.f32.mrb[24].mxu1  ;;  %v6407_v24 = vpop.f32.mrb[25].mxu0  ;;  %v31391_v20 = vmax.bf16 %v31389_v34, %v31390_v52  ;;  %v31395_v33 = vld [vmem:[#allocation74_spill] sm:$0xff] }
 0x323   : > { %31384 = vst [vmem:[#allocation47_spill] sm:$0xff] %v27161_v7  ;;  %v8785_v16 = vadd.f32 %v27032_v49, %v22246_v43  ;;  %v6408_v27 = vadd.f32 %v27032_v49, %v6407_v24  ;;  %v8776_v9 = vpop.f32.mrb[25].mxu1  ;;  %v22059_v35 = vpop.f32.mrb[26].mxu0 }
 0x324   : > { %31388 = vst [vmem:[#allocation58_spill] sm:$0xff] %v27167_v1  ;;  %v27177_v15 = vmax.bf16 %v7096_v12, %v31391_v20  ;;  %v8777_v22 = vadd.f32 %v27032_v49, %v8776_v9  ;;  %v6419_v41 = vadd.f32 %v27032_v49, %v22059_v35  ;;  %v22247_v44 = vpop.f32.mrb[26].mxu1  ;;  %v6410_v31 = vpop.f32.mrb[27].mxu0  ;;  %v6944_v52 = vmax.f32 %v6416_v4, 0.0 }
 0x325   : > { %v9361_v48 = vmax.f32 %v8785_v16, 0.0  ;;  %v8788_v12 = vadd.f32 %v27032_v49, %v22247_v44  ;;  %v6411_v34 = vadd.f32 %v27032_v49, %v6410_v31  ;;  %v8779_v43 = vpop.f32.mrb[27].mxu1  ;;  %v6942_v35 = vmax.f32 %v6408_v27, 0.0 }
 0x326   : > { %31392 = vst [vmem:[#allocation49_spill] sm:$0xff] %v27177_v15  ;;  %v9359_v24 = vmax.f32 %v8777_v22, 0.0  ;;  %v6945_v20 = vmax.f32 %v6419_v41, 0.0  ;;  %v8780_v9 = vadd.f32 %v27032_v49, %v8779_v43  ;;  %22165 = vmatmul.mubr.msk.bf16.gmra.mrb[132].mxu0 %vm1054_vm0, %v23609_v17  ;;  %v31393_v16 = vmax.bf16 %v26648_v23, %v26517_v13  ;;  %v23613_v43 = vld [vmem:[%s24802_s29 + $0xc48] sm:$0xff]   ;;  %v31396_v17 = vld [vmem:[#allocation65_spill] sm:$0xff] }
 0x327   : > { %v9362_v37 = vmax.f32 %v8788_v12, 0.0  ;;  %v6943_v7 = vmax.f32 %v6411_v34, 0.0  ;;  %22353 = vmatmul.mubr.msk.bf16.gmra.mrb[132].mxu1 %vm1054_vm0, %v23610_v53  ;;  %v31397_v27 = vmax.bf16 %v31395_v33, %v31396_v17  ;;  %v23615_v17 = vld [vmem:[%s24802_s29 + $0xc50] sm:$0xff]  }
 0x328   : > { %22388 = vmatprep.mubr.bf16.mxu0 %v31393_v16  ;;  %v7099_v44 = vpack.c.bf16 %v6945_v20, %v6944_v52  ;;  %v9360_v31 = vmax.f32 %v8780_v9, 0.0  ;;  %22356 = vmatprep.mubr.msk.bf16.mxu1 %vm1054_vm0, %v23611_v54  ;;  %v31400_v54 = vld [vmem:[#allocation67_spill] sm:$0xff] }
 0x329   : > { %v27195_v4 = vpack.c.bf16 %v9362_v37, %v9361_v48  ;;  %v7098_v22 = vpack.c.bf16 %v6943_v7, %v6942_v35  ;;  %v22062_v41 = vpop.f32.mrb[28].mxu0  ;;  %v23614_v37 = vld [vmem:[%s30774_s3 + $0x8] sm:$0xff]  }
 0x32a   : > { %v27201_v12 = vmax.bf16 %v7099_v44, %v31397_v27  ;;  %v27203_v53 = vpack.c.bf16 %v9360_v31, %v9359_v24  ;;  %v6432_v13 = vadd.f32 %v27032_v49, %v22062_v41  ;;  %v22250_v23 = vpop.f32.mrb[28].mxu1  ;;  %v6423_v34 = vpop.f32.mrb[29].mxu0  ;;  %v31399_v48 = vld [vmem:[#allocation76_spill] sm:$0xff] }
 0x32b   : > { %31394 = vst [vmem:[#allocation60_spill] sm:$0xff] %v27195_v4  ;;  %v31401_v52 = vmax.bf16 %v31399_v48, %v31400_v54  ;;  %v8801_v20 = vadd.f32 %v27032_v49, %v22250_v23  ;;  %v6424_v24 = vadd.f32 %v27032_v49, %v6423_v34  ;;  %v8792_v9 = vpop.f32.mrb[29].mxu1  ;;  %v22063_v35 = vpop.f32.mrb[30].mxu0 }
 0x32c   : > { %31398 = vst [vmem:[#allocation51_spill] sm:$0xff] %v27201_v12  ;;  %v8793_v16 = vadd.f32 %v27032_v49, %v8792_v9  ;;  %v6435_v44 = vadd.f32 %v27032_v49, %v22063_v35  ;;  %v22251_v31 = vpop.f32.mrb[30].mxu1  ;;  %v6426_v41 = vpop.f32.mrb[31].mxu0  ;;  %v6948_v54 = vmax.f32 %v6432_v13, 0.0  ;;  %v31402_v9 = vmax.bf16 %v26638_v10, %v26509_v3  ;;  %v23616_v3 = vld [vmem:[%s30774_s3 + $0x10] sm:$0xff]  }
 0x32d   : > { %v27214_v33 = vmax.bf16 %v7098_v22, %v31401_v52  ;;  %v9365_v7 = vmax.f32 %v8801_v20, 0.0  ;;  %v8804_v22 = vadd.f32 %v27032_v49, %v22251_v31  ;;  %v6427_v48 = vadd.f32 %v27032_v49, %v6426_v41  ;;  %v8795_v23 = vpop.f32.mrb[31].mxu1  ;;  %v24623_v20 = vld [vmem:[%s30774_s3] sm:$0xff]   ;;  %v31405_v41 = vld [vmem:[#allocation69_spill] sm:$0xff] }
 0x32e   : > { %v9363_v34 = vmax.f32 %v8793_v16, 0.0  ;;  %v6949_v52 = vmax.f32 %v6435_v44, 0.0  ;;  %v8796_v57 = vadd.f32 %v27032_v49, %v8795_v23  ;;  %22389 = vmatmul.mubr.bf16.vlgmr.msra.gmra.mrb[136].mxu0 %v31402_v9  ;;  %v6946_v35 = vmax.f32 %v6424_v24, 0.0  ;;  %v31404_v31 = vld [vmem:[#allocation78_spill] sm:$0xff] }
 0x32f   : > { %v9366_v4 = vmax.f32 %v8804_v22, 0.0  ;;  %v6947_v28 = vmax.f32 %v6427_v48, 0.0  ;;  %22357 = vmatmul.mubr.msk.bf16.gmra.mrb[136].mxu1 %vm1054_vm0, %v23613_v43  ;;  %22397 = vmatpush3.bf16.msra.mxu0 %v24623_v20  ;;  %v31403_v44 = vmax.bf16 %v26685_v32, %v26551_v45  ;;  %v31406_v22 = vmax.bf16 %v31404_v31, %v31405_v41 }
 0x330   : > { %v7101_v13 = vpack.c.bf16 %v6949_v52, %v6948_v54  ;;  %v9364_v16 = vmax.f32 %v8796_v57, 0.0  ;;  %22398 = vmatprep.subr.bf16.mxu0 %v23614_v37  ;;  %22360 = vmatprep.mubr.msk.bf16.mxu1 %vm1054_vm0, %v23615_v17  ;;  %v23617_v54 = vld [vmem:[%s24802_s29 + $0xc58] sm:$0xff]  }
 0x331   : > { %22392 = vmatprep.mubr.bf16.mxu0 %v31403_v44  ;;  %v27239_v10 = vpack.c.bf16 %v9366_v4, %v9365_v7  ;;  %v7100_v43 = vpack.c.bf16 %v6947_v28, %v6946_v35  ;;  %v22066_v24 = vpop.f32.mrb[32].mxu0  ;;  %v31408_v7 = vld [vmem:[#allocation80_spill] sm:$0xff]  ;;  %v31409_v28 = vld [vmem:[#allocation71_spill] sm:$0xff] }
 0x332   : > { %v27245_v48 = vmax.bf16 %v7101_v13, %v31406_v22  ;;  %v27247_v57 = vpack.c.bf16 %v9364_v16, %v9363_v34  ;;  %v6448_v45 = vadd.f32 %v27032_v49, %v22066_v24  ;;  %v22254_v32 = vpop.f32.mrb[32].mxu1  ;;  %v6439_v23 = vpop.f32.mrb[33].mxu0  ;;  %v31410_v52 = vmax.bf16 %v31408_v7, %v31409_v28  ;;  %v23619_v7 = vld [vmem:[%s24802_s29 + $0xc60] sm:$0xff]  }
 0x333   : > { %v8817_v17 = vadd.f32 %v27032_v49, %v22254_v32  ;;  %v6440_v35 = vadd.f32 %v27032_v49, %v6439_v23  ;;  %v8808_v20 = vpop.f32.mrb[33].mxu1  ;;  %22399 = vmatpush3.bf16.msra.mxu0 %v23614_v37  ;;  %v22067_v34 = vpop.f32.mrb[34].mxu0 }
 0x334   : > { %31407 = vst [vmem:[#allocation62_spill] sm:$0xff] %v27245_v48  ;;  %v27256_v9 = vmax.bf16 %v7100_v43, %v31410_v52  ;;  %v6952_v13 = vmax.f32 %v6448_v45, 0.0  ;;  %v8809_v16 = vadd.f32 %v27032_v49, %v8808_v20  ;;  %v6451_v44 = vadd.f32 %v27032_v49, %v22067_v34  ;;  %v22255_v24 = vpop.f32.mrb[34].mxu1  ;;  %v6442_v31 = vpop.f32.mrb[35].mxu0  ;;  %22400 = vmatprep.subr.bf16.mxu0 %v23616_v3  ;;  %v23618_v43 = vld [vmem:[%s30774_s3 + $0x18] sm:$0xff]  }
 0x335   : > { %v9369_v22 = vmax.f32 %v8817_v17, 0.0  ;;  %v6950_v32 = vmax.f32 %v6440_v35, 0.0  ;;  %v8820_v37 = vadd.f32 %v27032_v49, %v22255_v24  ;;  %v6443_v45 = vadd.f32 %v27032_v49, %v6442_v31  ;;  %v8811_v23 = vpop.f32.mrb[35].mxu1  ;;  %v23621_v31 = vld [vmem:[%s24802_s29 + $0xc68] sm:$0xff]  }
 0x336   : > { %v9367_v28 = vmax.f32 %v8809_v16, 0.0  ;;  %v6953_v52 = vmax.f32 %v6451_v44, 0.0  ;;  %v8812_v20 = vadd.f32 %v27032_v49, %v8811_v23  ;;  %v31411_v34 = vmax.bf16 %v26675_v47, %v26543_v0  ;;  %v23620_v16 = vld [vmem:[%s30774_s3 + $0x20] sm:$0xff]  }
 0x337   : > { %v9370_v4 = vmax.f32 %v8820_v37, 0.0  ;;  %v6951_v27 = vmax.f32 %v6443_v45, 0.0  ;;  %22361 = vmatmul.mubr.msk.bf16.gmra.mrb[140].mxu1 %vm1054_vm0, %v23617_v54  ;;  %22401 = vmatpush3.bf16.msra.mxu0 %v23616_v3  ;;  %v31412_v24 = vmax.bf16 %v26580_v58, %v26446_v40  ;;  %v31413_v54 = vld [vmem:[#allocation82_spill] sm:$0xff]  ;;  %v31414_v3 = vld [vmem:[#allocation73_spill] sm:$0xff] }
 0x338   : > { %22393 = vmatmul.mubr.bf16.gmra.mrb[140].mxu0 %v31411_v34  ;;  %v7103_v17 = vpack.c.bf16 %v6953_v52, %v6952_v13  ;;  %v9368_v35 = vmax.f32 %v8812_v20, 0.0  ;;  %22402 = vmatprep.subr.bf16.mxu0 %v23618_v43  ;;  %v31415_v13 = vmax.bf16 %v31413_v54, %v31414_v3 }
 0x339   : > { %22412 = vmatprep.mubr.bf16.mxu0 %v31412_v24  ;;  %v27281_v44 = vpack.c.bf16 %v9370_v4, %v9369_v22  ;;  %v7102_v0 = vpack.c.bf16 %v6951_v27, %v6950_v32  ;;  %v22070_v47 = vpop.f32.mrb[36].mxu0  ;;  %22364 = vmatprep.mubr.msk.bf16.mxu1 %vm1054_vm0, %v23619_v7  ;;  %v23622_v27 = vld [vmem:[%s30774_s3 + $0x28] sm:$0xff]  }
 0x33a   : > { %v27288_v37 = vmax.bf16 %v7103_v17, %v31415_v13  ;;  %v27290_v45 = vpack.c.bf16 %v9368_v35, %v9367_v28  ;;  %v6464_v40 = vadd.f32 %v27032_v49, %v22070_v47  ;;  %v22258_v58 = vpop.f32.mrb[36].mxu1  ;;  %v6455_v23 = vpop.f32.mrb[37].mxu0  ;;  %v31417_v22 = vld [vmem:[#allocation84_spill] sm:$0xff]  ;;  %v31418_v32 = vld [vmem:[#allocation75_spill] sm:$0xff] }
 0x33b   : > { %v31419_v7 = vmax.bf16 %v31417_v22, %v31418_v32  ;;  %v8833_v28 = vadd.f32 %v27032_v49, %v22258_v58  ;;  %v6456_v20 = vadd.f32 %v27032_v49, %v6455_v23  ;;  %v8824_v34 = vpop.f32.mrb[37].mxu1  ;;  %22403 = vmatpush3.bf16.msra.mxu0 %v23618_v43  ;;  %v22071_v17 = vpop.f32.mrb[38].mxu0  ;;  %v23623_v13 = vld [vmem:[%s24802_s29 + $0xc70] sm:$0xff]  }
 0x33c   : > { %31416 = vst [vmem:[#allocation53_spill] sm:$0xff] %v27288_v37  ;;  %v6956_v35 = vmax.f32 %v6464_v40, 0.0  ;;  %v8825_v24 = vadd.f32 %v27032_v49, %v8824_v34  ;;  %v6467_v47 = vadd.f32 %v27032_v49, %v22071_v17  ;;  %v22259_v54 = vpop.f32.mrb[38].mxu1  ;;  %v6458_v3 = vpop.f32.mrb[39].mxu0  ;;  %22404 = vmatprep.subr.bf16.mxu0 %v23620_v16 }
 0x33d   : > { %v27301_v52 = vmax.bf16 %v7102_v0, %v31419_v7  ;;  %v9373_v22 = vmax.f32 %v8833_v28, 0.0  ;;  %v6954_v32 = vmax.f32 %v6456_v20, 0.0  ;;  %v8836_v58 = vadd.f32 %v27032_v49, %v22259_v54  ;;  %v8827_v43 = vpop.f32.mrb[39].mxu1  ;;  %v23624_v28 = vld [vmem:[%s30774_s3 + $0x30] sm:$0xff]   ;;  %v23625_v54 = vld [vmem:[%s24802_s29 + $0xc78] sm:$0xff]   ;;  %s30729_s29 = scalar_lea.hbm %s30780_s9, %s20801_s16 }
 0x33e   : > { %v6459_v23 = vadd.f32 %v27032_v49, %v6458_v3  ;;  %v9371_v40 = vmax.f32 %v8825_v24, 0.0  ;;  %v6957_v7 = vmax.f32 %v6467_v47, 0.0  ;;  %v8828_v34 = vadd.f32 %v27032_v49, %v8827_v43  ;;  %v31422_v3 = vld [vmem:[#allocation86_spill] sm:$0xff] }
 0x33f   : > { %31420 = vst [vmem:[#allocation64_spill] sm:$0xff] %v27301_v52  ;;  %v9374_v17 = vmax.f32 %v8836_v58, 0.0  ;;  %22365 = vmatmul.mubr.msk.bf16.gmra.mrb[144].mxu1 %vm1054_vm0, %v23621_v31  ;;  %22405 = vmatpush3.bf16.msra.mxu0 %v23620_v16  ;;  %v31423_v58 = vld [vmem:[#allocation77_spill] sm:$0xff] }
 0x340   : > { %v6955_v4 = vmax.f32 %v6459_v23, 0.0  ;;  %v7105_v41 = vpack.c.bf16 %v6957_v7, %v6956_v35  ;;  %v9372_v19 = vmax.f32 %v8828_v34, 0.0  ;;  %22406 = vmatprep.subr.bf16.mxu0 %v23622_v27  ;;  %22368 = vmatprep.mubr.msk.bf16.mxu1 %vm1054_vm0, %v23623_v13  ;;  %v31424_v23 = vmax.bf16 %v31422_v3, %v31423_v58  ;;  %v31426_v34 = vld [vmem:[#allocation88_spill] sm:$0xff] }
 0x341   : > { %v27318_v20 = vpack.c.bf16 %v9374_v17, %v9373_v22  ;;  %v22074_v47 = vpop.f32.mrb[40].mxu0  ;;  %v31427_v22 = vld [vmem:[#allocation79_spill] sm:$0xff] }
 0x342   : > { %v7104_v24 = vpack.c.bf16 %v6955_v4, %v6954_v32  ;;  %v27324_v43 = vmax.bf16 %v7105_v41, %v31424_v23  ;;  %v27326_v16 = vpack.c.bf16 %v9372_v19, %v9371_v40  ;;  %v6480_v31 = vadd.f32 %v27032_v49, %v22074_v47  ;;  %v22262_v35 = vpop.f32.mrb[40].mxu1  ;;  %v6471_v13 = vpop.f32.mrb[41].mxu0 }
 0x343   : > { %31421 = vst [vmem:[#allocation55_spill] sm:$0xff] %v27318_v20  ;;  %v31428_v17 = vmax.bf16 %v31426_v34, %v31427_v22  ;;  %v8849_v32 = vadd.f32 %v27032_v49, %v22262_v35  ;;  %v6472_v3 = vadd.f32 %v27032_v49, %v6471_v13  ;;  %v8840_v41 = vpop.f32.mrb[41].mxu1  ;;  %22407 = vmatpush3.bf16.msra.mxu0 %v23622_v27  ;;  %v22075_v19 = vpop.f32.mrb[42].mxu0 }
 0x344   : > { %31425 = vst [vmem:[#allocation66_spill] sm:$0xff] %v27324_v43  ;;  %v6960_v40 = vmax.f32 %v6480_v31, 0.0  ;;  %v8841_v47 = vadd.f32 %v27032_v49, %v8840_v41  ;;  %v6483_v58 = vadd.f32 %v27032_v49, %v22075_v19  ;;  %v22263_v23 = vpop.f32.mrb[42].mxu1  ;;  %v6474_v0 = vpop.f32.mrb[43].mxu0  ;;  %22408 = vmatprep.subr.bf16.mxu0 %v23624_v28  ;;  %v27349_v31 = vld [vmem:[%s30773_s2] ss:$0 sm:$0xff] }
 0x345   : > { %v27334_v4 = vmax.bf16 %v7104_v24, %v31428_v17  ;;  %v23626_v24 = vld [vmem:[%s30774_s3 + $0x38] sm:$0xff]   ;;  %v9377_v34 = vmax.f32 %v8849_v32, 0.0  ;;  %v6958_v13 = vmax.f32 %v6472_v3, 0.0  ;;  %v8852_v27 = vadd.f32 %v27032_v49, %v22263_v23  ;;  %v8843_v17 = vpop.f32.mrb[43].mxu1  ;;  %v23627_v49 = vld [vmem:[%s30774_s3 + $0x80] sm:$0xff]  }
 0x346   : > { %v6475_v22 = vadd.f32 %v27349_v31, %v6474_v0  ;;  %v9375_v41 = vmax.f32 %v8841_v47, 0.0  ;;  %v6961_v19 = vmax.f32 %v6483_v58, 0.0  ;;  %v8844_v7 = vadd.f32 %v27349_v31, %v8843_v17  ;;  %v31431_v47 = vld [vmem:[#allocation90_spill] sm:$0xff]  ;;  %v31432_v58 = vld [vmem:[#allocation81_spill] sm:$0xff] }
 0x347   : > { %31429 = vst [vmem:[#allocation57_spill] sm:$0xff] %v27334_v4  ;;  %v9378_v1 = vmax.f32 %v8852_v27, 0.0  ;;  %22369 = vmatmul.mubr.msk.bf16.gmra.mrb[148].mxu1 %vm1054_vm0, %v23625_v54  ;;  %22409 = vmatpush3.bf16.msra.mxu0 %v23624_v28  ;;  %v31433_v15 = vmax.bf16 %v31431_v47, %v31432_v58 }
 0x348   : > { %v6959_v20 = vmax.f32 %v6475_v22, 0.0  ;;  %v7107_v32 = vpack.c.bf16 %v6961_v19, %v6960_v40  ;;  %v9376_v3 = vmax.f32 %v8844_v7, 0.0  ;;  %22410 = vmatprep.subr.bf16.mxu0 %v23626_v24  ;;  %v31435_v22 = vld [vmem:[#allocation92_spill] sm:$0xff]  ;;  %v31436_v19 = vld [vmem:[#allocation83_spill] sm:$0xff]  ;;  %v31438_v40 = vmax.bf16 %v26570_v14, %v26438_v8  ;;  %v31440_v8 = vld [vmem:[#allocation94_spill] sm:$0xff] }
 0x349   : > { %v27357_v23 = vpack.c.bf16 %v9378_v1, %v9377_v34  ;;  %v22078_v35 = vpop.f32.mrb[44].mxu0  ;;  %v31437_v1 = vmax.bf16 %v31435_v22, %v31436_v19  ;;  %v31441_v14 = vld [vmem:[#allocation85_spill] sm:$0xff] }
 0x34a   : > { %v7106_v0 = vpack.c.bf16 %v6959_v20, %v6958_v13  ;;  %v27362_v17 = vmax.bf16 %v7107_v32, %v31433_v15  ;;  %v27364_v27 = vpack.c.bf16 %v9376_v3, %v9375_v41  ;;  %v6496_v28 = vadd.f32 %v27349_v31, %v22078_v35  ;;  %v22266_v54 = vpop.f32.mrb[44].mxu1  ;;  %v6487_v7 = vpop.f32.mrb[45].mxu0 }
 0x34b   : > { %31430 = vst [vmem:[#allocation68_spill] sm:$0xff] %v27357_v23  ;;  %v8865_v20 = vadd.f32 %v27349_v31, %v22266_v54  ;;  %v6488_v13 = vadd.f32 %v27349_v31, %v6487_v7  ;;  %v8856_v15 = vpop.f32.mrb[45].mxu1  ;;  %22411 = vmatpush3.bf16.msra.mxu0 %v23626_v24  ;;  %v22079_v41 = vpop.f32.mrb[46].mxu0  ;;  %v31439_v54 = vmax.bf16 %v26614_v6, %v26480_v25 }
 0x34c   : > { %31434 = vst [vmem:[#allocation59_spill] sm:$0xff] %v27362_v17  ;;  %v27372_v34 = vmax.bf16 %v7106_v0, %v31437_v1  ;;  %v6964_v32 = vmax.f32 %v6496_v28, 0.0  ;;  %v8857_v35 = vadd.f32 %v27349_v31, %v8856_v15  ;;  %v6499_v3 = vadd.f32 %v27349_v31, %v22079_v41  ;;  %v22267_v47 = vpop.f32.mrb[46].mxu1  ;;  %v6490_v58 = vpop.f32.mrb[47].mxu0  ;;  %22420 = vmatprep.subr.bf16.mxu0 %v23627_v49  ;;  %v23628_v0 = vld [vmem:[%s30774_s3 + $0x88] sm:$0xff]  }
 0x34d   : > { %v9381_v22 = vmax.f32 %v8865_v20, 0.0  ;;  %v6962_v7 = vmax.f32 %v6488_v13, 0.0  ;;  %v8868_v24 = vadd.f32 %v27349_v31, %v22267_v47  ;;  %v6491_v28 = vadd.f32 %v27349_v31, %v6490_v58  ;;  %v8859_v19 = vpop.f32.mrb[47].mxu1 }
 0x34e   : > { %v9379_v1 = vmax.f32 %v8857_v35, 0.0  ;;  %v6965_v15 = vmax.f32 %v6499_v3, 0.0  ;;  %v8860_v41 = vadd.f32 %v27349_v31, %v8859_v19  ;;  %22413 = vmatmul.mubr.bf16.vlgmr.msra.gmra.mrb[136].mxu0 %v31438_v40  ;;  %v23629_v35 = vld [vmem:[%s30774_s3 + $0x90] sm:$0xff]   ;;  %v31442_v40 = vmax.bf16 %v31440_v8, %v31441_v14  ;;  %v31444_v19 = vld [vmem:[#allocation87_spill] sm:$0xff]  ;;  %v23630_v8 = vld [vmem:[%s30774_s3 + $0x98] sm:$0xff]  }
 0x34f   : > { %v9382_v12 = vmax.f32 %v8868_v24, 0.0  ;;  %v6963_v23 = vmax.f32 %v6491_v28, 0.0  ;;  %22416 = vmatprep.mubr.bf16.mxu0 %v31439_v54  ;;  %22421 = vmatpush3.bf16.msra.mxu0 %v23627_v49  ;;  %v31443_v54 = vld [vmem:[#allocation96_spill] sm:$0xff] }
 0x350   : > { %v7109_v20 = vpack.c.bf16 %v6965_v15, %v6964_v32  ;;  %v9380_v13 = vmax.f32 %v8860_v41, 0.0  ;;  %22422 = vmatprep.subr.bf16.mxu0 %v23628_v0 }
 0x351   : > { %v27395_v3 = vpack.c.bf16 %v9382_v12, %v9381_v22  ;;  %v7108_v47 = vpack.c.bf16 %v6963_v23, %v6962_v7  ;;  %v22082_v58 = vpop.f32.mrb[48].mxu0  ;;  %v31445_v12 = vmax.bf16 %v31443_v54, %v31444_v19 }
 0x352   : > { %v27400_v24 = vmax.bf16 %v7109_v20, %v31442_v40  ;;  %v27402_v28 = vpack.c.bf16 %v9380_v13, %v9379_v1  ;;  %v6512_v25 = vadd.f32 %v27349_v31, %v22082_v58  ;;  %v22270_v6 = vpop.f32.mrb[48].mxu1  ;;  %v6503_v49 = vpop.f32.mrb[49].mxu0 }
 0x353   : > { %v27410_v22 = vmax.bf16 %v7108_v47, %v31445_v12  ;;  %v8881_v23 = vadd.f32 %v27349_v31, %v22270_v6  ;;  %v6504_v7 = vadd.f32 %v27349_v31, %v6503_v49  ;;  %v8872_v15 = vpop.f32.mrb[49].mxu1  ;;  %22423 = vmatpush3.bf16.msra.mxu0 %v23628_v0  ;;  %v22083_v1 = vpop.f32.mrb[50].mxu0 }
 0x354   : > { %v8873_v41 = vadd.f32 %v27349_v31, %v8872_v15  ;;  %v6515_v20 = vadd.f32 %v27349_v31, %v22083_v1  ;;  %v22271_v13 = vpop.f32.mrb[50].mxu1  ;;  %v6506_v58 = vpop.f32.mrb[51].mxu0  ;;  %22424 = vmatprep.subr.bf16.mxu0 %v23629_v35  ;;  %v6968_v14 = vmax.f32 %v6512_v25, 0.0  ;;  %v31446_v15 = vmax.bf16 %v26604_v56, %v26472_v5  ;;  %v31449_v56 = vld [vmem:[#allocation98_spill] sm:$0xff] }
 0x355   : > { %v9385_v40 = vmax.f32 %v8881_v23, 0.0  ;;  %v8884_v6 = vadd.f32 %v27349_v31, %v22271_v13  ;;  %v6507_v0 = vadd.f32 %v27349_v31, %v6506_v58  ;;  %v8875_v49 = vpop.f32.mrb[51].mxu1  ;;  %v6966_v1 = vmax.f32 %v6504_v7, 0.0  ;;  %v31450_v7 = vld [vmem:[#allocation89_spill] sm:$0xff] }
 0x356   : > { %v9383_v54 = vmax.f32 %v8873_v41, 0.0  ;;  %v6969_v19 = vmax.f32 %v6515_v20, 0.0  ;;  %v8876_v12 = vadd.f32 %v27349_v31, %v8875_v49  ;;  %22417 = vmatmul.mubr.bf16.gmra.mrb[140].mxu0 %v31446_v15  ;;  %v31447_v25 = vmax.bf16 %v26724_v46, %v26587_v26  ;;  %v23631_v41 = vld [vmem:[%s30774_s3 + $0xa0] sm:$0xff]  }
 0x357   : > { %v9386_v32 = vmax.f32 %v8884_v6, 0.0  ;;  %v6967_v48 = vmax.f32 %v6507_v0, 0.0  ;;  %22425 = vmatpush3.bf16.msra.mxu0 %v23629_v35  ;;  %v31451_v6 = vmax.bf16 %v31449_v56, %v31450_v7  ;;  %v23632_v56 = vld [vmem:[%s30774_s3 + $0xa8] sm:$0xff]  }
 0x358   : > { %22436 = vmatprep.mubr.bf16.mxu0 %v31447_v25  ;;  %v7111_v23 = vpack.c.bf16 %v6969_v19, %v6968_v14  ;;  %v9384_v13 = vmax.f32 %v8876_v12, 0.0  ;;  %22426 = vmatprep.subr.bf16.mxu0 %v23630_v8  ;;  %v31453_v19 = vld [vmem:[#allocation100_spill] sm:$0xff]  ;;  %v31454_v12 = vld [vmem:[#allocation91_spill] sm:$0xff] }
 0x359   : > { %v27433_v20 = vpack.c.bf16 %v9386_v32, %v9385_v40  ;;  %v7110_v58 = vpack.c.bf16 %v6967_v48, %v6966_v1  ;;  %v22086_v5 = vpop.f32.mrb[52].mxu0  ;;  %v31455_v32 = vmax.bf16 %v31453_v19, %v31454_v12 }
 0x35a   : > { %v27438_v0 = vmax.bf16 %v7111_v23, %v31451_v6  ;;  %v27440_v35 = vpack.c.bf16 %v9384_v13, %v9383_v54  ;;  %v6528_v26 = vadd.f32 %v27349_v31, %v22086_v5  ;;  %v22274_v46 = vpop.f32.mrb[52].mxu1  ;;  %v6519_v14 = vpop.f32.mrb[53].mxu0 }
 0x35b   : > { %31448 = vst [vmem:[#allocation70_spill] sm:$0xff] %v27433_v20  ;;  %v27448_v40 = vmax.bf16 %v7110_v58, %v31455_v32  ;;  %v8897_v48 = vadd.f32 %v27349_v31, %v22274_v46  ;;  %v6520_v15 = vadd.f32 %v27349_v31, %v6519_v14  ;;  %v8888_v1 = vpop.f32.mrb[53].mxu1  ;;  %22427 = vmatpush3.bf16.msra.mxu0 %v23630_v8  ;;  %v22087_v54 = vpop.f32.mrb[54].mxu0 }
 0x35c   : > { %31452 = vst [vmem:[#allocation61_spill] sm:$0xff] %v27438_v0  ;;  %v8889_v25 = vadd.f32 %v27349_v31, %v8888_v1  ;;  %v6531_v23 = vadd.f32 %v27349_v31, %v22087_v54  ;;  %v22275_v13 = vpop.f32.mrb[54].mxu1  ;;  %v6522_v5 = vpop.f32.mrb[55].mxu0  ;;  %22428 = vmatprep.subr.bf16.mxu0 %v23631_v41  ;;  %v6972_v14 = vmax.f32 %v6528_v26, 0.0  ;;  %v31458_v26 = vld [vmem:[#allocation102_spill] sm:$0xff] }
 0x35d   : > { %31456 = vst [vmem:[#allocation72_spill] sm:$0xff] %v27448_v40  ;;  %v9389_v7 = vmax.f32 %v8897_v48, 0.0  ;;  %v8900_v6 = vadd.f32 %v27349_v31, %v22275_v13  ;;  %v6523_v8 = vadd.f32 %v27349_v31, %v6522_v5  ;;  %v8891_v46 = vpop.f32.mrb[55].mxu1  ;;  %v6970_v1 = vmax.f32 %v6520_v15, 0.0  ;;  %v23633_v48 = vld [vmem:[%s30774_s3 + $0xb0] sm:$0xff]  }
 0x35e   : > { %v9387_v19 = vmax.f32 %v8889_v25, 0.0  ;;  %v6973_v12 = vmax.f32 %v6531_v23, 0.0  ;;  %v8892_v32 = vadd.f32 %v27349_v31, %v8891_v46  ;;  %v31459_v25 = vld [vmem:[#allocation93_spill] sm:$0xff] }
 0x35f   : > { %v9390_v54 = vmax.f32 %v8900_v6, 0.0  ;;  %v6971_v49 = vmax.f32 %v6523_v8, 0.0  ;;  %22429 = vmatpush3.bf16.msra.mxu0 %v23631_v41  ;;  %v31460_v23 = vmax.bf16 %v31458_v26, %v31459_v25  ;;  %v23634_v25 = vld [vmem:[%s30774_s3 + $0xb8] sm:$0xff]  }
 0x360   : > { %v7113_v47 = vpack.c.bf16 %v6973_v12, %v6972_v14  ;;  %v9388_v37 = vmax.f32 %v8892_v32, 0.0  ;;  %22430 = vmatprep.subr.bf16.mxu0 %v23632_v56  ;;  %v31462_v14 = vld [vmem:[#allocation104_spill] sm:$0xff]  ;;  %v31463_v12 = vld [vmem:[#allocation95_spill] sm:$0xff] }
 0x361   : > { %v27465_v13 = vpack.c.bf16 %v9390_v54, %v9389_v7  ;;  %v7112_v5 = vpack.c.bf16 %v6971_v49, %v6970_v1  ;;  %v22090_v58 = vpop.f32.mrb[56].mxu0  ;;  %v31464_v7 = vmax.bf16 %v31462_v14, %v31463_v12 }
 0x362   : > { %v27470_v20 = vmax.bf16 %v7113_v47, %v31460_v23  ;;  %v27472_v15 = vpack.c.bf16 %v9388_v37, %v9387_v19  ;;  %v6544_v41 = vadd.f32 %v27349_v31, %v22090_v58  ;;  %v22278_v6 = vpop.f32.mrb[56].mxu1  ;;  %v6535_v8 = vpop.f32.mrb[57].mxu0 }
 0x363   : > { %31457 = vst [vmem:[#allocation63_spill] sm:$0xff] %v27465_v13  ;;  %v27480_v32 = vmax.bf16 %v7112_v5, %v31464_v7  ;;  %v8913_v49 = vadd.f32 %v27349_v31, %v22278_v6  ;;  %v6536_v1 = vadd.f32 %v27349_v31, %v6535_v8  ;;  %v8904_v47 = vpop.f32.mrb[57].mxu1  ;;  %22431 = vmatpush3.bf16.msra.mxu0 %v23632_v56  ;;  %v22091_v37 = vpop.f32.mrb[58].mxu0 }
 0x364   : > { %31461 = vst [vmem:[#allocation74_spill] sm:$0xff] %v27470_v20  ;;  %v8905_v19 = vadd.f32 %v27349_v31, %v8904_v47  ;;  %v6547_v58 = vadd.f32 %v27349_v31, %v22091_v37  ;;  %v22279_v54 = vpop.f32.mrb[58].mxu1  ;;  %v6538_v26 = vpop.f32.mrb[59].mxu0  ;;  %22432 = vmatprep.subr.bf16.mxu0 %v23633_v48  ;;  %v6976_v14 = vmax.f32 %v6544_v41, 0.0  ;;  %v31466_v41 = vld [vmem:[#allocation106_spill] sm:$0xff] }
 0x365   : > { %v9393_v23 = vmax.f32 %v8913_v49, 0.0  ;;  %v8916_v6 = vadd.f32 %v27349_v31, %v22279_v54  ;;  %v6539_v56 = vadd.f32 %v27349_v31, %v6538_v26  ;;  %v8907_v8 = vpop.f32.mrb[59].mxu1  ;;  %v6974_v37 = vmax.f32 %v6536_v1, 0.0  ;;  %v23635_v49 = vld [vmem:[%s30774_s3 + $0xc0] sm:$0xff]  }
 0x366   : > { %v9391_v12 = vmax.f32 %v8905_v19, 0.0  ;;  %v6977_v7 = vmax.f32 %v6547_v58, 0.0  ;;  %v8908_v47 = vadd.f32 %v27349_v31, %v8907_v8  ;;  %v31467_v19 = vld [vmem:[#allocation97_spill] sm:$0xff] }
 0x367   : > { %v9394_v46 = vmax.f32 %v8916_v6, 0.0  ;;  %v6975_v43 = vmax.f32 %v6539_v56, 0.0  ;;  %22433 = vmatpush3.bf16.msra.mxu0 %v23633_v48  ;;  %v31468_v58 = vmax.bf16 %v31466_v41, %v31467_v19  ;;  %v23636_v19 = vld [vmem:[%s30774_s3 + $0xc8] sm:$0xff]  }
 0x368   : > { %v7115_v13 = vpack.c.bf16 %v6977_v7, %v6976_v14  ;;  %v9392_v52 = vmax.f32 %v8908_v47, 0.0  ;;  %22434 = vmatprep.subr.bf16.mxu0 %v23634_v25  ;;  %v31470_v14 = vld [vmem:[#allocation108_spill] sm:$0xff]  ;;  %v31471_v7 = vld [vmem:[#allocation99_spill] sm:$0xff] }
 0x369   : > { %v27497_v54 = vpack.c.bf16 %v9394_v46, %v9393_v23  ;;  %v7114_v26 = vpack.c.bf16 %v6975_v43, %v6974_v37  ;;  %v22094_v5 = vpop.f32.mrb[60].mxu0  ;;  %v31472_v46 = vmax.bf16 %v31470_v14, %v31471_v7 }
 0x36a   : > { %v27502_v4 = vmax.bf16 %v7115_v13, %v31468_v58  ;;  %v27504_v1 = vpack.c.bf16 %v9392_v52, %v9391_v12  ;;  %v6560_v48 = vadd.f32 %v27349_v31, %v22094_v5  ;;  %v22282_v6 = vpop.f32.mrb[60].mxu1  ;;  %v6551_v56 = vpop.f32.mrb[61].mxu0 }
 0x36b   : > { %31465 = vst [vmem:[#allocation65_spill] sm:$0xff] %v27497_v54  ;;  %v27512_v23 = vmax.bf16 %v7114_v26, %v31472_v46  ;;  %v8929_v43 = vadd.f32 %v27349_v31, %v22282_v6  ;;  %v6552_v47 = vadd.f32 %v27349_v31, %v6551_v56  ;;  %v8920_v13 = vpop.f32.mrb[61].mxu1  ;;  %22435 = vmatpush3.bf16.msra.mxu0 %v23634_v25  ;;  %v22095_v52 = vpop.f32.mrb[62].mxu0 }
 0x36c   : > { %31469 = vst [vmem:[#allocation76_spill] sm:$0xff] %v27502_v4  ;;  %v8921_v12 = vadd.f32 %v27349_v31, %v8920_v13  ;;  %v6563_v5 = vadd.f32 %v27349_v31, %v22095_v52  ;;  %v22283_v37 = vpop.f32.mrb[62].mxu1  ;;  %v6554_v41 = vpop.f32.mrb[63].mxu0  ;;  %22444 = vmatprep.subr.bf16.mxu0 %v23635_v49  ;;  %v6980_v14 = vmax.f32 %v6560_v48, 0.0  ;;  %v31474_v52 = vmax.bf16 %v26709_v36, %v26577_v55  ;;  %v23637_v48 = vld [vmem:[%s30774_s3 + $0xd0] sm:$0xff]   ;;  %v31476_v36 = vld [vmem:[#allocation110_spill] sm:$0xff] }
 0x36d   : > { %31473 = vst [vmem:[#allocation67_spill] sm:$0xff] %v27512_v23  ;;  %v9397_v58 = vmax.f32 %v8929_v43, 0.0  ;;  %v8932_v6 = vadd.f32 %v27349_v31, %v22283_v37  ;;  %v6555_v25 = vadd.f32 %v27349_v31, %v6554_v41  ;;  %v8923_v56 = vpop.f32.mrb[63].mxu1  ;;  %v6978_v8 = vmax.f32 %v6552_v47, 0.0  ;;  %v31477_v47 = vld [vmem:[#allocation101_spill] sm:$0xff] }
 0x36e   : > { %v9395_v7 = vmax.f32 %v8921_v12, 0.0  ;;  %v6981_v46 = vmax.f32 %v6563_v5, 0.0  ;;  %v8924_v13 = vadd.f32 %v27349_v31, %v8923_v56  ;;  %22437 = vmatmul.mubr.bf16.vlgmr.msra.gmra.mrb[136].mxu0 %v31474_v52  ;;  %v31475_v43 = vmax.bf16 %v26758_v30, %v26621_v42 }
 0x36f   : > { %v9398_v17 = vmax.f32 %v8932_v6, 0.0  ;;  %v6979_v54 = vmax.f32 %v6555_v25, 0.0  ;;  %22445 = vmatpush3.bf16.msra.mxu0 %v23635_v49  ;;  %v31478_v6 = vmax.bf16 %v31476_v36, %v31477_v47  ;;  %v23638_v36 = vld [vmem:[%s30774_s3 + $0xd8] sm:$0xff]  }
 0x370   : > { %22440 = vmatprep.mubr.bf16.mxu0 %v31475_v43  ;;  %v7117_v37 = vpack.c.bf16 %v6981_v46, %v6980_v14  ;;  %v9396_v41 = vmax.f32 %v8924_v13, 0.0  ;;  %22446 = vmatprep.subr.bf16.mxu0 %v23636_v19  ;;  %v31480_v46 = vld [vmem:[#allocation112_spill] sm:$0xff]  ;;  %v31481_v13 = vld [vmem:[#allocation103_spill] sm:$0xff] }
 0x371   : > { %v27535_v12 = vpack.c.bf16 %v9398_v17, %v9397_v58  ;;  %v7116_v5 = vpack.c.bf16 %v6979_v54, %v6978_v8  ;;  %v22098_v55 = vpop.f32.mrb[64].mxu0  ;;  %v31482_v17 = vmax.bf16 %v31480_v46, %v31481_v13 }
 0x372   : > { %v27540_v25 = vmax.bf16 %v7117_v37, %v31478_v6  ;;  %v27542_v56 = vpack.c.bf16 %v9396_v41, %v9395_v7  ;;  %v6576_v42 = vadd.f32 %v27349_v31, %v22098_v55  ;;  %v22286_v30 = vpop.f32.mrb[64].mxu1  ;;  %v6567_v49 = vpop.f32.mrb[65].mxu0 }
 0x373   : > { %v27550_v58 = vmax.bf16 %v7116_v5, %v31482_v17  ;;  %v8945_v54 = vadd.f32 %v27349_v31, %v22286_v30  ;;  %v6568_v8 = vadd.f32 %v27349_v31, %v6567_v49  ;;  %v8936_v52 = vpop.f32.mrb[65].mxu1  ;;  %22447 = vmatpush3.bf16.msra.mxu0 %v23636_v19  ;;  %v22099_v7 = vpop.f32.mrb[66].mxu0 }
 0x374   : > { %31479 = vst [vmem:[#allocation78_spill] sm:$0xff] %v27540_v25  ;;  %v8937_v43 = vadd.f32 %v27349_v31, %v8936_v52  ;;  %v6579_v37 = vadd.f32 %v27349_v31, %v22099_v7  ;;  %v22287_v41 = vpop.f32.mrb[66].mxu1  ;;  %v6570_v55 = vpop.f32.mrb[67].mxu0  ;;  %22448 = vmatprep.subr.bf16.mxu0 %v23637_v48  ;;  %v6984_v49 = vmax.f32 %v6576_v42, 0.0  ;;  %v31484_v52 = vmax.bf16 %v26748_v2, %v26611_v59  ;;  %v23639_v42 = vld [vmem:[%s30774_s3 + $0xe0] sm:$0xff]  }
 0x375   : > { %31483 = vst [vmem:[#allocation69_spill] sm:$0xff] %v27550_v58  ;;  %v9401_v47 = vmax.f32 %v8945_v54, 0.0  ;;  %v8948_v6 = vadd.f32 %v27349_v31, %v22287_v41  ;;  %v6571_v19 = vadd.f32 %v27349_v31, %v6570_v55  ;;  %v8939_v30 = vpop.f32.mrb[67].mxu1  ;;  %v6982_v7 = vmax.f32 %v6568_v8, 0.0  ;;  %v31487_v2 = vld [vmem:[#allocation114_spill] sm:$0xff]  ;;  %v31488_v8 = vld [vmem:[#allocation105_spill] sm:$0xff] }
 0x376   : > { %v9399_v46 = vmax.f32 %v8937_v43, 0.0  ;;  %v6985_v13 = vmax.f32 %v6579_v37, 0.0  ;;  %v8940_v17 = vadd.f32 %v27349_v31, %v8939_v30  ;;  %22441 = vmatmul.mubr.bf16.gmra.mrb[140].mxu0 %v31484_v52  ;;  %v31485_v54 = vmax.bf16 %v26792_v50, %v26655_v62 }
 0x377   : > { %v9402_v14 = vmax.f32 %v8948_v6, 0.0  ;;  %v6983_v26 = vmax.f32 %v6571_v19, 0.0  ;;  %22449 = vmatpush3.bf16.msra.mxu0 %v23637_v48  ;;  %v31489_v6 = vmax.bf16 %v31487_v2, %v31488_v8  ;;  %v23640_v2 = vld [vmem:[%s30774_s3 + $0xe8] sm:$0xff]  }
 0x378   : > { %22460 = vmatprep.mubr.bf16.mxu0 %v31485_v54  ;;  %v7119_v41 = vpack.c.bf16 %v6985_v13, %v6984_v49  ;;  %v9400_v55 = vmax.f32 %v8940_v17, 0.0  ;;  %22450 = vmatprep.subr.bf16.mxu0 %v23638_v36  ;;  %v31491_v13 = vld [vmem:[#allocation116_spill] sm:$0xff]  ;;  %v31492_v17 = vld [vmem:[#allocation107_spill] sm:$0xff] }
 0x379   : > { %v27573_v43 = vpack.c.bf16 %v9402_v14, %v9401_v47  ;;  %v7118_v37 = vpack.c.bf16 %v6983_v26, %v6982_v7  ;;  %v22102_v59 = vpop.f32.mrb[68].mxu0  ;;  %v31493_v14 = vmax.bf16 %v31491_v13, %v31492_v17 }
 0x37a   : > { %v27578_v19 = vmax.bf16 %v7119_v41, %v31489_v6  ;;  %v27580_v48 = vpack.c.bf16 %v9400_v55, %v9399_v46  ;;  %v6592_v62 = vadd.f32 %v27349_v31, %v22102_v59  ;;  %v22290_v50 = vpop.f32.mrb[68].mxu1  ;;  %v6583_v30 = vpop.f32.mrb[69].mxu0 }
 0x37b   : > { %31486 = vst [vmem:[#allocation80_spill] sm:$0xff] %v27573_v43  ;;  %v27588_v47 = vmax.bf16 %v7118_v37, %v31493_v14  ;;  %v8961_v26 = vadd.f32 %v27349_v31, %v22290_v50  ;;  %v6584_v52 = vadd.f32 %v27349_v31, %v6583_v30  ;;  %v8952_v7 = vpop.f32.mrb[69].mxu1  ;;  %22451 = vmatpush3.bf16.msra.mxu0 %v23638_v36  ;;  %v22103_v46 = vpop.f32.mrb[70].mxu0 }
 0x37c   : > { %31490 = vst [vmem:[#allocation71_spill] sm:$0xff] %v27578_v19  ;;  %v8953_v54 = vadd.f32 %v27349_v31, %v8952_v7  ;;  %v6595_v41 = vadd.f32 %v27349_v31, %v22103_v46  ;;  %v22291_v55 = vpop.f32.mrb[70].mxu1  ;;  %v6586_v59 = vpop.f32.mrb[71].mxu0  ;;  %22452 = vmatprep.subr.bf16.mxu0 %v23639_v42  ;;  %v6988_v30 = vmax.f32 %v6592_v62, 0.0  ;;  %v31496_v62 = vld [vmem:[#allocation118_spill] sm:$0xff] }
 0x37d   : > { %31494 = vst [vmem:[#allocation82_spill] sm:$0xff] %v27588_v47  ;;  %v9405_v8 = vmax.f32 %v8961_v26, 0.0  ;;  %v8964_v6 = vadd.f32 %v27349_v31, %v22291_v55  ;;  %v6587_v36 = vadd.f32 %v27349_v31, %v6586_v59  ;;  %v8955_v50 = vpop.f32.mrb[71].mxu1  ;;  %v6986_v7 = vmax.f32 %v6584_v52, 0.0  ;;  %v23641_v26 = vld [vmem:[%s30774_s3 + $0xf0] sm:$0xff]  }
 0x37e   : > { %v9403_v13 = vmax.f32 %v8953_v54, 0.0  ;;  %v6989_v17 = vmax.f32 %v6595_v41, 0.0  ;;  %v8956_v14 = vadd.f32 %v27349_v31, %v8955_v50  ;;  %v31497_v54 = vld [vmem:[#allocation109_spill] sm:$0xff] }
 0x37f   : > { %v9406_v46 = vmax.f32 %v8964_v6, 0.0  ;;  %v6987_v49 = vmax.f32 %v6587_v36, 0.0  ;;  %22453 = vmatpush3.bf16.msra.mxu0 %v23639_v42  ;;  %v31498_v41 = vmax.bf16 %v31496_v62, %v31497_v54  ;;  %v23642_v54 = vld [vmem:[%s30774_s3 + $0xf8] sm:$0xff]  }
 0x380   : > { %v7121_v5 = vpack.c.bf16 %v6989_v17, %v6988_v30  ;;  %v9404_v0 = vmax.f32 %v8956_v14, 0.0  ;;  %22454 = vmatprep.subr.bf16.mxu0 %v23640_v2  ;;  %v31500_v30 = vld [vmem:[#allocation120_spill] sm:$0xff]  ;;  %v31501_v17 = vld [vmem:[#allocation111_spill] sm:$0xff] }
 0x381   : > { %v27605_v55 = vpack.c.bf16 %v9406_v46, %v9405_v8  ;;  %v7120_v59 = vpack.c.bf16 %v6987_v49, %v6986_v7  ;;  %v22106_v37 = vpop.f32.mrb[72].mxu0  ;;  %v31502_v8 = vmax.bf16 %v31500_v30, %v31501_v17 }
 0x382   : > { %v27610_v43 = vmax.bf16 %v7121_v5, %v31498_v41  ;;  %v27612_v52 = vpack.c.bf16 %v9404_v0, %v9403_v13  ;;  %v6608_v42 = vadd.f32 %v27349_v31, %v22106_v37  ;;  %v22294_v6 = vpop.f32.mrb[72].mxu1  ;;  %v6599_v36 = vpop.f32.mrb[73].mxu0 }
 0x383   : > { %31495 = vst [vmem:[#allocation73_spill] sm:$0xff] %v27605_v55  ;;  %v27620_v14 = vmax.bf16 %v7120_v59, %v31502_v8  ;;  %v8977_v49 = vadd.f32 %v27349_v31, %v22294_v6  ;;  %v6600_v7 = vadd.f32 %v27349_v31, %v6599_v36  ;;  %v8968_v5 = vpop.f32.mrb[73].mxu1  ;;  %22455 = vmatpush3.bf16.msra.mxu0 %v23640_v2  ;;  %v22107_v0 = vpop.f32.mrb[74].mxu0 }
 0x384   : > { %31499 = vst [vmem:[#allocation84_spill] sm:$0xff] %v27610_v43  ;;  %v8969_v13 = vadd.f32 %v27349_v31, %v8968_v5  ;;  %v6611_v37 = vadd.f32 %v27349_v31, %v22107_v0  ;;  %v22295_v46 = vpop.f32.mrb[74].mxu1  ;;  %v6602_v62 = vpop.f32.mrb[75].mxu0  ;;  %22456 = vmatprep.subr.bf16.mxu0 %v23641_v26  ;;  %v6992_v30 = vmax.f32 %v6608_v42, 0.0  ;;  %v31505_v42 = vld [vmem:[#allocation113_spill] sm:$0xff] }
 0x385   : > { %31503 = vst [vmem:[#allocation75_spill] sm:$0xff] %v27620_v14  ;;  %v9409_v41 = vmax.f32 %v8977_v49, 0.0  ;;  %v8980_v6 = vadd.f32 %v27349_v31, %v22295_v46  ;;  %v6603_v2 = vadd.f32 %v27349_v31, %v6602_v62  ;;  %v8971_v36 = vpop.f32.mrb[75].mxu1  ;;  %v6990_v0 = vmax.f32 %v6600_v7, 0.0  ;;  %v23643_v49 = vld [vmem:[%s30774_s3 + $0x100] sm:$0xff]  }
 0x386   : > { %v9407_v17 = vmax.f32 %v8969_v13, 0.0  ;;  %v6993_v8 = vmax.f32 %v6611_v37, 0.0  ;;  %v8972_v5 = vadd.f32 %v27349_v31, %v8971_v36  ;;  %v31506_v13 = vmax.bf16 %v26081_v21, %v31505_v42  ;;  %v23644_v42 = vld [vmem:[%s30774_s3 + $0x108] sm:$0xff]  }
 0x387   : > { %v9410_v50 = vmax.f32 %v8980_v6, 0.0  ;;  %v6991_v20 = vmax.f32 %v6603_v2, 0.0  ;;  %22457 = vmatpush3.bf16.msra.mxu0 %v23641_v26 }
 0x388   : > { %v7123_v55 = vpack.c.bf16 %v6993_v8, %v6992_v30  ;;  %v9408_v40 = vmax.f32 %v8972_v5, 0.0  ;;  %22458 = vmatprep.subr.bf16.mxu0 %v23642_v54  ;;  %v31509_v30 = vld [vmem:[#allocation123_spill] sm:$0xff] }
 0x389   : > { %v27637_v46 = vpack.c.bf16 %v9410_v50, %v9409_v41  ;;  %v7122_v62 = vpack.c.bf16 %v6991_v20, %v6990_v0  ;;  %v22110_v59 = vpop.f32.mrb[76].mxu0  ;;  %v31510_v8 = vld [vmem:[#allocation115_spill] sm:$0xff] }
 0x38a   : > { %v27642_v37 = vmax.bf16 %v7123_v55, %v31506_v13  ;;  %v27644_v7 = vpack.c.bf16 %v9408_v40, %v9407_v17  ;;  %v6624_v26 = vadd.f32 %v27349_v31, %v22110_v59  ;;  %v22298_v6 = vpop.f32.mrb[76].mxu1  ;;  %v6615_v2 = vpop.f32.mrb[77].mxu0  ;;  %v31511_v50 = vmax.bf16 %v31509_v30, %v31510_v8 }
 0x38b   : > { %31504 = vst [vmem:[#allocation86_spill] sm:$0xff] %v27637_v46  ;;  %v8993_v20 = vadd.f32 %v27349_v31, %v22298_v6  ;;  %v6616_v21 = vadd.f32 %v27349_v31, %v6615_v2  ;;  %v8984_v55 = vpop.f32.mrb[77].mxu1  ;;  %22459 = vmatpush3.bf16.msra.mxu0 %v23642_v54  ;;  %v22111_v40 = vpop.f32.mrb[78].mxu0 }
 0x38c   : > { %31507 = vst [vmem:[#allocation77_spill] sm:$0xff] %v27642_v37  ;;  %31508 = vst [vmem:[#allocation88_spill] sm:$0xff] %v27644_v7  ;;  %v27652_v41 = vmax.bf16 %v7122_v62, %v31511_v50  ;;  %v8985_v17 = vadd.f32 %v27349_v31, %v8984_v55  ;;  %v6627_v59 = vadd.f32 %v27349_v31, %v22111_v40  ;;  %v22299_v5 = vpop.f32.mrb[78].mxu1  ;;  %v6618_v0 = vpop.f32.mrb[79].mxu0  ;;  %22468 = vmatprep.subr.bf16.mxu0 %v23643_v49  ;;  %v31514_v62 = vld [vmem:[#allocation16_spill] sm:$0xff] }
 0x38d   : > { %v9413_v13 = vmax.f32 %v8993_v20, 0.0  ;;  %v8996_v6 = vadd.f32 %v27349_v31, %v22299_v5  ;;  %v6619_v54 = vadd.f32 %v27349_v31, %v6618_v0  ;;  %v8987_v2 = vpop.f32.mrb[79].mxu1  ;;  %v6996_v30 = vmax.f32 %v6624_v26, 0.0  ;;  %v23645_v26 = vld [vmem:[%s30774_s3 + $0x110] sm:$0xff]  }
 0x38e   : > { %31512 = vst [vmem:[#allocation79_spill] sm:$0xff] %v27652_v41  ;;  %v9411_v8 = vmax.f32 %v8985_v17, 0.0  ;;  %v6997_v50 = vmax.f32 %v6627_v59, 0.0  ;;  %v8988_v55 = vadd.f32 %v27349_v31, %v8987_v2  ;;  %v31513_v40 = vmax.bf16 %v26782_v18, %v26645_v60  ;;  %v31517_v18 = vld [vmem:[#allocation125_spill] sm:$0xff]  ;;  %v31565_v7 = vld [vmem:[#allocation32_spill] sm:$0xff] }
 0x38f   : > { %v6994_v36 = vmax.f32 %v6616_v21, 0.0  ;;  %v9414_v4 = vmax.f32 %v8996_v6, 0.0  ;;  %v6995_v46 = vmax.f32 %v6619_v54, 0.0  ;;  %v31515_v20 = vmax.bf16 %v26826_v39, %v31514_v62  ;;  %v31518_v21 = vld [vmem:[#allocation117_spill] sm:$0xff] }
 0x390   : > { %22461 = vmatmul.mubr.bf16.vlgmr.msra.gmra.mrb[136].mxu0 %v31513_v40  ;;  %v7125_v5 = vpack.c.bf16 %v6997_v50, %v6996_v30  ;;  %v9412_v0 = vmax.f32 %v8988_v55, 0.0  ;;  %v31519_v6 = vmax.bf16 %v31517_v18, %v31518_v21  ;;  %v31522_v50 = vld [vmem:[#allocation127_spill] sm:$0xff]  ;;  %v23646_v18 = vld [vmem:[%s30774_s3 + $0x118] sm:$0xff]  }
 0x391   : > { %22464 = vmatprep.mubr.bf16.mxu0 %v31515_v20  ;;  %22469 = vmatpush3.bf16.msra.mxu0 %v23643_v49  ;;  %v27675_v17 = vpack.c.bf16 %v9414_v4, %v9413_v13  ;;  %v7124_v59 = vpack.c.bf16 %v6995_v46, %v6994_v36  ;;  %v22114_v60 = vpop.f32.mrb[80].mxu0  ;;  %v31523_v55 = vld [vmem:[#allocation119_spill] sm:$0xff] }
 0x392   : > { %22470 = vmatprep.subr.bf16.mxu0 %v23644_v42  ;;  %v27680_v54 = vmax.bf16 %v7125_v5, %v31519_v6  ;;  %v27682_v2 = vpack.c.bf16 %v9412_v0, %v9411_v8  ;;  %v6640_v39 = vadd.f32 %v27349_v31, %v22114_v60  ;;  %v22302_v49 = vpop.f32.mrb[80].mxu1  ;;  %v6631_v62 = vpop.f32.mrb[81].mxu0  ;;  %v31524_v4 = vmax.bf16 %v31522_v50, %v31523_v55 }
 0x393   : > { %31516 = vst [vmem:[#allocation90_spill] sm:$0xff] %v27675_v17  ;;  %v9009_v46 = vadd.f32 %v27349_v31, %v22302_v49  ;;  %v6632_v36 = vadd.f32 %v27349_v31, %v6631_v62  ;;  %v9000_v40 = vpop.f32.mrb[81].mxu1  ;;  %v22115_v8 = vpop.f32.mrb[82].mxu0 }
 0x394   : > { %31520 = vst [vmem:[#allocation81_spill] sm:$0xff] %v27680_v54  ;;  %31521 = vst [vmem:[#allocation92_spill] sm:$0xff] %v27682_v2  ;;  %v27690_v13 = vmax.bf16 %v7124_v59, %v31524_v4  ;;  %v9001_v20 = vadd.f32 %v27349_v31, %v9000_v40  ;;  %v6643_v5 = vadd.f32 %v27349_v31, %v22115_v8  ;;  %v22303_v0 = vpop.f32.mrb[82].mxu1  ;;  %v6634_v60 = vpop.f32.mrb[83].mxu0  ;;  %v7000_v62 = vmax.f32 %v6640_v39, 0.0  ;;  %v31526_v40 = vld [vmem:[#allocation14_spill] sm:$0xff] }
 0x395   : > { %22471 = vmatpush3.bf16.msra.mxu0 %v23644_v42  ;;  %v9417_v21 = vmax.f32 %v9009_v46, 0.0  ;;  %v9012_v6 = vadd.f32 %v27349_v31, %v22303_v0  ;;  %v6635_v42 = vadd.f32 %v27349_v31, %v6634_v60  ;;  %v9003_v49 = vpop.f32.mrb[83].mxu1  ;;  %v31527_v8 = vld [vmem:[#allocation10_spill] sm:$0xff]  ;;  %v6998_v25 = vmax.f32 %v6632_v36, 0.0  ;;  %v31529_v59 = vld [vmem:[#allocation28_spill] sm:$0xff]  ;;  %v31534_v36 = vld [vmem:[#allocation121_spill] sm:$0xff] }
 0x396   : > { %31525 = vst [vmem:[#allocation83_spill] sm:$0xff] %v27690_v13  ;;  %22472 = vmatprep.subr.bf16.mxu0 %v23645_v26  ;;  %v9415_v50 = vmax.f32 %v9001_v20, 0.0  ;;  %v7001_v55 = vmax.f32 %v6643_v5, 0.0  ;;  %v9004_v4 = vadd.f32 %v27349_v31, %v9003_v49  ;;  %v31528_v30 = vmax.bf16 %v31526_v40, %v31527_v8  ;;  %v31530_v46 = vld [vmem:[#allocation18_spill] sm:$0xff] }
 0x397   : > { %v9418_v17 = vmax.f32 %v9012_v6, 0.0  ;;  %v6999_v23 = vmax.f32 %v6635_v42, 0.0  ;;  %v31531_v58 = vmax.bf16 %v31529_v59, %v31530_v46  ;;  %v23647_v39 = vld [vmem:[%s30774_s3 + $0x120] sm:$0xff]  }
 0x398   : > { %22465 = vmatmul.mubr.bf16.gmra.mrb[140].mxu0 %v31528_v30  ;;  %v7127_v0 = vpack.c.bf16 %v7001_v55, %v7000_v62  ;;  %v9416_v60 = vmax.f32 %v9004_v4, 0.0  ;;  %v31533_v30 = vld [vmem:[#allocation129_spill] sm:$0xff]  ;;  %v31538_v4 = vld [vmem:[#allocation131_spill] sm:$0xff]  ;;  %v31539_v40 = vld [vmem:[#allocation122_spill] sm:$0xff] }
 0x399   : > { %22473 = vmatpush3.bf16.msra.mxu0 %v23645_v26  ;;  %22484 = vmatprep.mubr.bf16.mxu0 %v31531_v58  ;;  %v27713_v20 = vpack.c.bf16 %v9418_v17, %v9417_v21  ;;  %v7126_v5 = vpack.c.bf16 %v6999_v23, %v6998_v25  ;;  %v22118_v49 = vpop.f32.mrb[84].mxu0  ;;  %v31535_v6 = vmax.bf16 %v31533_v30, %v31534_v36  ;;  %v23648_v30 = vld [vmem:[%s30774_s3 + $0x128] sm:$0xff]  }
 0x39a   : > { %22474 = vmatprep.subr.bf16.mxu0 %v23646_v18  ;;  %v27720_v26 = vpack.c.bf16 %v9416_v60, %v9415_v50  ;;  %v6656_v58 = vadd.f32 %v27349_v31, %v22118_v49  ;;  %v22306_v59 = vpop.f32.mrb[84].mxu1  ;;  %v6647_v62 = vpop.f32.mrb[85].mxu0  ;;  %v31540_v17 = vmax.bf16 %v31538_v4, %v31539_v40 }
 0x39b   : > { %31532 = vst [vmem:[#allocation94_spill] sm:$0xff] %v27713_v20  ;;  %v27718_v42 = vmax.bf16 %v7127_v0, %v31535_v6  ;;  %v9025_v23 = vadd.f32 %v27349_v31, %v22306_v59  ;;  %v6648_v25 = vadd.f32 %v27349_v31, %v6647_v62  ;;  %v9016_v8 = vpop.f32.mrb[85].mxu1  ;;  %v22119_v50 = vpop.f32.mrb[86].mxu0 }
 0x39c   : > { %31537 = vst [vmem:[#allocation96_spill] sm:$0xff] %v27720_v26  ;;  %v27728_v21 = vmax.bf16 %v7126_v5, %v31540_v17  ;;  %v9017_v46 = vadd.f32 %v27349_v31, %v9016_v8  ;;  %v6659_v0 = vadd.f32 %v27349_v31, %v22119_v50  ;;  %v22307_v60 = vpop.f32.mrb[86].mxu1  ;;  %v6650_v49 = vpop.f32.mrb[87].mxu0  ;;  %v7004_v62 = vmax.f32 %v6656_v58, 0.0  ;;  %v31543_v58 = vld [vmem:[#allocation133_spill] sm:$0xff] }
 0x39d   : > { %31536 = vst [vmem:[#allocation85_spill] sm:$0xff] %v27718_v42  ;;  %22475 = vmatpush3.bf16.msra.mxu0 %v23646_v18  ;;  %v9421_v36 = vmax.f32 %v9025_v23, 0.0  ;;  %v9028_v6 = vadd.f32 %v27349_v31, %v22307_v60  ;;  %v6651_v18 = vadd.f32 %v27349_v31, %v6650_v49  ;;  %v9019_v59 = vpop.f32.mrb[87].mxu1  ;;  %v7002_v8 = vmax.f32 %v6648_v25, 0.0  ;;  %v23649_v23 = vld [vmem:[%s30774_s3 + $0x130] sm:$0xff]  }
 0x39e   : > { %31541 = vst [vmem:[#allocation87_spill] sm:$0xff] %v27728_v21  ;;  %22476 = vmatprep.subr.bf16.mxu0 %v23647_v39  ;;  %v9419_v4 = vmax.f32 %v9017_v46, 0.0  ;;  %v7005_v40 = vmax.f32 %v6659_v0, 0.0  ;;  %v9020_v17 = vadd.f32 %v27349_v31, %v9019_v59  ;;  %v31544_v46 = vld [vmem:[#allocation124_spill] sm:$0xff] }
 0x39f   : > { %v9422_v50 = vmax.f32 %v9028_v6, 0.0  ;;  %v7003_v55 = vmax.f32 %v6651_v18, 0.0  ;;  %v31545_v0 = vmax.bf16 %v31543_v58, %v31544_v46  ;;  %v23650_v46 = vld [vmem:[%s30774_s3 + $0x138] sm:$0xff]  }
 0x3a0   : > { %v7129_v19 = vpack.c.bf16 %v7005_v40, %v7004_v62  ;;  %v9420_v20 = vmax.f32 %v9020_v17, 0.0  ;;  %v31548_v62 = vld [vmem:[#allocation135_spill] sm:$0xff]  ;;  %v31549_v40 = vld [vmem:[#allocation126_spill] sm:$0xff] }
 0x3a1   : > { %22477 = vmatpush3.bf16.msra.mxu0 %v23647_v39  ;;  %v27745_v60 = vpack.c.bf16 %v9422_v50, %v9421_v36  ;;  %v7128_v49 = vpack.c.bf16 %v7003_v55, %v7002_v8  ;;  %v22122_v5 = vpop.f32.mrb[88].mxu0  ;;  %v31550_v36 = vmax.bf16 %v31548_v62, %v31549_v40 }
 0x3a2   : > { %22478 = vmatprep.subr.bf16.mxu0 %v23648_v30  ;;  %v27750_v47 = vmax.bf16 %v7129_v19, %v31545_v0  ;;  %v27752_v25 = vpack.c.bf16 %v9420_v20, %v9419_v4  ;;  %v6672_v39 = vadd.f32 %v27349_v31, %v22122_v5  ;;  %v22310_v6 = vpop.f32.mrb[88].mxu1  ;;  %v6663_v18 = vpop.f32.mrb[89].mxu0 }
 0x3a3   : > { %31542 = vst [vmem:[#allocation98_spill] sm:$0xff] %v27745_v60  ;;  %v27760_v17 = vmax.bf16 %v7128_v49, %v31550_v36  ;;  %v9041_v55 = vadd.f32 %v27349_v31, %v22310_v6  ;;  %v6664_v8 = vadd.f32 %v27349_v31, %v6663_v18  ;;  %v9032_v19 = vpop.f32.mrb[89].mxu1  ;;  %v22123_v20 = vpop.f32.mrb[90].mxu0 }
 0x3a4   : > { %31546 = vst [vmem:[#allocation89_spill] sm:$0xff] %v27750_v47  ;;  %31547 = vst [vmem:[#allocation100_spill] sm:$0xff] %v27752_v25  ;;  %v9033_v4 = vadd.f32 %v27349_v31, %v9032_v19  ;;  %v6675_v5 = vadd.f32 %v27349_v31, %v22123_v20  ;;  %v22311_v50 = vpop.f32.mrb[90].mxu1  ;;  %v6666_v58 = vpop.f32.mrb[91].mxu0  ;;  %v7008_v62 = vmax.f32 %v6672_v39, 0.0  ;;  %v31553_v39 = vld [vmem:[#allocation137_spill] sm:$0xff] }
 0x3a5   : > { %31551 = vst [vmem:[#allocation91_spill] sm:$0xff] %v27760_v17  ;;  %22479 = vmatpush3.bf16.msra.mxu0 %v23648_v30  ;;  %v9425_v0 = vmax.f32 %v9041_v55, 0.0  ;;  %v9044_v6 = vadd.f32 %v27349_v31, %v22311_v50  ;;  %v6667_v30 = vadd.f32 %v27349_v31, %v6666_v58  ;;  %v9035_v18 = vpop.f32.mrb[91].mxu1  ;;  %v7006_v20 = vmax.f32 %v6664_v8, 0.0  ;;  %v23651_v55 = vld [vmem:[%s30774_s3 + $0x140] sm:$0xff]  }
 0x3a6   : > { %22480 = vmatprep.subr.bf16.mxu0 %v23649_v23  ;;  %v9423_v40 = vmax.f32 %v9033_v4, 0.0  ;;  %v7009_v36 = vmax.f32 %v6675_v5, 0.0  ;;  %v9036_v19 = vadd.f32 %v27349_v31, %v9035_v18  ;;  %v31554_v4 = vld [vmem:[#allocation128_spill] sm:$0xff] }
 0x3a7   : > { %v9426_v59 = vmax.f32 %v9044_v6, 0.0  ;;  %v7007_v43 = vmax.f32 %v6667_v30, 0.0  ;;  %v31555_v5 = vmax.bf16 %v31553_v39, %v31554_v4  ;;  %v23652_v4 = vld [vmem:[%s30774_s3 + $0x148] sm:$0xff]  }
 0x3a8   : > { %v7131_v60 = vpack.c.bf16 %v7009_v36, %v7008_v62  ;;  %v9424_v26 = vmax.f32 %v9036_v19, 0.0 }
 0x3a9   : > { %22481 = vmatpush3.bf16.msra.mxu0 %v23649_v23  ;;  %v27777_v50 = vpack.c.bf16 %v9426_v59, %v9425_v0  ;;  %v7130_v58 = vpack.c.bf16 %v7007_v43, %v7006_v20  ;;  %v22126_v49 = vpop.f32.mrb[92].mxu0  ;;  %v27789_v23 = vld [vmem:[%s30773_s2] ss:$0 sm:$0xff]  ;;  %v31558_v59 = vld [vmem:[#allocation139_spill] sm:$0xff] }
 0x3aa   : > { %22482 = vmatprep.subr.bf16.mxu0 %v23650_v46  ;;  %v27782_v14 = vmax.bf16 %v7131_v60, %v31555_v5  ;;  %v27784_v31 = vpack.c.bf16 %v9424_v26, %v9423_v40  ;;  %v6688_v8 = vadd.f32 %v27789_v23, %v22126_v49  ;;  %v22314_v6 = vpop.f32.mrb[92].mxu1  ;;  %v6679_v30 = vpop.f32.mrb[93].mxu0  ;;  %v31559_v0 = vld [vmem:[#allocation130_spill] sm:$0xff]  ;;  %v31563_v43 = vld [vmem:[#allocation11_spill] sm:$0xff] }
 0x3ab   : > { %31552 = vst [vmem:[#allocation102_spill] sm:$0xff] %v27777_v50  ;;  %v31560_v18 = vmax.bf16 %v31558_v59, %v31559_v0  ;;  %v9057_v26 = vadd.f32 %v27789_v23, %v22314_v6  ;;  %v6680_v60 = vadd.f32 %v27789_v23, %v6679_v30  ;;  %v9048_v40 = vpop.f32.mrb[93].mxu1  ;;  %v22127_v36 = vpop.f32.mrb[94].mxu0 }
 0x3ac   : > { %31556 = vst [vmem:[#allocation93_spill] sm:$0xff] %v27782_v14  ;;  %31557 = vst [vmem:[#allocation104_spill] sm:$0xff] %v27784_v31  ;;  %v9049_v19 = vadd.f32 %v27789_v23, %v9048_v40  ;;  %v6691_v49 = vadd.f32 %v27789_v23, %v22127_v36  ;;  %v22315_v20 = vpop.f32.mrb[94].mxu1  ;;  %v6682_v39 = vpop.f32.mrb[95].mxu0  ;;  %v7012_v59 = vmax.f32 %v6688_v8, 0.0  ;;  %v31562_v36 = vld [vmem:[#allocation26_spill] sm:$0xff] }
 0x3ad   : > { %v27797_v62 = vmax.bf16 %v7130_v58, %v31560_v18  ;;  %22483 = vmatpush3.bf16.msra.mxu0 %v23650_v46  ;;  %v9429_v5 = vmax.f32 %v9057_v26, 0.0  ;;  %v9060_v6 = vadd.f32 %v27789_v23, %v22315_v20  ;;  %v6683_v46 = vadd.f32 %v27789_v23, %v6682_v39  ;;  %v9051_v30 = vpop.f32.mrb[95].mxu1  ;;  %v31566_v58 = vld [vmem:[#allocation20_spill] sm:$0xff] }
 0x3ae   : > { %22492 = vmatprep.subr.bf16.mxu0 %v23651_v55  ;;  %v9427_v0 = vmax.f32 %v9049_v19, 0.0  ;;  %v7013_v18 = vmax.f32 %v6691_v49, 0.0  ;;  %v9052_v40 = vadd.f32 %v27789_v23, %v9051_v30  ;;  %v31564_v37 = vmax.bf16 %v31562_v36, %v31563_v43  ;;  %v23653_v8 = vld [vmem:[%s30774_s3 + $0x150] sm:$0xff]  }
 0x3af   : > { %31561 = vst [vmem:[#allocation95_spill] sm:$0xff] %v27797_v62  ;;  %v7010_v50 = vmax.f32 %v6680_v60, 0.0  ;;  %v9430_v25 = vmax.f32 %v9060_v6, 0.0  ;;  %v7011_v2 = vmax.f32 %v6683_v46, 0.0  ;;  %v31567_v26 = vmax.bf16 %v31565_v7, %v31566_v58  ;;  %v31570_v60 = vld [vmem:[#allocation132_spill] sm:$0xff] }
 0x3b0   : > { %22485 = vmatmul.mubr.bf16.vlgmr.msra.gmra.mrb[136].mxu0 %v31564_v37  ;;  %v7133_v20 = vpack.c.bf16 %v7013_v18, %v7012_v59  ;;  %v9428_v39 = vmax.f32 %v9052_v40, 0.0  ;;  %v31569_v37 = vld [vmem:[#allocation141_spill] sm:$0xff]  ;;  %v31574_v18 = vld [vmem:[#allocation143_spill] sm:$0xff]  ;;  %v31575_v40 = vld [vmem:[#allocation134_spill] sm:$0xff] }
 0x3b1   : > { %22488 = vmatprep.mubr.bf16.mxu0 %v31567_v26  ;;  %22493 = vmatpush3.bf16.msra.mxu0 %v23651_v55  ;;  %v27820_v19 = vpack.c.bf16 %v9430_v25, %v9429_v5  ;;  %v7132_v49 = vpack.c.bf16 %v7011_v2, %v7010_v50  ;;  %v22130_v43 = vpop.f32.mrb[96].mxu0  ;;  %v31571_v6 = vmax.bf16 %v31569_v37, %v31570_v60  ;;  %v23654_v37 = vld [vmem:[%s30774_s3 + $0x158] sm:$0xff]   ;;  %v31617_v31 = vld [vmem:[#allocation40_spill] sm:$0xff] }
 0x3b2   : > { %22494 = vmatprep.subr.bf16.mxu0 %v23652_v4  ;;  %v27827_v30 = vpack.c.bf16 %v9428_v39, %v9427_v0  ;;  %v6704_v7 = vadd.f32 %v27789_v23, %v22130_v43  ;;  %v22318_v55 = vpop.f32.mrb[96].mxu1  ;;  %v6695_v58 = vpop.f32.mrb[97].mxu0  ;;  %v31576_v25 = vmax.bf16 %v31574_v18, %v31575_v40 }
 0x3b3   : > { %31568 = vst [vmem:[#allocation106_spill] sm:$0xff] %v27820_v19  ;;  %v27825_v46 = vmax.bf16 %v7133_v20, %v31571_v6  ;;  %v9073_v2 = vadd.f32 %v27789_v23, %v22318_v55  ;;  %v6696_v50 = vadd.f32 %v27789_v23, %v6695_v58  ;;  %v9064_v36 = vpop.f32.mrb[97].mxu1  ;;  %v22131_v0 = vpop.f32.mrb[98].mxu0 }
 0x3b4   : > { %31573 = vst [vmem:[#allocation108_spill] sm:$0xff] %v27827_v30  ;;  %v27835_v5 = vmax.bf16 %v7132_v49, %v31576_v25  ;;  %v9065_v26 = vadd.f32 %v27789_v23, %v9064_v36  ;;  %v6707_v20 = vadd.f32 %v27789_v23, %v22131_v0  ;;  %v22319_v39 = vpop.f32.mrb[98].mxu1  ;;  %v6698_v43 = vpop.f32.mrb[99].mxu0  ;;  %v7016_v58 = vmax.f32 %v6704_v7, 0.0  ;;  %v31578_v36 = vld [vmem:[#allocation30_spill] sm:$0xff]  ;;  %v31579_v0 = vld [vmem:[#allocation12_spill] sm:$0xff] }
 0x3b5   : > { %31572 = vst [vmem:[#allocation97_spill] sm:$0xff] %v27825_v46  ;;  %22495 = vmatpush3.bf16.msra.mxu0 %v23652_v4  ;;  %v9433_v60 = vmax.f32 %v9073_v2, 0.0  ;;  %v9076_v6 = vadd.f32 %v27789_v23, %v22319_v39  ;;  %v6699_v4 = vadd.f32 %v27789_v23, %v6698_v43  ;;  %v9067_v55 = vpop.f32.mrb[99].mxu1  ;;  %v31580_v59 = vmax.bf16 %v31578_v36, %v31579_v0  ;;  %v31581_v49 = vld [vmem:[#allocation36_spill] sm:$0xff]  ;;  %v31582_v2 = vld [vmem:[#allocation22_spill] sm:$0xff] }
 0x3b6   : > { %31577 = vst [vmem:[#allocation99_spill] sm:$0xff] %v27835_v5  ;;  %22496 = vmatprep.subr.bf16.mxu0 %v23653_v8  ;;  %v9431_v18 = vmax.f32 %v9065_v26, 0.0  ;;  %v7017_v40 = vmax.f32 %v6707_v20, 0.0  ;;  %v9068_v25 = vadd.f32 %v27789_v23, %v9067_v55  ;;  %v7014_v54 = vmax.f32 %v6696_v50, 0.0  ;;  %v23655_v7 = vld [vmem:[%s30774_s3 + $0x160] sm:$0xff]   ;;  %v31586_v50 = vld [vmem:[#allocation136_spill] sm:$0xff] }
 0x3b7   : > { %v9434_v19 = vmax.f32 %v9076_v6, 0.0  ;;  %v7015_v41 = vmax.f32 %v6699_v4, 0.0  ;;  %v31583_v13 = vmax.bf16 %v31581_v49, %v31582_v2  ;;  %v31591_v36 = vld [vmem:[#allocation138_spill] sm:$0xff] }
 0x3b8   : > { %22489 = vmatmul.mubr.bf16.gmra.mrb[140].mxu0 %v31580_v59  ;;  %v7135_v39 = vpack.c.bf16 %v7017_v40, %v7016_v58  ;;  %v9432_v43 = vmax.f32 %v9068_v25, 0.0  ;;  %v31585_v59 = vld [vmem:[#allocation145_spill] sm:$0xff]  ;;  %v31590_v25 = vld [vmem:[#allocation147_spill] sm:$0xff] }
 0x3b9   : > { %22497 = vmatpush3.bf16.msra.mxu0 %v23653_v8  ;;  %22508 = vmatprep.mubr.bf16.mxu0 %v31583_v13  ;;  %v27858_v26 = vpack.c.bf16 %v9434_v19, %v9433_v60  ;;  %v7134_v20 = vpack.c.bf16 %v7015_v41, %v7014_v54  ;;  %v22134_v55 = vpop.f32.mrb[100].mxu0  ;;  %v31587_v6 = vmax.bf16 %v31585_v59, %v31586_v50  ;;  %v23656_v59 = vld [vmem:[%s30774_s3 + $0x168] sm:$0xff]  }
 0x3ba   : > { %22498 = vmatprep.subr.bf16.mxu0 %v23654_v37  ;;  %v27865_v8 = vpack.c.bf16 %v9432_v43, %v9431_v18  ;;  %v6720_v13 = vadd.f32 %v27789_v23, %v22134_v55  ;;  %v22322_v49 = vpop.f32.mrb[100].mxu1  ;;  %v6711_v58 = vpop.f32.mrb[101].mxu0  ;;  %v31592_v19 = vmax.bf16 %v31590_v25, %v31591_v36 }
 0x3bb   : > { %31584 = vst [vmem:[#allocation110_spill] sm:$0xff] %v27858_v26  ;;  %v27863_v4 = vmax.bf16 %v7135_v39, %v31587_v6  ;;  %v9089_v41 = vadd.f32 %v27789_v23, %v22322_v49  ;;  %v6712_v54 = vadd.f32 %v27789_v23, %v6711_v58  ;;  %v9080_v0 = vpop.f32.mrb[101].mxu1  ;;  %v22135_v18 = vpop.f32.mrb[102].mxu0 }
 0x3bc   : > { %31589 = vst [vmem:[#allocation112_spill] sm:$0xff] %v27865_v8  ;;  %v27873_v60 = vmax.bf16 %v7134_v20, %v31592_v19  ;;  %v9081_v2 = vadd.f32 %v27789_v23, %v9080_v0  ;;  %v6723_v39 = vadd.f32 %v27789_v23, %v22135_v18  ;;  %v22323_v43 = vpop.f32.mrb[102].mxu1  ;;  %v6714_v55 = vpop.f32.mrb[103].mxu0  ;;  %v7020_v58 = vmax.f32 %v6720_v13, 0.0  ;;  %v31595_v13 = vld [vmem:[#allocation149_spill] sm:$0xff] }
 0x3bd   : > { %31588 = vst [vmem:[#allocation101_spill] sm:$0xff] %v27863_v4  ;;  %22499 = vmatpush3.bf16.msra.mxu0 %v23654_v37  ;;  %v9437_v50 = vmax.f32 %v9089_v41, 0.0  ;;  %v9092_v6 = vadd.f32 %v27789_v23, %v22323_v43  ;;  %v6715_v37 = vadd.f32 %v27789_v23, %v6714_v55  ;;  %v9083_v49 = vpop.f32.mrb[103].mxu1  ;;  %v7018_v0 = vmax.f32 %v6712_v54, 0.0  ;;  %v23657_v41 = vld [vmem:[%s30774_s3 + $0x170] sm:$0xff]  }
 0x3be   : > { %31593 = vst [vmem:[#allocation103_spill] sm:$0xff] %v27873_v60  ;;  %22500 = vmatprep.subr.bf16.mxu0 %v23655_v7  ;;  %v9435_v25 = vmax.f32 %v9081_v2, 0.0  ;;  %v7021_v36 = vmax.f32 %v6723_v39, 0.0  ;;  %v9084_v19 = vadd.f32 %v27789_v23, %v9083_v49  ;;  %v31596_v2 = vld [vmem:[#allocation140_spill] sm:$0xff] }
 0x3bf   : > { %v9438_v18 = vmax.f32 %v9092_v6, 0.0  ;;  %v7019_v40 = vmax.f32 %v6715_v37, 0.0  ;;  %v31597_v39 = vmax.bf16 %v31595_v13, %v31596_v2  ;;  %v23658_v2 = vld [vmem:[%s30774_s3 + $0x178] sm:$0xff]  }
 0x3c0   : > { %v7137_v42 = vpack.c.bf16 %v7021_v36, %v7020_v58  ;;  %v9436_v26 = vmax.f32 %v9084_v19, 0.0  ;;  %v31600_v58 = vld [vmem:[#allocation151_spill] sm:$0xff]  ;;  %v31601_v36 = vld [vmem:[#allocation142_spill] sm:$0xff] }
 0x3c1   : > { %22501 = vmatpush3.bf16.msra.mxu0 %v23655_v7  ;;  %v27890_v43 = vpack.c.bf16 %v9438_v18, %v9437_v50  ;;  %v7136_v55 = vpack.c.bf16 %v7019_v40, %v7018_v0  ;;  %v22138_v20 = vpop.f32.mrb[104].mxu0  ;;  %v31602_v50 = vmax.bf16 %v31600_v58, %v31601_v36 }
 0x3c2   : > { %22502 = vmatprep.subr.bf16.mxu0 %v23656_v59  ;;  %v27895_v21 = vmax.bf16 %v7137_v42, %v31597_v39  ;;  %v27897_v54 = vpack.c.bf16 %v9436_v26, %v9435_v25  ;;  %v6736_v7 = vadd.f32 %v27789_v23, %v22138_v20  ;;  %v22326_v6 = vpop.f32.mrb[104].mxu1  ;;  %v6727_v37 = vpop.f32.mrb[105].mxu0 }
 0x3c3   : > { %31594 = vst [vmem:[#allocation114_spill] sm:$0xff] %v27890_v43  ;;  %v27905_v19 = vmax.bf16 %v7136_v55, %v31602_v50  ;;  %v9105_v40 = vadd.f32 %v27789_v23, %v22326_v6  ;;  %v6728_v0 = vadd.f32 %v27789_v23, %v6727_v37  ;;  %v9096_v42 = vpop.f32.mrb[105].mxu1  ;;  %v22139_v26 = vpop.f32.mrb[106].mxu0 }
 0x3c4   : > { %31598 = vst [vmem:[#allocation105_spill] sm:$0xff] %v27895_v21  ;;  %31599 = vst [vmem:[#allocation116_spill] sm:$0xff] %v27897_v54  ;;  %v9097_v25 = vadd.f32 %v27789_v23, %v9096_v42  ;;  %v6739_v20 = vadd.f32 %v27789_v23, %v22139_v26  ;;  %v22327_v18 = vpop.f32.mrb[106].mxu1  ;;  %v6730_v13 = vpop.f32.mrb[107].mxu0  ;;  %v7024_v58 = vmax.f32 %v6736_v7, 0.0  ;;  %v31605_v7 = vld [vmem:[#allocation153_spill] sm:$0xff] }
 0x3c5   : > { %31603 = vst [vmem:[#allocation107_spill] sm:$0xff] %v27905_v19  ;;  %22503 = vmatpush3.bf16.msra.mxu0 %v23656_v59  ;;  %v9441_v39 = vmax.f32 %v9105_v40, 0.0  ;;  %v9108_v6 = vadd.f32 %v27789_v23, %v22327_v18  ;;  %v6731_v59 = vadd.f32 %v27789_v23, %v6730_v13  ;;  %v9099_v37 = vpop.f32.mrb[107].mxu1  ;;  %v7022_v26 = vmax.f32 %v6728_v0, 0.0  ;;  %v23659_v40 = vld [vmem:[%s30774_s3 + $0x180] sm:$0xff]  }
 0x3c6   : > { %22504 = vmatprep.subr.bf16.mxu0 %v23657_v41  ;;  %v9439_v36 = vmax.f32 %v9097_v25, 0.0  ;;  %v7025_v50 = vmax.f32 %v6739_v20, 0.0  ;;  %v9100_v42 = vadd.f32 %v27789_v23, %v9099_v37  ;;  %v31606_v25 = vld [vmem:[#allocation144_spill] sm:$0xff]  ;;  %v31615_v37 = vld [vmem:[#allocation13_spill] sm:$0xff] }
 0x3c7   : > { %v9442_v49 = vmax.f32 %v9108_v6, 0.0  ;;  %v7023_v47 = vmax.f32 %v6731_v59, 0.0  ;;  %v31607_v20 = vmax.bf16 %v31605_v7, %v31606_v25  ;;  %v23660_v25 = vld [vmem:[%s30774_s3 + $0x188] sm:$0xff]  }
 0x3c8   : > { %v7139_v43 = vpack.c.bf16 %v7025_v50, %v7024_v58  ;;  %v9440_v8 = vmax.f32 %v9100_v42, 0.0  ;;  %v31610_v58 = vld [vmem:[#allocation155_spill] sm:$0xff]  ;;  %v31611_v50 = vld [vmem:[#allocation146_spill] sm:$0xff] }
 0x3c9   : > { %22505 = vmatpush3.bf16.msra.mxu0 %v23657_v41  ;;  %v27922_v18 = vpack.c.bf16 %v9442_v49, %v9441_v39  ;;  %v7138_v13 = vpack.c.bf16 %v7023_v47, %v7022_v26  ;;  %v22142_v55 = vpop.f32.mrb[108].mxu0  ;;  %v31612_v49 = vmax.bf16 %v31610_v58, %v31611_v50 }
 0x3ca   : > { %22506 = vmatprep.subr.bf16.mxu0 %v23658_v2  ;;  %v27927_v17 = vmax.bf16 %v7139_v43, %v31607_v20  ;;  %v27929_v0 = vpack.c.bf16 %v9440_v8, %v9439_v36  ;;  %v6752_v41 = vadd.f32 %v27789_v23, %v22142_v55  ;;  %v22330_v6 = vpop.f32.mrb[108].mxu1  ;;  %v6743_v59 = vpop.f32.mrb[109].mxu0 }
 0x3cb   : > { %31604 = vst [vmem:[#allocation118_spill] sm:$0xff] %v27922_v18  ;;  %v27937_v39 = vmax.bf16 %v7138_v13, %v31612_v49  ;;  %v9121_v47 = vadd.f32 %v27789_v23, %v22330_v6  ;;  %v6744_v42 = vadd.f32 %v27789_v23, %v6743_v59  ;;  %v9112_v43 = vpop.f32.mrb[109].mxu1  ;;  %v22143_v8 = vpop.f32.mrb[110].mxu0  ;;  %v31618_v13 = vld [vmem:[#allocation15_spill] sm:$0xff] }
 0x3cc   : > { %31608 = vst [vmem:[#allocation109_spill] sm:$0xff] %v27927_v17  ;;  %31609 = vst [vmem:[#allocation120_spill] sm:$0xff] %v27929_v0  ;;  %v9113_v36 = vadd.f32 %v27789_v23, %v9112_v43  ;;  %v6755_v55 = vadd.f32 %v27789_v23, %v22143_v8  ;;  %v22331_v26 = vpop.f32.mrb[110].mxu1  ;;  %v6746_v7 = vpop.f32.mrb[111].mxu0  ;;  %v7028_v58 = vmax.f32 %v6752_v41, 0.0  ;;  %v31614_v8 = vld [vmem:[#allocation34_spill] sm:$0xff] }
 0x3cd   : > { %31613 = vst [vmem:[#allocation111_spill] sm:$0xff] %v27937_v39  ;;  %22507 = vmatpush3.bf16.msra.mxu0 %v23658_v2  ;;  %v9445_v20 = vmax.f32 %v9121_v47, 0.0  ;;  %v9124_v6 = vadd.f32 %v27789_v23, %v22331_v26  ;;  %v6747_v2 = vadd.f32 %v27789_v23, %v6746_v7  ;;  %v9115_v59 = vpop.f32.mrb[111].mxu1  ;;  %v31616_v14 = vmax.bf16 %v31614_v8, %v31615_v37  ;;  %v23661_v41 = vld [vmem:[%s30774_s3 + $0x190] sm:$0xff]  }
 0x3ce   : > { %22516 = vmatprep.subr.bf16.mxu0 %v23659_v40  ;;  %v9443_v50 = vmax.f32 %v9113_v36, 0.0  ;;  %v7029_v49 = vmax.f32 %v6755_v55, 0.0  ;;  %v9116_v43 = vadd.f32 %v27789_v23, %v9115_v59  ;;  %v7026_v18 = vmax.f32 %v6744_v42, 0.0  ;;  %v31622_v42 = vld [vmem:[#allocation148_spill] sm:$0xff] }
 0x3cf   : > { %v9446_v54 = vmax.f32 %v9124_v6, 0.0  ;;  %v7027_v30 = vmax.f32 %v6747_v2, 0.0  ;;  %v31619_v47 = vmax.bf16 %v31617_v31, %v31618_v13  ;;  %v31664_v0 = vld [vmem:[#allocation48_spill] sm:$0xff] }
 0x3d0   : > { %22509 = vmatmul.mubr.bf16.vlgmr.msra.gmra.mrb[136].mxu0 %v31616_v14  ;;  %v7141_v26 = vpack.c.bf16 %v7029_v49, %v7028_v58  ;;  %v9444_v7 = vmax.f32 %v9116_v43, 0.0  ;;  %v31621_v14 = vld [vmem:[#allocation157_spill] sm:$0xff]  ;;  %v31626_v49 = vld [vmem:[#allocation159_spill] sm:$0xff]  ;;  %v31627_v43 = vld [vmem:[#allocation150_spill] sm:$0xff] }
 0x3d1   : > { %22512 = vmatprep.mubr.bf16.mxu0 %v31619_v47  ;;  %22517 = vmatpush3.bf16.msra.mxu0 %v23659_v40  ;;  %v27960_v36 = vpack.c.bf16 %v9446_v54, %v9445_v20  ;;  %v7140_v55 = vpack.c.bf16 %v7027_v30, %v7026_v18  ;;  %v22146_v37 = vpop.f32.mrb[112].mxu0  ;;  %v31623_v6 = vmax.bf16 %v31621_v14, %v31622_v42  ;;  %v23662_v14 = vld [vmem:[%s30774_s3 + $0x198] sm:$0xff]  }
 0x3d2   : > { %22518 = vmatprep.subr.bf16.mxu0 %v23660_v25  ;;  %v27967_v59 = vpack.c.bf16 %v9444_v7, %v9443_v50  ;;  %v6768_v31 = vadd.f32 %v27789_v23, %v22146_v37  ;;  %v22334_v40 = vpop.f32.mrb[112].mxu1  ;;  %v6759_v13 = vpop.f32.mrb[113].mxu0  ;;  %v31628_v54 = vmax.bf16 %v31626_v49, %v31627_v43 }
 0x3d3   : > { %31620 = vst [vmem:[#allocation113_spill] sm:$0xff] %v27960_v36  ;;  %v27965_v2 = vmax.bf16 %v7141_v26, %v31623_v6  ;;  %v9137_v30 = vadd.f32 %v27789_v23, %v22334_v40  ;;  %v6760_v18 = vadd.f32 %v27789_v23, %v6759_v13  ;;  %v9128_v8 = vpop.f32.mrb[113].mxu1  ;;  %v22147_v50 = vpop.f32.mrb[114].mxu0 }
 0x3d4   : > { %31625 = vst [vmem:[#allocation115_spill] sm:$0xff] %v27967_v59  ;;  %v27975_v20 = vmax.bf16 %v7140_v55, %v31628_v54  ;;  %v9129_v47 = vadd.f32 %v27789_v23, %v9128_v8  ;;  %v6771_v26 = vadd.f32 %v27789_v23, %v22147_v50  ;;  %v22335_v7 = vpop.f32.mrb[114].mxu1  ;;  %v6762_v37 = vpop.f32.mrb[115].mxu0  ;;  %v7032_v13 = vmax.f32 %v6768_v31, 0.0  ;;  %v31630_v8 = vld [vmem:[#allocation38_spill] sm:$0xff]  ;;  %v31631_v50 = vld [vmem:[#allocation24_spill] sm:$0xff] }
 0x3d5   : > { %31624 = vst [vmem:[#allocation123_spill] sm:$0xff] %v27965_v2  ;;  %22519 = vmatpush3.bf16.msra.mxu0 %v23660_v25  ;;  %v9449_v42 = vmax.f32 %v9137_v30, 0.0  ;;  %v9140_v6 = vadd.f32 %v27789_v23, %v22335_v7  ;;  %v6763_v25 = vadd.f32 %v27789_v23, %v6762_v37  ;;  %v9131_v40 = vpop.f32.mrb[115].mxu1  ;;  %v31632_v58 = vmax.bf16 %v31630_v8, %v31631_v50  ;;  %v31633_v55 = vld [vmem:[#allocation44_spill] sm:$0xff]  ;;  %v31634_v30 = vld [vmem:[#allocation19_spill] sm:$0xff]  ;;  %v31643_v8 = vld [vmem:[#allocation154_spill] sm:$0xff] }
 0x3d6   : > { %31629 = vst [vmem:[#allocation16_spill] sm:$0xff] %v27975_v20  ;;  %22520 = vmatprep.subr.bf16.mxu0 %v23661_v41  ;;  %v9447_v49 = vmax.f32 %v9129_v47, 0.0  ;;  %v7033_v43 = vmax.f32 %v6771_v26, 0.0  ;;  %v9132_v54 = vadd.f32 %v27789_v23, %v9131_v40  ;;  %v7030_v46 = vmax.f32 %v6760_v18, 0.0  ;;  %v23663_v31 = vld [vmem:[%s30774_s3 + $0x1a0] sm:$0xff]   ;;  %v31638_v18 = vld [vmem:[#allocation152_spill] sm:$0xff] }
 0x3d7   : > { %v9450_v36 = vmax.f32 %v9140_v6, 0.0  ;;  %v7031_v62 = vmax.f32 %v6763_v25, 0.0  ;;  %v31635_v5 = vmax.bf16 %v31633_v55, %v31634_v30 }
 0x3d8   : > { %22513 = vmatmul.mubr.bf16.gmra.mrb[140].mxu0 %v31632_v58  ;;  %v7143_v7 = vpack.c.bf16 %v7033_v43, %v7032_v13  ;;  %v9448_v37 = vmax.f32 %v9132_v54, 0.0  ;;  %v31637_v58 = vld [vmem:[#allocation161_spill] sm:$0xff]  ;;  %v31642_v54 = vld [vmem:[#allocation163_spill] sm:$0xff] }
 0x3d9   : > { %22521 = vmatpush3.bf16.msra.mxu0 %v23661_v41  ;;  %22532 = vmatprep.mubr.bf16.mxu0 %v31635_v5  ;;  %v27998_v47 = vpack.c.bf16 %v9450_v36, %v9449_v42  ;;  %v7142_v26 = vpack.c.bf16 %v7031_v62, %v7030_v46  ;;  %v22150_v40 = vpop.f32.mrb[116].mxu0  ;;  %v31639_v6 = vmax.bf16 %v31637_v58, %v31638_v18  ;;  %v23664_v58 = vld [vmem:[%s30774_s3 + $0x1a8] sm:$0xff]  }
 0x3da   : > { %22522 = vmatprep.subr.bf16.mxu0 %v23662_v14  ;;  %v28005_v41 = vpack.c.bf16 %v9448_v37, %v9447_v49  ;;  %v6784_v5 = vadd.f32 %v27789_v23, %v22150_v40  ;;  %v22338_v55 = vpop.f32.mrb[116].mxu1  ;;  %v6775_v13 = vpop.f32.mrb[117].mxu0  ;;  %v31644_v36 = vmax.bf16 %v31642_v54, %v31643_v8 }
 0x3db   : > { %31636 = vst [vmem:[#allocation125_spill] sm:$0xff] %v27998_v47  ;;  %v28003_v25 = vmax.bf16 %v7143_v7, %v31639_v6  ;;  %v9153_v62 = vadd.f32 %v27789_v23, %v22338_v55  ;;  %v6776_v46 = vadd.f32 %v27789_v23, %v6775_v13  ;;  %v9144_v50 = vpop.f32.mrb[117].mxu1  ;;  %v22151_v49 = vpop.f32.mrb[118].mxu0 }
 0x3dc   : > { %31641 = vst [vmem:[#allocation127_spill] sm:$0xff] %v28005_v41  ;;  %v28013_v42 = vmax.bf16 %v7142_v26, %v31644_v36  ;;  %v9145_v30 = vadd.f32 %v27789_v23, %v9144_v50  ;;  %v6787_v7 = vadd.f32 %v27789_v23, %v22151_v49  ;;  %v22339_v37 = vpop.f32.mrb[118].mxu1  ;;  %v6778_v40 = vpop.f32.mrb[119].mxu0  ;;  %v7036_v13 = vmax.f32 %v6784_v5, 0.0  ;;  %v31646_v5 = vld [vmem:[#allocation165_spill] sm:$0xff] }
 0x3dd   : > { %31640 = vst [vmem:[#allocation117_spill] sm:$0xff] %v28003_v25  ;;  %22523 = vmatpush3.bf16.msra.mxu0 %v23662_v14  ;;  %v9453_v18 = vmax.f32 %v9153_v62, 0.0  ;;  %v9156_v6 = vadd.f32 %v27789_v23, %v22339_v37  ;;  %v6779_v14 = vadd.f32 %v27789_v23, %v6778_v40  ;;  %v9147_v55 = vpop.f32.mrb[119].mxu1  ;;  %v7034_v50 = vmax.f32 %v6776_v46, 0.0  ;;  %v23665_v62 = vld [vmem:[%s30774_s3 + $0x1b0] sm:$0xff]  }
 0x3de   : > { %22524 = vmatprep.subr.bf16.mxu0 %v23663_v31  ;;  %v9451_v54 = vmax.f32 %v9145_v30, 0.0  ;;  %v7037_v8 = vmax.f32 %v6787_v7, 0.0  ;;  %v9148_v36 = vadd.f32 %v27789_v23, %v9147_v55  ;;  %v31647_v30 = vld [vmem:[#allocation156_spill] sm:$0xff] }
 0x3df   : > { %v9454_v49 = vmax.f32 %v9156_v6, 0.0  ;;  %v7035_v43 = vmax.f32 %v6779_v14, 0.0  ;;  %v31648_v7 = vmax.bf16 %v31646_v5, %v31647_v30  ;;  %v23666_v30 = vld [vmem:[%s30774_s3 + $0x1b8] sm:$0xff]  }
 0x3e0   : > { %v7145_v4 = vpack.c.bf16 %v7037_v8, %v7036_v13  ;;  %v9452_v47 = vmax.f32 %v9148_v36, 0.0  ;;  %v31650_v13 = vld [vmem:[#allocation167_spill] sm:$0xff]  ;;  %v31651_v8 = vld [vmem:[#allocation158_spill] sm:$0xff] }
 0x3e1   : > { %22525 = vmatpush3.bf16.msra.mxu0 %v23663_v31  ;;  %v28030_v37 = vpack.c.bf16 %v9454_v49, %v9453_v18  ;;  %v7144_v40 = vpack.c.bf16 %v7035_v43, %v7034_v50  ;;  %v22154_v26 = vpop.f32.mrb[120].mxu0  ;;  %v31652_v18 = vmax.bf16 %v31650_v13, %v31651_v8 }
 0x3e2   : > { %22526 = vmatprep.subr.bf16.mxu0 %v23664_v58  ;;  %v28035_v60 = vmax.bf16 %v7145_v4, %v31648_v7  ;;  %v28037_v46 = vpack.c.bf16 %v9452_v47, %v9451_v54  ;;  %v6800_v31 = vadd.f32 %v27789_v23, %v22154_v26  ;;  %v22342_v6 = vpop.f32.mrb[120].mxu1  ;;  %v6791_v14 = vpop.f32.mrb[121].mxu0 }
 0x3e3   : > { %31645 = vst [vmem:[#allocation119_spill] sm:$0xff] %v28030_v37  ;;  %v28045_v36 = vmax.bf16 %v7144_v40, %v31652_v18  ;;  %v9169_v43 = vadd.f32 %v27789_v23, %v22342_v6  ;;  %v6792_v50 = vadd.f32 %v27789_v23, %v6791_v14  ;;  %v9160_v4 = vpop.f32.mrb[121].mxu1  ;;  %v22155_v47 = vpop.f32.mrb[122].mxu0 }
 0x3e4   : > { %31649 = vst [vmem:[#allocation14_spill] sm:$0xff] %v28037_v46  ;;  %v9161_v54 = vadd.f32 %v27789_v23, %v9160_v4  ;;  %v6803_v26 = vadd.f32 %v27789_v23, %v22155_v47  ;;  %v22343_v49 = vpop.f32.mrb[122].mxu1  ;;  %v6794_v5 = vpop.f32.mrb[123].mxu0  ;;  %v7040_v13 = vmax.f32 %v6800_v31, 0.0  ;;  %v31654_v31 = vld [vmem:[#allocation168_spill] sm:$0xff] }
 0x3e5   : > { %22527 = vmatpush3.bf16.msra.mxu0 %v23664_v58  ;;  %v9457_v7 = vmax.f32 %v9169_v43, 0.0  ;;  %v9172_v6 = vadd.f32 %v27789_v23, %v22343_v49  ;;  %v6795_v58 = vadd.f32 %v27789_v23, %v6794_v5  ;;  %v9163_v14 = vpop.f32.mrb[123].mxu1  ;;  %v7038_v47 = vmax.f32 %v6792_v50, 0.0  ;;  %v23667_v43 = vld [vmem:[%s30774_s3 + $0x1c0] sm:$0xff]  }
 0x3e6   : > { %22528 = vmatprep.subr.bf16.mxu0 %v23665_v62  ;;  %v9455_v8 = vmax.f32 %v9161_v54, 0.0  ;;  %v7041_v18 = vmax.f32 %v6803_v26, 0.0  ;;  %v9164_v4 = vadd.f32 %v27789_v23, %v9163_v14  ;;  %v31655_v54 = vld [vmem:[#allocation160_spill] sm:$0xff]  ;;  %v31662_v14 = vld [vmem:[#allocation17_spill] sm:$0xff] }
 0x3e7   : > { %v9458_v55 = vmax.f32 %v9172_v6, 0.0  ;;  %v7039_v21 = vmax.f32 %v6795_v58, 0.0  ;;  %v31656_v26 = vmax.bf16 %v31654_v31, %v31655_v54  ;;  %v23668_v54 = vld [vmem:[%s30774_s3 + $0x1c8] sm:$0xff]  }
 0x3e8   : > { %v7147_v37 = vpack.c.bf16 %v7041_v18, %v7040_v13  ;;  %v9456_v41 = vmax.f32 %v9164_v4, 0.0  ;;  %v31658_v13 = vld [vmem:[#allocation169_spill] sm:$0xff]  ;;  %v31659_v18 = vld [vmem:[#allocation162_spill] sm:$0xff] }
 0x3e9   : > { %22529 = vmatpush3.bf16.msra.mxu0 %v23665_v62  ;;  %v28062_v49 = vpack.c.bf16 %v9458_v55, %v9457_v7  ;;  %v7146_v5 = vpack.c.bf16 %v7039_v21, %v7038_v47  ;;  %v22158_v40 = vpop.f32.mrb[124].mxu0  ;;  %v31660_v55 = vmax.bf16 %v31658_v13, %v31659_v18 }
 0x3ea   : > { %22530 = vmatprep.subr.bf16.mxu0 %v23666_v30  ;;  %v28067_v19 = vmax.bf16 %v7147_v37, %v31656_v26  ;;  %v28069_v50 = vpack.c.bf16 %v9456_v41, %v9455_v8  ;;  %v6816_v62 = vadd.f32 %v27789_v23, %v22158_v40  ;;  %v22346_v6 = vpop.f32.mrb[124].mxu1  ;;  %v6807_v58 = vpop.f32.mrb[125].mxu0 }
 0x3eb   : > { %31653 = vst [vmem:[#allocation10_spill] sm:$0xff] %v28062_v49  ;;  %v28077_v7 = vmax.bf16 %v7146_v5, %v31660_v55  ;;  %v9185_v21 = vadd.f32 %v27789_v23, %v22346_v6  ;;  %v6808_v4 = vadd.f32 %v27789_v23, %v6807_v58  ;;  %v9176_v37 = vpop.f32.mrb[125].mxu1  ;;  %v22159_v41 = vpop.f32.mrb[126].mxu0  ;;  %v31665_v5 = vld [vmem:[#allocation23_spill] sm:$0xff] }
 0x3ec   : > { %31657 = vst [vmem:[#allocation28_spill] sm:$0xff] %v28067_v19  ;;  %v9177_v8 = vadd.f32 %v27789_v23, %v9176_v37  ;;  %v6819_v40 = vadd.f32 %v27789_v23, %v22159_v41  ;;  %v22347_v47 = vpop.f32.mrb[126].mxu1  ;;  %v6810_v31 = vpop.f32.mrb[127].mxu0  ;;  %v7044_v13 = vmax.f32 %v6816_v62, 0.0  ;;  %v31661_v41 = vld [vmem:[#allocation42_spill] sm:$0xff]  ;;  %v23669_v62 = vld [vmem:[%s30774_s3 + $0x1d0] sm:$0xff]  }
 0x3ed   : > { %22531 = vmatpush3.bf16.msra.mxu0 %v23666_v30  ;;  %v9461_v26 = vmax.f32 %v9185_v21, 0.0  ;;  %v9188_v6 = vadd.f32 %v27789_v23, %v22347_v47  ;;  %v6811_v30 = vadd.f32 %v27789_v23, %v6810_v31  ;;  %v9179_v58 = vpop.f32.mrb[127].mxu1  ;;  %v31663_v17 = vmax.bf16 %v31661_v41, %v31662_v14 }
 0x3ee   : > { %22540 = vmatprep.subr.bf16.mxu0 %v23667_v43  ;;  %v9459_v18 = vmax.f32 %v9177_v8, 0.0  ;;  %v7045_v55 = vmax.f32 %v6819_v40, 0.0  ;;  %v9180_v37 = vadd.f32 %v27789_v23, %v9179_v58  ;;  %v7042_v49 = vmax.f32 %v6808_v4, 0.0  ;;  %v31669_v4 = vld [vmem:[#allocation164_spill] sm:$0xff] }
 0x3ef   : > { %v9462_v46 = vmax.f32 %v9188_v6, 0.0  ;;  %v7043_v59 = vmax.f32 %v6811_v30, 0.0  ;;  %v31666_v21 = vmax.bf16 %v31664_v0, %v31665_v5 }
 0x3f0   : > { %22533 = vmatmul.mubr.bf16.vlgmr.msra.gmra.mrb[136].mxu0 %v31663_v17  ;;  %v7149_v47 = vpack.c.bf16 %v7045_v55, %v7044_v13  ;;  %v9460_v31 = vmax.f32 %v9180_v37, 0.0  ;;  %v31668_v17 = vld [vmem:[#allocation170_spill] sm:$0xff]  ;;  %v31672_v55 = vld [vmem:[#allocation171_spill] sm:$0xff] }
 0x3f1   : > { %22536 = vmatprep.mubr.bf16.mxu0 %v31666_v21  ;;  %22541 = vmatpush3.bf16.msra.mxu0 %v23667_v43  ;;  %v28100_v8 = vpack.c.bf16 %v9462_v46, %v9461_v26  ;;  %v7148_v40 = vpack.c.bf16 %v7043_v59, %v7042_v49  ;;  %v22162_v14 = vpop.f32.mrb[128].mxu0  ;;  %v31670_v6 = vmax.bf16 %v31668_v17, %v31669_v4  ;;  %v31673_v37 = vld [vmem:[#allocation166_spill] sm:$0xff] }
 0x3f2   : > { %22542 = vmatprep.subr.bf16.mxu0 %v23668_v54  ;;  %v28107_v58 = vpack.c.bf16 %v9460_v31, %v9459_v18  ;;  %v6832_v0 = vadd.f32 %v27789_v23, %v22162_v14  ;;  %v22350_v43 = vpop.f32.mrb[128].mxu1  ;;  %v6823_v5 = vpop.f32.mrb[129].mxu0  ;;  %v31674_v46 = vmax.bf16 %v31672_v55, %v31673_v37  ;;  %v23670_v17 = vld [vmem:[%s30774_s3 + $0x1d8] sm:$0xff]  }
 0x3f3   : > { %31667 = vst [vmem:[#allocation18_spill] sm:$0xff] %v28100_v8  ;;  %v28105_v30 = vmax.bf16 %v7149_v47, %v31670_v6  ;;  %v9201_v59 = vadd.f32 %v27789_v23, %v22350_v43  ;;  %v6824_v49 = vadd.f32 %v27789_v23, %v6823_v5  ;;  %v9192_v41 = vpop.f32.mrb[129].mxu1  ;;  %v22163_v18 = vpop.f32.mrb[130].mxu0 }
 0x3f4   : > { %v28115_v26 = vmax.bf16 %v7148_v40, %v31674_v46  ;;  %v9193_v21 = vadd.f32 %v27789_v23, %v9192_v41  ;;  %v6835_v47 = vadd.f32 %v27789_v23, %v22163_v18  ;;  %v22351_v31 = vpop.f32.mrb[130].mxu1  ;;  %v6826_v14 = vpop.f32.mrb[131].mxu0  ;;  %v7048_v5 = vmax.f32 %v6832_v0, 0.0  ;;  %v31675_v41 = vld [vmem:[#allocation46_spill] sm:$0xff]  ;;  %v31676_v18 = vld [vmem:[#allocation21_spill] sm:$0xff]  ;;  %v31678_v40 = vld [vmem:[#allocation52_spill] sm:$0xff] }
 0x3f5   : > { %31671 = vst [vmem:[#allocation129_spill] sm:$0xff] %v28105_v30  ;;  %22543 = vmatpush3.bf16.msra.mxu0 %v23668_v54  ;;  %v9465_v4 = vmax.f32 %v9201_v59, 0.0  ;;  %v9204_v6 = vadd.f32 %v27789_v23, %v22351_v31  ;;  %v6827_v54 = vadd.f32 %v27789_v23, %v6826_v14  ;;  %v9195_v43 = vpop.f32.mrb[131].mxu1  ;;  %v31677_v13 = vmax.bf16 %v31675_v41, %v31676_v18  ;;  %v31679_v59 = vld [vmem:[#allocation27_spill] sm:$0xff] }
 0x3f6   : > { %22544 = vmatprep.subr.bf16.mxu0 %v23669_v62  ;;  %v9463_v55 = vmax.f32 %v9193_v21, 0.0  ;;  %v7049_v37 = vmax.f32 %v6835_v47, 0.0  ;;  %v9196_v46 = vadd.f32 %v27789_v23, %v9195_v43  ;;  %v7046_v2 = vmax.f32 %v6824_v49, 0.0  ;;  %v23671_v0 = vld [vmem:[%s30774_s3 + $0x1e0] sm:$0xff]  }
 0x3f7   : > { %v9466_v8 = vmax.f32 %v9204_v6, 0.0  ;;  %v7047_v39 = vmax.f32 %v6827_v54, 0.0  ;;  %v31680_v20 = vmax.bf16 %v31678_v40, %v31679_v59  ;;  %v31683_v49 = vld [vmem:[#allocation6_spill] sm:$0xff]  ;;  %v31686_v41 = vld [vmem:[#allocation7_spill] sm:$0xff] }
 0x3f8   : > { %22537 = vmatmul.mubr.bf16.gmra.mrb[140].mxu0 %v31677_v13  ;;  %v7151_v31 = vpack.c.bf16 %v7049_v37, %v7048_v5  ;;  %v9464_v14 = vmax.f32 %v9196_v46, 0.0  ;;  %v31682_v13 = vld [vmem:[#allocation172_spill] sm:$0xff]  ;;  %v31685_v46 = vld [vmem:[#allocation173_spill] sm:$0xff] }
 0x3f9   : > { %22545 = vmatpush3.bf16.msra.mxu0 %v23669_v62  ;;  %22556 = vmatprep.mubr.bf16.mxu0 %v31680_v20  ;;  %v28138_v21 = vpack.c.bf16 %v9466_v8, %v9465_v4  ;;  %v7150_v47 = vpack.c.bf16 %v7047_v39, %v7046_v2  ;;  %v22166_v43 = vpop.f32.mrb[132].mxu0  ;;  %v31684_v6 = vmax.bf16 %v31682_v13, %v31683_v49  ;;  %v23672_v13 = vld [vmem:[%s30774_s3 + $0x1e8] sm:$0xff]  }
 0x3fa   : > { %22546 = vmatprep.subr.bf16.mxu0 %v23670_v17  ;;  %v28145_v62 = vpack.c.bf16 %v9464_v14, %v9463_v55  ;;  %v6848_v20 = vadd.f32 %v27789_v23, %v22166_v43  ;;  %v22354_v40 = vpop.f32.mrb[132].mxu1  ;;  %v6839_v5 = vpop.f32.mrb[133].mxu0  ;;  %v31687_v8 = vmax.bf16 %v31685_v46, %v31686_v41 }
 0x3fb   : > { %31681 = vst [vmem:[#allocation121_spill] sm:$0xff] %v28138_v21  ;;  %v28143_v54 = vmax.bf16 %v7151_v31, %v31684_v6  ;;  %v9217_v39 = vadd.f32 %v27789_v23, %v22354_v40  ;;  %v6840_v2 = vadd.f32 %v27789_v23, %v6839_v5  ;;  %v9208_v18 = vpop.f32.mrb[133].mxu1  ;;  %v22167_v55 = vpop.f32.mrb[134].mxu0 }
 0x3fc   : > { %v28153_v4 = vmax.bf16 %v7150_v47, %v31687_v8  ;;  %v9209_v59 = vadd.f32 %v27789_v23, %v9208_v18  ;;  %v6851_v31 = vadd.f32 %v27789_v23, %v22167_v55  ;;  %v22355_v14 = vpop.f32.mrb[134].mxu1  ;;  %v6842_v43 = vpop.f32.mrb[135].mxu0  ;;  %v7052_v5 = vmax.f32 %v6848_v20, 0.0  ;;  %v31688_v47 = vld [vmem:[#allocation174_spill] sm:$0xff]  ;;  %v31689_v20 = vld [vmem:[#allocation8_spill] sm:$0xff] }
 0x3fd   : > { %22547 = vmatpush3.bf16.msra.mxu0 %v23670_v17  ;;  %v9469_v49 = vmax.f32 %v9217_v39, 0.0  ;;  %v9220_v6 = vadd.f32 %v27789_v23, %v22355_v14  ;;  %v6843_v17 = vadd.f32 %v27789_v23, %v6842_v43  ;;  %v9211_v40 = vpop.f32.mrb[135].mxu1  ;;  %v7050_v18 = vmax.f32 %v6840_v2, 0.0  ;;  %v23673_v39 = vld [vmem:[%s30774_s3 + $0x1f0] sm:$0xff]  }
 0x3fe   : > { %22548 = vmatprep.subr.bf16.mxu0 %v23671_v0  ;;  %v9467_v46 = vmax.f32 %v9209_v59, 0.0  ;;  %v7053_v41 = vmax.f32 %v6851_v31, 0.0  ;;  %v9212_v8 = vadd.f32 %v27789_v23, %v9211_v40  ;;  %v31690_v59 = vmax.bf16 %v31688_v47, %v31689_v20 }
 0x3ff   : > { %v9470_v55 = vmax.f32 %v9220_v6, 0.0  ;;  %v7051_v37 = vmax.f32 %v6843_v17, 0.0  ;;  %v31691_v6 = vld [vmem:[#allocation175_spill] sm:$0xff]  ;;  %v31692_v17 = vld [vmem:[#allocation9_spill] sm:$0xff] }
 0x400   : > { %v7153_v25 = vpack.c.bf16 %v7053_v41, %v7052_v5  ;;  %v9468_v21 = vmax.f32 %v9212_v8, 0.0  ;;  %v31693_v5 = vmax.bf16 %v31691_v6, %v31692_v17 }
 0x401   : > { %22549 = vmatpush3.bf16.msra.mxu0 %v23671_v0  ;;  %v28170_v14 = vpack.c.bf16 %v9470_v55, %v9469_v49  ;;  %v7152_v43 = vpack.c.bf16 %v7051_v37, %v7050_v18  ;;  %v31698_v0 = vld [vmem:[#allocation54_spill] sm:$0xff] }
 0x402   : > { %22550 = vmatprep.subr.bf16.mxu0 %v23672_v13  ;;  %v28175_v31 = vmax.bf16 %v7153_v25, %v31690_v59  ;;  %v28177_v40 = vpack.c.bf16 %v9468_v21, %v9467_v46  ;;  %v22358_v2 = vpop.f32.mrb[136].mxu1  ;;  %v23674_v25 = vld [vmem:[%s30774_s3 + $0x1f8] sm:$0xff]   ;;  %v31699_v21 = vld [vmem:[#allocation31_spill] sm:$0xff] }
 0x403   : > { %v28184_v41 = vmax.bf16 %v7152_v43, %v31693_v5  ;;  %v9233_v49 = vadd.f32 %v27789_v23, %v22358_v2  ;;  %v9224_v8 = vpop.f32.mrb[137].mxu1  ;;  %v23675_v2 = vld [vmem:[%s30774_s3 + $0x200] sm:$0xff]   ;;  %v31700_v19 = vmax.bf16 %v31698_v0, %v31699_v21  ;;  %v23678_v21 = vld [vmem:[%s30774_s3 + $0x218] sm:$0xff]  }
 0x404   : > { %v9225_v37 = vadd.f32 %v27789_v23, %v9224_v8  ;;  %v22359_v47 = vpop.f32.mrb[138].mxu1 }
 0x405   : > { %22551 = vmatpush3.bf16.msra.mxu0 %v23672_v13  ;;  %v9473_v46 = vmax.f32 %v9233_v49, 0.0  ;;  %v9236_v18 = vadd.f32 %v27789_v23, %v22359_v47  ;;  %v9227_v55 = vpop.f32.mrb[139].mxu1 }
 0x406   : > { %22552 = vmatprep.subr.bf16.mxu0 %v23673_v39  ;;  %v9471_v43 = vmax.f32 %v9225_v37, 0.0  ;;  %v9228_v20 = vadd.f32 %v27789_v23, %v9227_v55 }
 0x407   : > { %v9474_v59 = vmax.f32 %v9236_v18, 0.0  ;;  %v23676_v18 = vld [vmem:[%s30774_s3 + $0x208] sm:$0xff]  }
 0x408   : > { %v9472_v13 = vmax.f32 %v9228_v20, 0.0 }
 0x409   : > { %22553 = vmatpush3.bf16.msra.mxu0 %v23673_v39  ;;  %v28198_v6 = vpack.c.bf16 %v9474_v59, %v9473_v46 }
 0x40a   : > { %22554 = vmatprep.subr.bf16.mxu0 %v23674_v25  ;;  %v28200_v17 = vpack.c.bf16 %v9472_v13, %v9471_v43  ;;  %v22362_v5 = vpop.f32.mrb[140].mxu1 }
 0x40b   : > { %31694 = vst [vmem:[#allocation131_spill] sm:$0xff] %v28198_v6  ;;  %v9249_v8 = vadd.f32 %v27789_v23, %v22362_v5  ;;  %v9240_v37 = vpop.f32.mrb[141].mxu1  ;;  %v31695_v5 = vld [vmem:[#allocation50_spill] sm:$0xff] }
 0x40c   : > { %v9241_v39 = vadd.f32 %v27789_v23, %v9240_v37  ;;  %v22363_v47 = vpop.f32.mrb[142].mxu1 }
 0x40d   : > { %22555 = vmatpush3.bf16.msra.mxu0 %v23674_v25  ;;  %v9477_v55 = vmax.f32 %v9249_v8, 0.0  ;;  %v9252_v43 = vadd.f32 %v27789_v23, %v22363_v47  ;;  %v9243_v20 = vpop.f32.mrb[143].mxu1  ;;  %v31696_v25 = vld [vmem:[#allocation25_spill] sm:$0xff] }
 0x40e   : > { %22564 = vmatprep.subr.bf16.mxu0 %v23675_v2  ;;  %v9475_v59 = vmax.f32 %v9241_v39, 0.0  ;;  %v9244_v13 = vadd.f32 %v27789_v23, %v9243_v20  ;;  %v31697_v49 = vmax.bf16 %v31695_v5, %v31696_v25  ;;  %v23677_v8 = vld [vmem:[%s30774_s3 + $0x210] sm:$0xff]  }
 0x40f   : > { %v9478_v37 = vmax.f32 %v9252_v43, 0.0 }
 0x410   : > { %22557 = vmatmul.mubr.bf16.vlgmr.msra.gmra.mrb[136].mxu0 %v31697_v49  ;;  %v9476_v6 = vmax.f32 %v9244_v13, 0.0  ;;  %v31704_v49 = vld [vmem:[#allocation35_spill] sm:$0xff] }
 0x411   : > { %22560 = vmatprep.mubr.bf16.mxu0 %v31700_v19  ;;  %22565 = vmatpush3.bf16.msra.mxu0 %v23675_v2  ;;  %v28222_v47 = vpack.c.bf16 %v9478_v37, %v9477_v55  ;;  %v31701_v37 = vld [vmem:[#allocation43_spill] sm:$0xff]  ;;  %v31705_v46 = vmax.bf16 %v27136_v51, %v31704_v49 }
 0x412   : > { %22566 = vmatprep.subr.bf16.mxu0 %v23676_v18  ;;  %v28224_v39 = vpack.c.bf16 %v9476_v6, %v9475_v59  ;;  %v22366_v20 = vpop.f32.mrb[144].mxu1  ;;  %v23680_v49 = vld [vmem:[%s30774_s3 + $0x228] sm:$0xff]  }
 0x413   : > { %v9265_v43 = vadd.f32 %v27789_v23, %v22366_v20  ;;  %v9256_v5 = vpop.f32.mrb[145].mxu1 }
 0x414   : > { %v9257_v19 = vadd.f32 %v27789_v23, %v9256_v5  ;;  %v22367_v0 = vpop.f32.mrb[146].mxu1  ;;  %v9781_v2 = vmax.bf16 %v28224_v39, %v28115_v26  ;;  %v23816_v26 = vld [vmem:[%s30774_s3 + $0x620] sm:$0xff]   ;;  %v23820_v39 = vld [vmem:[%s30774_s3 + $0x628] sm:$0xff]  }
 0x415   : > { %22567 = vmatpush3.bf16.msra.mxu0 %v23676_v18  ;;  %v9481_v6 = vmax.f32 %v9265_v43, 0.0  ;;  %v9268_v55 = vadd.f32 %v27789_v23, %v22367_v0  ;;  %v9259_v59 = vpop.f32.mrb[147].mxu1  ;;  %v31702_v18 = vld [vmem:[#allocation29_spill] sm:$0xff]  ;;  %v23679_v43 = vld [vmem:[%s30774_s3 + $0x220] sm:$0xff]  }
 0x416   : > { %22568 = vmatprep.subr.bf16.mxu0 %v23677_v8  ;;  %v9479_v13 = vmax.f32 %v9257_v19, 0.0  ;;  %v9260_v25 = vadd.f32 %v27789_v23, %v9259_v59  ;;  %v31703_v20 = vmax.bf16 %v31701_v37, %v31702_v18 }
 0x417   : > { %v9482_v5 = vmax.f32 %v9268_v55, 0.0 }
 0x418   : > { %22561 = vmatmul.mubr.bf16.gmra.mrb[140].mxu0 %v31703_v20  ;;  %v9480_v30 = vmax.f32 %v9260_v25, 0.0 }
 0x419   : > { %22569 = vmatpush3.bf16.msra.mxu0 %v23677_v8  ;;  %22580 = vmatprep.mubr.bf16.mxu0 %v31705_v46  ;;  %v28246_v0 = vpack.c.bf16 %v9482_v5, %v9481_v6 }
 0x41a   : > { %22570 = vmatprep.subr.bf16.mxu0 %v23678_v21  ;;  %v28248_v19 = vpack.c.bf16 %v9480_v30, %v9479_v13  ;;  %v22370_v59 = vpop.f32.mrb[148].mxu1 }
 0x41b   : > { %v9281_v8 = vadd.f32 %v27789_v23, %v22370_v59  ;;  %v9272_v55 = vpop.f32.mrb[149].mxu1 }
 0x41c   : > { %v9273_v51 = vadd.f32 %v27789_v23, %v9272_v55  ;;  %v22371_v46 = vpop.f32.mrb[150].mxu1  ;;  %v9783_v30 = vmax.bf16 %v28248_v19, %v28153_v4  ;;  %v23681_v55 = vld [vmem:[%s30774_s3 + $0x230] sm:$0xff]   ;;  %v23822_v4 = vld [vmem:[%s30774_s3 + $0x638] sm:$0xff]  }
 0x41d   : > { %22571 = vmatpush3.bf16.msra.mxu0 %v23678_v21  ;;  %v9485_v6 = vmax.f32 %v9281_v8, 0.0  ;;  %v9284_v13 = vadd.f32 %v27789_v23, %v22371_v46  ;;  %v9275_v25 = vpop.f32.mrb[151].mxu1  ;;  %v24626_v21 = vld [vmem:[%s30773_s2] ss:$0 sm:$0xff]  ;;  %v23835_v19 = vld [vmem:[%s30776_s5 + $0xc08] ss:$16 sps:$4 sm:$0xff]  }
 0x41e   : > { %22572 = vmatprep.subr.bf16.mxu0 %v23679_v43  ;;  %v9483_v18 = vmax.f32 %v9273_v51, 0.0  ;;  %v9276_v20 = vadd.f32 %v24626_v21, %v9275_v25  ;;  %v23682_v51 = vld [vmem:[%s30774_s3 + $0x238] sm:$0xff]   ;;  %v23683_v46 = vld [vmem:[%s30774_s3 + $0x240] sm:$0xff]  }
 0x41f   : > { %v9486_v5 = vmax.f32 %v9284_v13, 0.0  ;;  %v31707_v13 = vld [vmem:[#allocation33_spill] sm:$0xff] }
 0x420   : > { %v9484_v59 = vmax.f32 %v9276_v20, 0.0  ;;  %v23685_v20 = vld [vmem:[%s30774_s3 + $0x250] sm:$0xff]  }
 0x421   : > { %22573 = vmatpush3.bf16.msra.mxu0 %v23679_v43  ;;  %v28266_v37 = vpack.c.bf16 %v9486_v5, %v9485_v6  ;;  %v31706_v6 = vld [vmem:[#allocation45_spill] sm:$0xff] }
 0x422   : > { %22574 = vmatprep.subr.bf16.mxu0 %v23680_v49  ;;  %v28268_v8 = vpack.c.bf16 %v9484_v59, %v9483_v18  ;;  %v31708_v25 = vmax.bf16 %v31706_v6, %v31707_v13  ;;  %v31709_v18 = vld [vmem:[#allocation39_spill] sm:$0xff]  ;;  %v23686_v5 = vld [vmem:[%s30774_s3 + $0x258] sm:$0xff]   ;;  %v23689_v6 = vld [vmem:[%s30774_s3 + $0x270] sm:$0xff]  }
 0x423   : > { %v9786_v23 = vmax.bf16 %v28266_v37, %v28175_v31  ;;  %v31710_v21 = vmax.bf16 %v27169_v11, %v31709_v18  ;;  %v31711_v59 = vld [vmem:[#allocation47_spill] sm:$0xff]  ;;  %v31714_v11 = vmax.bf16 %v27203_v53, %v27076_v61  ;;  %v23690_v61 = vld [vmem:[%s30774_s3 + $0x278] sm:$0xff]  }
 0x424   : > { %v9785_v43 = vmax.bf16 %v28268_v8, %v28184_v41  ;;  %v23691_v53 = vld [vmem:[%s30774_s3 + $0x280] sm:$0xff]   ;;  %v23692_v13 = vld [vmem:[%s30774_s3 + $0x288] sm:$0xff]   ;;  %v31716_v18 = vld [vmem:[#allocation41_spill] sm:$0xff] }
 0x425   : > { %22575 = vmatpush3.bf16.msra.mxu0 %v23680_v49  ;;  %v23684_v49 = vld [vmem:[%s30774_s3 + $0x248] sm:$0xff]  }
 0x426   : > { %22576 = vmatprep.subr.bf16.mxu0 %v23681_v55  ;;  %v23846_v41 = vld [vmem:[%s30776_s5 + $0xc6c] ss:$16 sps:$4 sm:$0xff]   ;;  %v23847_v31 = vld [vmem:[%s30776_s5 + $0xc88] ss:$16 sps:$4 sm:$0xff]  }
 0x427   : > { %v23849_v8 = vld [vmem:[%s30776_s5 + $0xc8c] ss:$16 sps:$4 sm:$0xff]  }
 0x428   : > { %v23852_v37 = vld [vmem:[%s30776_s5 + $0xcac] ss:$16 sps:$4 sm:$0xff]  }
 0x429   : > { %22577 = vmatpush3.bf16.msra.mxu0 %v23681_v55  ;;  %v31712_v55 = vld [vmem:[#allocation37_spill] sm:$0xff] }
 0x42a   : > { %22578 = vmatprep.subr.bf16.mxu0 %v23682_v51 }
 0x42d   : > { %22579 = vmatpush3.bf16.msra.mxu0 %v23682_v51  ;;  %v31713_v51 = vmax.bf16 %v31711_v59, %v31712_v55  ;;  %v23694_v59 = vld [vmem:[%s30774_s3 + $0x298] sm:$0xff]   ;;  %v31719_v55 = vmax.bf16 %v27239_v10, %v27100_v38  ;;  %v23697_v38 = vld [vmem:[%s30774_s3 + $0x2b0] sm:$0xff]   ;;  %v23699_v10 = vld [vmem:[%s30774_s3 + $0x2c0] sm:$0xff]  }
 0x42e   : > { %22588 = vmatprep.subr.bf16.mxu0 %v23683_v46 }
 0x430   : > { %22581 = vmatmul.mubr.bf16.vlgmr.msra.gmra.mrb[136].mxu0 %v31708_v25  ;;  %v31715_v25 = vld [vmem:[#allocation60_spill] sm:$0xff] }
 0x431   : > { %22584 = vmatprep.mubr.bf16.mxu0 %v31710_v21  ;;  %22589 = vmatpush3.bf16.msra.mxu0 %v23683_v46  ;;  %v23687_v46 = vld [vmem:[%s30774_s3 + $0x260] sm:$0xff]   ;;  %v31717_v21 = vmax.bf16 %v31715_v25, %v31716_v18 }
 0x432   : > { %22590 = vmatprep.subr.bf16.mxu0 %v23684_v49  ;;  %v31726_v25 = vld [vmem:[#allocation58_spill] sm:$0xff] }
 0x433   : > { %v23703_v18 = vld [vmem:[%s30774_s3 + $0x2e0] sm:$0xff]  }
 0x435   : > { %22591 = vmatpush3.bf16.msra.mxu0 %v23684_v49  ;;  %v23688_v49 = vld [vmem:[%s30774_s3 + $0x268] sm:$0xff]  }
 0x436   : > { %22592 = vmatprep.subr.bf16.mxu0 %v23685_v20 }
 0x438   : > { %22585 = vmatmul.mubr.bf16.gmra.mrb[140].mxu0 %v31713_v51  ;;  %v23696_v51 = vld [vmem:[%s30774_s3 + $0x2a8] sm:$0xff]  }
 0x439   : > { %22593 = vmatpush3.bf16.msra.mxu0 %v23685_v20  ;;  %22604 = vmatprep.mubr.bf16.mxu0 %v31714_v11  ;;  %v31718_v20 = vmax.bf16 %v27247_v57, %v27110_v29  ;;  %v31720_v29 = vmax.bf16 %v27290_v45, %v27144_v63  ;;  %v23695_v57 = vld [vmem:[%s30774_s3 + $0x2a0] sm:$0xff]   ;;  %v23698_v63 = vld [vmem:[%s30774_s3 + $0x2b8] sm:$0xff]   ;;  %v23700_v45 = vld [vmem:[%s30774_s3 + $0x2c8] sm:$0xff]  }
 0x43a   : > { %22594 = vmatprep.subr.bf16.mxu0 %v23686_v5  ;;  %v31721_v11 = vld [vmem:[#allocation56_spill] sm:$0xff] }
 0x43d   : > { %22595 = vmatpush3.bf16.msra.mxu0 %v23686_v5  ;;  %v23693_v5 = vld [vmem:[%s30774_s3 + $0x290] sm:$0xff]  }
 0x43e   : > { %22596 = vmatprep.subr.bf16.mxu0 %v23687_v46 }
 0x441   : > { %22597 = vmatpush3.bf16.msra.mxu0 %v23687_v46  ;;  %v31722_v46 = vmax.bf16 %v27281_v44, %v31721_v11  ;;  %v23712_v11 = vld [vmem:[%s30774_s3 + $0x328] sm:$0xff]  }
 0x442   : > { %22598 = vmatprep.subr.bf16.mxu0 %v23688_v49 }
 0x445   : > { %22599 = vmatpush3.bf16.msra.mxu0 %v23688_v49  ;;  %v31723_v49 = vld [vmem:[#allocation49_spill] sm:$0xff] }
 0x446   : > { %22600 = vmatprep.subr.bf16.mxu0 %v23689_v6 }
 0x449   : > { %22601 = vmatpush3.bf16.msra.mxu0 %v23689_v6  ;;  %v31724_v6 = vmax.bf16 %v27326_v16, %v31723_v49  ;;  %v31728_v16 = vmax.bf16 %v27364_v27, %v27214_v33  ;;  %v23706_v33 = vld [vmem:[%s30774_s3 + $0x2f8] sm:$0xff]   ;;  %v23707_v27 = vld [vmem:[%s30774_s3 + $0x300] sm:$0xff]   ;;  %v23716_v49 = vld [vmem:[%s30774_s3 + $0x348] sm:$0xff]  }
 0x44a   : > { %22602 = vmatprep.subr.bf16.mxu0 %v23690_v61 }
 0x44d   : > { %22603 = vmatpush3.bf16.msra.mxu0 %v23690_v61  ;;  %v23701_v61 = vld [vmem:[%s30774_s3 + $0x2d0] sm:$0xff]  }
 0x44e   : > { %22612 = vmatprep.subr.bf16.mxu0 %v23691_v53 }
 0x450   : > { %22605 = vmatmul.mubr.bf16.vlgmr.msra.gmra.mrb[136].mxu0 %v31717_v21  ;;  %v23704_v21 = vld [vmem:[%s30774_s3 + $0x2e8] sm:$0xff]  }
 0x451   : > { %22608 = vmatprep.mubr.bf16.mxu0 %v31718_v20  ;;  %22613 = vmatpush3.bf16.msra.mxu0 %v23691_v53  ;;  %v23702_v53 = vld [vmem:[%s30774_s3 + $0x2d8] sm:$0xff]   ;;  %v23705_v20 = vld [vmem:[%s30774_s3 + $0x2f0] sm:$0xff]  }
 0x452   : > { %22614 = vmatprep.subr.bf16.mxu0 %v23692_v13 }
 0x455   : > { %22615 = vmatpush3.bf16.msra.mxu0 %v23692_v13  ;;  %v31725_v13 = vld [vmem:[#allocation55_spill] sm:$0xff] }
 0x456   : > { %22616 = vmatprep.subr.bf16.mxu0 %v23693_v5  ;;  %v31727_v44 = vmax.bf16 %v31725_v13, %v31726_v25  ;;  %v31740_v13 = vld [vmem:[#allocation57_spill] sm:$0xff] }
 0x457   : > { %v31741_v25 = vmax.bf16 %v27472_v15, %v31740_v13  ;;  %v31745_v15 = vmax.bf16 %v27504_v1, %v27372_v34  ;;  %v23722_v34 = vld [vmem:[%s30774_s3 + $0x378] sm:$0xff]   ;;  %v23723_v1 = vld [vmem:[%s30774_s3 + $0x380] sm:$0xff]  }
 0x458   : > { %22609 = vmatmul.mubr.bf16.gmra.mrb[140].mxu0 %v31719_v55  ;;  %v31730_v55 = vld [vmem:[#allocation51_spill] sm:$0xff] }
 0x459   : > { %22617 = vmatpush3.bf16.msra.mxu0 %v23693_v5  ;;  %22628 = vmatprep.mubr.bf16.mxu0 %v31720_v29  ;;  %v23708_v5 = vld [vmem:[%s30774_s3 + $0x308] sm:$0xff]  }
 0x45a   : > { %22618 = vmatprep.subr.bf16.mxu0 %v23694_v59 }
 0x45d   : > { %22619 = vmatpush3.bf16.msra.mxu0 %v23694_v59  ;;  %v31729_v59 = vld [vmem:[#allocation68_spill] sm:$0xff] }
 0x45e   : > { %22620 = vmatprep.subr.bf16.mxu0 %v23695_v57  ;;  %v31731_v29 = vmax.bf16 %v31729_v59, %v31730_v55  ;;  %v23724_v59 = vld [vmem:[%s30774_s3 + $0x388] sm:$0xff]   ;;  %v31746_v55 = vld [vmem:[#allocation65_spill] sm:$0xff] }
 0x461   : > { %22621 = vmatpush3.bf16.msra.mxu0 %v23695_v57  ;;  %v31732_v57 = vmax.bf16 %v27402_v28, %v27256_v9  ;;  %v31735_v9 = vld [vmem:[#allocation64_spill] sm:$0xff] }
 0x462   : > { %22622 = vmatprep.subr.bf16.mxu0 %v23696_v51  ;;  %v31736_v28 = vmax.bf16 %v27440_v35, %v31735_v9  ;;  %v23714_v35 = vld [vmem:[%s30774_s3 + $0x338] sm:$0xff]   ;;  %v23727_v9 = vld [vmem:[%s30774_s3 + $0x3a0] sm:$0xff]  }
 0x465   : > { %22623 = vmatpush3.bf16.msra.mxu0 %v23696_v51  ;;  %v23709_v51 = vld [vmem:[%s30774_s3 + $0x310] sm:$0xff]  }
 0x466   : > { %22624 = vmatprep.subr.bf16.mxu0 %v23697_v38 }
 0x469   : > { %22625 = vmatpush3.bf16.msra.mxu0 %v23697_v38  ;;  %v23710_v38 = vld [vmem:[%s30774_s3 + $0x318] sm:$0xff]  }
 0x46a   : > { %22626 = vmatprep.subr.bf16.mxu0 %v23698_v63 }
 0x46d   : > { %22627 = vmatpush3.bf16.msra.mxu0 %v23698_v63  ;;  %v31733_v63 = vld [vmem:[#allocation62_spill] sm:$0xff] }
 0x46e   : > { %22636 = vmatprep.subr.bf16.mxu0 %v23699_v10 }
 0x470   : > { %22629 = vmatmul.mubr.bf16.vlgmr.msra.gmra.mrb[136].mxu0 %v31722_v46  ;;  %v23715_v46 = vld [vmem:[%s30774_s3 + $0x340] sm:$0xff]  }
 0x471   : > { %22632 = vmatprep.mubr.bf16.mxu0 %v31724_v6  ;;  %22637 = vmatpush3.bf16.msra.mxu0 %v23699_v10  ;;  %v31734_v10 = vmax.bf16 %v27395_v3, %v31733_v63  ;;  %v23713_v3 = vld [vmem:[%s30774_s3 + $0x330] sm:$0xff]   ;;  %v31737_v6 = vld [vmem:[#allocation70_spill] sm:$0xff] }
 0x472   : > { %22638 = vmatprep.subr.bf16.mxu0 %v23700_v45  ;;  %v23726_v63 = vld [vmem:[%s30774_s3 + $0x398] sm:$0xff]  }
 0x475   : > { %22639 = vmatpush3.bf16.msra.mxu0 %v23700_v45  ;;  %v23711_v45 = vld [vmem:[%s30774_s3 + $0x320] sm:$0xff]  }
 0x476   : > { %22640 = vmatprep.subr.bf16.mxu0 %v23701_v61 }
 0x478   : > { %22633 = vmatmul.mubr.bf16.gmra.mrb[140].mxu0 %v31727_v44  ;;  %v23717_v44 = vld [vmem:[%s30774_s3 + $0x350] sm:$0xff]  }
 0x479   : > { %22641 = vmatpush3.bf16.msra.mxu0 %v23701_v61  ;;  %22652 = vmatprep.mubr.bf16.mxu0 %v31728_v16  ;;  %v31738_v61 = vld [vmem:[#allocation53_spill] sm:$0xff] }
 0x47a   : > { %22642 = vmatprep.subr.bf16.mxu0 %v23702_v53  ;;  %v23718_v16 = vld [vmem:[%s30774_s3 + $0x358] sm:$0xff]  }
 0x47d   : > { %22643 = vmatpush3.bf16.msra.mxu0 %v23702_v53  ;;  %v31739_v53 = vmax.bf16 %v31737_v6, %v31738_v61  ;;  %v23734_v6 = vld [vmem:[%s30774_s3 + $0x3d8] sm:$0xff]  }
 0x47e   : > { %22644 = vmatprep.subr.bf16.mxu0 %v23703_v18  ;;  %v31757_v61 = vld [vmem:[#allocation73_spill] sm:$0xff] }
 0x481   : > { %22645 = vmatpush3.bf16.msra.mxu0 %v23703_v18  ;;  %v31742_v18 = vld [vmem:[#allocation63_spill] sm:$0xff] }
 0x482   : > { %22646 = vmatprep.subr.bf16.mxu0 %v23704_v21 }
 0x485   : > { %22647 = vmatpush3.bf16.msra.mxu0 %v23704_v21  ;;  %v31743_v21 = vld [vmem:[#allocation66_spill] sm:$0xff] }
 0x486   : > { %22648 = vmatprep.subr.bf16.mxu0 %v23705_v20 }
 0x489   : > { %22649 = vmatpush3.bf16.msra.mxu0 %v23705_v20  ;;  %v31744_v20 = vmax.bf16 %v31742_v18, %v31743_v21  ;;  %v23737_v18 = vld [vmem:[%s30774_s3 + $0x3f0] sm:$0xff]   ;;  %v23738_v21 = vld [vmem:[%s30774_s3 + $0x3f8] sm:$0xff]  }
 0x48a   : > { %22650 = vmatprep.subr.bf16.mxu0 %v23706_v33 }
 0x48d   : > { %22651 = vmatpush3.bf16.msra.mxu0 %v23706_v33  ;;  %v23719_v33 = vld [vmem:[%s30774_s3 + $0x360] sm:$0xff]  }
 0x48e   : > { %22660 = vmatprep.subr.bf16.mxu0 %v23707_v27 }
 0x490   : > { %22653 = vmatmul.mubr.bf16.vlgmr.msra.gmra.mrb[136].mxu0 %v31731_v29  ;;  %v31747_v29 = vld [vmem:[#allocation59_spill] sm:$0xff] }
 0x491   : > { %22656 = vmatprep.mubr.bf16.mxu0 %v31732_v57  ;;  %22661 = vmatpush3.bf16.msra.mxu0 %v23707_v27  ;;  %v23720_v27 = vld [vmem:[%s30774_s3 + $0x368] sm:$0xff]   ;;  %v31748_v57 = vmax.bf16 %v31746_v55, %v31747_v29  ;;  %v31767_v55 = vld [vmem:[#allocation69_spill] sm:$0xff] }
 0x492   : > { %22662 = vmatprep.subr.bf16.mxu0 %v23708_v5 }
 0x495   : > { %22663 = vmatpush3.bf16.msra.mxu0 %v23708_v5  ;;  %v23721_v5 = vld [vmem:[%s30774_s3 + $0x370] sm:$0xff]  }
 0x496   : > { %22664 = vmatprep.subr.bf16.mxu0 %v23709_v51 }
 0x498   : > { %22657 = vmatmul.mubr.bf16.gmra.mrb[140].mxu0 %v31734_v10  ;;  %v31750_v10 = vmax.bf16 %v27535_v12, %v27400_v24  ;;  %v23729_v24 = vld [vmem:[%s30774_s3 + $0x3b0] sm:$0xff]   ;;  %v23730_v12 = vld [vmem:[%s30774_s3 + $0x3b8] sm:$0xff]  }
 0x499   : > { %22665 = vmatpush3.bf16.msra.mxu0 %v23709_v51  ;;  %22676 = vmatprep.mubr.bf16.mxu0 %v31736_v28  ;;  %v31749_v51 = vmax.bf16 %v27542_v56, %v27410_v22  ;;  %v31751_v22 = vld [vmem:[#allocation72_spill] sm:$0xff] }
 0x49a   : > { %22666 = vmatprep.subr.bf16.mxu0 %v23710_v38  ;;  %v31752_v56 = vmax.bf16 %v27580_v48, %v31751_v22  ;;  %v23728_v28 = vld [vmem:[%s30774_s3 + $0x3a8] sm:$0xff]   ;;  %v23731_v48 = vld [vmem:[%s30774_s3 + $0x3c0] sm:$0xff]  }
 0x49b   : > { %v31772_v22 = vld [vmem:[#allocation96_spill] sm:$0xff] }
 0x49d   : > { %22667 = vmatpush3.bf16.msra.mxu0 %v23710_v38  ;;  %v23725_v38 = vld [vmem:[%s30774_s3 + $0x390] sm:$0xff]  }
 0x49e   : > { %22668 = vmatprep.subr.bf16.mxu0 %v23711_v45 }
 0x4a1   : > { %22669 = vmatpush3.bf16.msra.mxu0 %v23711_v45  ;;  %v23732_v45 = vld [vmem:[%s30774_s3 + $0x3c8] sm:$0xff]  }
 0x4a2   : > { %22670 = vmatprep.subr.bf16.mxu0 %v23712_v11 }
 0x4a5   : > { %22671 = vmatpush3.bf16.msra.mxu0 %v23712_v11  ;;  %v31753_v11 = vld [vmem:[#allocation80_spill] sm:$0xff] }
 0x4a6   : > { %22672 = vmatprep.subr.bf16.mxu0 %v23713_v3 }
 0x4a9   : > { %22673 = vmatpush3.bf16.msra.mxu0 %v23713_v3  ;;  %v31754_v3 = vld [vmem:[#allocation61_spill] sm:$0xff] }
 0x4aa   : > { %22674 = vmatprep.subr.bf16.mxu0 %v23714_v35 }
 0x4ad   : > { %22675 = vmatpush3.bf16.msra.mxu0 %v23714_v35  ;;  %v31755_v35 = vmax.bf16 %v31753_v11, %v31754_v3  ;;  %v23748_v11 = vld [vmem:[%s30774_s3 + $0x448] sm:$0xff]   ;;  %v31775_v3 = vld [vmem:[#allocation94_spill] sm:$0xff] }
 0x4ae   : > { %22684 = vmatprep.subr.bf16.mxu0 %v23715_v46 }
 0x4b0   : > { %22677 = vmatmul.mubr.bf16.vlgmr.msra.gmra.mrb[136].mxu0 %v31739_v53  ;;  %v31758_v53 = vld [vmem:[#allocation74_spill] sm:$0xff] }
 0x4b1   : > { %22680 = vmatprep.mubr.bf16.mxu0 %v31741_v25  ;;  %22685 = vmatpush3.bf16.msra.mxu0 %v23715_v46  ;;  %v31756_v46 = vmax.bf16 %v27612_v52, %v27480_v32  ;;  %v31759_v13 = vmax.bf16 %v31757_v61, %v31758_v53  ;;  %v31760_v25 = vld [vmem:[#allocation88_spill] sm:$0xff]  ;;  %v31761_v32 = vld [vmem:[#allocation67_spill] sm:$0xff] }
 0x4b2   : > { %22686 = vmatprep.subr.bf16.mxu0 %v23716_v49  ;;  %v31762_v52 = vmax.bf16 %v31760_v25, %v31761_v32  ;;  %v23749_v53 = vld [vmem:[%s30774_s3 + $0x450] sm:$0xff]   ;;  %v31781_v25 = vld [vmem:[#allocation98_spill] sm:$0xff] }
 0x4b3   : > { %v31782_v32 = vld [vmem:[#allocation84_spill] sm:$0xff] }
 0x4b5   : > { %22687 = vmatpush3.bf16.msra.mxu0 %v23716_v49  ;;  %v23733_v49 = vld [vmem:[%s30774_s3 + $0x3d0] sm:$0xff]  }
 0x4b6   : > { %22688 = vmatprep.subr.bf16.mxu0 %v23717_v44 }
 0x4b8   : > { %22681 = vmatmul.mubr.bf16.gmra.mrb[140].mxu0 %v31744_v20  ;;  %v23770_v20 = vld [vmem:[%s30776_s5 + $0x100] ss:$16 sps:$4 sm:$0xff]  }
 0x4b9   : > { %22689 = vmatpush3.bf16.msra.mxu0 %v23717_v44  ;;  %22700 = vmatprep.mubr.bf16.mxu0 %v31745_v15  ;;  %v23735_v44 = vld [vmem:[%s30774_s3 + $0x3e0] sm:$0xff]  }
 0x4ba   : > { %22690 = vmatprep.subr.bf16.mxu0 %v23718_v16  ;;  %v23772_v15 = vld [vmem:[%s30776_s5 + $0x104] ss:$16 sps:$4 sm:$0xff]  }
 0x4bb   : > { %13679 = vmatprep.subr.bf16.mxu1 %v23772_v15  ;;  %v23788_v15 = vld [vmem:[%s30776_s5 + $0x124] ss:$16 sps:$4 sm:$0xff]  }
 0x4bc   : > { %13680 = vmatpush1.bf16.msra.mxu1 %v23770_v20  ;;  %v23786_v20 = vld [vmem:[%s30776_s5 + $0x120] ss:$16 sps:$4 sm:$0xff]  }
 0x4bd   : > { %22691 = vmatpush3.bf16.msra.mxu0 %v23718_v16  ;;  %v23736_v16 = vld [vmem:[%s30774_s3 + $0x3e8] sm:$0xff]   ;;  %13681 = vmatprep.subr.bf16.mxu1 %v23788_v15 }
 0x4be   : > { %22692 = vmatprep.subr.bf16.mxu0 %v23719_v33  ;;  %v31808_v15 = vld [vmem:[#allocation120_spill] sm:$0xff] }
 0x4c0   : > { %13682 = vmatpush1.bf16.msra.mxu1 %v23786_v20 }
 0x4c1   : > { %22693 = vmatpush3.bf16.msra.mxu0 %v23719_v33  ;;  %v23739_v33 = vld [vmem:[%s30774_s3 + $0x400] sm:$0xff]  }
 0x4c2   : > { %22694 = vmatprep.subr.bf16.mxu0 %v23720_v27 }
 0x4c5   : > { %22695 = vmatpush3.bf16.msra.mxu0 %v23720_v27  ;;  %v23740_v27 = vld [vmem:[%s30774_s3 + $0x408] sm:$0xff]  }
 0x4c6   : > { %22696 = vmatprep.subr.bf16.mxu0 %v23721_v5 }
 0x4c9   : > { %22697 = vmatpush3.bf16.msra.mxu0 %v23721_v5  ;;  %v31763_v5 = vld [vmem:[#allocation86_spill] sm:$0xff] }
 0x4ca   : > { %22698 = vmatprep.subr.bf16.mxu0 %v23722_v34 }
 0x4cd   : > { %22699 = vmatpush3.bf16.msra.mxu0 %v23722_v34  ;;  %v31764_v34 = vld [vmem:[#allocation76_spill] sm:$0xff] }
 0x4ce   : > { %22708 = vmatprep.subr.bf16.mxu0 %v23723_v1 }
 0x4d0   : > { %22701 = vmatmul.mubr.bf16.vlgmr.msra.gmra.mrb[136].mxu0 %v31748_v57  ;;  %v23741_v57 = vld [vmem:[%s30774_s3 + $0x410] sm:$0xff]  }
 0x4d1   : > { %22704 = vmatprep.mubr.bf16.mxu0 %v31749_v51  ;;  %22709 = vmatpush3.bf16.msra.mxu0 %v23723_v1  ;;  %v31765_v1 = vmax.bf16 %v31763_v5, %v31764_v34  ;;  %v23742_v51 = vld [vmem:[%s30774_s3 + $0x418] sm:$0xff]   ;;  %v23755_v34 = vld [vmem:[%s30774_s3 + $0x480] sm:$0xff]  }
 0x4d2   : > { %22710 = vmatprep.subr.bf16.mxu0 %v23724_v59  ;;  %v23754_v5 = vld [vmem:[%s30774_s3 + $0x478] sm:$0xff]  }
 0x4d5   : > { %22711 = vmatpush3.bf16.msra.mxu0 %v23724_v59  ;;  %v31766_v59 = vld [vmem:[#allocation92_spill] sm:$0xff] }
 0x4d6   : > { %22712 = vmatprep.subr.bf16.mxu0 %v23725_v38  ;;  %v31768_v29 = vmax.bf16 %v31766_v59, %v31767_v55  ;;  %v31787_v59 = vld [vmem:[#allocation102_spill] sm:$0xff]  ;;  %v31788_v55 = vld [vmem:[#allocation77_spill] sm:$0xff] }
 0x4d8   : > { %22705 = vmatmul.mubr.bf16.gmra.mrb[140].mxu0 %v31750_v10 }
 0x4d9   : > { %22713 = vmatpush3.bf16.msra.mxu0 %v23725_v38  ;;  %22724 = vmatprep.mubr.bf16.mxu0 %v31752_v56  ;;  %v31769_v38 = vld [vmem:[#allocation90_spill] sm:$0xff] }
 0x4da   : > { %22714 = vmatprep.subr.bf16.mxu0 %v23726_v63  ;;  %v31773_v56 = vld [vmem:[#allocation82_spill] sm:$0xff] }
 0x4dd   : > { %22715 = vmatpush3.bf16.msra.mxu0 %v23726_v63  ;;  %v31770_v63 = vld [vmem:[#allocation78_spill] sm:$0xff] }
 0x4de   : > { %22716 = vmatprep.subr.bf16.mxu0 %v23727_v9  ;;  %v31771_v10 = vmax.bf16 %v31769_v38, %v31770_v63  ;;  %v23757_v63 = vld [vmem:[%s30774_s3 + $0x490] sm:$0xff]  }
 0x4e1   : > { %22717 = vmatpush3.bf16.msra.mxu0 %v23727_v9  ;;  %v31774_v9 = vmax.bf16 %v31772_v22, %v31773_v56  ;;  %v31793_v22 = vld [vmem:[#allocation106_spill] sm:$0xff]  ;;  %v31794_v56 = vld [vmem:[#allocation81_spill] sm:$0xff] }
 0x4e2   : > { %22718 = vmatprep.subr.bf16.mxu0 %v23728_v28 }
 0x4e5   : > { %22719 = vmatpush3.bf16.msra.mxu0 %v23728_v28  ;;  %v23743_v28 = vld [vmem:[%s30774_s3 + $0x420] sm:$0xff]  }
 0x4e6   : > { %22720 = vmatprep.subr.bf16.mxu0 %v23729_v24 }
 0x4e9   : > { %22721 = vmatpush3.bf16.msra.mxu0 %v23729_v24  ;;  %v23744_v24 = vld [vmem:[%s30774_s3 + $0x428] sm:$0xff]  }
 0x4ea   : > { %22722 = vmatprep.subr.bf16.mxu0 %v23730_v12 }
 0x4ed   : > { %22723 = vmatpush3.bf16.msra.mxu0 %v23730_v12  ;;  %v23745_v12 = vld [vmem:[%s30774_s3 + $0x430] sm:$0xff]  }
 0x4ee   : > { %22732 = vmatprep.subr.bf16.mxu0 %v23731_v48 }
 0x4f0   : > { %22725 = vmatmul.mubr.bf16.vlgmr.msra.gmra.mrb[136].mxu0 %v31755_v35  ;;  %v31776_v35 = vld [vmem:[#allocation71_spill] sm:$0xff] }
 0x4f1   : > { %22728 = vmatprep.mubr.bf16.mxu0 %v31756_v46  ;;  %22733 = vmatpush3.bf16.msra.mxu0 %v23731_v48  ;;  %v23746_v48 = vld [vmem:[%s30774_s3 + $0x438] sm:$0xff]   ;;  %v31777_v46 = vmax.bf16 %v31775_v3, %v31776_v35  ;;  %v23763_v35 = vld [vmem:[%s30774_s3 + $0x4c0] sm:$0xff]  }
 0x4f2   : > { %22734 = vmatprep.subr.bf16.mxu0 %v23732_v45  ;;  %v23762_v3 = vld [vmem:[%s30774_s3 + $0x4b8] sm:$0xff]  }
 0x4f5   : > { %22735 = vmatpush3.bf16.msra.mxu0 %v23732_v45  ;;  %v23747_v45 = vld [vmem:[%s30774_s3 + $0x440] sm:$0xff]  }
 0x4f6   : > { %22736 = vmatprep.subr.bf16.mxu0 %v23733_v49 }
 0x4f8   : > { %22729 = vmatmul.mubr.bf16.gmra.mrb[140].mxu0 %v31759_v13  ;;  %v23750_v13 = vld [vmem:[%s30774_s3 + $0x458] sm:$0xff]  }
 0x4f9   : > { %22737 = vmatpush3.bf16.msra.mxu0 %v23733_v49  ;;  %22748 = vmatprep.mubr.bf16.mxu0 %v31762_v52  ;;  %v31778_v49 = vld [vmem:[#allocation100_spill] sm:$0xff]  ;;  %v31783_v52 = vmax.bf16 %v31781_v25, %v31782_v32  ;;  %v31803_v32 = vld [vmem:[#allocation91_spill] sm:$0xff] }
 0x4fa   : > { %22738 = vmatprep.subr.bf16.mxu0 %v23734_v6  ;;  %v31802_v25 = vld [vmem:[#allocation116_spill] sm:$0xff] }
 0x4fd   : > { %22739 = vmatpush3.bf16.msra.mxu0 %v23734_v6  ;;  %v31779_v6 = vld [vmem:[#allocation75_spill] sm:$0xff] }
 0x4fe   : > { %22740 = vmatprep.subr.bf16.mxu0 %v23735_v44  ;;  %v31780_v61 = vmax.bf16 %v31778_v49, %v31779_v6  ;;  %v23803_v49 = vld [vmem:[%s30776_s5 + $0x144] ss:$16 sps:$4 sm:$0xff]   ;;  %v23764_v6 = vld [vmem:[%s30774_s3 + $0x4c8] sm:$0xff]  }
 0x4ff   : > { %13683 = vmatprep.subr.bf16.mxu1 %v23803_v49  ;;  %v23819_v49 = vld [vmem:[%s30776_s5 + $0x164] ss:$16 sps:$4 sm:$0xff]  }
 0x501   : > { %22741 = vmatpush3.bf16.msra.mxu0 %v23735_v44  ;;  %v31784_v44 = vld [vmem:[#allocation104_spill] sm:$0xff] }
 0x502   : > { %22742 = vmatprep.subr.bf16.mxu0 %v23736_v16 }
 0x505   : > { %22743 = vmatpush3.bf16.msra.mxu0 %v23736_v16  ;;  %v31785_v16 = vld [vmem:[#allocation79_spill] sm:$0xff] }
 0x506   : > { %22744 = vmatprep.subr.bf16.mxu0 %v23737_v18 }
 0x509   : > { %22745 = vmatpush3.bf16.msra.mxu0 %v23737_v18  ;;  %v31786_v18 = vmax.bf16 %v31784_v44, %v31785_v16  ;;  %v23765_v44 = vld [vmem:[%s30774_s3 + $0x4d0] sm:$0xff]   ;;  %v23766_v16 = vld [vmem:[%s30774_s3 + $0x4d8] sm:$0xff]  }
 0x50a   : > { %22746 = vmatprep.subr.bf16.mxu0 %v23738_v21 }
 0x50d   : > { %22747 = vmatpush3.bf16.msra.mxu0 %v23738_v21  ;;  %v23751_v21 = vld [vmem:[%s30774_s3 + $0x460] sm:$0xff]  }
 0x50e   : > { %22756 = vmatprep.subr.bf16.mxu0 %v23739_v33 }
 0x510   : > { %22749 = vmatmul.mubr.bf16.vlgmr.msra.gmra.mrb[136].mxu0 %v31765_v1  ;;  %v23756_v1 = vld [vmem:[%s30774_s3 + $0x488] sm:$0xff]  }
 0x511   : > { %22752 = vmatprep.mubr.bf16.mxu0 %v31768_v29  ;;  %22757 = vmatpush3.bf16.msra.mxu0 %v23739_v33  ;;  %v23752_v33 = vld [vmem:[%s30774_s3 + $0x468] sm:$0xff]   ;;  %v31789_v29 = vmax.bf16 %v31787_v59, %v31788_v55  ;;  %v23773_v59 = vld [vmem:[%s30774_s3 + $0x4f8] sm:$0xff]   ;;  %v23774_v55 = vld [vmem:[%s30774_s3 + $0x500] sm:$0xff]  }
 0x512   : > { %22758 = vmatprep.subr.bf16.mxu0 %v23740_v27 }
 0x515   : > { %22759 = vmatpush3.bf16.msra.mxu0 %v23740_v27  ;;  %v23753_v27 = vld [vmem:[%s30774_s3 + $0x470] sm:$0xff]  }
 0x516   : > { %22760 = vmatprep.subr.bf16.mxu0 %v23741_v57 }
 0x518   : > { %22753 = vmatmul.mubr.bf16.gmra.mrb[140].mxu0 %v31771_v10  ;;  %v23758_v10 = vld [vmem:[%s30774_s3 + $0x498] sm:$0xff]  }
 0x519   : > { %22761 = vmatpush3.bf16.msra.mxu0 %v23741_v57  ;;  %22772 = vmatprep.mubr.bf16.mxu0 %v31774_v9  ;;  %v31790_v57 = vld [vmem:[#allocation108_spill] sm:$0xff]  ;;  %v31795_v9 = vmax.bf16 %v31793_v22, %v31794_v56 }
 0x51a   : > { %22762 = vmatprep.subr.bf16.mxu0 %v23742_v51  ;;  %v23776_v56 = vld [vmem:[%s30774_s3 + $0x510] sm:$0xff]  }
 0x51d   : > { %22763 = vmatpush3.bf16.msra.mxu0 %v23742_v51  ;;  %v31791_v51 = vld [vmem:[#allocation83_spill] sm:$0xff] }
 0x51e   : > { %22764 = vmatprep.subr.bf16.mxu0 %v23743_v28  ;;  %v31792_v38 = vmax.bf16 %v31790_v57, %v31791_v51  ;;  %v31811_v57 = vld [vmem:[#allocation118_spill] sm:$0xff]  ;;  %v31812_v51 = vld [vmem:[#allocation93_spill] sm:$0xff] }
 0x521   : > { %22765 = vmatpush3.bf16.msra.mxu0 %v23743_v28  ;;  %v31796_v28 = vld [vmem:[#allocation112_spill] sm:$0xff] }
 0x522   : > { %22766 = vmatprep.subr.bf16.mxu0 %v23744_v24 }
 0x525   : > { %22767 = vmatpush3.bf16.msra.mxu0 %v23744_v24  ;;  %v31797_v24 = vld [vmem:[#allocation87_spill] sm:$0xff] }
 0x526   : > { %22768 = vmatprep.subr.bf16.mxu0 %v23745_v12 }
 0x529   : > { %22769 = vmatpush3.bf16.msra.mxu0 %v23745_v12  ;;  %v31798_v12 = vmax.bf16 %v31796_v28, %v31797_v24  ;;  %v31817_v28 = vld [vmem:[#allocation113_spill] sm:$0xff] }
 0x52a   : > { %22770 = vmatprep.subr.bf16.mxu0 %v23746_v48  ;;  %v31818_v24 = vld [vmem:[#allocation97_spill] sm:$0xff] }
 0x52d   : > { %22771 = vmatpush3.bf16.msra.mxu0 %v23746_v48  ;;  %v23759_v48 = vld [vmem:[%s30774_s3 + $0x4a0] sm:$0xff]  }
 0x52e   : > { %22780 = vmatprep.subr.bf16.mxu0 %v23747_v45 }
 0x530   : > { %22773 = vmatmul.mubr.bf16.vlgmr.msra.gmra.mrb[136].mxu0 %v31777_v46  ;;  %v23801_v46 = vld [vmem:[%s30776_s5 + $0x140] ss:$16 sps:$4 sm:$0xff]  }
 0x531   : > { %22776 = vmatprep.mubr.bf16.mxu0 %v31780_v61  ;;  %22781 = vmatpush3.bf16.msra.mxu0 %v23747_v45  ;;  %v23760_v45 = vld [vmem:[%s30774_s3 + $0x4a8] sm:$0xff]   ;;  %v31799_v61 = vld [vmem:[#allocation110_spill] sm:$0xff] }
 0x532   : > { %22782 = vmatprep.subr.bf16.mxu0 %v23748_v11  ;;  %13684 = vmatpush1.bf16.msra.mxu1 %v23801_v46  ;;  %v23817_v46 = vld [vmem:[%s30776_s5 + $0x160] ss:$16 sps:$4 sm:$0xff]  }
 0x533   : > { %13685 = vmatprep.subr.bf16.mxu1 %v23819_v49  ;;  %v31840_v49 = vld [vmem:[#allocation123_spill] sm:$0xff] }
 0x535   : > { %22783 = vmatpush3.bf16.msra.mxu0 %v23748_v11  ;;  %v23761_v11 = vld [vmem:[%s30774_s3 + $0x4b0] sm:$0xff]  }
 0x536   : > { %22784 = vmatprep.subr.bf16.mxu0 %v23749_v53  ;;  %13686 = vmatpush1.bf16.msra.mxu1 %v23817_v46  ;;  %v31839_v46 = vld [vmem:[#allocation18_spill] sm:$0xff] }
 0x538   : > { %22777 = vmatmul.mubr.bf16.gmra.mrb[140].mxu0 %v31783_v52  ;;  %v31804_v52 = vmax.bf16 %v31802_v25, %v31803_v32  ;;  %v31823_v25 = vld [vmem:[#allocation125_spill] sm:$0xff] }
 0x539   : > { %22785 = vmatpush3.bf16.msra.mxu0 %v23749_v53  ;;  %22796 = vmatprep.mubr.bf16.mxu0 %v31786_v18  ;;  %v31800_v53 = vld [vmem:[#allocation85_spill] sm:$0xff]  ;;  %v31805_v18 = vld [vmem:[#allocation114_spill] sm:$0xff] }
 0x53a   : > { %22786 = vmatprep.subr.bf16.mxu0 %v23750_v13  ;;  %v31824_v32 = vld [vmem:[#allocation101_spill] sm:$0xff] }
 0x53d   : > { %22787 = vmatpush3.bf16.msra.mxu0 %v23750_v13  ;;  %v31801_v13 = vmax.bf16 %v31799_v61, %v31800_v53  ;;  %v23781_v61 = vld [vmem:[%s30774_s3 + $0x538] sm:$0xff]   ;;  %v23782_v53 = vld [vmem:[%s30774_s3 + $0x540] sm:$0xff]  }
 0x53e   : > { %22788 = vmatprep.subr.bf16.mxu0 %v23751_v21 }
 0x541   : > { %22789 = vmatpush3.bf16.msra.mxu0 %v23751_v21  ;;  %v31806_v21 = vld [vmem:[#allocation89_spill] sm:$0xff] }
 0x542   : > { %22790 = vmatprep.subr.bf16.mxu0 %v23752_v33  ;;  %v31807_v20 = vmax.bf16 %v31805_v18, %v31806_v21  ;;  %v23784_v21 = vld [vmem:[%s30774_s3 + $0x550] sm:$0xff]  }
 0x545   : > { %22791 = vmatpush3.bf16.msra.mxu0 %v23752_v33  ;;  %v31809_v33 = vld [vmem:[#allocation95_spill] sm:$0xff] }
 0x546   : > { %22792 = vmatprep.subr.bf16.mxu0 %v23753_v27 }
 0x549   : > { %22793 = vmatpush3.bf16.msra.mxu0 %v23753_v27  ;;  %v31810_v27 = vmax.bf16 %v31808_v15, %v31809_v33  ;;  %v31829_v15 = vld [vmem:[#allocation119_spill] sm:$0xff]  ;;  %v31830_v33 = vld [vmem:[#allocation105_spill] sm:$0xff] }
 0x54a   : > { %22794 = vmatprep.subr.bf16.mxu0 %v23754_v5 }
 0x54d   : > { %22795 = vmatpush3.bf16.msra.mxu0 %v23754_v5  ;;  %v23767_v5 = vld [vmem:[%s30774_s3 + $0x4e0] sm:$0xff]  }
 0x54e   : > { %22804 = vmatprep.subr.bf16.mxu0 %v23755_v34 }
 0x550   : > { %22797 = vmatmul.mubr.bf16.vlgmr.msra.gmra.mrb[136].mxu0 %v31789_v29  ;;  %v23775_v29 = vld [vmem:[%s30774_s3 + $0x508] sm:$0xff]  }
 0x551   : > { %22800 = vmatprep.mubr.bf16.mxu0 %v31792_v38  ;;  %22805 = vmatpush3.bf16.msra.mxu0 %v23755_v34  ;;  %v23768_v34 = vld [vmem:[%s30774_s3 + $0x4e8] sm:$0xff]   ;;  %v31813_v38 = vmax.bf16 %v31811_v57, %v31812_v51  ;;  %v23826_v57 = vld [vmem:[%s30776_s5 + $0x1a0] ss:$16 sps:$4 sm:$0xff]  }
 0x552   : > { %22806 = vmatprep.subr.bf16.mxu0 %v23756_v1  ;;  %v23790_v51 = vld [vmem:[%s30774_s3 + $0x568] sm:$0xff]  }
 0x555   : > { %22807 = vmatpush3.bf16.msra.mxu0 %v23756_v1  ;;  %v23769_v1 = vld [vmem:[%s30774_s3 + $0x4f0] sm:$0xff]  }
 0x556   : > { %22808 = vmatprep.subr.bf16.mxu0 %v23757_v63 }
 0x558   : > { %22801 = vmatmul.mubr.bf16.gmra.mrb[140].mxu0 %v31795_v9  ;;  %v23777_v9 = vld [vmem:[%s30774_s3 + $0x518] sm:$0xff]  }
 0x559   : > { %22809 = vmatpush3.bf16.msra.mxu0 %v23757_v63  ;;  %22820 = vmatprep.mubr.bf16.mxu0 %v31798_v12  ;;  %v31814_v63 = vld [vmem:[#allocation115_spill] sm:$0xff]  ;;  %v31819_v12 = vmax.bf16 %v31817_v28, %v31818_v24  ;;  %v31834_v24 = vld [vmem:[#allocation10_spill] sm:$0xff] }
 0x55a   : > { %22810 = vmatprep.subr.bf16.mxu0 %v23758_v10  ;;  %v23794_v28 = vld [vmem:[%s30774_s3 + $0x588] sm:$0xff]  }
 0x55d   : > { %22811 = vmatpush3.bf16.msra.mxu0 %v23758_v10  ;;  %v31815_v10 = vld [vmem:[#allocation99_spill] sm:$0xff] }
 0x55e   : > { %22812 = vmatprep.subr.bf16.mxu0 %v23759_v48  ;;  %v31816_v22 = vmax.bf16 %v31814_v63, %v31815_v10  ;;  %v23834_v63 = vld [vmem:[%s30776_s5 + $0x1e4] ss:$16 sps:$4 sm:$0xff]  }
 0x55f   : > { %v23791_v10 = vld [vmem:[%s30774_s3 + $0x570] sm:$0xff]  }
 0x561   : > { %22813 = vmatpush3.bf16.msra.mxu0 %v23759_v48  ;;  %v31820_v48 = vld [vmem:[#allocation127_spill] sm:$0xff] }
 0x562   : > { %22814 = vmatprep.subr.bf16.mxu0 %v23760_v45 }
 0x565   : > { %22815 = vmatpush3.bf16.msra.mxu0 %v23760_v45  ;;  %v31821_v45 = vld [vmem:[#allocation103_spill] sm:$0xff] }
 0x566   : > { %22816 = vmatprep.subr.bf16.mxu0 %v23761_v11 }
 0x569   : > { %22817 = vmatpush3.bf16.msra.mxu0 %v23761_v11  ;;  %v31822_v11 = vmax.bf16 %v31820_v48, %v31821_v45  ;;  %v31837_v45 = vld [vmem:[#allocation16_spill] sm:$0xff] }
 0x56a   : > { %22818 = vmatprep.subr.bf16.mxu0 %v23762_v3 }
 0x56d   : > { %22819 = vmatpush3.bf16.msra.mxu0 %v23762_v3  ;;  %v23778_v3 = vld [vmem:[%s30774_s3 + $0x520] sm:$0xff]  }
 0x56e   : > { %22828 = vmatprep.subr.bf16.mxu0 %v23763_v35 }
 0x570   : > { %22821 = vmatmul.mubr.bf16.vlgmr.msra.gmra.mrb[136].mxu0 %v31801_v13  ;;  %v23783_v13 = vld [vmem:[%s30774_s3 + $0x548] sm:$0xff]  }
 0x571   : > { %22824 = vmatprep.mubr.bf16.mxu0 %v31804_v52  ;;  %22829 = vmatpush3.bf16.msra.mxu0 %v23763_v35  ;;  %v23779_v35 = vld [vmem:[%s30774_s3 + $0x528] sm:$0xff]   ;;  %v31825_v52 = vmax.bf16 %v31823_v25, %v31824_v32  ;;  %v31843_v32 = vld [vmem:[#allocation121_spill] sm:$0xff] }
 0x572   : > { %22830 = vmatprep.subr.bf16.mxu0 %v23764_v6  ;;  %v23805_v25 = vld [vmem:[%s30774_s3 + $0x5c8] sm:$0xff]  }
 0x575   : > { %22831 = vmatpush3.bf16.msra.mxu0 %v23764_v6  ;;  %v23780_v6 = vld [vmem:[%s30774_s3 + $0x530] sm:$0xff]  }
 0x576   : > { %22832 = vmatprep.subr.bf16.mxu0 %v23765_v44 }
 0x578   : > { %22825 = vmatmul.mubr.bf16.gmra.mrb[140].mxu0 %v31807_v20  ;;  %v23785_v20 = vld [vmem:[%s30774_s3 + $0x558] sm:$0xff]  }
 0x579   : > { %22833 = vmatpush3.bf16.msra.mxu0 %v23765_v44  ;;  %22844 = vmatprep.mubr.bf16.mxu0 %v31810_v27  ;;  %v31826_v44 = vld [vmem:[#allocation14_spill] sm:$0xff]  ;;  %v31831_v27 = vmax.bf16 %v31829_v15, %v31830_v33  ;;  %v23809_v15 = vld [vmem:[%s30774_s3 + $0x5e8] sm:$0xff]  }
 0x57a   : > { %22834 = vmatprep.subr.bf16.mxu0 %v23766_v16  ;;  %v31849_v33 = vld [vmem:[#allocation131_spill] sm:$0xff] }
 0x57d   : > { %22835 = vmatpush3.bf16.msra.mxu0 %v23766_v16  ;;  %v31827_v16 = vld [vmem:[#allocation107_spill] sm:$0xff] }
 0x57e   : > { %22836 = vmatprep.subr.bf16.mxu0 %v23767_v5  ;;  %v31828_v18 = vmax.bf16 %v31826_v44, %v31827_v16  ;;  %v31846_v16 = vmax.bf16 %v28177_v40, %v28045_v36  ;;  %v31848_v36 = vmax.bf16 %v28200_v17, %v28077_v7  ;;  %v23808_v40 = vld [vmem:[%s30774_s3 + $0x5e0] sm:$0xff]   ;;  %v23811_v7 = vld [vmem:[%s30774_s3 + $0x5f8] sm:$0xff]   ;;  %v23813_v17 = vld [vmem:[%s30774_s3 + $0x608] sm:$0xff]  }
 0x581   : > { %22837 = vmatpush3.bf16.msra.mxu0 %v23767_v5  ;;  %v23823_v5 = vld [vmem:[%s30776_s5 + $0x180] ss:$16 sps:$4 sm:$0xff]  }
 0x582   : > { %22838 = vmatprep.subr.bf16.mxu0 %v23768_v34 }
 0x585   : > { %22839 = vmatpush3.bf16.msra.mxu0 %v23768_v34  ;;  %v23825_v34 = vld [vmem:[%s30776_s5 + $0x184] ss:$16 sps:$4 sm:$0xff]  }
 0x586   : > { %22840 = vmatprep.subr.bf16.mxu0 %v23769_v1  ;;  %13687 = vmatprep.subr.bf16.mxu1 %v23825_v34  ;;  %v23814_v34 = vld [vmem:[%s30774_s3 + $0x610] sm:$0xff]  }
 0x587   : > { %13688 = vmatpush1.bf16.msra.mxu1 %v23823_v5 }
 0x589   : > { %22841 = vmatpush3.bf16.msra.mxu0 %v23769_v1  ;;  %v31832_v1 = vld [vmem:[#allocation111_spill] sm:$0xff] }
 0x58a   : > { %22842 = vmatprep.subr.bf16.mxu0 %v23773_v59 }
 0x58d   : > { %22843 = vmatpush3.bf16.msra.mxu0 %v23773_v59  ;;  %v31833_v59 = vmax.bf16 %v28069_v50, %v31832_v1  ;;  %v23831_v50 = vld [vmem:[%s30776_s5 + $0x1c4] ss:$16 sps:$4 sm:$0xff]   ;;  %v23815_v1 = vld [vmem:[%s30774_s3 + $0x618] sm:$0xff]  }
 0x58e   : > { %22852 = vmatprep.subr.bf16.mxu0 %v23774_v55 }
 0x590   : > { %22845 = vmatmul.mubr.bf16.vlgmr.msra.gmra.mrb[136].mxu0 %v31813_v38  ;;  %v23829_v38 = vld [vmem:[%s30776_s5 + $0x1c0] ss:$16 sps:$4 sm:$0xff]  }
 0x591   : > { %22848 = vmatprep.mubr.bf16.mxu0 %v31816_v22  ;;  %22853 = vmatpush3.bf16.msra.mxu0 %v23774_v55  ;;  %v23828_v55 = vld [vmem:[%s30776_s5 + $0x1a4] ss:$16 sps:$4 sm:$0xff]   ;;  %v23832_v22 = vld [vmem:[%s30776_s5 + $0x1e0] ss:$16 sps:$4 sm:$0xff]  }
 0x592   : > { %22854 = vmatprep.subr.bf16.mxu0 %v23775_v29  ;;  %13689 = vmatprep.subr.bf16.mxu1 %v23828_v55 }
 0x593   : > { %13690 = vmatpush1.bf16.msra.mxu1 %v23826_v57  ;;  %v23838_v57 = vld [vmem:[%s30776_s5 + $0xc28] ss:$16 sps:$4 sm:$0xff]  }
 0x594   : > { %13691 = vmatprep.subr.bf16.mxu1 %v23831_v50  ;;  %v23843_v50 = vld [vmem:[%s30776_s5 + $0xc4c] ss:$16 sps:$4 sm:$0xff]  }
 0x595   : > { %22855 = vmatpush3.bf16.msra.mxu0 %v23775_v29  ;;  %v23789_v29 = vld [vmem:[%s30774_s3 + $0x560] sm:$0xff]  }
 0x596   : > { %22856 = vmatprep.subr.bf16.mxu0 %v23776_v56 }
 0x597   : > { %13692 = vmatpush1.bf16.msra.mxu1 %v23829_v38  ;;  %v23858_v38 = vld [vmem:[%s30776_s5 + $0xcec] ss:$16 sps:$4 sm:$0xff]  }
 0x598   : > { %22849 = vmatmul.mubr.bf16.gmra.mrb[140].mxu0 %v31819_v12  ;;  %13693 = vmatprep.subr.bf16.mxu1 %v23834_v63  ;;  %v31835_v12 = vld [vmem:[#allocation109_spill] sm:$0xff] }
 0x599   : > { %22857 = vmatpush3.bf16.msra.mxu0 %v23776_v56  ;;  %22868 = vmatprep.mubr.bf16.mxu0 %v31822_v11  ;;  %v23792_v56 = vld [vmem:[%s30774_s3 + $0x578] sm:$0xff]   ;;  %v31836_v48 = vmax.bf16 %v31834_v24, %v31835_v12  ;;  %v31838_v11 = vmax.bf16 %v28107_v58, %v31837_v45  ;;  %v31842_v58 = vmax.bf16 %v28145_v62, %v28013_v42  ;;  %v23804_v62 = vld [vmem:[%s30774_s3 + $0x5c0] sm:$0xff]  }
 0x59a   : > { %22858 = vmatprep.subr.bf16.mxu0 %v23777_v9  ;;  %v23800_v42 = vld [vmem:[%s30774_s3 + $0x5b8] sm:$0xff]  }
 0x59b   : > { %13694 = vmatpush1.bf16.msra.mxu1 %v23832_v22  ;;  %v23856_v63 = vld [vmem:[%s30776_s5 + $0xce8] ss:$16 sps:$4 sm:$0xff]   ;;  %v24691_v22 = vmov 0  }
 0x59c   : > { %13711 = vmatprep.mubr.bf16.mxu1 %v24691_v22 }
 0x59d   : > { %22859 = vmatpush3.bf16.msra.mxu0 %v23777_v9  ;;  %v23793_v9 = vld [vmem:[%s30774_s3 + $0x580] sm:$0xff]  }
 0x59e   : > { %22860 = vmatprep.subr.bf16.mxu0 %v23778_v3 }
 0x5a1   : > { %22861 = vmatpush3.bf16.msra.mxu0 %v23778_v3  ;;  %v23795_v3 = vld [vmem:[%s30774_s3 + $0x590] sm:$0xff]  }
 0x5a2   : > { %22862 = vmatprep.subr.bf16.mxu0 %v23779_v35 }
 0x5a5   : > { %22863 = vmatpush3.bf16.msra.mxu0 %v23779_v35  ;;  %v23796_v35 = vld [vmem:[%s30774_s3 + $0x598] sm:$0xff]  }
 0x5a6   : > { %22864 = vmatprep.subr.bf16.mxu0 %v23780_v6 }
 0x5a9   : > { %22865 = vmatpush3.bf16.msra.mxu0 %v23780_v6  ;;  %v31841_v6 = vmax.bf16 %v31839_v46, %v31840_v49 }
 0x5aa   : > { %22866 = vmatprep.subr.bf16.mxu0 %v23781_v61 }
 0x5ad   : > { %22867 = vmatpush3.bf16.msra.mxu0 %v23781_v61  ;;  %v23797_v61 = vld [vmem:[%s30774_s3 + $0x5a0] sm:$0xff]  }
 0x5ae   : > { %22876 = vmatprep.subr.bf16.mxu0 %v23782_v53 }
 0x5b0   : > { %22869 = vmatmul.mubr.bf16.vlgmr.msra.gmra.mrb[136].mxu0 %v31825_v52  ;;  %v31844_v52 = vld [vmem:[#allocation117_spill] sm:$0xff] }
 0x5b1   : > { %22872 = vmatprep.mubr.bf16.mxu0 %v31828_v18  ;;  %22877 = vmatpush3.bf16.msra.mxu0 %v23782_v53  ;;  %v23798_v53 = vld [vmem:[%s30774_s3 + $0x5a8] sm:$0xff]   ;;  %v31845_v44 = vmax.bf16 %v31843_v32, %v31844_v52  ;;  %v23806_v18 = vld [vmem:[%s30774_s3 + $0x5d0] sm:$0xff]  }
 0x5b2   : > { %22878 = vmatprep.subr.bf16.mxu0 %v23783_v13 }
 0x5b5   : > { %22879 = vmatpush3.bf16.msra.mxu0 %v23783_v13  ;;  %v23799_v13 = vld [vmem:[%s30774_s3 + $0x5b0] sm:$0xff]  }
 0x5b6   : > { %22880 = vmatprep.subr.bf16.mxu0 %v23784_v21 }
 0x5b8   : > { %22873 = vmatmul.mubr.bf16.gmra.mrb[140].mxu0 %v31831_v27  ;;  %v31850_v27 = vld [vmem:[#allocation28_spill] sm:$0xff] }
 0x5b9   : > { %22881 = vmatpush3.bf16.msra.mxu0 %v23784_v21  ;;  %22892 = vmatprep.mubr.bf16.mxu0 %v31833_v59  ;;  %v23807_v21 = vld [vmem:[%s30774_s3 + $0x5d8] sm:$0xff]   ;;  %v31851_v5 = vmax.bf16 %v31849_v33, %v31850_v27 }
 0x5ba   : > { %22882 = vmatprep.subr.bf16.mxu0 %v23785_v20  ;;  %v31852_v59 = vld [vmem:[#allocation129_spill] sm:$0xff] }
 0x5bb   : > { %v31853_v55 = vmax.bf16 %v28222_v47, %v31852_v59  ;;  %v23821_v47 = vld [vmem:[%s30774_s3 + $0x630] sm:$0xff]   ;;  %v23862_v33 = vld [vmem:[%s30776_s5 + $0xd08] ss:$16 sps:$4 sm:$0xff]  }
 0x5bc   : > { %v23865_v59 = vld [vmem:[%s30776_s5 + $0x128] ss:$16 sps:$4 sm:$0xff]  }
 0x5bd   : > { %22883 = vmatpush3.bf16.msra.mxu0 %v23785_v20  ;;  %v31847_v20 = vmax.bf16 %v28170_v14, %v28035_v60  ;;  %v23810_v60 = vld [vmem:[%s30774_s3 + $0x5f0] sm:$0xff]   ;;  %v23812_v14 = vld [vmem:[%s30774_s3 + $0x600] sm:$0xff]  }
 0x5be   : > { %22884 = vmatprep.subr.bf16.mxu0 %v23789_v29 }
 0x5c1   : > { %22885 = vmatpush3.bf16.msra.mxu0 %v23789_v29  ;;  %v31854_v29 = vmax.bf16 %v28246_v0, %v28143_v54  ;;  %v23841_v54 = vld [vmem:[%s30776_s5 + $0xc48] ss:$16 sps:$4 sm:$0xff]  }
 0x5c2   : > { %22886 = vmatprep.subr.bf16.mxu0 %v23790_v51  ;;  %v23844_v0 = vld [vmem:[%s30776_s5 + $0xc68] ss:$16 sps:$4 sm:$0xff]  }
 0x5c5   : > { %22887 = vmatpush3.bf16.msra.mxu0 %v23790_v51  ;;  %v23853_v51 = vld [vmem:[%s30776_s5 + $0xcc8] ss:$16 sps:$4 sm:$0xff]  }
 0x5c6   : > { %22888 = vmatprep.subr.bf16.mxu0 %v23791_v10 }
 0x5c9   : > { %22889 = vmatpush3.bf16.msra.mxu0 %v23791_v10  ;;  %v23861_v10 = vld [vmem:[%s30776_s5 + $0x10c] ss:$16 sps:$4 sm:$0xff]  }
 0x5ca   : > { %22890 = vmatprep.subr.bf16.mxu0 %v23792_v56  ;;  %13720 = vmatprep.subr.bf16.mxu1 %v23861_v10  ;;  %v23906_v10 = vld [vmem:[%s30776_s5 + $0xdec] ss:$16 sps:$4 sm:$0xff]  }
 0x5cd   : > { %22891 = vmatpush3.bf16.msra.mxu0 %v23792_v56  ;;  %v23864_v56 = vld [vmem:[%s30776_s5 + $0xd0c] ss:$16 sps:$4 sm:$0xff]  }
 0x5ce   : > { %22900 = vmatprep.subr.bf16.mxu0 %v23793_v9 }
 0x5d0   : > { %22893 = vmatmul.mubr.bf16.vlgmr.msra.gmra.mrb[136].mxu0 %v31836_v48  ;;  %v19776_v48 = vld [vmem:[%s30775_s4] ss:$0 sm:$0xff] }
 0x5d1   : > { %22896 = vmatprep.mubr.bf16.mxu0 %v31838_v11  ;;  %22901 = vmatpush3.bf16.msra.mxu0 %v23793_v9 }
 0x5d2   : > { %22902 = vmatprep.subr.bf16.mxu0 %v23794_v28 }
 0x5d5   : > { %22903 = vmatpush3.bf16.msra.mxu0 %v23794_v28 }
 0x5d6   : > { %22904 = vmatprep.subr.bf16.mxu0 %v23795_v3 }
 0x5d8   : > { %22897 = vmatmul.mubr.bf16.gmra.mrb[140].mxu0 %v31841_v6 }
 0x5d9   : > { %22905 = vmatpush3.bf16.msra.mxu0 %v23795_v3  ;;  %22916 = vmatprep.mubr.bf16.mxu0 %v31842_v58 }
 0x5da   : > { %22906 = vmatprep.subr.bf16.mxu0 %v23796_v35 }
 0x5dd   : > { %22907 = vmatpush3.bf16.msra.mxu0 %v23796_v35 }
 0x5de   : > { %22908 = vmatprep.subr.bf16.mxu0 %v23797_v61 }
 0x5e1   : > { %22909 = vmatpush3.bf16.msra.mxu0 %v23797_v61 }
 0x5e2   : > { %22910 = vmatprep.subr.bf16.mxu0 %v23798_v53 }
 0x5e5   : > { %22911 = vmatpush3.bf16.msra.mxu0 %v23798_v53 }
 0x5e6   : > { %22912 = vmatprep.subr.bf16.mxu0 %v23799_v13 }
 0x5e9   : > { %22913 = vmatpush3.bf16.msra.mxu0 %v23799_v13 }
 0x5ea   : > { %22914 = vmatprep.subr.bf16.mxu0 %v23800_v42 }
 0x5ed   : > { %22915 = vmatpush3.bf16.msra.mxu0 %v23800_v42 }
 0x5ee   : > { %22924 = vmatprep.subr.bf16.mxu0 %v23804_v62 }
 0x5f0   : > { %22917 = vmatmul.mubr.bf16.vlgmr.msra.gmra.mrb[136].mxu0 %v31845_v44 }
 0x5f1   : > { %22920 = vmatprep.mubr.bf16.mxu0 %v31846_v16  ;;  %22925 = vmatpush3.bf16.msra.mxu0 %v23804_v62 }
 0x5f2   : > { %22926 = vmatprep.subr.bf16.mxu0 %v23805_v25 }
 0x5f5   : > { %22927 = vmatpush3.bf16.msra.mxu0 %v23805_v25 }
 0x5f6   : > { %22928 = vmatprep.subr.bf16.mxu0 %v23806_v18 }
 0x5f8   : > { %22921 = vmatmul.mubr.bf16.gmra.mrb[140].mxu0 %v31847_v20 }
 0x5f9   : > { %22929 = vmatpush3.bf16.msra.mxu0 %v23806_v18  ;;  %22940 = vmatprep.mubr.bf16.mxu0 %v31848_v36 }
 0x5fa   : > { %22930 = vmatprep.subr.bf16.mxu0 %v23807_v21 }
 0x5fd   : > { %22931 = vmatpush3.bf16.msra.mxu0 %v23807_v21 }
 0x5fe   : > { %22932 = vmatprep.subr.bf16.mxu0 %v23808_v40 }
 0x601   : > { %22933 = vmatpush3.bf16.msra.mxu0 %v23808_v40 }
 0x602   : > { %22934 = vmatprep.subr.bf16.mxu0 %v23809_v15 }
 0x605   : > { %22935 = vmatpush3.bf16.msra.mxu0 %v23809_v15 }
 0x606   : > { %22936 = vmatprep.subr.bf16.mxu0 %v23810_v60 }
 0x609   : > { %22937 = vmatpush3.bf16.msra.mxu0 %v23810_v60 }
 0x60a   : > { %22938 = vmatprep.subr.bf16.mxu0 %v23811_v7 }
 0x60d   : > { %22939 = vmatpush3.bf16.msra.mxu0 %v23811_v7 }
 0x60e   : > { %22948 = vmatprep.subr.bf16.mxu0 %v23812_v14 }
 0x610   : > { %22941 = vmatmul.mubr.bf16.vlgmr.msra.gmra.mrb[136].mxu0 %v31851_v5 }
 0x611   : > { %22944 = vmatprep.mubr.bf16.mxu0 %v9781_v2  ;;  %22949 = vmatpush3.bf16.msra.mxu0 %v23812_v14  ;;  %v23837_v2 = vld [vmem:[%s30776_s5 + $0xc0c] ss:$16 sps:$4 sm:$0xff]  }
 0x612   : > { %22950 = vmatprep.subr.bf16.mxu0 %v23813_v17 }
 0x615   : > { %22951 = vmatpush3.bf16.msra.mxu0 %v23813_v17  ;;  %v23859_v17 = vld [vmem:[%s30776_s5 + $0x108] ss:$16 sps:$4 sm:$0xff]  }
 0x616   : > { %22952 = vmatprep.subr.bf16.mxu0 %v23814_v34 }
 0x618   : > { %22945 = vmatmul.mubr.bf16.gmra.mrb[140].mxu0 %v31853_v55  ;;  %v23868_v55 = vld [vmem:[%s30776_s5 + $0xd28] ss:$16 sps:$4 sm:$0xff]  }
 0x619   : > { %22953 = vmatpush3.bf16.msra.mxu0 %v23814_v34  ;;  %22964 = vmatprep.mubr.bf16.mxu0 %v9783_v30  ;;  %v23840_v30 = vld [vmem:[%s30776_s5 + $0xc2c] ss:$16 sps:$4 sm:$0xff]  }
 0x61a   : > { %22954 = vmatprep.subr.bf16.mxu0 %v23815_v1  ;;  %v23867_v34 = vld [vmem:[%s30776_s5 + $0x12c] ss:$16 sps:$4 sm:$0xff]  }
 0x61d   : > { %22955 = vmatpush3.bf16.msra.mxu0 %v23815_v1  ;;  %v23870_v1 = vld [vmem:[%s30776_s5 + $0xd2c] ss:$16 sps:$4 sm:$0xff]  }
 0x61e   : > { %22956 = vmatprep.subr.bf16.mxu0 %v23816_v26 }
 0x621   : > { %22957 = vmatpush3.bf16.msra.mxu0 %v23816_v26  ;;  %v23873_v26 = vld [vmem:[%s30776_s5 + $0x14c] ss:$16 sps:$4 sm:$0xff]  }
 0x622   : > { %22958 = vmatprep.subr.bf16.mxu0 %v23820_v39 }
 0x625   : > { %22959 = vmatpush3.bf16.msra.mxu0 %v23820_v39  ;;  %v23876_v39 = vld [vmem:[%s30776_s5 + $0xd4c] ss:$16 sps:$4 sm:$0xff]  }
 0x626   : > { %22960 = vmatprep.subr.bf16.mxu0 %v23821_v47 }
 0x629   : > { %22961 = vmatpush3.bf16.msra.mxu0 %v23821_v47  ;;  %v23871_v47 = vld [vmem:[%s30776_s5 + $0x148] ss:$16 sps:$4 sm:$0xff]  }
 0x62a   : > { %22962 = vmatprep.subr.bf16.mxu0 %v23822_v4 }
 0x62d   : > { %22963 = vmatpush3.bf16.msra.mxu0 %v23822_v4  ;;  %v23874_v4 = vld [vmem:[%s30776_s5 + $0xd48] ss:$16 sps:$4 sm:$0xff]  }
 0x62e   : > { %17050 = vmatprep.subr.bf16.mxu0 %v23837_v2  ;;  %v23879_v2 = vld [vmem:[%s30776_s5 + $0x16c] ss:$16 sps:$4 sm:$0xff]  }
 0x630   : > { %22965 = vmatmul.mubr.bf16.vlgmr.msra.gmra.mrb[136].mxu0 %v31854_v29  ;;  %v23880_v29 = vld [vmem:[%s30776_s5 + $0xd68] ss:$16 sps:$4 sm:$0xff]  }
 0x631   : > { %22968 = vmatprep.mubr.bf16.mxu0 %v9785_v43  ;;  %17051 = vmatpush1.bf16.msra.mxu0 %v23835_v19  ;;  %v23855_v43 = vld [vmem:[%s30776_s5 + $0xccc] ss:$16 sps:$4 sm:$0xff]  }
 0x632   : > { %17052 = vmatprep.subr.bf16.mxu0 %v23840_v30  ;;  %v23882_v19 = vld [vmem:[%s30776_s5 + $0xd6c] ss:$16 sps:$4 sm:$0xff]   ;;  %v23877_v30 = vld [vmem:[%s30776_s5 + $0x168] ss:$16 sps:$4 sm:$0xff]  }
 0x635   : > { %17053 = vmatpush1.bf16.msra.mxu0 %v23838_v57  ;;  %v23885_v57 = vld [vmem:[%s30776_s5 + $0x18c] ss:$16 sps:$4 sm:$0xff]  }
 0x636   : > { %17054 = vmatprep.subr.bf16.mxu0 %v23843_v50  ;;  %v23888_v50 = vld [vmem:[%s30776_s5 + $0xd8c] ss:$16 sps:$4 sm:$0xff]  }
 0x638   : > { %22969 = vmatmul.mubr.bf16.gmra.mrb[140].mxu0 %v9786_v23  ;;  %v23850_v23 = vld [vmem:[%s30776_s5 + $0xca8] ss:$16 sps:$4 sm:$0xff]  }
 0x639   : > { %17055 = vmatpush1.bf16.msra.mxu0 %v23841_v54  ;;  %17082 = vmatprep.mubr.bf16.mxu0 %v24691_v22  ;;  %v23883_v54 = vld [vmem:[%s30776_s5 + $0x188] ss:$16 sps:$4 sm:$0xff]  }
 0x63a   : > { %17056 = vmatprep.subr.bf16.mxu0 %v23846_v41  ;;  %v23886_v41 = vld [vmem:[%s30776_s5 + $0xd88] ss:$16 sps:$4 sm:$0xff]  }
 0x63d   : > { %17057 = vmatpush1.bf16.msra.mxu0 %v23844_v0  ;;  %v23891_v0 = vld [vmem:[%s30776_s5 + $0x1ac] ss:$16 sps:$4 sm:$0xff]  }
 0x63e   : > { %17058 = vmatprep.subr.bf16.mxu0 %v23849_v8  ;;  %v23894_v8 = vld [vmem:[%s30776_s5 + $0xdac] ss:$16 sps:$4 sm:$0xff]  }
 0x641   : > { %17059 = vmatpush1.bf16.msra.mxu0 %v23847_v31  ;;  %v23889_v31 = vld [vmem:[%s30776_s5 + $0x1a8] ss:$16 sps:$4 sm:$0xff]  }
 0x642   : > { %17060 = vmatprep.subr.bf16.mxu0 %v23852_v37  ;;  %v23892_v37 = vld [vmem:[%s30776_s5 + $0xda8] ss:$16 sps:$4 sm:$0xff]  }
 0x645   : > { %17061 = vmatpush1.bf16.msra.mxu0 %v23850_v23  ;;  %v23897_v23 = vld [vmem:[%s30776_s5 + $0x1cc] ss:$16 sps:$4 sm:$0xff]  }
 0x646   : > { %17062 = vmatprep.subr.bf16.mxu0 %v23855_v43  ;;  %v23900_v43 = vld [vmem:[%s30776_s5 + $0xdcc] ss:$16 sps:$4 sm:$0xff]  }
 0x649   : > { %17063 = vmatpush1.bf16.msra.mxu0 %v23853_v51  ;;  %v23895_v51 = vld [vmem:[%s30776_s5 + $0x1c8] ss:$16 sps:$4 sm:$0xff]  }
 0x64a   : > { %17064 = vmatprep.subr.bf16.mxu0 %v23858_v38  ;;  %v23898_v38 = vld [vmem:[%s30776_s5 + $0xdc8] ss:$16 sps:$4 sm:$0xff]  }
 0x64d   : > { %17065 = vmatpush1.bf16.msra.mxu0 %v23856_v63  ;;  %v23903_v63 = vld [vmem:[%s30776_s5 + $0x1ec] ss:$16 sps:$4 sm:$0xff]  }
 0x64e   : > { %17331 = vmatprep.subr.bf16.mxu0 %v23864_v56  ;;  %v23901_v56 = vld [vmem:[%s30776_s5 + $0x1e8] ss:$16 sps:$4 sm:$0xff]  }
 0x703   : > { %v22966_v9 = vpop.f32.mrb[136].mxu0 }
 0x704   : > { %v13381_v28 = vpop.f32.mrb[137].mxu0  ;;  %v13429_v45 = vadd.f32 %v22966_v9, %v19776_v48  ;;  %v23904_v9 = vld [vmem:[%s30776_s5 + $0xde8] ss:$16 sps:$4 sm:$0xff]  }
 0x705   : > { %v22967_v24 = vpop.f32.mrb[138].mxu0  ;;  %v13427_v11 = vadd.f32 %v19776_v48, %v13381_v28  ;;  %v23909_v28 = vld [vmem:[%s30776_s5 + $0x4] ss:$16 sps:$4 sm:$0xff]  }
 0x706   : > { %v13384_v12 = vpop.f32.mrb[139].mxu0  ;;  %v13430_v35 = vadd.f32 %v22967_v24, %v19776_v48  ;;  %v13437_v53 = vmax.f32 %v13429_v45, 0.0  ;;  %v23912_v24 = vld [vmem:[%s30776_s5 + $0xe0c] ss:$16 sps:$4 sm:$0xff]  }
 0x707   : > { %v13428_v6 = vadd.f32 %v19776_v48, %v13384_v12  ;;  %v13435_v25 = vmax.f32 %v13427_v11, 0.0  ;;  %v23907_v12 = vld [vmem:[%s30776_s5] ss:$16 sps:$4 sm:$0xff]   ;;  %v23915_v11 = vld [vmem:[%s30776_s5 + $0x24] ss:$16 sps:$4 sm:$0xff]  }
 0x708   : > { %v13438_v44 = vmax.f32 %v13430_v35, 0.0  ;;  %v23913_v35 = vld [vmem:[%s30776_s5 + $0x20] ss:$16 sps:$4 sm:$0xff]  }
 0x709   : > { %v13436_v21 = vmax.f32 %v13428_v6, 0.0  ;;  %v23924_v6 = vld [vmem:[%s30776_s5 + $0xe4c] ss:$16 sps:$4 sm:$0xff]  }
 0x70b   : > { %v22970_v3 = vpop.f32.mrb[140].mxu0 }
 0x70c   : > { %v13433_v46 = vadd.f32 %v22970_v3, %v19776_v48  ;;  %v13397_v49 = vpop.f32.mrb[141].mxu0  ;;  %v23918_v3 = vld [vmem:[%s30776_s5 + $0xe2c] ss:$16 sps:$4 sm:$0xff]  }
 0x70d   : > { %v13431_v58 = vadd.f32 %v19776_v48, %v13397_v49  ;;  %v22971_v61 = vpop.f32.mrb[142].mxu0  ;;  %v23921_v49 = vld [vmem:[%s30776_s5 + $0x44] ss:$16 sps:$4 sm:$0xff]  }
 0x70e   : > { %v13441_v13 = vmax.f32 %v13433_v46, 0.0  ;;  %v13434_v42 = vadd.f32 %v22971_v61, %v19776_v48  ;;  %v13400_v62 = vpop.f32.mrb[143].mxu0  ;;  %v23916_v46 = vld [vmem:[%s30776_s5 + $0xe28] ss:$16 sps:$4 sm:$0xff]  }
 0x70f   : > { %v13439_v32 = vmax.f32 %v13431_v58, 0.0  ;;  %v13432_v52 = vadd.f32 %v19776_v48, %v13400_v62  ;;  %v23910_v48 = vld [vmem:[%s30776_s5 + $0xe08] ss:$16 sps:$4 sm:$0xff]   ;;  %v23919_v58 = vld [vmem:[%s30776_s5 + $0x40] ss:$16 sps:$4 sm:$0xff]  }
 0x710   : > { %v13444_v16 = vmax.f32 %v13437_v53, %v13441_v13  ;;  %v13442_v18 = vmax.f32 %v13434_v42, 0.0  ;;  %v23922_v61 = vld [vmem:[%s30776_s5 + $0xe48] ss:$16 sps:$4 sm:$0xff]   ;;  %v23927_v53 = vld [vmem:[%s30776_s5 + $0x64] ss:$16 sps:$4 sm:$0xff]  }
 0x711   : > { %v13443_v20 = vmax.f32 %v13435_v25, %v13439_v32  ;;  %v13440_v36 = vmax.f32 %v13432_v52, 0.0  ;;  %v23930_v13 = vld [vmem:[%s30776_s5 + $0xe6c] ss:$16 sps:$4 sm:$0xff]   ;;  %v23925_v42 = vld [vmem:[%s30776_s5 + $0x60] ss:$16 sps:$4 sm:$0xff]  }
 0x712   : > { %v13447_v40 = vmax.f32 %v13438_v44, %v13442_v18  ;;  %v23928_v62 = vld [vmem:[%s30776_s5 + $0xe68] ss:$16 sps:$4 sm:$0xff]   ;;  %v23933_v25 = vld [vmem:[%s30776_s5 + $0x84] ss:$16 sps:$4 sm:$0xff]   ;;  %v23936_v32 = vld [vmem:[%s30776_s5 + $0xe8c] ss:$16 sps:$4 sm:$0xff]  }
 0x713   : > { %v13445_v15 = vmax.f32 %v13443_v20, %v13444_v16  ;;  %v13446_v60 = vmax.f32 %v13436_v21, %v13440_v36  ;;  %v23931_v52 = vld [vmem:[%s30776_s5 + $0x80] ss:$16 sps:$4 sm:$0xff]   ;;  %v23934_v44 = vld [vmem:[%s30776_s5 + $0xe88] ss:$16 sps:$4 sm:$0xff]   ;;  %v23939_v16 = vld [vmem:[%s30776_s5 + $0xa4] ss:$16 sps:$4 sm:$0xff]  }
 0x714   : > { %v23942_v18 = vld [vmem:[%s30776_s5 + $0xeac] ss:$16 sps:$4 sm:$0xff]   ;;  %v23937_v21 = vld [vmem:[%s30776_s5 + $0xa0] ss:$16 sps:$4 sm:$0xff]   ;;  %v23940_v20 = vld [vmem:[%s30776_s5 + $0xea8] ss:$16 sps:$4 sm:$0xff]  }
 0x715   : > { %v13448_v7 = vmax.f32 %v13446_v60, %v13447_v40  ;;  %v23945_v36 = vld [vmem:[%s30776_s5 + $0xc4] ss:$16 sps:$4 sm:$0xff]   ;;  %v23948_v40 = vld [vmem:[%s30776_s5 + $0xecc] ss:$16 sps:$4 sm:$0xff]   ;;  %v23946_v60 = vld [vmem:[%s30776_s5 + $0xec8] ss:$16 sps:$4 sm:$0xff]  }
 0x717   : > { %v28969_v14 = vpack.c.bf16 %v13448_v7, %v13445_v15  ;;  %v23943_v15 = vld [vmem:[%s30776_s5 + $0xc0] ss:$16 sps:$4 sm:$0xff]   ;;  %v23951_v7 = vld [vmem:[%s30776_s5 + $0xe4] ss:$16 sps:$4 sm:$0xff]  }
 0x719   : > { %v28978_v27 = vshrl.u32 %v28969_v14, 16  ;;  %v16847_v5 = vrot.slane %v28969_v14, 6 }
 0x71b   : > { %13712 = vmatmul.mubr.bf16.vlgmr.msra.gmra.mrb[152].mxu1 %v28978_v27  ;;  %17083 = vmatmul.mubr.bf16.vlgmr.msra.gmra.mrb[144].mxu0 %v16847_v5  ;;  %v17128_v45 = vrot.slane %v28978_v27, 6 }
 0x71c   : > { %13721 = vmatpush1.bf16.msra.mxu1 %v23859_v17  ;;  %17332 = vmatpush1.bf16.msra.mxu0 %v23862_v33  ;;  %v23954_v17 = vld [vmem:[%s30776_s5 + $0xeec] ss:$16 sps:$4 sm:$0xff]   ;;  %v23949_v33 = vld [vmem:[%s30776_s5 + $0xe0] ss:$16 sps:$4 sm:$0xff]  }
 0x71d   : > { %13722 = vmatprep.subr.bf16.mxu1 %v23867_v34  ;;  %17333 = vmatprep.subr.bf16.mxu0 %v23870_v1  ;;  %v23952_v34 = vld [vmem:[%s30776_s5 + $0xee8] ss:$16 sps:$4 sm:$0xff]   ;;  %v23957_v1 = vld [vmem:[%s30776_s5 + $0xc] ss:$16 sps:$4 sm:$0xff]  }
 0x71e   : > { %13752 = vmatprep.mubr.bf16.mxu1 %v24691_v22  ;;  %17363 = vmatprep.mubr.bf16.mxu0 %v24691_v22 }
 0x720   : > { %13723 = vmatpush1.bf16.msra.mxu1 %v23865_v59  ;;  %17334 = vmatpush1.bf16.msra.mxu0 %v23868_v55  ;;  %v23960_v59 = vld [vmem:[%s30776_s5 + $0xf0c] ss:$16 sps:$4 sm:$0xff]   ;;  %v23955_v55 = vld [vmem:[%s30776_s5 + $0x8] ss:$16 sps:$4 sm:$0xff]  }
 0x721   : > { %13724 = vmatprep.subr.bf16.mxu1 %v23873_v26  ;;  %17335 = vmatprep.subr.bf16.mxu0 %v23876_v39  ;;  %v23958_v26 = vld [vmem:[%s30776_s5 + $0xf08] ss:$16 sps:$4 sm:$0xff]   ;;  %v17409_v39 = vrot.slane %v28969_v14, 7 }
 0x724   : > { %13725 = vmatpush1.bf16.msra.mxu1 %v23871_v47  ;;  %17336 = vmatpush1.bf16.msra.mxu0 %v23874_v4  ;;  %v23963_v47 = vld [vmem:[%s30776_s5 + $0x2c] ss:$16 sps:$4 sm:$0xff]  }
 0x725   : > { %13726 = vmatprep.subr.bf16.mxu1 %v23879_v2  ;;  %17337 = vmatprep.subr.bf16.mxu0 %v23882_v19  ;;  %v23966_v4 = vld [vmem:[%s30776_s5 + $0xf2c] ss:$16 sps:$4 sm:$0xff]   ;;  %v23961_v2 = vld [vmem:[%s30776_s5 + $0x28] ss:$16 sps:$4 sm:$0xff]  }
 0x726   : > { %v23964_v19 = vld [vmem:[%s30776_s5 + $0xf28] ss:$16 sps:$4 sm:$0xff]  }
 0x728   : > { %13727 = vmatpush1.bf16.msra.mxu1 %v23877_v30  ;;  %17338 = vmatpush1.bf16.msra.mxu0 %v23880_v29  ;;  %v23969_v30 = vld [vmem:[%s30776_s5 + $0x4c] ss:$16 sps:$4 sm:$0xff]  }
 0x729   : > { %13728 = vmatprep.subr.bf16.mxu1 %v23885_v57  ;;  %17339 = vmatprep.subr.bf16.mxu0 %v23888_v50  ;;  %v23972_v29 = vld [vmem:[%s30776_s5 + $0xf4c] ss:$16 sps:$4 sm:$0xff]   ;;  %v23967_v57 = vld [vmem:[%s30776_s5 + $0x48] ss:$16 sps:$4 sm:$0xff]  }
 0x72a   : > { %v23970_v50 = vld [vmem:[%s30776_s5 + $0xf48] ss:$16 sps:$4 sm:$0xff]  }
 0x72c   : > { %13729 = vmatpush1.bf16.msra.mxu1 %v23883_v54  ;;  %17340 = vmatpush1.bf16.msra.mxu0 %v23886_v41  ;;  %v23975_v54 = vld [vmem:[%s30776_s5 + $0x6c] ss:$16 sps:$4 sm:$0xff]  }
 0x72d   : > { %13730 = vmatprep.subr.bf16.mxu1 %v23891_v0  ;;  %17341 = vmatprep.subr.bf16.mxu0 %v23894_v8  ;;  %v23978_v41 = vld [vmem:[%s30776_s5 + $0xf6c] ss:$16 sps:$4 sm:$0xff]   ;;  %v23973_v0 = vld [vmem:[%s30776_s5 + $0x68] ss:$16 sps:$4 sm:$0xff]  }
 0x72e   : > { %v23976_v8 = vld [vmem:[%s30776_s5 + $0xf68] ss:$16 sps:$4 sm:$0xff]  }
 0x730   : > { %13731 = vmatpush1.bf16.msra.mxu1 %v23889_v31  ;;  %17342 = vmatpush1.bf16.msra.mxu0 %v23892_v37  ;;  %v23981_v31 = vld [vmem:[%s30776_s5 + $0x8c] ss:$16 sps:$4 sm:$0xff]  }
 0x731   : > { %13732 = vmatprep.subr.bf16.mxu1 %v23897_v23  ;;  %17343 = vmatprep.subr.bf16.mxu0 %v23900_v43  ;;  %v23984_v37 = vld [vmem:[%s30776_s5 + $0xf8c] ss:$16 sps:$4 sm:$0xff]   ;;  %v23979_v23 = vld [vmem:[%s30776_s5 + $0x88] ss:$16 sps:$4 sm:$0xff]  }
 0x732   : > { %v23982_v43 = vld [vmem:[%s30776_s5 + $0xf88] ss:$16 sps:$4 sm:$0xff]  }
 0x734   : > { %13733 = vmatpush1.bf16.msra.mxu1 %v23895_v51  ;;  %17344 = vmatpush1.bf16.msra.mxu0 %v23898_v38  ;;  %v23987_v51 = vld [vmem:[%s30776_s5 + $0xac] ss:$16 sps:$4 sm:$0xff]  }
 0x735   : > { %13734 = vmatprep.subr.bf16.mxu1 %v23903_v63  ;;  %17345 = vmatprep.subr.bf16.mxu0 %v23906_v10  ;;  %v23990_v38 = vld [vmem:[%s30776_s5 + $0xfac] ss:$16 sps:$4 sm:$0xff]   ;;  %v23985_v63 = vld [vmem:[%s30776_s5 + $0xa8] ss:$16 sps:$4 sm:$0xff]  }
 0x736   : > { %v23988_v10 = vld [vmem:[%s30776_s5 + $0xfa8] ss:$16 sps:$4 sm:$0xff]  }
 0x738   : > { %13735 = vmatpush1.bf16.msra.mxu1 %v23901_v56  ;;  %17346 = vmatpush1.bf16.msra.mxu0 %v23904_v9  ;;  %v23993_v56 = vld [vmem:[%s30776_s5 + $0xcc] ss:$16 sps:$4 sm:$0xff]  }
 0x739   : > { %13921 = vmatprep.subr.bf16.mxu1 %v23909_v28  ;;  %17612 = vmatprep.subr.bf16.mxu0 %v23912_v24  ;;  %v23996_v9 = vld [vmem:[%s30776_s5 + $0xfcc] ss:$16 sps:$4 sm:$0xff]   ;;  %v23991_v28 = vld [vmem:[%s30776_s5 + $0xc8] ss:$16 sps:$4 sm:$0xff]  }
 0x73a   : > { %v23994_v24 = vld [vmem:[%s30776_s5 + $0xfc8] ss:$16 sps:$4 sm:$0xff]  }
 0x73b   : > { %13753 = vmatmul.mubr.bf16.vlgmr.msra.gmra.mrb[156].mxu1 %v28978_v27  ;;  %17364 = vmatmul.mubr.bf16.vlgmr.msra.gmra.mrb[148].mxu0 %v17128_v45 }
 0x73c   : > { %13922 = vmatpush1.bf16.msra.mxu1 %v23907_v12  ;;  %17613 = vmatpush1.bf16.msra.mxu0 %v23910_v48  ;;  %v23999_v12 = vld [vmem:[%s30776_s5 + $0xec] ss:$16 sps:$4 sm:$0xff]  }
 0x73d   : > { %13923 = vmatprep.subr.bf16.mxu1 %v23915_v11  ;;  %17614 = vmatprep.subr.bf16.mxu0 %v23918_v3  ;;  %v24002_v48 = vld [vmem:[%s30776_s5 + $0xfec] ss:$16 sps:$4 sm:$0xff]   ;;  %v23997_v11 = vld [vmem:[%s30776_s5 + $0xe8] ss:$16 sps:$4 sm:$0xff]  }
 0x73e   : > { %13953 = vmatprep.mubr.bf16.mxu1 %v24691_v22  ;;  %17644 = vmatprep.mubr.bf16.mxu0 %v24691_v22  ;;  %v24000_v3 = vld [vmem:[%s30776_s5 + $0xfe8] ss:$16 sps:$4 sm:$0xff]  }
 0x740   : > { %13924 = vmatpush1.bf16.msra.mxu1 %v23913_v35  ;;  %17615 = vmatpush1.bf16.msra.mxu0 %v23916_v46  ;;  %v24005_v35 = vld [vmem:[%s30776_s5 + $0x204] ss:$16 sps:$4 sm:$0xff]   ;;  %v24003_v46 = vld [vmem:[%s30776_s5 + $0x200] ss:$16 sps:$4 sm:$0xff]  }
 0x741   : > { %13925 = vmatprep.subr.bf16.mxu1 %v23921_v49  ;;  %17616 = vmatprep.subr.bf16.mxu0 %v23924_v6  ;;  %v17690_v49 = vrot.slane %v28978_v27, 7  ;;  %v24008_v6 = vld [vmem:[%s30776_s5 + $0x224] ss:$16 sps:$4 sm:$0xff]  }
 0x744   : > { %13926 = vmatpush1.bf16.msra.mxu1 %v23919_v58  ;;  %17617 = vmatpush1.bf16.msra.mxu0 %v23922_v61  ;;  %v24006_v58 = vld [vmem:[%s30776_s5 + $0x220] ss:$16 sps:$4 sm:$0xff]   ;;  %v24011_v61 = vld [vmem:[%s30776_s5 + $0x244] ss:$16 sps:$4 sm:$0xff]  }
 0x745   : > { %13927 = vmatprep.subr.bf16.mxu1 %v23927_v53  ;;  %17618 = vmatprep.subr.bf16.mxu0 %v23930_v13  ;;  %v24009_v53 = vld [vmem:[%s30776_s5 + $0x240] ss:$16 sps:$4 sm:$0xff]   ;;  %v24014_v13 = vld [vmem:[%s30776_s5 + $0x264] ss:$16 sps:$4 sm:$0xff]  }
 0x748   : > { %13928 = vmatpush1.bf16.msra.mxu1 %v23925_v42  ;;  %17619 = vmatpush1.bf16.msra.mxu0 %v23928_v62  ;;  %v24012_v42 = vld [vmem:[%s30776_s5 + $0x260] ss:$16 sps:$4 sm:$0xff]   ;;  %v24017_v62 = vld [vmem:[%s30776_s5 + $0x284] ss:$16 sps:$4 sm:$0xff]  }
 0x749   : > { %13929 = vmatprep.subr.bf16.mxu1 %v23933_v25  ;;  %17620 = vmatprep.subr.bf16.mxu0 %v23936_v32  ;;  %v24015_v25 = vld [vmem:[%s30776_s5 + $0x280] ss:$16 sps:$4 sm:$0xff]   ;;  %v24020_v32 = vld [vmem:[%s30776_s5 + $0x2a4] ss:$16 sps:$4 sm:$0xff]  }
 0x74c   : > { %13930 = vmatpush1.bf16.msra.mxu1 %v23931_v52  ;;  %17621 = vmatpush1.bf16.msra.mxu0 %v23934_v44  ;;  %v24018_v52 = vld [vmem:[%s30776_s5 + $0x2a0] ss:$16 sps:$4 sm:$0xff]   ;;  %v24023_v44 = vld [vmem:[%s30776_s5 + $0x2c4] ss:$16 sps:$4 sm:$0xff]  }
 0x74d   : > { %13931 = vmatprep.subr.bf16.mxu1 %v23939_v16  ;;  %17622 = vmatprep.subr.bf16.mxu0 %v23942_v18  ;;  %v24021_v16 = vld [vmem:[%s30776_s5 + $0x2c0] ss:$16 sps:$4 sm:$0xff]   ;;  %v24026_v18 = vld [vmem:[%s30776_s5 + $0x2e4] ss:$16 sps:$4 sm:$0xff]  }
 0x750   : > { %13932 = vmatpush1.bf16.msra.mxu1 %v23937_v21  ;;  %17623 = vmatpush1.bf16.msra.mxu0 %v23940_v20  ;;  %v24024_v21 = vld [vmem:[%s30776_s5 + $0x2e0] ss:$16 sps:$4 sm:$0xff]   ;;  %v24029_v20 = vld [vmem:[%s30776_s5 + $0x20c] ss:$16 sps:$4 sm:$0xff]  }
 0x751   : > { %13933 = vmatprep.subr.bf16.mxu1 %v23945_v36  ;;  %17624 = vmatprep.subr.bf16.mxu0 %v23948_v40  ;;  %v24027_v36 = vld [vmem:[%s30776_s5 + $0x208] ss:$16 sps:$4 sm:$0xff]   ;;  %v14037_v40 = vrot.slane %v28969_v14, 1 }
 0x754   : > { %13934 = vmatpush1.bf16.msra.mxu1 %v23943_v15  ;;  %17625 = vmatpush1.bf16.msra.mxu0 %v23946_v60  ;;  %v24032_v15 = vld [vmem:[%s30776_s5 + $0x22c] ss:$16 sps:$4 sm:$0xff]   ;;  %v24030_v60 = vld [vmem:[%s30776_s5 + $0x228] ss:$16 sps:$4 sm:$0xff]  }
 0x755   : > { %13935 = vmatprep.subr.bf16.mxu1 %v23951_v7  ;;  %17626 = vmatprep.subr.bf16.mxu0 %v23954_v17  ;;  %v24035_v7 = vld [vmem:[%s30776_s5 + $0x24c] ss:$16 sps:$4 sm:$0xff]   ;;  %v24033_v17 = vld [vmem:[%s30776_s5 + $0x248] ss:$16 sps:$4 sm:$0xff]  }
 0x758   : > { %13936 = vmatpush1.bf16.msra.mxu1 %v23949_v33  ;;  %17627 = vmatpush1.bf16.msra.mxu0 %v23952_v34  ;;  %v24038_v33 = vld [vmem:[%s30776_s5 + $0x26c] ss:$16 sps:$4 sm:$0xff]   ;;  %v24036_v34 = vld [vmem:[%s30776_s5 + $0x268] ss:$16 sps:$4 sm:$0xff]  }
 0x759   : > { %13962 = vmatprep.subr.bf16.mxu1 %v23957_v1  ;;  %17893 = vmatprep.subr.bf16.mxu0 %v23960_v59  ;;  %v24041_v1 = vld [vmem:[%s30776_s5 + $0x28c] ss:$16 sps:$4 sm:$0xff]   ;;  %v24039_v59 = vld [vmem:[%s30776_s5 + $0x288] ss:$16 sps:$4 sm:$0xff]  }
 0x75b   : > { %13954 = vmatmul.mubr.bf16.vlgmr.msra.gmra.mrb[160].mxu1 %v28969_v14  ;;  %17645 = vmatmul.mubr.bf16.vlgmr.msra.gmra.mrb[152].mxu0 %v17409_v39 }
 0x75c   : > { %13963 = vmatpush1.bf16.msra.mxu1 %v23955_v55  ;;  %17894 = vmatpush1.bf16.msra.mxu0 %v23958_v26  ;;  %v24044_v55 = vld [vmem:[%s30776_s5 + $0x2ac] ss:$16 sps:$4 sm:$0xff]   ;;  %v24042_v26 = vld [vmem:[%s30776_s5 + $0x2a8] ss:$16 sps:$4 sm:$0xff]  }
 0x75d   : > { %13964 = vmatprep.subr.bf16.mxu1 %v23963_v47  ;;  %17895 = vmatprep.subr.bf16.mxu0 %v23966_v4  ;;  %v24047_v47 = vld [vmem:[%s30776_s5 + $0x2cc] ss:$16 sps:$4 sm:$0xff]   ;;  %v24045_v4 = vld [vmem:[%s30776_s5 + $0x2c8] ss:$16 sps:$4 sm:$0xff]  }
 0x75e   : > { %13994 = vmatprep.mubr.bf16.mxu1 %v24691_v22  ;;  %17925 = vmatprep.mubr.bf16.mxu0 %v24691_v22 }
 0x760   : > { %13965 = vmatpush1.bf16.msra.mxu1 %v23961_v2  ;;  %17896 = vmatpush1.bf16.msra.mxu0 %v23964_v19  ;;  %v24050_v2 = vld [vmem:[%s30776_s5 + $0x2ec] ss:$16 sps:$4 sm:$0xff]   ;;  %v24048_v19 = vld [vmem:[%s30776_s5 + $0x2e8] ss:$16 sps:$4 sm:$0xff]  }
 0x761   : > { %13966 = vmatprep.subr.bf16.mxu1 %v23969_v30  ;;  %17897 = vmatprep.subr.bf16.mxu0 %v23972_v29  ;;  %v24053_v30 = vld [vmem:[%s30776_s5 + $0x304] ss:$16 sps:$4 sm:$0xff]   ;;  %v24051_v29 = vld [vmem:[%s30776_s5 + $0x300] ss:$16 sps:$4 sm:$0xff]  }
 0x764   : > { %13967 = vmatpush1.bf16.msra.mxu1 %v23967_v57  ;;  %17898 = vmatpush1.bf16.msra.mxu0 %v23970_v50  ;;  %v24056_v57 = vld [vmem:[%s30776_s5 + $0x324] ss:$16 sps:$4 sm:$0xff]   ;;  %v24054_v50 = vld [vmem:[%s30776_s5 + $0x320] ss:$16 sps:$4 sm:$0xff]  }
 0x765   : > { %13968 = vmatprep.subr.bf16.mxu1 %v23975_v54  ;;  %17899 = vmatprep.subr.bf16.mxu0 %v23978_v41  ;;  %v24059_v54 = vld [vmem:[%s30776_s5 + $0x344] ss:$16 sps:$4 sm:$0xff]   ;;  %v24057_v41 = vld [vmem:[%s30776_s5 + $0x340] ss:$16 sps:$4 sm:$0xff]  }
 0x768   : > { %13969 = vmatpush1.bf16.msra.mxu1 %v23973_v0  ;;  %17900 = vmatpush1.bf16.msra.mxu0 %v23976_v8  ;;  %v24062_v0 = vld [vmem:[%s30776_s5 + $0x364] ss:$16 sps:$4 sm:$0xff]   ;;  %v24060_v8 = vld [vmem:[%s30776_s5 + $0x360] ss:$16 sps:$4 sm:$0xff]  }
 0x769   : > { %13970 = vmatprep.subr.bf16.mxu1 %v23981_v31  ;;  %17901 = vmatprep.subr.bf16.mxu0 %v23984_v37  ;;  %v24065_v31 = vld [vmem:[%s30776_s5 + $0x384] ss:$16 sps:$4 sm:$0xff]   ;;  %v24063_v37 = vld [vmem:[%s30776_s5 + $0x380] ss:$16 sps:$4 sm:$0xff]  }
 0x76c   : > { %13971 = vmatpush1.bf16.msra.mxu1 %v23979_v23  ;;  %17902 = vmatpush1.bf16.msra.mxu0 %v23982_v43  ;;  %v24068_v23 = vld [vmem:[%s30776_s5 + $0x3a4] ss:$16 sps:$4 sm:$0xff]   ;;  %v24066_v43 = vld [vmem:[%s30776_s5 + $0x3a0] ss:$16 sps:$4 sm:$0xff]  }
 0x76d   : > { %13972 = vmatprep.subr.bf16.mxu1 %v23987_v51  ;;  %17903 = vmatprep.subr.bf16.mxu0 %v23990_v38  ;;  %v24071_v51 = vld [vmem:[%s30776_s5 + $0x3c4] ss:$16 sps:$4 sm:$0xff]   ;;  %v24069_v38 = vld [vmem:[%s30776_s5 + $0x3c0] ss:$16 sps:$4 sm:$0xff]  }
 0x770   : > { %13973 = vmatpush1.bf16.msra.mxu1 %v23985_v63  ;;  %17904 = vmatpush1.bf16.msra.mxu0 %v23988_v10  ;;  %v24074_v63 = vld [vmem:[%s30776_s5 + $0x3e4] ss:$16 sps:$4 sm:$0xff]   ;;  %v24072_v10 = vld [vmem:[%s30776_s5 + $0x3e0] ss:$16 sps:$4 sm:$0xff]  }
 0x771   : > { %13974 = vmatprep.subr.bf16.mxu1 %v23993_v56  ;;  %17905 = vmatprep.subr.bf16.mxu0 %v23996_v9  ;;  %v24077_v56 = vld [vmem:[%s30776_s5 + $0x30c] ss:$16 sps:$4 sm:$0xff]   ;;  %v24075_v9 = vld [vmem:[%s30776_s5 + $0x308] ss:$16 sps:$4 sm:$0xff]  }
 0x774   : > { %13975 = vmatpush1.bf16.msra.mxu1 %v23991_v28  ;;  %17906 = vmatpush1.bf16.msra.mxu0 %v23994_v24  ;;  %v14318_v28 = vrot.slane %v28978_v27, 1  ;;  %v24080_v24 = vld [vmem:[%s30776_s5 + $0x32c] ss:$16 sps:$4 sm:$0xff]  }
 0x775   : > { %13976 = vmatprep.subr.bf16.mxu1 %v23999_v12  ;;  %17907 = vmatprep.subr.bf16.mxu0 %v24002_v48  ;;  %v24078_v12 = vld [vmem:[%s30776_s5 + $0x328] ss:$16 sps:$4 sm:$0xff]   ;;  %v24083_v48 = vld [vmem:[%s30776_s5 + $0x34c] ss:$16 sps:$4 sm:$0xff]  }
 0x778   : > { %13977 = vmatpush1.bf16.msra.mxu1 %v23997_v11  ;;  %17908 = vmatpush1.bf16.msra.mxu0 %v24000_v3  ;;  %v24081_v11 = vld [vmem:[%s30776_s5 + $0x348] ss:$16 sps:$4 sm:$0xff]   ;;  %v24086_v3 = vld [vmem:[%s30776_s5 + $0x36c] ss:$16 sps:$4 sm:$0xff]  }
 0x779   : > { %14199 = vmatprep.subr.bf16.mxu1 %v24005_v35  ;;  %v24084_v35 = vld [vmem:[%s30776_s5 + $0x368] ss:$16 sps:$4 sm:$0xff]  }
 0x77b   : > { %13995 = vmatmul.mubr.bf16.vlgmr.msra.gmra.mrb[164].mxu1 %v28969_v14  ;;  %17926 = vmatmul.mubr.bf16.vlgmr.msra.gmra.mrb[156].mxu0 %v17690_v49 }
 0x77c   : > { %14200 = vmatpush1.bf16.msra.mxu1 %v24003_v46  ;;  %14231 = vmatprep.mubr.bf16.mxu1 %v24691_v22  ;;  %v24089_v46 = vld [vmem:[%s30776_s5 + $0x38c] ss:$16 sps:$4 sm:$0xff]  }
 0x77d   : > { %14201 = vmatprep.subr.bf16.mxu1 %v24008_v6  ;;  %v24087_v6 = vld [vmem:[%s30776_s5 + $0x388] ss:$16 sps:$4 sm:$0xff]  }
 0x780   : > { %14202 = vmatpush1.bf16.msra.mxu1 %v24006_v58  ;;  %v24092_v58 = vld [vmem:[%s30776_s5 + $0x3ac] ss:$16 sps:$4 sm:$0xff]  }
 0x781   : > { %14203 = vmatprep.subr.bf16.mxu1 %v24011_v61  ;;  %v24090_v61 = vld [vmem:[%s30776_s5 + $0x3a8] ss:$16 sps:$4 sm:$0xff]  }
 0x784   : > { %14204 = vmatpush1.bf16.msra.mxu1 %v24009_v53  ;;  %v24095_v53 = vld [vmem:[%s30776_s5 + $0x3cc] ss:$16 sps:$4 sm:$0xff]  }
 0x785   : > { %14205 = vmatprep.subr.bf16.mxu1 %v24014_v13 }
 0x788   : > { %14206 = vmatpush1.bf16.msra.mxu1 %v24012_v42 }
 0x789   : > { %14207 = vmatprep.subr.bf16.mxu1 %v24017_v62 }
 0x78c   : > { %14208 = vmatpush1.bf16.msra.mxu1 %v24015_v25 }
 0x78d   : > { %14209 = vmatprep.subr.bf16.mxu1 %v24020_v32 }
 0x790   : > { %14210 = vmatpush1.bf16.msra.mxu1 %v24018_v52 }
 0x791   : > { %14211 = vmatprep.subr.bf16.mxu1 %v24023_v44  ;;  %v24093_v44 = vld [vmem:[%s30776_s5 + $0x3c8] ss:$16 sps:$4 sm:$0xff]  }
 0x794   : > { %14212 = vmatpush1.bf16.msra.mxu1 %v24021_v16 }
 0x795   : > { %14213 = vmatprep.subr.bf16.mxu1 %v24026_v18 }
 0x798   : > { %14214 = vmatpush1.bf16.msra.mxu1 %v24024_v21  ;;  %v24098_v21 = vld [vmem:[%s30776_s5 + $0x3ec] ss:$16 sps:$4 sm:$0xff]  }
 0x799   : > { %14240 = vmatprep.subr.bf16.mxu1 %v24029_v20  ;;  %v24096_v20 = vld [vmem:[%s30776_s5 + $0x3e8] ss:$16 sps:$4 sm:$0xff]  }
 0x79b   : > { %14232 = vmatmul.mubr.bf16.vlgmr.msra.gmra.mrb[168].mxu1 %v14037_v40 }
 0x79c   : > { %14241 = vmatpush1.bf16.msra.mxu1 %v24027_v36  ;;  %14272 = vmatprep.mubr.bf16.mxu1 %v24691_v22  ;;  %v24101_v36 = vld [vmem:[%s30776_s5 + $0x404] ss:$16 sps:$4 sm:$0xff]  }
 0x79d   : > { %14242 = vmatprep.subr.bf16.mxu1 %v24032_v15  ;;  %v24104_v15 = vld [vmem:[%s30776_s5 + $0x424] ss:$16 sps:$4 sm:$0xff]  }
 0x7a0   : > { %14243 = vmatpush1.bf16.msra.mxu1 %v24030_v60  ;;  %v24102_v60 = vld [vmem:[%s30776_s5 + $0x420] ss:$16 sps:$4 sm:$0xff]  }
 0x7a1   : > { %14244 = vmatprep.subr.bf16.mxu1 %v24035_v7  ;;  %v24107_v7 = vld [vmem:[%s30776_s5 + $0x444] ss:$16 sps:$4 sm:$0xff]  }
 0x7a4   : > { %14245 = vmatpush1.bf16.msra.mxu1 %v24033_v17  ;;  %v24105_v17 = vld [vmem:[%s30776_s5 + $0x440] ss:$16 sps:$4 sm:$0xff]  }
 0x7a5   : > { %14246 = vmatprep.subr.bf16.mxu1 %v24038_v33  ;;  %v24110_v33 = vld [vmem:[%s30776_s5 + $0x464] ss:$16 sps:$4 sm:$0xff]  }
 0x7a8   : > { %14247 = vmatpush1.bf16.msra.mxu1 %v24036_v34  ;;  %v24108_v34 = vld [vmem:[%s30776_s5 + $0x460] ss:$16 sps:$4 sm:$0xff]  }
 0x7a9   : > { %14248 = vmatprep.subr.bf16.mxu1 %v24041_v1  ;;  %v24113_v1 = vld [vmem:[%s30776_s5 + $0x484] ss:$16 sps:$4 sm:$0xff]  }
 0x7ac   : > { %14249 = vmatpush1.bf16.msra.mxu1 %v24039_v59  ;;  %v24111_v59 = vld [vmem:[%s30776_s5 + $0x480] ss:$16 sps:$4 sm:$0xff]  }
 0x7ad   : > { %14250 = vmatprep.subr.bf16.mxu1 %v24044_v55  ;;  %v24116_v55 = vld [vmem:[%s30776_s5 + $0x4a4] ss:$16 sps:$4 sm:$0xff]  }
 0x7b0   : > { %14251 = vmatpush1.bf16.msra.mxu1 %v24042_v26  ;;  %v24114_v26 = vld [vmem:[%s30776_s5 + $0x4a0] ss:$16 sps:$4 sm:$0xff]  }
 0x7b1   : > { %14252 = vmatprep.subr.bf16.mxu1 %v24047_v47  ;;  %v24119_v47 = vld [vmem:[%s30776_s5 + $0x4c4] ss:$16 sps:$4 sm:$0xff]  }
 0x7b4   : > { %14253 = vmatpush1.bf16.msra.mxu1 %v24045_v4 }
 0x7b5   : > { %14254 = vmatprep.subr.bf16.mxu1 %v24050_v2 }
 0x7b8   : > { %14255 = vmatpush1.bf16.msra.mxu1 %v24048_v19 }
 0x7b9   : > { %14480 = vmatprep.subr.bf16.mxu1 %v24053_v30 }
 0x7bb   : > { %14273 = vmatmul.mubr.bf16.vlgmr.msra.gmra.mrb[172].mxu1 %v14037_v40  ;;  %v24099_v40 = vld [vmem:[%s30776_s5 + $0x400] ss:$16 sps:$4 sm:$0xff]  }
 0x7bc   : > { %14481 = vmatpush1.bf16.msra.mxu1 %v24051_v29  ;;  %14512 = vmatprep.mubr.bf16.mxu1 %v24691_v22 }
 0x7bd   : > { %14482 = vmatprep.subr.bf16.mxu1 %v24056_v57 }
 0x7c0   : > { %14483 = vmatpush1.bf16.msra.mxu1 %v24054_v50  ;;  %v24117_v50 = vld [vmem:[%s30776_s5 + $0x4c0] ss:$16 sps:$4 sm:$0xff]  }
 0x7c1   : > { %14484 = vmatprep.subr.bf16.mxu1 %v24059_v54 }
 0x7c4   : > { %14485 = vmatpush1.bf16.msra.mxu1 %v24057_v41 }
 0x7c5   : > { %14486 = vmatprep.subr.bf16.mxu1 %v24062_v0  ;;  %v24122_v0 = vld [vmem:[%s30776_s5 + $0x4e4] ss:$16 sps:$4 sm:$0xff]  }
 0x7c8   : > { %14487 = vmatpush1.bf16.msra.mxu1 %v24060_v8  ;;  %v24120_v8 = vld [vmem:[%s30776_s5 + $0x4e0] ss:$16 sps:$4 sm:$0xff]  }
 0x7c9   : > { %14488 = vmatprep.subr.bf16.mxu1 %v24065_v31  ;;  %v24125_v31 = vld [vmem:[%s30776_s5 + $0x40c] ss:$16 sps:$4 sm:$0xff]  }
 0x7cc   : > { %14489 = vmatpush1.bf16.msra.mxu1 %v24063_v37  ;;  %v24123_v37 = vld [vmem:[%s30776_s5 + $0x408] ss:$16 sps:$4 sm:$0xff]  }
 0x7cd   : > { %14490 = vmatprep.subr.bf16.mxu1 %v24068_v23  ;;  %v14599_v23 = vrot.slane %v28969_v14, 2 }
 0x7d0   : > { %14491 = vmatpush1.bf16.msra.mxu1 %v24066_v43  ;;  %v24128_v43 = vld [vmem:[%s30776_s5 + $0x42c] ss:$16 sps:$4 sm:$0xff]  }
 0x7d1   : > { %14492 = vmatprep.subr.bf16.mxu1 %v24071_v51  ;;  %v24126_v51 = vld [vmem:[%s30776_s5 + $0x428] ss:$16 sps:$4 sm:$0xff]  }
 0x7d4   : > { %14493 = vmatpush1.bf16.msra.mxu1 %v24069_v38  ;;  %v24131_v38 = vld [vmem:[%s30776_s5 + $0x44c] ss:$16 sps:$4 sm:$0xff]  }
 0x7d5   : > { %14494 = vmatprep.subr.bf16.mxu1 %v24074_v63  ;;  %v24129_v63 = vld [vmem:[%s30776_s5 + $0x448] ss:$16 sps:$4 sm:$0xff]  }
 0x7d8   : > { %14495 = vmatpush1.bf16.msra.mxu1 %v24072_v10  ;;  %v24134_v10 = vld [vmem:[%s30776_s5 + $0x46c] ss:$16 sps:$4 sm:$0xff]  }
 0x7d9   : > { %14521 = vmatprep.subr.bf16.mxu1 %v24077_v56  ;;  %v24132_v56 = vld [vmem:[%s30776_s5 + $0x468] ss:$16 sps:$4 sm:$0xff]  }
 0x7db   : > { %14513 = vmatmul.mubr.bf16.vlgmr.msra.gmra.mrb[176].mxu1 %v14318_v28 }
 0x7dc   : > { %14522 = vmatpush1.bf16.msra.mxu1 %v24075_v9  ;;  %14553 = vmatprep.mubr.bf16.mxu1 %v24691_v22  ;;  %v24137_v9 = vld [vmem:[%s30776_s5 + $0x48c] ss:$16 sps:$4 sm:$0xff]  }
 0x7dd   : > { %14523 = vmatprep.subr.bf16.mxu1 %v24080_v24  ;;  %v24140_v24 = vld [vmem:[%s30776_s5 + $0x4ac] ss:$16 sps:$4 sm:$0xff]  }
 0x7e0   : > { %14524 = vmatpush1.bf16.msra.mxu1 %v24078_v12  ;;  %v24138_v12 = vld [vmem:[%s30776_s5 + $0x4a8] ss:$16 sps:$4 sm:$0xff]  }
 0x7e1   : > { %14525 = vmatprep.subr.bf16.mxu1 %v24083_v48  ;;  %v24143_v48 = vld [vmem:[%s30776_s5 + $0x4cc] ss:$16 sps:$4 sm:$0xff]  }
 0x7e4   : > { %14526 = vmatpush1.bf16.msra.mxu1 %v24081_v11 }
 0x7e5   : > { %14527 = vmatprep.subr.bf16.mxu1 %v24086_v3 }
 0x7e8   : > { %14528 = vmatpush1.bf16.msra.mxu1 %v24084_v35 }
 0x7e9   : > { %14529 = vmatprep.subr.bf16.mxu1 %v24089_v46 }
 0x7ec   : > { %14530 = vmatpush1.bf16.msra.mxu1 %v24087_v6 }
 0x7ed   : > { %14531 = vmatprep.subr.bf16.mxu1 %v24092_v58 }
 0x7ee   : > { %v29467_v13 = vpop.f32.mrb[152].mxu1  ;;  %v29469_v42 = vpop.f32.mrb[144].mxu0 }
 0x7ef   : > { %v29471_v62 = vpop.f32.mrb[153].mxu1  ;;  %v29473_v25 = vpop.f32.mrb[145].mxu0 }
 0x7f0   : > { %14532 = vmatpush1.bf16.msra.mxu1 %v24090_v61  ;;  %v13717_v32 = vpop.f32.mrb[154].mxu1  ;;  %v17088_v52 = vpop.f32.mrb[146].mxu0 }
 0x7f1   : > { %v13718_v16 = vpop.f32.mrb[155].mxu1  ;;  %v17089_v18 = vpop.f32.mrb[147].mxu0  ;;  %14533 = vmatprep.subr.bf16.mxu1 %v24095_v53  ;;  %v24141_v32 = vld [vmem:[%s30776_s5 + $0x4c8] ss:$16 sps:$4 sm:$0xff]  }
 0x7f2   : > { %v24149_v16 = vld [vmem:[%s30776_s5 + $0x504] ss:$16 sps:$4 sm:$0xff]   ;;  %v24147_v18 = vld [vmem:[%s30776_s5 + $0x500] ss:$16 sps:$4 sm:$0xff]  }
 0x7f4   : > { %14534 = vmatpush1.bf16.msra.mxu1 %v24093_v44 }
 0x7f5   : > { %14535 = vmatprep.subr.bf16.mxu1 %v24098_v21  ;;  %v24152_v21 = vld [vmem:[%s30776_s5 + $0x524] ss:$16 sps:$4 sm:$0xff]  }
 0x7f8   : > { %14536 = vmatpush1.bf16.msra.mxu1 %v24096_v20  ;;  %v24150_v20 = vld [vmem:[%s30776_s5 + $0x520] ss:$16 sps:$4 sm:$0xff]  }
 0x7f9   : > { %14761 = vmatprep.subr.bf16.mxu1 %v24101_v36  ;;  %v24155_v36 = vld [vmem:[%s30776_s5 + $0x544] ss:$16 sps:$4 sm:$0xff]  }
 0x7fb   : > { %14554 = vmatmul.mubr.bf16.vlgmr.msra.gmra.mrb[180].mxu1 %v14318_v28  ;;  %v24135_v28 = vld [vmem:[%s30776_s5 + $0x488] ss:$16 sps:$4 sm:$0xff]  }
 0x7fc   : > { %14762 = vmatpush1.bf16.msra.mxu1 %v24099_v40  ;;  %14793 = vmatprep.mubr.bf16.mxu1 %v24691_v22  ;;  %v24153_v40 = vld [vmem:[%s30776_s5 + $0x540] ss:$16 sps:$4 sm:$0xff]  }
 0x7fd   : > { %14763 = vmatprep.subr.bf16.mxu1 %v24104_v15  ;;  %v24158_v15 = vld [vmem:[%s30776_s5 + $0x564] ss:$16 sps:$4 sm:$0xff]  }
 0x800   : > { %14764 = vmatpush1.bf16.msra.mxu1 %v24102_v60  ;;  %v24156_v60 = vld [vmem:[%s30776_s5 + $0x560] ss:$16 sps:$4 sm:$0xff]  }
 0x801   : > { %14765 = vmatprep.subr.bf16.mxu1 %v24107_v7  ;;  %v24161_v7 = vld [vmem:[%s30776_s5 + $0x584] ss:$16 sps:$4 sm:$0xff]  }
 0x804   : > { %14766 = vmatpush1.bf16.msra.mxu1 %v24105_v17  ;;  %v24159_v17 = vld [vmem:[%s30776_s5 + $0x580] ss:$16 sps:$4 sm:$0xff]  }
 0x805   : > { %14767 = vmatprep.subr.bf16.mxu1 %v24110_v33  ;;  %v24164_v33 = vld [vmem:[%s30776_s5 + $0x5a4] ss:$16 sps:$4 sm:$0xff]  }
 0x808   : > { %14768 = vmatpush1.bf16.msra.mxu1 %v24108_v34  ;;  %v24162_v34 = vld [vmem:[%s30776_s5 + $0x5a0] ss:$16 sps:$4 sm:$0xff]  }
 0x809   : > { %14769 = vmatprep.subr.bf16.mxu1 %v24113_v1  ;;  %v24167_v1 = vld [vmem:[%s30776_s5 + $0x5c4] ss:$16 sps:$4 sm:$0xff]  }
 0x80c   : > { %14770 = vmatpush1.bf16.msra.mxu1 %v24111_v59 }
 0x80d   : > { %14771 = vmatprep.subr.bf16.mxu1 %v24116_v55 }
 0x80e   : > { %v29524_v4 = vpop.f32.mrb[156].mxu1  ;;  %v29526_v2 = vpop.f32.mrb[148].mxu0 }
 0x80f   : > { %v29528_v19 = vpop.f32.mrb[157].mxu1  ;;  %v29530_v30 = vpop.f32.mrb[149].mxu0 }
 0x810   : > { %v13758_v29 = vpop.f32.mrb[158].mxu1  ;;  %14772 = vmatpush1.bf16.msra.mxu1 %v24114_v26  ;;  %v17369_v57 = vpop.f32.mrb[150].mxu0 }
 0x811   : > { %v13759_v54 = vpop.f32.mrb[159].mxu1  ;;  %v17370_v41 = vpop.f32.mrb[151].mxu0  ;;  %14773 = vmatprep.subr.bf16.mxu1 %v24119_v47 }
 0x812   : > { %v24165_v41 = vld [vmem:[%s30776_s5 + $0x5c0] ss:$16 sps:$4 sm:$0xff]  }
 0x814   : > { %14774 = vmatpush1.bf16.msra.mxu1 %v24117_v50 }
 0x815   : > { %14775 = vmatprep.subr.bf16.mxu1 %v24122_v0 }
 0x818   : > { %14776 = vmatpush1.bf16.msra.mxu1 %v24120_v8 }
 0x819   : > { %14802 = vmatprep.subr.bf16.mxu1 %v24125_v31  ;;  %v24173_v31 = vld [vmem:[%s30776_s5 + $0x50c] ss:$16 sps:$4 sm:$0xff]  }
 0x81b   : > { %14794 = vmatmul.mubr.bf16.vlgmr.msra.gmra.mrb[184].mxu1 %v14599_v23 }
 0x81c   : > { %14803 = vmatpush1.bf16.msra.mxu1 %v24123_v37  ;;  %14834 = vmatprep.mubr.bf16.mxu1 %v24691_v22  ;;  %v24171_v37 = vld [vmem:[%s30776_s5 + $0x508] ss:$16 sps:$4 sm:$0xff]  }
 0x81d   : > { %14804 = vmatprep.subr.bf16.mxu1 %v24128_v43  ;;  %v24176_v43 = vld [vmem:[%s30776_s5 + $0x52c] ss:$16 sps:$4 sm:$0xff]  }
 0x820   : > { %14805 = vmatpush1.bf16.msra.mxu1 %v24126_v51  ;;  %v24174_v51 = vld [vmem:[%s30776_s5 + $0x528] ss:$16 sps:$4 sm:$0xff]  }
 0x821   : > { %14806 = vmatprep.subr.bf16.mxu1 %v24131_v38  ;;  %v24179_v38 = vld [vmem:[%s30776_s5 + $0x54c] ss:$16 sps:$4 sm:$0xff]  }
 0x824   : > { %14807 = vmatpush1.bf16.msra.mxu1 %v24129_v63  ;;  %v24177_v63 = vld [vmem:[%s30776_s5 + $0x548] ss:$16 sps:$4 sm:$0xff]  }
 0x825   : > { %14808 = vmatprep.subr.bf16.mxu1 %v24134_v10  ;;  %v24182_v10 = vld [vmem:[%s30776_s5 + $0x56c] ss:$16 sps:$4 sm:$0xff]  }
 0x828   : > { %14809 = vmatpush1.bf16.msra.mxu1 %v24132_v56  ;;  %v24180_v56 = vld [vmem:[%s30776_s5 + $0x568] ss:$16 sps:$4 sm:$0xff]  }
 0x829   : > { %14810 = vmatprep.subr.bf16.mxu1 %v24137_v9  ;;  %v24185_v9 = vld [vmem:[%s30776_s5 + $0x58c] ss:$16 sps:$4 sm:$0xff]  }
 0x82c   : > { %14811 = vmatpush1.bf16.msra.mxu1 %v24135_v28  ;;  %v24183_v28 = vld [vmem:[%s30776_s5 + $0x588] ss:$16 sps:$4 sm:$0xff]  }
 0x82d   : > { %14812 = vmatprep.subr.bf16.mxu1 %v24140_v24  ;;  %v24188_v24 = vld [vmem:[%s30776_s5 + $0x5ac] ss:$16 sps:$4 sm:$0xff]  }
 0x82e   : > { %v13955_v11 = vpop.f32.mrb[160].mxu1  ;;  %v29582_v3 = vpop.f32.mrb[152].mxu0 }
 0x82f   : > { %v29585_v35 = vadd.f32 %v13955_v11, %v29467_v13  ;;  %v13957_v46 = vpop.f32.mrb[161].mxu1  ;;  %v29587_v6 = vpop.f32.mrb[153].mxu0  ;;  %v24146_v13 = vld [vmem:[%s30776_s5 + $0x4ec] ss:$16 sps:$4 sm:$0xff]  }
 0x830   : > { %v29590_v58 = vadd.f32 %v13957_v46, %v29471_v62  ;;  %v13959_v61 = vpop.f32.mrb[162].mxu1  ;;  %14813 = vmatpush1.bf16.msra.mxu1 %v24138_v12  ;;  %v17650_v53 = vpop.f32.mrb[154].mxu0  ;;  %v24144_v62 = vld [vmem:[%s30776_s5 + $0x4e8] ss:$16 sps:$4 sm:$0xff]  }
 0x831   : > { %v13960_v52 = vpop.f32.mrb[163].mxu1  ;;  %v17651_v44 = vpop.f32.mrb[155].mxu0  ;;  %14814 = vmatprep.subr.bf16.mxu1 %v24143_v48  ;;  %v24186_v12 = vld [vmem:[%s30776_s5 + $0x5a8] ss:$16 sps:$4 sm:$0xff]   ;;  %v24191_v48 = vld [vmem:[%s30776_s5 + $0x5cc] ss:$16 sps:$4 sm:$0xff]  }
 0x832   : > { %v24189_v52 = vld [vmem:[%s30776_s5 + $0x5c8] ss:$16 sps:$4 sm:$0xff]  }
 0x834   : > { %14815 = vmatpush1.bf16.msra.mxu1 %v24141_v32 }
 0x835   : > { %14816 = vmatprep.subr.bf16.mxu1 %v24146_v13  ;;  %v24194_v13 = vld [vmem:[%s30776_s5 + $0x5ec] ss:$16 sps:$4 sm:$0xff]  }
 0x838   : > { %14817 = vmatpush1.bf16.msra.mxu1 %v24144_v62  ;;  %v24195_v62 = vld [vmem:[%s30776_s5 + $0x600] ss:$16 sps:$4 sm:$0xff]  }
 0x839   : > { %15042 = vmatprep.subr.bf16.mxu1 %v24149_v16  ;;  %v24200_v16 = vld [vmem:[%s30776_s5 + $0x624] ss:$16 sps:$4 sm:$0xff]  }
 0x83b   : > { %14835 = vmatmul.mubr.bf16.vlgmr.msra.gmra.mrb[188].mxu1 %v14599_v23  ;;  %v14880_v23 = vrot.slane %v28978_v27, 2 }
 0x83c   : > { %15043 = vmatpush1.bf16.msra.mxu1 %v24147_v18  ;;  %15074 = vmatprep.mubr.bf16.mxu1 %v24691_v22  ;;  %v24198_v18 = vld [vmem:[%s30776_s5 + $0x620] ss:$16 sps:$4 sm:$0xff]  }
 0x83d   : > { %15044 = vmatprep.subr.bf16.mxu1 %v24152_v21  ;;  %v24203_v21 = vld [vmem:[%s30776_s5 + $0x644] ss:$16 sps:$4 sm:$0xff]  }
 0x840   : > { %15045 = vmatpush1.bf16.msra.mxu1 %v24150_v20  ;;  %v24201_v20 = vld [vmem:[%s30776_s5 + $0x640] ss:$16 sps:$4 sm:$0xff]  }
 0x841   : > { %15046 = vmatprep.subr.bf16.mxu1 %v24155_v36  ;;  %v24206_v36 = vld [vmem:[%s30776_s5 + $0x664] ss:$16 sps:$4 sm:$0xff]  }
 0x844   : > { %15047 = vmatpush1.bf16.msra.mxu1 %v24153_v40  ;;  %v24204_v40 = vld [vmem:[%s30776_s5 + $0x660] ss:$16 sps:$4 sm:$0xff]  }
 0x845   : > { %15048 = vmatprep.subr.bf16.mxu1 %v24158_v15  ;;  %v24209_v15 = vld [vmem:[%s30776_s5 + $0x684] ss:$16 sps:$4 sm:$0xff]  }
 0x848   : > { %15049 = vmatpush1.bf16.msra.mxu1 %v24156_v60  ;;  %v24207_v60 = vld [vmem:[%s30776_s5 + $0x680] ss:$16 sps:$4 sm:$0xff]  }
 0x849   : > { %15050 = vmatprep.subr.bf16.mxu1 %v24161_v7  ;;  %v24212_v7 = vld [vmem:[%s30776_s5 + $0x6a4] ss:$16 sps:$4 sm:$0xff]  }
 0x84c   : > { %15051 = vmatpush1.bf16.msra.mxu1 %v24159_v17  ;;  %v24210_v17 = vld [vmem:[%s30776_s5 + $0x6a0] ss:$16 sps:$4 sm:$0xff]  }
 0x84d   : > { %15052 = vmatprep.subr.bf16.mxu1 %v24164_v33  ;;  %v24215_v33 = vld [vmem:[%s30776_s5 + $0x6c4] ss:$16 sps:$4 sm:$0xff]  }
 0x84e   : > { %v13996_v59 = vpop.f32.mrb[164].mxu1  ;;  %v29641_v55 = vpop.f32.mrb[156].mxu0 }
 0x84f   : > { %v29644_v26 = vadd.f32 %v13996_v59, %v29524_v4  ;;  %v13998_v47 = vpop.f32.mrb[165].mxu1  ;;  %v29646_v29 = vpop.f32.mrb[157].mxu0  ;;  %v24170_v4 = vld [vmem:[%s30776_s5 + $0x5e4] ss:$16 sps:$4 sm:$0xff]  }
 0x850   : > { %v29649_v57 = vadd.f32 %v13998_v47, %v29528_v19  ;;  %v14000_v50 = vpop.f32.mrb[166].mxu1  ;;  %15053 = vmatpush1.bf16.msra.mxu1 %v24162_v34  ;;  %v17931_v54 = vpop.f32.mrb[158].mxu0  ;;  %v24168_v19 = vld [vmem:[%s30776_s5 + $0x5e0] ss:$16 sps:$4 sm:$0xff]  }
 0x851   : > { %v14001_v0 = vpop.f32.mrb[167].mxu1  ;;  %v17932_v8 = vpop.f32.mrb[159].mxu0  ;;  %15054 = vmatprep.subr.bf16.mxu1 %v24167_v1  ;;  %v24213_v54 = vld [vmem:[%s30776_s5 + $0x6c0] ss:$16 sps:$4 sm:$0xff]  }
 0x852   : > { %v24218_v0 = vld [vmem:[%s30776_s5 + $0x6e4] ss:$16 sps:$4 sm:$0xff]   ;;  %v24219_v8 = vld [vmem:[%s30776_s5 + $0x608] ss:$16 sps:$4 sm:$0xff]  }
 0x854   : > { %15055 = vmatpush1.bf16.msra.mxu1 %v24165_v41 }
 0x855   : > { %15056 = vmatprep.subr.bf16.mxu1 %v24170_v4  ;;  %v15161_v4 = vrot.slane %v28969_v14, 3 }
 0x858   : > { %15057 = vmatpush1.bf16.msra.mxu1 %v24168_v19  ;;  %v24224_v19 = vld [vmem:[%s30776_s5 + $0x62c] ss:$16 sps:$4 sm:$0xff]  }
 0x859   : > { %15083 = vmatprep.subr.bf16.mxu1 %v24173_v31  ;;  %v24222_v31 = vld [vmem:[%s30776_s5 + $0x628] ss:$16 sps:$4 sm:$0xff]  }
 0x85b   : > { %15075 = vmatmul.mubr.bf16.vlgmr.msra.gmra.mrb[192].mxu1 %v14880_v23 }
 0x85c   : > { %15084 = vmatpush1.bf16.msra.mxu1 %v24171_v37  ;;  %15115 = vmatprep.mubr.bf16.mxu1 %v24691_v22  ;;  %v24227_v37 = vld [vmem:[%s30776_s5 + $0x64c] ss:$16 sps:$4 sm:$0xff]  }
 0x85d   : > { %15085 = vmatprep.subr.bf16.mxu1 %v24176_v43  ;;  %v24230_v43 = vld [vmem:[%s30776_s5 + $0x66c] ss:$16 sps:$4 sm:$0xff]  }
 0x860   : > { %15086 = vmatpush1.bf16.msra.mxu1 %v24174_v51  ;;  %v24228_v51 = vld [vmem:[%s30776_s5 + $0x668] ss:$16 sps:$4 sm:$0xff]  }
 0x861   : > { %15087 = vmatprep.subr.bf16.mxu1 %v24179_v38  ;;  %v24233_v38 = vld [vmem:[%s30776_s5 + $0x68c] ss:$16 sps:$4 sm:$0xff]  }
 0x864   : > { %15088 = vmatpush1.bf16.msra.mxu1 %v24177_v63  ;;  %v24231_v63 = vld [vmem:[%s30776_s5 + $0x688] ss:$16 sps:$4 sm:$0xff]  }
 0x865   : > { %15089 = vmatprep.subr.bf16.mxu1 %v24182_v10  ;;  %v24236_v10 = vld [vmem:[%s30776_s5 + $0x6ac] ss:$16 sps:$4 sm:$0xff]  }
 0x868   : > { %15090 = vmatpush1.bf16.msra.mxu1 %v24180_v56  ;;  %v24234_v56 = vld [vmem:[%s30776_s5 + $0x6a8] ss:$16 sps:$4 sm:$0xff]  }
 0x869   : > { %15091 = vmatprep.subr.bf16.mxu1 %v24185_v9  ;;  %v24239_v9 = vld [vmem:[%s30776_s5 + $0x6cc] ss:$16 sps:$4 sm:$0xff]  }
 0x86c   : > { %15092 = vmatpush1.bf16.msra.mxu1 %v24183_v28 }
 0x86d   : > { %15093 = vmatprep.subr.bf16.mxu1 %v24188_v24 }
 0x86e   : > { %v14233_v11 = vpop.f32.mrb[168].mxu1 }
 0x86f   : > { %v29702_v46 = vadd.f32 %v14233_v11, %v29585_v35  ;;  %v14235_v61 = vpop.f32.mrb[169].mxu1  ;;  %v24192_v35 = vld [vmem:[%s30776_s5 + $0x5e8] ss:$16 sps:$4 sm:$0xff]  }
 0x870   : > { %v29705_v53 = vadd.f32 %v14235_v61, %v29590_v58  ;;  %v14237_v32 = vpop.f32.mrb[170].mxu1  ;;  %15094 = vmatpush1.bf16.msra.mxu1 %v24186_v12  ;;  %v24197_v58 = vld [vmem:[%s30776_s5 + $0x604] ss:$16 sps:$4 sm:$0xff]   ;;  %v24237_v61 = vld [vmem:[%s30776_s5 + $0x6c8] ss:$16 sps:$4 sm:$0xff]  }
 0x871   : > { %v14238_v44 = vpop.f32.mrb[171].mxu1  ;;  %15095 = vmatprep.subr.bf16.mxu1 %v24191_v48 }
 0x872   : > { %v24243_v44 = vld [vmem:[%s30776_s5 + $0x700] ss:$16 sps:$4 sm:$0xff]  }
 0x874   : > { %15096 = vmatpush1.bf16.msra.mxu1 %v24189_v52  ;;  %v24242_v52 = vld [vmem:[%s30776_s5 + $0x6ec] ss:$16 sps:$4 sm:$0xff]  }
 0x875   : > { %15097 = vmatprep.subr.bf16.mxu1 %v24194_v13  ;;  %v24248_v13 = vld [vmem:[%s30776_s5 + $0x724] ss:$16 sps:$4 sm:$0xff]  }
 0x878   : > { %15098 = vmatpush1.bf16.msra.mxu1 %v24192_v35  ;;  %v24246_v35 = vld [vmem:[%s30776_s5 + $0x720] ss:$16 sps:$4 sm:$0xff]  }
 0x879   : > { %15323 = vmatprep.subr.bf16.mxu1 %v24197_v58  ;;  %v24251_v58 = vld [vmem:[%s30776_s5 + $0x744] ss:$16 sps:$4 sm:$0xff]  }
 0x87b   : > { %15116 = vmatmul.mubr.bf16.vlgmr.msra.gmra.mrb[196].mxu1 %v14880_v23  ;;  %v24225_v23 = vld [vmem:[%s30776_s5 + $0x648] ss:$16 sps:$4 sm:$0xff]  }
 0x87c   : > { %15324 = vmatpush1.bf16.msra.mxu1 %v24195_v62  ;;  %15355 = vmatprep.mubr.bf16.mxu1 %v24691_v22  ;;  %v24249_v62 = vld [vmem:[%s30776_s5 + $0x740] ss:$16 sps:$4 sm:$0xff]  }
 0x87d   : > { %15325 = vmatprep.subr.bf16.mxu1 %v24200_v16  ;;  %v24254_v16 = vld [vmem:[%s30776_s5 + $0x764] ss:$16 sps:$4 sm:$0xff]  }
 0x880   : > { %15326 = vmatpush1.bf16.msra.mxu1 %v24198_v18  ;;  %v24252_v18 = vld [vmem:[%s30776_s5 + $0x760] ss:$16 sps:$4 sm:$0xff]  }
 0x881   : > { %15327 = vmatprep.subr.bf16.mxu1 %v24203_v21  ;;  %v24257_v21 = vld [vmem:[%s30776_s5 + $0x784] ss:$16 sps:$4 sm:$0xff]  }
 0x884   : > { %15328 = vmatpush1.bf16.msra.mxu1 %v24201_v20  ;;  %v24255_v20 = vld [vmem:[%s30776_s5 + $0x780] ss:$16 sps:$4 sm:$0xff]  }
 0x885   : > { %15329 = vmatprep.subr.bf16.mxu1 %v24206_v36  ;;  %v24260_v36 = vld [vmem:[%s30776_s5 + $0x7a4] ss:$16 sps:$4 sm:$0xff]  }
 0x888   : > { %15330 = vmatpush1.bf16.msra.mxu1 %v24204_v40  ;;  %v24258_v40 = vld [vmem:[%s30776_s5 + $0x7a0] ss:$16 sps:$4 sm:$0xff]  }
 0x889   : > { %15331 = vmatprep.subr.bf16.mxu1 %v24209_v15  ;;  %v24263_v15 = vld [vmem:[%s30776_s5 + $0x7c4] ss:$16 sps:$4 sm:$0xff]  }
 0x88c   : > { %15332 = vmatpush1.bf16.msra.mxu1 %v24207_v60 }
 0x88d   : > { %15333 = vmatprep.subr.bf16.mxu1 %v24212_v7 }
 0x88e   : > { %v14274_v34 = vpop.f32.mrb[172].mxu1 }
 0x88f   : > { %v29757_v1 = vadd.f32 %v14274_v34, %v29644_v26  ;;  %v14276_v59 = vpop.f32.mrb[173].mxu1  ;;  %v24216_v26 = vld [vmem:[%s30776_s5 + $0x6e0] ss:$16 sps:$4 sm:$0xff]  }
 0x890   : > { %v29760_v47 = vadd.f32 %v14276_v59, %v29649_v57  ;;  %v14278_v50 = vpop.f32.mrb[174].mxu1  ;;  %15334 = vmatpush1.bf16.msra.mxu1 %v24210_v17  ;;  %v24221_v57 = vld [vmem:[%s30776_s5 + $0x60c] ss:$16 sps:$4 sm:$0xff]   ;;  %v24261_v59 = vld [vmem:[%s30776_s5 + $0x7c0] ss:$16 sps:$4 sm:$0xff]  }
 0x891   : > { %v14279_v41 = vpop.f32.mrb[175].mxu1  ;;  %15335 = vmatprep.subr.bf16.mxu1 %v24215_v33 }
 0x892   : > { %v24267_v41 = vld [vmem:[%s30776_s5 + $0x708] ss:$16 sps:$4 sm:$0xff]  }
 0x894   : > { %15336 = vmatpush1.bf16.msra.mxu1 %v24213_v54  ;;  %v24266_v54 = vld [vmem:[%s30776_s5 + $0x7e4] ss:$16 sps:$4 sm:$0xff]  }
 0x895   : > { %15337 = vmatprep.subr.bf16.mxu1 %v24218_v0  ;;  %v15442_v0 = vrot.slane %v28978_v27, 3 }
 0x898   : > { %15338 = vmatpush1.bf16.msra.mxu1 %v24216_v26  ;;  %v24272_v26 = vld [vmem:[%s30776_s5 + $0x72c] ss:$16 sps:$4 sm:$0xff]  }
 0x899   : > { %15364 = vmatprep.subr.bf16.mxu1 %v24221_v57  ;;  %v24270_v57 = vld [vmem:[%s30776_s5 + $0x728] ss:$16 sps:$4 sm:$0xff]  }
 0x89b   : > { %15356 = vmatmul.mubr.bf16.vlgmr.msra.gmra.mrb[200].mxu1 %v15161_v4 }
 0x89c   : > { %15365 = vmatpush1.bf16.msra.mxu1 %v24219_v8  ;;  %15396 = vmatprep.mubr.bf16.mxu1 %v24691_v22  ;;  %v24275_v8 = vld [vmem:[%s30776_s5 + $0x74c] ss:$16 sps:$4 sm:$0xff]  }
 0x89d   : > { %15366 = vmatprep.subr.bf16.mxu1 %v24224_v19  ;;  %v24278_v19 = vld [vmem:[%s30776_s5 + $0x76c] ss:$16 sps:$4 sm:$0xff]  }
 0x8a0   : > { %15367 = vmatpush1.bf16.msra.mxu1 %v24222_v31  ;;  %v24276_v31 = vld [vmem:[%s30776_s5 + $0x768] ss:$16 sps:$4 sm:$0xff]  }
 0x8a1   : > { %15368 = vmatprep.subr.bf16.mxu1 %v24227_v37  ;;  %v24281_v37 = vld [vmem:[%s30776_s5 + $0x78c] ss:$16 sps:$4 sm:$0xff]  }
 0x8a4   : > { %15369 = vmatpush1.bf16.msra.mxu1 %v24225_v23  ;;  %v24279_v23 = vld [vmem:[%s30776_s5 + $0x788] ss:$16 sps:$4 sm:$0xff]  }
 0x8a5   : > { %15370 = vmatprep.subr.bf16.mxu1 %v24230_v43  ;;  %v24284_v43 = vld [vmem:[%s30776_s5 + $0x7ac] ss:$16 sps:$4 sm:$0xff]  }
 0x8a8   : > { %15371 = vmatpush1.bf16.msra.mxu1 %v24228_v51  ;;  %v24282_v51 = vld [vmem:[%s30776_s5 + $0x7a8] ss:$16 sps:$4 sm:$0xff]  }
 0x8a9   : > { %15372 = vmatprep.subr.bf16.mxu1 %v24233_v38  ;;  %v24287_v38 = vld [vmem:[%s30776_s5 + $0x7cc] ss:$16 sps:$4 sm:$0xff]  }
 0x8ac   : > { %15373 = vmatpush1.bf16.msra.mxu1 %v24231_v63 }
 0x8ad   : > { %15374 = vmatprep.subr.bf16.mxu1 %v24236_v10 }
 0x8ae   : > { %v14514_v28 = vpop.f32.mrb[176].mxu1 }
 0x8af   : > { %v29813_v24 = vadd.f32 %v14514_v28, %v29702_v46  ;;  %v14516_v12 = vpop.f32.mrb[177].mxu1  ;;  %v24240_v46 = vld [vmem:[%s30776_s5 + $0x6e8] ss:$16 sps:$4 sm:$0xff]  }
 0x8b0   : > { %v29816_v48 = vadd.f32 %v14516_v12, %v29705_v53  ;;  %v14518_v11 = vpop.f32.mrb[178].mxu1  ;;  %15375 = vmatpush1.bf16.msra.mxu1 %v24234_v56  ;;  %v24245_v53 = vld [vmem:[%s30776_s5 + $0x704] ss:$16 sps:$4 sm:$0xff]   ;;  %v24285_v12 = vld [vmem:[%s30776_s5 + $0x7c8] ss:$16 sps:$4 sm:$0xff]  }
 0x8b1   : > { %v14519_v32 = vpop.f32.mrb[179].mxu1  ;;  %15376 = vmatprep.subr.bf16.mxu1 %v24239_v9 }
 0x8b2   : > { %v24291_v32 = vld [vmem:[%s30776_s5 + $0x800] ss:$16 sps:$4 sm:$0xff]  }
 0x8b4   : > { %15377 = vmatpush1.bf16.msra.mxu1 %v24237_v61  ;;  %v24290_v61 = vld [vmem:[%s30776_s5 + $0x7ec] ss:$16 sps:$4 sm:$0xff]  }
 0x8b5   : > { %15378 = vmatprep.subr.bf16.mxu1 %v24242_v52  ;;  %v24296_v52 = vld [vmem:[%s30776_s5 + $0x824] ss:$16 sps:$4 sm:$0xff]  }
 0x8b8   : > { %15379 = vmatpush1.bf16.msra.mxu1 %v24240_v46  ;;  %v24294_v46 = vld [vmem:[%s30776_s5 + $0x820] ss:$16 sps:$4 sm:$0xff]  }
 0x8b9   : > { %15604 = vmatprep.subr.bf16.mxu1 %v24245_v53  ;;  %v24299_v53 = vld [vmem:[%s30776_s5 + $0x844] ss:$16 sps:$4 sm:$0xff]  }
 0x8bb   : > { %15397 = vmatmul.mubr.bf16.vlgmr.msra.gmra.mrb[204].mxu1 %v15161_v4  ;;  %v24273_v4 = vld [vmem:[%s30776_s5 + $0x748] ss:$16 sps:$4 sm:$0xff]  }
 0x8bc   : > { %15605 = vmatpush1.bf16.msra.mxu1 %v24243_v44  ;;  %15636 = vmatprep.mubr.bf16.mxu1 %v24691_v22  ;;  %v24297_v44 = vld [vmem:[%s30776_s5 + $0x840] ss:$16 sps:$4 sm:$0xff]  }
 0x8bd   : > { %15606 = vmatprep.subr.bf16.mxu1 %v24248_v13  ;;  %v24302_v13 = vld [vmem:[%s30776_s5 + $0x864] ss:$16 sps:$4 sm:$0xff]  }
 0x8c0   : > { %15607 = vmatpush1.bf16.msra.mxu1 %v24246_v35  ;;  %v24300_v35 = vld [vmem:[%s30776_s5 + $0x860] ss:$16 sps:$4 sm:$0xff]  }
 0x8c1   : > { %15608 = vmatprep.subr.bf16.mxu1 %v24251_v58  ;;  %v24305_v58 = vld [vmem:[%s30776_s5 + $0x884] ss:$16 sps:$4 sm:$0xff]  }
 0x8c4   : > { %15609 = vmatpush1.bf16.msra.mxu1 %v24249_v62  ;;  %v24303_v62 = vld [vmem:[%s30776_s5 + $0x880] ss:$16 sps:$4 sm:$0xff]  }
 0x8c5   : > { %15610 = vmatprep.subr.bf16.mxu1 %v24254_v16  ;;  %v24308_v16 = vld [vmem:[%s30776_s5 + $0x8a4] ss:$16 sps:$4 sm:$0xff]  }
 0x8c8   : > { %15611 = vmatpush1.bf16.msra.mxu1 %v24252_v18  ;;  %v24306_v18 = vld [vmem:[%s30776_s5 + $0x8a0] ss:$16 sps:$4 sm:$0xff]  }
 0x8c9   : > { %15612 = vmatprep.subr.bf16.mxu1 %v24257_v21  ;;  %v24311_v21 = vld [vmem:[%s30776_s5 + $0x8c4] ss:$16 sps:$4 sm:$0xff]  }
 0x8cc   : > { %15613 = vmatpush1.bf16.msra.mxu1 %v24255_v20 }
 0x8cd   : > { %15614 = vmatprep.subr.bf16.mxu1 %v24260_v36 }
 0x8ce   : > { %v14555_v60 = vpop.f32.mrb[180].mxu1 }
 0x8cf   : > { %v29868_v7 = vadd.f32 %v14555_v60, %v29757_v1  ;;  %v14557_v17 = vpop.f32.mrb[181].mxu1  ;;  %v24264_v1 = vld [vmem:[%s30776_s5 + $0x7e0] ss:$16 sps:$4 sm:$0xff]  }
 0x8d0   : > { %v29871_v33 = vadd.f32 %v14557_v17, %v29760_v47  ;;  %v14559_v34 = vpop.f32.mrb[182].mxu1  ;;  %15615 = vmatpush1.bf16.msra.mxu1 %v24258_v40  ;;  %v24269_v47 = vld [vmem:[%s30776_s5 + $0x70c] ss:$16 sps:$4 sm:$0xff]   ;;  %v24309_v17 = vld [vmem:[%s30776_s5 + $0x8c0] ss:$16 sps:$4 sm:$0xff]  }
 0x8d1   : > { %v14560_v50 = vpop.f32.mrb[183].mxu1  ;;  %15616 = vmatprep.subr.bf16.mxu1 %v24263_v15 }
 0x8d2   : > { %v24315_v50 = vld [vmem:[%s30776_s5 + $0x808] ss:$16 sps:$4 sm:$0xff]  }
 0x8d4   : > { %15617 = vmatpush1.bf16.msra.mxu1 %v24261_v59  ;;  %v24314_v59 = vld [vmem:[%s30776_s5 + $0x8e4] ss:$16 sps:$4 sm:$0xff]  }
 0x8d5   : > { %15618 = vmatprep.subr.bf16.mxu1 %v24266_v54  ;;  %v15723_v54 = vrot.slane %v28969_v14, 4 }
 0x8d8   : > { %15619 = vmatpush1.bf16.msra.mxu1 %v24264_v1  ;;  %v24320_v1 = vld [vmem:[%s30776_s5 + $0x82c] ss:$16 sps:$4 sm:$0xff]  }
 0x8d9   : > { %15645 = vmatprep.subr.bf16.mxu1 %v24269_v47  ;;  %v24318_v47 = vld [vmem:[%s30776_s5 + $0x828] ss:$16 sps:$4 sm:$0xff]  }
 0x8db   : > { %15637 = vmatmul.mubr.bf16.vlgmr.msra.gmra.mrb[208].mxu1 %v15442_v0 }
 0x8dc   : > { %15646 = vmatpush1.bf16.msra.mxu1 %v24267_v41  ;;  %15677 = vmatprep.mubr.bf16.mxu1 %v24691_v22  ;;  %v24323_v41 = vld [vmem:[%s30776_s5 + $0x84c] ss:$16 sps:$4 sm:$0xff]  }
 0x8dd   : > { %15647 = vmatprep.subr.bf16.mxu1 %v24272_v26  ;;  %v24326_v26 = vld [vmem:[%s30776_s5 + $0x86c] ss:$16 sps:$4 sm:$0xff]  }
 0x8e0   : > { %15648 = vmatpush1.bf16.msra.mxu1 %v24270_v57  ;;  %v24324_v57 = vld [vmem:[%s30776_s5 + $0x868] ss:$16 sps:$4 sm:$0xff]  }
 0x8e1   : > { %15649 = vmatprep.subr.bf16.mxu1 %v24275_v8  ;;  %v24329_v8 = vld [vmem:[%s30776_s5 + $0x88c] ss:$16 sps:$4 sm:$0xff]  }
 0x8e4   : > { %15650 = vmatpush1.bf16.msra.mxu1 %v24273_v4  ;;  %v24327_v4 = vld [vmem:[%s30776_s5 + $0x888] ss:$16 sps:$4 sm:$0xff]  }
 0x8e5   : > { %15651 = vmatprep.subr.bf16.mxu1 %v24278_v19  ;;  %v24332_v19 = vld [vmem:[%s30776_s5 + $0x8ac] ss:$16 sps:$4 sm:$0xff]  }
 0x8e8   : > { %15652 = vmatpush1.bf16.msra.mxu1 %v24276_v31  ;;  %v24330_v31 = vld [vmem:[%s30776_s5 + $0x8a8] ss:$16 sps:$4 sm:$0xff]  }
 0x8e9   : > { %15653 = vmatprep.subr.bf16.mxu1 %v24281_v37  ;;  %v24335_v37 = vld [vmem:[%s30776_s5 + $0x8cc] ss:$16 sps:$4 sm:$0xff]  }
 0x8ec   : > { %15654 = vmatpush1.bf16.msra.mxu1 %v24279_v23 }
 0x8ed   : > { %15655 = vmatprep.subr.bf16.mxu1 %v24284_v43 }
 0x8ee   : > { %v14795_v63 = vpop.f32.mrb[184].mxu1 }
 0x8ef   : > { %v29924_v10 = vadd.f32 %v14795_v63, %v29813_v24  ;;  %v14797_v56 = vpop.f32.mrb[185].mxu1  ;;  %v24288_v24 = vld [vmem:[%s30776_s5 + $0x7e8] ss:$16 sps:$4 sm:$0xff]  }
 0x8f0   : > { %v29927_v9 = vadd.f32 %v14797_v56, %v29816_v48  ;;  %v14799_v28 = vpop.f32.mrb[186].mxu1  ;;  %15656 = vmatpush1.bf16.msra.mxu1 %v24282_v51  ;;  %v24293_v48 = vld [vmem:[%s30776_s5 + $0x804] ss:$16 sps:$4 sm:$0xff]   ;;  %v24333_v56 = vld [vmem:[%s30776_s5 + $0x8c8] ss:$16 sps:$4 sm:$0xff]  }
 0x8f1   : > { %v14800_v11 = vpop.f32.mrb[187].mxu1  ;;  %15657 = vmatprep.subr.bf16.mxu1 %v24287_v38 }
 0x8f2   : > { %v24339_v11 = vld [vmem:[%s30776_s5 + $0x900] ss:$16 sps:$4 sm:$0xff]  }
 0x8f4   : > { %15658 = vmatpush1.bf16.msra.mxu1 %v24285_v12  ;;  %v24338_v12 = vld [vmem:[%s30776_s5 + $0x8ec] ss:$16 sps:$4 sm:$0xff]  }
 0x8f5   : > { %15659 = vmatprep.subr.bf16.mxu1 %v24290_v61  ;;  %v24344_v61 = vld [vmem:[%s30776_s5 + $0x924] ss:$16 sps:$4 sm:$0xff]  }
 0x8f8   : > { %15660 = vmatpush1.bf16.msra.mxu1 %v24288_v24  ;;  %v24342_v24 = vld [vmem:[%s30776_s5 + $0x920] ss:$16 sps:$4 sm:$0xff]  }
 0x8f9   : > { %15885 = vmatprep.subr.bf16.mxu1 %v24293_v48  ;;  %v24347_v48 = vld [vmem:[%s30776_s5 + $0x944] ss:$16 sps:$4 sm:$0xff]  }
 0x8fb   : > { %15678 = vmatmul.mubr.bf16.vlgmr.msra.gmra.mrb[212].mxu1 %v15442_v0  ;;  %v24321_v0 = vld [vmem:[%s30776_s5 + $0x848] ss:$16 sps:$4 sm:$0xff]  }
 0x8fc   : > { %15886 = vmatpush1.bf16.msra.mxu1 %v24291_v32  ;;  %15917 = vmatprep.mubr.bf16.mxu1 %v24691_v22  ;;  %v24345_v32 = vld [vmem:[%s30776_s5 + $0x940] ss:$16 sps:$4 sm:$0xff]  }
 0x8fd   : > { %15887 = vmatprep.subr.bf16.mxu1 %v24296_v52  ;;  %v24350_v52 = vld [vmem:[%s30776_s5 + $0x964] ss:$16 sps:$4 sm:$0xff]  }
 0x900   : > { %15888 = vmatpush1.bf16.msra.mxu1 %v24294_v46  ;;  %v24348_v46 = vld [vmem:[%s30776_s5 + $0x960] ss:$16 sps:$4 sm:$0xff]  }
 0x901   : > { %15889 = vmatprep.subr.bf16.mxu1 %v24299_v53  ;;  %v24353_v53 = vld [vmem:[%s30776_s5 + $0x984] ss:$16 sps:$4 sm:$0xff]  }
 0x904   : > { %15890 = vmatpush1.bf16.msra.mxu1 %v24297_v44  ;;  %v24351_v44 = vld [vmem:[%s30776_s5 + $0x980] ss:$16 sps:$4 sm:$0xff]  }
 0x905   : > { %15891 = vmatprep.subr.bf16.mxu1 %v24302_v13  ;;  %v24356_v13 = vld [vmem:[%s30776_s5 + $0x9a4] ss:$16 sps:$4 sm:$0xff]  }
 0x908   : > { %15892 = vmatpush1.bf16.msra.mxu1 %v24300_v35  ;;  %v24354_v35 = vld [vmem:[%s30776_s5 + $0x9a0] ss:$16 sps:$4 sm:$0xff]  }
 0x909   : > { %15893 = vmatprep.subr.bf16.mxu1 %v24305_v58  ;;  %v24359_v58 = vld [vmem:[%s30776_s5 + $0x9c4] ss:$16 sps:$4 sm:$0xff]  }
 0x90c   : > { %15894 = vmatpush1.bf16.msra.mxu1 %v24303_v62 }
 0x90d   : > { %15895 = vmatprep.subr.bf16.mxu1 %v24308_v16 }
 0x90e   : > { %v14836_v20 = vpop.f32.mrb[188].mxu1 }
 0x90f   : > { %v29979_v36 = vadd.f32 %v14836_v20, %v29868_v7  ;;  %v14838_v40 = vpop.f32.mrb[189].mxu1  ;;  %v24312_v7 = vld [vmem:[%s30776_s5 + $0x8e0] ss:$16 sps:$4 sm:$0xff]  }
 0x910   : > { %v29982_v15 = vadd.f32 %v14838_v40, %v29871_v33  ;;  %v14840_v60 = vpop.f32.mrb[190].mxu1  ;;  %15896 = vmatpush1.bf16.msra.mxu1 %v24306_v18  ;;  %v24317_v33 = vld [vmem:[%s30776_s5 + $0x80c] ss:$16 sps:$4 sm:$0xff]   ;;  %v24357_v40 = vld [vmem:[%s30776_s5 + $0x9c0] ss:$16 sps:$4 sm:$0xff]  }
 0x911   : > { %v14841_v34 = vpop.f32.mrb[191].mxu1  ;;  %15897 = vmatprep.subr.bf16.mxu1 %v24311_v21 }
 0x912   : > { %v24363_v34 = vld [vmem:[%s30776_s5 + $0x908] ss:$16 sps:$4 sm:$0xff]  }
 0x914   : > { %15898 = vmatpush1.bf16.msra.mxu1 %v24309_v17  ;;  %v24362_v17 = vld [vmem:[%s30776_s5 + $0x9e4] ss:$16 sps:$4 sm:$0xff]  }
 0x915   : > { %15899 = vmatprep.subr.bf16.mxu1 %v24314_v59  ;;  %v16004_v59 = vrot.slane %v28978_v27, 4 }
 0x918   : > { %15900 = vmatpush1.bf16.msra.mxu1 %v24312_v7  ;;  %v24368_v7 = vld [vmem:[%s30776_s5 + $0x92c] ss:$16 sps:$4 sm:$0xff]  }
 0x919   : > { %15926 = vmatprep.subr.bf16.mxu1 %v24317_v33  ;;  %v24366_v33 = vld [vmem:[%s30776_s5 + $0x928] ss:$16 sps:$4 sm:$0xff]  }
 0x91b   : > { %15918 = vmatmul.mubr.bf16.vlgmr.msra.gmra.mrb[216].mxu1 %v15723_v54 }
 0x91c   : > { %15927 = vmatpush1.bf16.msra.mxu1 %v24315_v50  ;;  %15958 = vmatprep.mubr.bf16.mxu1 %v24691_v22  ;;  %v24371_v50 = vld [vmem:[%s30776_s5 + $0x94c] ss:$16 sps:$4 sm:$0xff]  }
 0x91d   : > { %15928 = vmatprep.subr.bf16.mxu1 %v24320_v1  ;;  %v24374_v1 = vld [vmem:[%s30776_s5 + $0x96c] ss:$16 sps:$4 sm:$0xff]  }
 0x920   : > { %15929 = vmatpush1.bf16.msra.mxu1 %v24318_v47  ;;  %v24372_v47 = vld [vmem:[%s30776_s5 + $0x968] ss:$16 sps:$4 sm:$0xff]  }
 0x921   : > { %15930 = vmatprep.subr.bf16.mxu1 %v24323_v41  ;;  %v24377_v41 = vld [vmem:[%s30776_s5 + $0x98c] ss:$16 sps:$4 sm:$0xff]  }
 0x924   : > { %15931 = vmatpush1.bf16.msra.mxu1 %v24321_v0  ;;  %v24375_v0 = vld [vmem:[%s30776_s5 + $0x988] ss:$16 sps:$4 sm:$0xff]  }
 0x925   : > { %15932 = vmatprep.subr.bf16.mxu1 %v24326_v26  ;;  %v24380_v26 = vld [vmem:[%s30776_s5 + $0x9ac] ss:$16 sps:$4 sm:$0xff]  }
 0x928   : > { %15933 = vmatpush1.bf16.msra.mxu1 %v24324_v57  ;;  %v24378_v57 = vld [vmem:[%s30776_s5 + $0x9a8] ss:$16 sps:$4 sm:$0xff]  }
 0x929   : > { %15934 = vmatprep.subr.bf16.mxu1 %v24329_v8  ;;  %v24383_v8 = vld [vmem:[%s30776_s5 + $0x9cc] ss:$16 sps:$4 sm:$0xff]  }
 0x92c   : > { %15935 = vmatpush1.bf16.msra.mxu1 %v24327_v4 }
 0x92d   : > { %15936 = vmatprep.subr.bf16.mxu1 %v24332_v19 }
 0x92e   : > { %v15076_v23 = vpop.f32.mrb[192].mxu1 }
 0x92f   : > { %v30035_v43 = vadd.f32 %v15076_v23, %v29924_v10  ;;  %v15078_v51 = vpop.f32.mrb[193].mxu1  ;;  %v24336_v10 = vld [vmem:[%s30776_s5 + $0x8e8] ss:$16 sps:$4 sm:$0xff]  }
 0x930   : > { %v30038_v38 = vadd.f32 %v15078_v51, %v29927_v9  ;;  %v15080_v63 = vpop.f32.mrb[194].mxu1  ;;  %15937 = vmatpush1.bf16.msra.mxu1 %v24330_v31  ;;  %v24341_v9 = vld [vmem:[%s30776_s5 + $0x904] ss:$16 sps:$4 sm:$0xff]   ;;  %v24381_v51 = vld [vmem:[%s30776_s5 + $0x9c8] ss:$16 sps:$4 sm:$0xff]  }
 0x931   : > { %v15081_v28 = vpop.f32.mrb[195].mxu1  ;;  %15938 = vmatprep.subr.bf16.mxu1 %v24335_v37 }
 0x932   : > { %v24387_v28 = vld [vmem:[%s30776_s5 + $0xa00] ss:$16 sps:$4 sm:$0xff]  }
 0x934   : > { %15939 = vmatpush1.bf16.msra.mxu1 %v24333_v56  ;;  %v24386_v56 = vld [vmem:[%s30776_s5 + $0x9ec] ss:$16 sps:$4 sm:$0xff]  }
 0x935   : > { %15940 = vmatprep.subr.bf16.mxu1 %v24338_v12  ;;  %v24392_v12 = vld [vmem:[%s30776_s5 + $0xa24] ss:$16 sps:$4 sm:$0xff]  }
 0x938   : > { %15941 = vmatpush1.bf16.msra.mxu1 %v24336_v10  ;;  %v24390_v10 = vld [vmem:[%s30776_s5 + $0xa20] ss:$16 sps:$4 sm:$0xff]  }
 0x939   : > { %16166 = vmatprep.subr.bf16.mxu1 %v24341_v9  ;;  %v24395_v9 = vld [vmem:[%s30776_s5 + $0xa44] ss:$16 sps:$4 sm:$0xff]  }
 0x93b   : > { %15959 = vmatmul.mubr.bf16.vlgmr.msra.gmra.mrb[220].mxu1 %v15723_v54  ;;  %v24369_v54 = vld [vmem:[%s30776_s5 + $0x948] ss:$16 sps:$4 sm:$0xff]  }
 0x93c   : > { %16167 = vmatpush1.bf16.msra.mxu1 %v24339_v11  ;;  %16198 = vmatprep.mubr.bf16.mxu1 %v24691_v22  ;;  %v24393_v11 = vld [vmem:[%s30776_s5 + $0xa40] ss:$16 sps:$4 sm:$0xff]  }
 0x93d   : > { %16168 = vmatprep.subr.bf16.mxu1 %v24344_v61  ;;  %v24398_v61 = vld [vmem:[%s30776_s5 + $0xa64] ss:$16 sps:$4 sm:$0xff]  }
 0x940   : > { %16169 = vmatpush1.bf16.msra.mxu1 %v24342_v24  ;;  %v24396_v24 = vld [vmem:[%s30776_s5 + $0xa60] ss:$16 sps:$4 sm:$0xff]  }
 0x941   : > { %16170 = vmatprep.subr.bf16.mxu1 %v24347_v48  ;;  %v24401_v48 = vld [vmem:[%s30776_s5 + $0xa84] ss:$16 sps:$4 sm:$0xff]  }
 0x944   : > { %16171 = vmatpush1.bf16.msra.mxu1 %v24345_v32  ;;  %v24399_v32 = vld [vmem:[%s30776_s5 + $0xa80] ss:$16 sps:$4 sm:$0xff]  }
 0x945   : > { %16172 = vmatprep.subr.bf16.mxu1 %v24350_v52  ;;  %v24404_v52 = vld [vmem:[%s30776_s5 + $0xaa4] ss:$16 sps:$4 sm:$0xff]  }
 0x948   : > { %16173 = vmatpush1.bf16.msra.mxu1 %v24348_v46  ;;  %v24402_v46 = vld [vmem:[%s30776_s5 + $0xaa0] ss:$16 sps:$4 sm:$0xff]  }
 0x949   : > { %16174 = vmatprep.subr.bf16.mxu1 %v24353_v53  ;;  %v24407_v53 = vld [vmem:[%s30776_s5 + $0xac4] ss:$16 sps:$4 sm:$0xff]  }
 0x94c   : > { %16175 = vmatpush1.bf16.msra.mxu1 %v24351_v44 }
 0x94d   : > { %16176 = vmatprep.subr.bf16.mxu1 %v24356_v13 }
 0x94e   : > { %v15117_v62 = vpop.f32.mrb[196].mxu1 }
 0x94f   : > { %v30090_v16 = vadd.f32 %v15117_v62, %v29979_v36  ;;  %v15119_v18 = vpop.f32.mrb[197].mxu1  ;;  %v24360_v36 = vld [vmem:[%s30776_s5 + $0x9e0] ss:$16 sps:$4 sm:$0xff]  }
 0x950   : > { %v30093_v21 = vadd.f32 %v15119_v18, %v29982_v15  ;;  %v15121_v20 = vpop.f32.mrb[198].mxu1  ;;  %16177 = vmatpush1.bf16.msra.mxu1 %v24354_v35  ;;  %v24365_v15 = vld [vmem:[%s30776_s5 + $0x90c] ss:$16 sps:$4 sm:$0xff]   ;;  %v24405_v18 = vld [vmem:[%s30776_s5 + $0xac0] ss:$16 sps:$4 sm:$0xff]  }
 0x951   : > { %v15122_v60 = vpop.f32.mrb[199].mxu1  ;;  %16178 = vmatprep.subr.bf16.mxu1 %v24359_v58 }
 0x952   : > { %v24411_v60 = vld [vmem:[%s30776_s5 + $0xa08] ss:$16 sps:$4 sm:$0xff]  }
 0x954   : > { %16179 = vmatpush1.bf16.msra.mxu1 %v24357_v40  ;;  %v24410_v40 = vld [vmem:[%s30776_s5 + $0xae4] ss:$16 sps:$4 sm:$0xff]  }
 0x955   : > { %16180 = vmatprep.subr.bf16.mxu1 %v24362_v17  ;;  %v16285_v17 = vrot.slane %v28969_v14, 5  ;;  %v24594_v14 = vld [vmem:[%s30778_s7 + $0xb8] sm:$0xff]  }
 0x958   : > { %16181 = vmatpush1.bf16.msra.mxu1 %v24360_v36  ;;  %v24416_v36 = vld [vmem:[%s30776_s5 + $0xa2c] ss:$16 sps:$4 sm:$0xff]  }
 0x959   : > { %16207 = vmatprep.subr.bf16.mxu1 %v24365_v15  ;;  %v24414_v15 = vld [vmem:[%s30776_s5 + $0xa28] ss:$16 sps:$4 sm:$0xff]  }
 0x95b   : > { %16199 = vmatmul.mubr.bf16.vlgmr.msra.gmra.mrb[224].mxu1 %v16004_v59 }
 0x95c   : > { %16208 = vmatpush1.bf16.msra.mxu1 %v24363_v34  ;;  %16239 = vmatprep.mubr.bf16.mxu1 %v24691_v22  ;;  %v24419_v34 = vld [vmem:[%s30776_s5 + $0xa4c] ss:$16 sps:$4 sm:$0xff]  }
 0x95d   : > { %16209 = vmatprep.subr.bf16.mxu1 %v24368_v7  ;;  %v24422_v7 = vld [vmem:[%s30776_s5 + $0xa6c] ss:$16 sps:$4 sm:$0xff]  }
 0x960   : > { %16210 = vmatpush1.bf16.msra.mxu1 %v24366_v33  ;;  %v24420_v33 = vld [vmem:[%s30776_s5 + $0xa68] ss:$16 sps:$4 sm:$0xff]  }
 0x961   : > { %16211 = vmatprep.subr.bf16.mxu1 %v24371_v50  ;;  %v24425_v50 = vld [vmem:[%s30776_s5 + $0xa8c] ss:$16 sps:$4 sm:$0xff]  }
 0x964   : > { %16212 = vmatpush1.bf16.msra.mxu1 %v24369_v54  ;;  %v24423_v54 = vld [vmem:[%s30776_s5 + $0xa88] ss:$16 sps:$4 sm:$0xff]  }
 0x965   : > { %16213 = vmatprep.subr.bf16.mxu1 %v24374_v1  ;;  %v24428_v1 = vld [vmem:[%s30776_s5 + $0xaac] ss:$16 sps:$4 sm:$0xff]  }
 0x968   : > { %16214 = vmatpush1.bf16.msra.mxu1 %v24372_v47  ;;  %v24426_v47 = vld [vmem:[%s30776_s5 + $0xaa8] ss:$16 sps:$4 sm:$0xff]  }
 0x969   : > { %16215 = vmatprep.subr.bf16.mxu1 %v24377_v41  ;;  %v24431_v41 = vld [vmem:[%s30776_s5 + $0xacc] ss:$16 sps:$4 sm:$0xff]  }
 0x96c   : > { %16216 = vmatpush1.bf16.msra.mxu1 %v24375_v0 }
 0x96d   : > { %16217 = vmatprep.subr.bf16.mxu1 %v24380_v26 }
 0x96e   : > { %v15357_v4 = vpop.f32.mrb[200].mxu1 }
 0x96f   : > { %v30146_v19 = vadd.f32 %v15357_v4, %v30035_v43  ;;  %v15359_v31 = vpop.f32.mrb[201].mxu1  ;;  %v24384_v43 = vld [vmem:[%s30776_s5 + $0x9e8] ss:$16 sps:$4 sm:$0xff]  }
 0x970   : > { %v30149_v37 = vadd.f32 %v15359_v31, %v30038_v38  ;;  %v15361_v23 = vpop.f32.mrb[202].mxu1  ;;  %16218 = vmatpush1.bf16.msra.mxu1 %v24378_v57  ;;  %v24389_v38 = vld [vmem:[%s30776_s5 + $0xa04] ss:$16 sps:$4 sm:$0xff]   ;;  %v24429_v31 = vld [vmem:[%s30776_s5 + $0xac8] ss:$16 sps:$4 sm:$0xff]  }
 0x971   : > { %v15362_v63 = vpop.f32.mrb[203].mxu1  ;;  %16219 = vmatprep.subr.bf16.mxu1 %v24383_v8 }
 0x972   : > { %v24435_v63 = vld [vmem:[%s30776_s5 + $0xb00] ss:$16 sps:$4 sm:$0xff]  }
 0x974   : > { %16220 = vmatpush1.bf16.msra.mxu1 %v24381_v51  ;;  %v24434_v51 = vld [vmem:[%s30776_s5 + $0xaec] ss:$16 sps:$4 sm:$0xff]  }
 0x975   : > { %16221 = vmatprep.subr.bf16.mxu1 %v24386_v56  ;;  %v24440_v56 = vld [vmem:[%s30776_s5 + $0xb24] ss:$16 sps:$4 sm:$0xff]  }
 0x978   : > { %16222 = vmatpush1.bf16.msra.mxu1 %v24384_v43  ;;  %v24438_v43 = vld [vmem:[%s30776_s5 + $0xb20] ss:$16 sps:$4 sm:$0xff]  }
 0x979   : > { %16447 = vmatprep.subr.bf16.mxu1 %v24389_v38  ;;  %v24443_v38 = vld [vmem:[%s30776_s5 + $0xb44] ss:$16 sps:$4 sm:$0xff]  }
 0x97b   : > { %16240 = vmatmul.mubr.bf16.vlgmr.msra.gmra.mrb[228].mxu1 %v16004_v59  ;;  %v24417_v59 = vld [vmem:[%s30776_s5 + $0xa48] ss:$16 sps:$4 sm:$0xff]  }
 0x97c   : > { %16448 = vmatpush1.bf16.msra.mxu1 %v24387_v28  ;;  %16479 = vmatprep.mubr.bf16.mxu1 %v24691_v22  ;;  %v24441_v28 = vld [vmem:[%s30776_s5 + $0xb40] ss:$16 sps:$4 sm:$0xff]  }
 0x97d   : > { %16449 = vmatprep.subr.bf16.mxu1 %v24392_v12  ;;  %v24446_v12 = vld [vmem:[%s30776_s5 + $0xb64] ss:$16 sps:$4 sm:$0xff]  }
 0x980   : > { %16450 = vmatpush1.bf16.msra.mxu1 %v24390_v10  ;;  %v24444_v10 = vld [vmem:[%s30776_s5 + $0xb60] ss:$16 sps:$4 sm:$0xff]  }
 0x981   : > { %16451 = vmatprep.subr.bf16.mxu1 %v24395_v9  ;;  %v24449_v9 = vld [vmem:[%s30776_s5 + $0xb84] ss:$16 sps:$4 sm:$0xff]  }
 0x984   : > { %16452 = vmatpush1.bf16.msra.mxu1 %v24393_v11  ;;  %v24447_v11 = vld [vmem:[%s30776_s5 + $0xb80] ss:$16 sps:$4 sm:$0xff]  }
 0x985   : > { %16453 = vmatprep.subr.bf16.mxu1 %v24398_v61  ;;  %v24452_v61 = vld [vmem:[%s30776_s5 + $0xba4] ss:$16 sps:$4 sm:$0xff]  }
 0x988   : > { %16454 = vmatpush1.bf16.msra.mxu1 %v24396_v24  ;;  %v24450_v24 = vld [vmem:[%s30776_s5 + $0xba0] ss:$16 sps:$4 sm:$0xff]  }
 0x989   : > { %16455 = vmatprep.subr.bf16.mxu1 %v24401_v48  ;;  %v24455_v48 = vld [vmem:[%s30776_s5 + $0xbc4] ss:$16 sps:$4 sm:$0xff]  }
 0x98c   : > { %16456 = vmatpush1.bf16.msra.mxu1 %v24399_v32 }
 0x98d   : > { %16457 = vmatprep.subr.bf16.mxu1 %v24404_v52 }
 0x98e   : > { %v15398_v44 = vpop.f32.mrb[204].mxu1 }
 0x98f   : > { %v30201_v13 = vadd.f32 %v15398_v44, %v30090_v16  ;;  %v15400_v35 = vpop.f32.mrb[205].mxu1  ;;  %v24408_v16 = vld [vmem:[%s30776_s5 + $0xae0] ss:$16 sps:$4 sm:$0xff]  }
 0x990   : > { %v30204_v58 = vadd.f32 %v15400_v35, %v30093_v21  ;;  %v15402_v62 = vpop.f32.mrb[206].mxu1  ;;  %16458 = vmatpush1.bf16.msra.mxu1 %v24402_v46  ;;  %v24413_v21 = vld [vmem:[%s30776_s5 + $0xa0c] ss:$16 sps:$4 sm:$0xff]   ;;  %v24453_v35 = vld [vmem:[%s30776_s5 + $0xbc0] ss:$16 sps:$4 sm:$0xff]  }
 0x991   : > { %v15403_v20 = vpop.f32.mrb[207].mxu1  ;;  %16459 = vmatprep.subr.bf16.mxu1 %v24407_v53 }
 0x992   : > { %v24459_v20 = vld [vmem:[%s30776_s5 + $0xb08] ss:$16 sps:$4 sm:$0xff]  }
 0x994   : > { %16460 = vmatpush1.bf16.msra.mxu1 %v24405_v18  ;;  %v24458_v18 = vld [vmem:[%s30776_s5 + $0xbe4] ss:$16 sps:$4 sm:$0xff]  }
 0x995   : > { %16461 = vmatprep.subr.bf16.mxu1 %v24410_v40  ;;  %v16566_v40 = vrot.slane %v28978_v27, 5  ;;  %v24595_v27 = vld [vmem:[%s30778_s7 + $0x40] sm:$0xff]  }
 0x998   : > { %16462 = vmatpush1.bf16.msra.mxu1 %v24408_v16  ;;  %v24464_v16 = vld [vmem:[%s30776_s5 + $0xb2c] ss:$16 sps:$4 sm:$0xff]  }
 0x999   : > { %16488 = vmatprep.subr.bf16.mxu1 %v24413_v21  ;;  %v24462_v21 = vld [vmem:[%s30776_s5 + $0xb28] ss:$16 sps:$4 sm:$0xff]  }
 0x99b   : > { %16480 = vmatmul.mubr.bf16.vlgmr.msra.gmra.mrb[232].mxu1 %v16285_v17 }
 0x99c   : > { %16489 = vmatpush1.bf16.msra.mxu1 %v24411_v60  ;;  %16520 = vmatprep.mubr.bf16.mxu1 %v24691_v22  ;;  %v24467_v60 = vld [vmem:[%s30776_s5 + $0xb4c] ss:$16 sps:$4 sm:$0xff]  }
 0x99d   : > { %16490 = vmatprep.subr.bf16.mxu1 %v24416_v36  ;;  %v24470_v36 = vld [vmem:[%s30776_s5 + $0xb6c] ss:$16 sps:$4 sm:$0xff]  }
 0x9a0   : > { %16491 = vmatpush1.bf16.msra.mxu1 %v24414_v15  ;;  %v24468_v15 = vld [vmem:[%s30776_s5 + $0xb68] ss:$16 sps:$4 sm:$0xff]  }
 0x9a1   : > { %16492 = vmatprep.subr.bf16.mxu1 %v24419_v34  ;;  %v24473_v34 = vld [vmem:[%s30776_s5 + $0xb8c] ss:$16 sps:$4 sm:$0xff]  }
 0x9a4   : > { %16493 = vmatpush1.bf16.msra.mxu1 %v24417_v59  ;;  %v24471_v59 = vld [vmem:[%s30776_s5 + $0xb88] ss:$16 sps:$4 sm:$0xff]  }
 0x9a5   : > { %16494 = vmatprep.subr.bf16.mxu1 %v24422_v7  ;;  %v24476_v7 = vld [vmem:[%s30776_s5 + $0xbac] ss:$16 sps:$4 sm:$0xff]  }
 0x9a8   : > { %16495 = vmatpush1.bf16.msra.mxu1 %v24420_v33  ;;  %v24474_v33 = vld [vmem:[%s30776_s5 + $0xba8] ss:$16 sps:$4 sm:$0xff]  }
 0x9a9   : > { %16496 = vmatprep.subr.bf16.mxu1 %v24425_v50  ;;  %v24479_v50 = vld [vmem:[%s30776_s5 + $0xbcc] ss:$16 sps:$4 sm:$0xff]  }
 0x9ac   : > { %16497 = vmatpush1.bf16.msra.mxu1 %v24423_v54 }
 0x9ad   : > { %16498 = vmatprep.subr.bf16.mxu1 %v24428_v1 }
 0x9ae   : > { %v15638_v0 = vpop.f32.mrb[208].mxu1 }
 0x9af   : > { %v30257_v26 = vadd.f32 %v15638_v0, %v30146_v19  ;;  %v15640_v57 = vpop.f32.mrb[209].mxu1  ;;  %v24432_v19 = vld [vmem:[%s30776_s5 + $0xae8] ss:$16 sps:$4 sm:$0xff]  }
 0x9b0   : > { %v30260_v8 = vadd.f32 %v15640_v57, %v30149_v37  ;;  %v15642_v4 = vpop.f32.mrb[210].mxu1  ;;  %16499 = vmatpush1.bf16.msra.mxu1 %v24426_v47  ;;  %v24437_v37 = vld [vmem:[%s30776_s5 + $0xb04] ss:$16 sps:$4 sm:$0xff]   ;;  %v24477_v57 = vld [vmem:[%s30776_s5 + $0xbc8] ss:$16 sps:$4 sm:$0xff]  }
 0x9b1   : > { %v15643_v23 = vpop.f32.mrb[211].mxu1  ;;  %16500 = vmatprep.subr.bf16.mxu1 %v24431_v41 }
 0x9b2   : > { %v24483_v23 = vld [vmem:[%s30776_s5 + $0xc00] ss:$16 sps:$4 sm:$0xff]  }
 0x9b4   : > { %16501 = vmatpush1.bf16.msra.mxu1 %v24429_v31  ;;  %v24482_v31 = vld [vmem:[%s30776_s5 + $0xbec] ss:$16 sps:$4 sm:$0xff]  }
 0x9b5   : > { %16502 = vmatprep.subr.bf16.mxu1 %v24434_v51  ;;  %v24488_v51 = vld [vmem:[%s30776_s5 + $0xc24] ss:$16 sps:$4 sm:$0xff]  }
 0x9b8   : > { %16503 = vmatpush1.bf16.msra.mxu1 %v24432_v19  ;;  %v24486_v19 = vld [vmem:[%s30776_s5 + $0xc20] ss:$16 sps:$4 sm:$0xff]  }
 0x9b9   : > { %16728 = vmatprep.subr.bf16.mxu1 %v24437_v37  ;;  %v24491_v37 = vld [vmem:[%s30776_s5 + $0xc44] ss:$16 sps:$4 sm:$0xff]  }
 0x9bb   : > { %16521 = vmatmul.mubr.bf16.vlgmr.msra.gmra.mrb[236].mxu1 %v16285_v17  ;;  %v24465_v17 = vld [vmem:[%s30776_s5 + $0xb48] ss:$16 sps:$4 sm:$0xff]  }
 0x9bc   : > { %16729 = vmatpush1.bf16.msra.mxu1 %v24435_v63  ;;  %16760 = vmatprep.mubr.bf16.mxu1 %v24691_v22  ;;  %v24489_v63 = vld [vmem:[%s30776_s5 + $0xc40] ss:$16 sps:$4 sm:$0xff]  }
 0x9bd   : > { %16730 = vmatprep.subr.bf16.mxu1 %v24440_v56  ;;  %v24494_v56 = vld [vmem:[%s30776_s5 + $0xc64] ss:$16 sps:$4 sm:$0xff]  }
 0x9c0   : > { %16731 = vmatpush1.bf16.msra.mxu1 %v24438_v43  ;;  %v24492_v43 = vld [vmem:[%s30776_s5 + $0xc60] ss:$16 sps:$4 sm:$0xff]  }
 0x9c1   : > { %16732 = vmatprep.subr.bf16.mxu1 %v24443_v38  ;;  %v24497_v38 = vld [vmem:[%s30776_s5 + $0xc84] ss:$16 sps:$4 sm:$0xff]  }
 0x9c4   : > { %16733 = vmatpush1.bf16.msra.mxu1 %v24441_v28  ;;  %v24495_v28 = vld [vmem:[%s30776_s5 + $0xc80] ss:$16 sps:$4 sm:$0xff]  }
 0x9c5   : > { %16734 = vmatprep.subr.bf16.mxu1 %v24446_v12  ;;  %v24500_v12 = vld [vmem:[%s30776_s5 + $0xca4] ss:$16 sps:$4 sm:$0xff]  }
 0x9c8   : > { %16735 = vmatpush1.bf16.msra.mxu1 %v24444_v10  ;;  %v24498_v10 = vld [vmem:[%s30776_s5 + $0xca0] ss:$16 sps:$4 sm:$0xff]  }
 0x9c9   : > { %16736 = vmatprep.subr.bf16.mxu1 %v24449_v9  ;;  %v24503_v9 = vld [vmem:[%s30776_s5 + $0xcc4] ss:$16 sps:$4 sm:$0xff]  }
 0x9cc   : > { %16737 = vmatpush1.bf16.msra.mxu1 %v24447_v11 }
 0x9cd   : > { %16738 = vmatprep.subr.bf16.mxu1 %v24452_v61 }
 0x9ce   : > { %v15679_v32 = vpop.f32.mrb[212].mxu1 }
 0x9cf   : > { %v30312_v52 = vadd.f32 %v15679_v32, %v30201_v13  ;;  %v15681_v46 = vpop.f32.mrb[213].mxu1  ;;  %v24456_v13 = vld [vmem:[%s30776_s5 + $0xbe0] ss:$16 sps:$4 sm:$0xff]  }
 0x9d0   : > { %v30315_v53 = vadd.f32 %v15681_v46, %v30204_v58  ;;  %v15683_v44 = vpop.f32.mrb[214].mxu1  ;;  %16739 = vmatpush1.bf16.msra.mxu1 %v24450_v24  ;;  %v24461_v58 = vld [vmem:[%s30776_s5 + $0xb0c] ss:$16 sps:$4 sm:$0xff]   ;;  %v24501_v46 = vld [vmem:[%s30776_s5 + $0xcc0] ss:$16 sps:$4 sm:$0xff]  }
 0x9d1   : > { %v15684_v62 = vpop.f32.mrb[215].mxu1  ;;  %16740 = vmatprep.subr.bf16.mxu1 %v24455_v48 }
 0x9d2   : > { %v24507_v62 = vld [vmem:[%s30776_s5 + $0xd00] ss:$16 sps:$4 sm:$0xff]  }
 0x9d4   : > { %16741 = vmatpush1.bf16.msra.mxu1 %v24453_v35  ;;  %v24506_v35 = vld [vmem:[%s30776_s5 + $0xce4] ss:$16 sps:$4 sm:$0xff]  }
 0x9d5   : > { %16742 = vmatprep.subr.bf16.mxu1 %v24458_v18  ;;  %v24512_v18 = vld [vmem:[%s30776_s5 + $0xd24] ss:$16 sps:$4 sm:$0xff]  }
 0x9d8   : > { %16743 = vmatpush1.bf16.msra.mxu1 %v24456_v13  ;;  %v24510_v13 = vld [vmem:[%s30776_s5 + $0xd20] ss:$16 sps:$4 sm:$0xff]  }
 0x9d9   : > { %16769 = vmatprep.subr.bf16.mxu1 %v24461_v58  ;;  %v24515_v58 = vld [vmem:[%s30776_s5 + $0xd44] ss:$16 sps:$4 sm:$0xff]  }
 0x9db   : > { %16761 = vmatmul.mubr.bf16.vlgmr.msra.gmra.mrb[240].mxu1 %v16566_v40 }
 0x9dc   : > { %16770 = vmatpush1.bf16.msra.mxu1 %v24459_v20  ;;  %16801 = vmatprep.mubr.bf16.mxu1 %v24691_v22  ;;  %v24513_v20 = vld [vmem:[%s30776_s5 + $0xd40] ss:$16 sps:$4 sm:$0xff]  }
 0x9dd   : > { %16771 = vmatprep.subr.bf16.mxu1 %v24464_v16  ;;  %v24521_v16 = vld [vmem:[%s30776_s5 + $0xd84] ss:$16 sps:$4 sm:$0xff]  }
 0x9e0   : > { %16772 = vmatpush1.bf16.msra.mxu1 %v24462_v21  ;;  %v24519_v21 = vld [vmem:[%s30776_s5 + $0xd80] ss:$16 sps:$4 sm:$0xff]  }
 0x9e1   : > { %16773 = vmatprep.subr.bf16.mxu1 %v24467_v60  ;;  %v24524_v60 = vld [vmem:[%s30776_s5 + $0xda4] ss:$16 sps:$4 sm:$0xff]  }
 0x9e4   : > { %16774 = vmatpush1.bf16.msra.mxu1 %v24465_v17  ;;  %v24522_v17 = vld [vmem:[%s30776_s5 + $0xda0] ss:$16 sps:$4 sm:$0xff]  }
 0x9e5   : > { %16775 = vmatprep.subr.bf16.mxu1 %v24470_v36  ;;  %v24527_v36 = vld [vmem:[%s30776_s5 + $0xdc4] ss:$16 sps:$4 sm:$0xff]  }
 0x9e8   : > { %16776 = vmatpush1.bf16.msra.mxu1 %v24468_v15 }
 0x9e9   : > { %16777 = vmatprep.subr.bf16.mxu1 %v24473_v34 }
 0x9ec   : > { %16778 = vmatpush1.bf16.msra.mxu1 %v24471_v59 }
 0x9ed   : > { %16779 = vmatprep.subr.bf16.mxu1 %v24476_v7 }
 0x9ee   : > { %v15919_v54 = vpop.f32.mrb[216].mxu1 }
 0x9ef   : > { %v30368_v1 = vadd.f32 %v15919_v54, %v30257_v26  ;;  %v15921_v47 = vpop.f32.mrb[217].mxu1  ;;  %v24480_v26 = vld [vmem:[%s30776_s5 + $0xbe8] ss:$16 sps:$4 sm:$0xff]   ;;  %v24530_v54 = vld [vmem:[%s30776_s5 + $0xde4] ss:$16 sps:$4 sm:$0xff]  }
 0x9f0   : > { %v30371_v41 = vadd.f32 %v15921_v47, %v30260_v8  ;;  %v15923_v0 = vpop.f32.mrb[218].mxu1  ;;  %16780 = vmatpush1.bf16.msra.mxu1 %v24474_v33  ;;  %v24485_v8 = vld [vmem:[%s30776_s5 + $0xc04] ss:$16 sps:$4 sm:$0xff]  }
 0x9f1   : > { %v15924_v4 = vpop.f32.mrb[219].mxu1  ;;  %16781 = vmatprep.subr.bf16.mxu1 %v24479_v50  ;;  %v24525_v50 = vld [vmem:[%s30776_s5 + $0xdc0] ss:$16 sps:$4 sm:$0xff]   ;;  %v24581_v0 = vld [vmem:[%s30778_s7 + $0xc8] sm:$0xff]  }
 0x9f2   : > { %v24582_v4 = vld [vmem:[%s30778_s7 + $0x88] sm:$0xff]  }
 0x9f4   : > { %16782 = vmatpush1.bf16.msra.mxu1 %v24477_v57  ;;  %v24528_v57 = vld [vmem:[%s30776_s5 + $0xde0] ss:$16 sps:$4 sm:$0xff]  }
 0x9f5   : > { %16783 = vmatprep.subr.bf16.mxu1 %v24482_v31  ;;  %v24533_v31 = vld [vmem:[%s30776_s5 + $0xe04] ss:$16 sps:$4 sm:$0xff]  }
 0x9f8   : > { %16784 = vmatpush1.bf16.msra.mxu1 %v24480_v26  ;;  %v24583_v26 = vld [vmem:[%s30778_s7 + $0xd0] sm:$0xff]  }
 0x9f9   : > { %17009 = vmatprep.subr.bf16.mxu1 %v24485_v8  ;;  %v24531_v8 = vld [vmem:[%s30776_s5 + $0xe00] ss:$16 sps:$4 sm:$0xff]  }
 0x9fb   : > { %16802 = vmatmul.mubr.bf16.vlgmr.msra.gmra.mrb[244].mxu1 %v16566_v40  ;;  %v24516_v40 = vld [vmem:[%s30776_s5 + $0xd60] ss:$16 sps:$4 sm:$0xff]  }
 0x9fc   : > { %17010 = vmatpush1.bf16.msra.mxu1 %v24483_v23  ;;  %17041 = vmatprep.mubr.bf16.mxu1 %v24691_v22  ;;  %v24536_v23 = vld [vmem:[%s30776_s5 + $0xe24] ss:$16 sps:$4 sm:$0xff]  }
 0x9fd   : > { %17011 = vmatprep.subr.bf16.mxu1 %v24488_v51  ;;  %v24584_v51 = vld [vmem:[%s30778_s7 + $0x90] sm:$0xff]  }
 0xa00   : > { %17012 = vmatpush1.bf16.msra.mxu1 %v24486_v19  ;;  %v24585_v19 = vld [vmem:[%s30778_s7 + $0xd8] sm:$0xff]  }
 0xa01   : > { %17013 = vmatprep.subr.bf16.mxu1 %v24491_v37  ;;  %v24534_v37 = vld [vmem:[%s30776_s5 + $0xe20] ss:$16 sps:$4 sm:$0xff]  }
 0xa04   : > { %17014 = vmatpush1.bf16.msra.mxu1 %v24489_v63  ;;  %v24539_v63 = vld [vmem:[%s30776_s5 + $0xe44] ss:$16 sps:$4 sm:$0xff]  }
 0xa05   : > { %17015 = vmatprep.subr.bf16.mxu1 %v24494_v56  ;;  %v24537_v56 = vld [vmem:[%s30776_s5 + $0xe40] ss:$16 sps:$4 sm:$0xff]  }
 0xa08   : > { %17016 = vmatpush1.bf16.msra.mxu1 %v24492_v43  ;;  %v24540_v43 = vld [vmem:[%s30776_s5 + $0xe60] ss:$16 sps:$4 sm:$0xff]  }
 0xa09   : > { %17017 = vmatprep.subr.bf16.mxu1 %v24497_v38  ;;  %v24545_v38 = vld [vmem:[%s30776_s5 + $0xe84] ss:$16 sps:$4 sm:$0xff]  }
 0xa0c   : > { %17018 = vmatpush1.bf16.msra.mxu1 %v24495_v28  ;;  %v24543_v28 = vld [vmem:[%s30776_s5 + $0xe80] ss:$16 sps:$4 sm:$0xff]  }
 0xa0d   : > { %17019 = vmatprep.subr.bf16.mxu1 %v24500_v12  ;;  %v24548_v12 = vld [vmem:[%s30776_s5 + $0xea4] ss:$16 sps:$4 sm:$0xff]  }
 0xa0e   : > { %v15960_v11 = vpop.f32.mrb[220].mxu1 }
 0xa0f   : > { %v30423_v61 = vadd.f32 %v15960_v11, %v30312_v52  ;;  %v15962_v24 = vpop.f32.mrb[221].mxu1  ;;  %v24504_v52 = vld [vmem:[%s30776_s5 + $0xce0] ss:$16 sps:$4 sm:$0xff]   ;;  %v24586_v11 = vld [vmem:[%s30778_s7 + $0x98] sm:$0xff]  }
 0xa10   : > { %v30426_v48 = vadd.f32 %v15962_v24, %v30315_v53  ;;  %v15964_v32 = vpop.f32.mrb[222].mxu1  ;;  %17020 = vmatpush1.bf16.msra.mxu1 %v24498_v10  ;;  %v24509_v53 = vld [vmem:[%s30776_s5 + $0xd04] ss:$16 sps:$4 sm:$0xff]   ;;  %v24546_v10 = vld [vmem:[%s30776_s5 + $0xea0] ss:$16 sps:$4 sm:$0xff]  }
 0xa11   : > { %v15965_v44 = vpop.f32.mrb[223].mxu1  ;;  %17021 = vmatprep.subr.bf16.mxu1 %v24503_v9  ;;  %v24551_v9 = vld [vmem:[%s30776_s5 + $0xec4] ss:$16 sps:$4 sm:$0xff]  }
 0xa14   : > { %17022 = vmatpush1.bf16.msra.mxu1 %v24501_v46 }
 0xa15   : > { %17023 = vmatprep.subr.bf16.mxu1 %v24506_v35 }
 0xa18   : > { %17024 = vmatpush1.bf16.msra.mxu1 %v24504_v52  ;;  %v24549_v52 = vld [vmem:[%s30776_s5 + $0xec0] ss:$16 sps:$4 sm:$0xff]  }
 0xa19   : > { %17290 = vmatprep.subr.bf16.mxu1 %v24509_v53  ;;  %v24587_v53 = vld [vmem:[%s30778_s7 + $0xe0] sm:$0xff]  }
 0xa1b   : > { %17042 = vmatmul.mubr.bf16.vlgmr.msra.gmra.mrb[248].mxu1 %v16847_v5  ;;  %v24518_v5 = vld [vmem:[%s30776_s5 + $0xd64] ss:$16 sps:$4 sm:$0xff]  }
 0xa1c   : > { %17291 = vmatpush1.bf16.msra.mxu1 %v24507_v62  ;;  %17322 = vmatprep.mubr.bf16.mxu1 %v24691_v22 }
 0xa1d   : > { %17292 = vmatprep.subr.bf16.mxu1 %v24512_v18  ;;  %v24552_v18 = vld [vmem:[%s30776_s5 + $0xee0] ss:$16 sps:$4 sm:$0xff]  }
 0xa20   : > { %17293 = vmatpush1.bf16.msra.mxu1 %v24510_v13  ;;  %v24589_v13 = vld [vmem:[%s30778_s7 + $0xe8] sm:$0xff]  }
 0xa21   : > { %17294 = vmatprep.subr.bf16.mxu1 %v24515_v58  ;;  %v24557_v58 = vld [vmem:[%s30776_s5 + $0xf04] ss:$16 sps:$4 sm:$0xff]  }
 0xa24   : > { %17295 = vmatpush1.bf16.msra.mxu1 %v24513_v20  ;;  %v24590_v20 = vld [vmem:[%s30778_s7 + $0xa8] sm:$0xff]  }
 0xa25   : > { %17296 = vmatprep.subr.bf16.mxu1 %v24518_v5  ;;  %v24555_v5 = vld [vmem:[%s30776_s5 + $0xf00] ss:$16 sps:$4 sm:$0xff]  }
 0xa28   : > { %17297 = vmatpush1.bf16.msra.mxu1 %v24516_v40  ;;  %v24591_v40 = vld [vmem:[%s30778_s7 + $0xf0] sm:$0xff]  }
 0xa29   : > { %17298 = vmatprep.subr.bf16.mxu1 %v24521_v16  ;;  %v24560_v16 = vld [vmem:[%s30776_s5 + $0xf24] ss:$16 sps:$4 sm:$0xff]  }
 0xa2c   : > { %17299 = vmatpush1.bf16.msra.mxu1 %v24519_v21  ;;  %v24592_v21 = vld [vmem:[%s30778_s7 + $0xb0] sm:$0xff]  }
 0xa2d   : > { %17300 = vmatprep.subr.bf16.mxu1 %v24524_v60  ;;  %v24558_v60 = vld [vmem:[%s30776_s5 + $0xf20] ss:$16 sps:$4 sm:$0xff]  }
 0xa2e   : > { %v16200_v15 = vpop.f32.mrb[224].mxu1 }
 0xa2f   : > { %v30480_v34 = vadd.f32 %v16200_v15, %v30368_v1  ;;  %v16202_v59 = vpop.f32.mrb[225].mxu1  ;;  %v24579_v1 = vld [vmem:[%s30778_s7 + $0xc0] sm:$0xff]  }
 0xa30   : > { %v30483_v7 = vadd.f32 %v16202_v59, %v30371_v41  ;;  %v16204_v33 = vpop.f32.mrb[226].mxu1  ;;  %17301 = vmatpush1.bf16.msra.mxu1 %v24522_v17  ;;  %v24580_v41 = vld [vmem:[%s30778_s7 + $0x80] sm:$0xff]   ;;  %21534 = vmatprep.subr.bf16.mxu0 %v24579_v1  ;;  %v24593_v17 = vld [vmem:[%s30778_s7 + $0xf8] sm:$0xff]  }
 0xa31   : > { %v16205_v47 = vpop.f32.mrb[227].mxu1  ;;  %17302 = vmatprep.subr.bf16.mxu1 %v24527_v36  ;;  %21535 = vmatpush3.bf16.msra.mxu0 %v24580_v41  ;;  %v24563_v36 = vld [vmem:[%s30776_s5 + $0xf44] ss:$16 sps:$4 sm:$0xff]   ;;  %v24564_v15 = vld [vmem:[%s30776_s5 + $0xf60] ss:$16 sps:$4 sm:$0xff]  }
 0xa32   : > { %21536 = vmatprep.subr.bf16.mxu0 %v24581_v0  ;;  %v24569_v59 = vld [vmem:[%s30776_s5 + $0xf84] ss:$16 sps:$4 sm:$0xff]   ;;  %v24567_v33 = vld [vmem:[%s30776_s5 + $0xf80] ss:$16 sps:$4 sm:$0xff]  }
 0xa33   : > { %v24575_v47 = vld [vmem:[%s30776_s5 + $0xfc4] ss:$16 sps:$4 sm:$0xff]  }
 0xa34   : > { %17303 = vmatpush1.bf16.msra.mxu1 %v24525_v50  ;;  %v24572_v50 = vld [vmem:[%s30776_s5 + $0xfa4] ss:$16 sps:$4 sm:$0xff]  }
 0xa35   : > { %17304 = vmatprep.subr.bf16.mxu1 %v24530_v54  ;;  %21537 = vmatpush3.bf16.msra.mxu0 %v24582_v4  ;;  %v24570_v54 = vld [vmem:[%s30776_s5 + $0xfa0] ss:$16 sps:$4 sm:$0xff]  }
 0xa36   : > { %21538 = vmatprep.subr.bf16.mxu0 %v24583_v26 }
 0xa38   : > { %17305 = vmatpush1.bf16.msra.mxu1 %v24528_v57 }
 0xa39   : > { %17571 = vmatprep.subr.bf16.mxu1 %v24533_v31  ;;  %21539 = vmatpush3.bf16.msra.mxu0 %v24584_v51  ;;  %v24573_v31 = vld [vmem:[%s30776_s5 + $0xfc0] ss:$16 sps:$4 sm:$0xff]  }
 0xa3a   : > { %21540 = vmatprep.subr.bf16.mxu0 %v24585_v19 }
 0xa3b   : > { %17323 = vmatmul.mubr.bf16.vlgmr.msra.gmra.mrb[252].mxu1 %v17128_v45  ;;  %v24542_v45 = vld [vmem:[%s30776_s5 + $0xe64] ss:$16 sps:$4 sm:$0xff]  }
 0xa3c   : > { %17572 = vmatpush1.bf16.msra.mxu1 %v24531_v8  ;;  %17603 = vmatprep.mubr.bf16.mxu1 %v24691_v22  ;;  %v24578_v8 = vld [vmem:[%s30776_s5 + $0xfe4] ss:$16 sps:$4 sm:$0xff]  }
 0xa3d   : > { %17573 = vmatprep.subr.bf16.mxu1 %v24536_v23  ;;  %21541 = vmatpush3.bf16.msra.mxu0 %v24586_v11  ;;  %v24599_v11 = vld [vmem:[%s30778_s7 + $0x50] sm:$0xff]  }
 0xa3e   : > { %21542 = vmatprep.subr.bf16.mxu0 %v24587_v53  ;;  %v17940_v53 = vlaneseq }
 0xa40   : > { %17574 = vmatpush1.bf16.msra.mxu1 %v24534_v37 }
 0xa41   : > { %17575 = vmatprep.subr.bf16.mxu1 %v24539_v63 }
 0xa44   : > { %17576 = vmatpush1.bf16.msra.mxu1 %v24537_v56 }
 0xa45   : > { %17577 = vmatprep.subr.bf16.mxu1 %v24542_v45 }
 0xa48   : > { %17578 = vmatpush1.bf16.msra.mxu1 %v24540_v43 }
 0xa49   : > { %17579 = vmatprep.subr.bf16.mxu1 %v24545_v38 }
 0xa4c   : > { %17580 = vmatpush1.bf16.msra.mxu1 %v24543_v28 }
 0xa4d   : > { %17581 = vmatprep.subr.bf16.mxu1 %v24548_v12 }
 0xa4e   : > { %v16241_v24 = vpop.f32.mrb[228].mxu1 }
 0xa4f   : > { %v30561_v32 = vadd.f32 %v16241_v24, %v30423_v61  ;;  %v16243_v46 = vpop.f32.mrb[229].mxu1  ;;  %v24554_v61 = vld [vmem:[%s30776_s5 + $0xee4] ss:$16 sps:$4 sm:$0xff]  }
 0xa50   : > { %v30564_v44 = vadd.f32 %v16243_v46, %v30426_v48  ;;  %v16245_v35 = vpop.f32.mrb[230].mxu1  ;;  %17582 = vmatpush1.bf16.msra.mxu1 %v24546_v10  ;;  %v24588_v48 = vld [vmem:[%s30778_s7 + $0xa0] sm:$0xff]   ;;  %v24597_v10 = vld [vmem:[%s30778_s7 + $0x48] sm:$0xff]   ;;  %v24600_v24 = vld [vmem:[%s30778_s7 + $0x10] sm:$0xff]  }
 0xa51   : > { %v16246_v62 = vpop.f32.mrb[231].mxu1  ;;  %17583 = vmatprep.subr.bf16.mxu1 %v24551_v9  ;;  %21543 = vmatpush3.bf16.msra.mxu0 %v24588_v48  ;;  %v24598_v9 = vld [vmem:[%s30778_s7 + $0x8] sm:$0xff]   ;;  %v24602_v46 = vld [vmem:[%s30778_s7 + $0x18] sm:$0xff]   ;;  %v24604_v35 = vld [vmem:[%s30778_s7 + $0x20] sm:$0xff]  }
 0xa52   : > { %21544 = vmatprep.subr.bf16.mxu0 %v24589_v13  ;;  %v17941_v62 = vshrl.u32 %v17940_v53, 7 }
 0xa54   : > { %17584 = vmatpush1.bf16.msra.mxu1 %v24549_v52  ;;  %v24605_v52 = vld [vmem:[%s30778_s7 + $0x68] sm:$0xff]  }
 0xa55   : > { %17585 = vmatprep.subr.bf16.mxu1 %v24554_v61  ;;  %21545 = vmatpush3.bf16.msra.mxu0 %v24590_v20  ;;  %v24606_v61 = vld [vmem:[%s30778_s7 + $0x28] sm:$0xff]  }
 0xa56   : > { %21546 = vmatprep.subr.bf16.mxu0 %v24591_v40 }
 0xa58   : > { %17586 = vmatpush1.bf16.msra.mxu1 %v24552_v18 }
 0xa59   : > { %17852 = vmatprep.subr.bf16.mxu1 %v24557_v58  ;;  %21547 = vmatpush3.bf16.msra.mxu0 %v24592_v21 }
 0xa5a   : > { %21548 = vmatprep.subr.bf16.mxu0 %v24593_v17  ;;  %v17938_v17 = vld [vmem:[%s30777_s6] sm:$0xf] }
 0xa5b   : > { %17604 = vmatmul.mubr.bf16.vlgmr.msra.gmra.mrb[0].mxu1 %v17409_v39  ;;  %v24566_v39 = vld [vmem:[%s30776_s5 + $0xf64] ss:$16 sps:$4 sm:$0xff]  }
 0xa5c   : > { %17853 = vmatpush1.bf16.msra.mxu1 %v24555_v5  ;;  %17884 = vmatprep.mubr.bf16.mxu1 %v24691_v22  ;;  %v24561_v22 = vld [vmem:[%s30776_s5 + $0xf40] ss:$16 sps:$4 sm:$0xff]  }
 0xa5d   : > { %17854 = vmatprep.subr.bf16.mxu1 %v24560_v16  ;;  %21549 = vmatpush3.bf16.msra.mxu0 %v24594_v14  ;;  %v24607_v5 = vld [vmem:[%s30778_s7 + $0x70] sm:$0xff]   ;;  %v17950_v16 = vsub.s32 2, %v17941_v62  ;;  %v17954_v14 = vsub.s32 3, %v17941_v62 }
 0xa60   : > { %17855 = vmatpush1.bf16.msra.mxu1 %v24558_v60  ;;  %v24608_v60 = vld [vmem:[%s30778_s7 + $0x30] sm:$0xff]  }
 0xa61   : > { %17856 = vmatprep.subr.bf16.mxu1 %v24563_v36 }
 0xa64   : > { %17857 = vmatpush1.bf16.msra.mxu1 %v24561_v22 }
 0xa65   : > { %17858 = vmatprep.subr.bf16.mxu1 %v24566_v39 }
 0xa68   : > { %17859 = vmatpush1.bf16.msra.mxu1 %v24564_v15 }
 0xa69   : > { %17860 = vmatprep.subr.bf16.mxu1 %v24569_v59  ;;  %v17951_v59 = vrot.slane %v17938_v17, %v17950_v16 }
 0xa6c   : > { %17861 = vmatpush1.bf16.msra.mxu1 %v24567_v33  ;;  %v24610_v33 = vld [vmem:[%s30778_s7 + $0x38] sm:$0xff]  }
 0xa6d   : > { %17862 = vmatprep.subr.bf16.mxu1 %v24572_v50  ;;  %v17955_v50 = vrot.slane %v17938_v17, %v17954_v14 }
 0xa6e   : > { %v16481_v1 = vpop.f32.mrb[232].mxu1 }
 0xa6f   : > { %v16529_v41 = vadd.f32 %v16481_v1, %v30480_v34  ;;  %v16483_v0 = vpop.f32.mrb[233].mxu1  ;;  %v24576_v34 = vld [vmem:[%s30776_s5 + $0xfe0] ss:$16 sps:$4 sm:$0xff]  }
 0xa70   : > { %v16530_v57 = vadd.f32 %v16483_v0, %v30483_v7  ;;  %v16485_v4 = vpop.f32.mrb[234].mxu1  ;;  %17863 = vmatpush1.bf16.msra.mxu1 %v24570_v54 }
 0xa71   : > { %v16486_v26 = vpop.f32.mrb[235].mxu1  ;;  %17864 = vmatprep.subr.bf16.mxu1 %v24575_v47 }
 0xa74   : > { %17865 = vmatpush1.bf16.msra.mxu1 %v24573_v31 }
 0xa75   : > { %17866 = vmatprep.subr.bf16.mxu1 %v24578_v8 }
 0xa78   : > { %17867 = vmatpush1.bf16.msra.mxu1 %v24576_v34 }
 0xa79   : > { %21512 = vmatprep.subr.bf16.mxu1 %v24595_v27  ;;  %v17946_v27 = vsub.s32 1, %v17941_v62 }
 0xa7b   : > { %17885 = vmatmul.mubr.bf16.vlgmr.msra.gmra.mrb[4].mxu1 %v17690_v49  ;;  %v24596_v49 = vld [vmem:[%s30778_s7] sm:$0xff]  }
 0xa7c   : > { %21513 = vmatpush3.bf16.msra.mxu1 %v24596_v49 }
 0xa7d   : > { %21514 = vmatprep.subr.bf16.mxu1 %v24597_v10  ;;  %v17947_v10 = vrot.slane %v17938_v17, %v17946_v27 }
 0xa80   : > { %21515 = vmatpush3.bf16.msra.mxu1 %v24598_v9 }
 0xa81   : > { %21516 = vmatprep.subr.bf16.mxu1 %v24599_v11 }
 0xa84   : > { %21517 = vmatpush3.bf16.msra.mxu1 %v24600_v24 }
 0xa8e   : > { %v16522_v7 = vpop.f32.mrb[236].mxu1 }
 0xa8f   : > { %v16531_v23 = vadd.f32 %v16522_v7, %v30561_v32  ;;  %v16524_v51 = vpop.f32.mrb[237].mxu1  ;;  %v24601_v32 = vld [vmem:[%s30778_s7 + $0x58] sm:$0xff]  }
 0xa90   : > { %v16532_v19 = vadd.f32 %v16524_v51, %v30564_v44  ;;  %v16526_v37 = vpop.f32.mrb[238].mxu1  ;;  %21518 = vmatprep.subr.bf16.mxu1 %v24601_v32  ;;  %v24603_v44 = vld [vmem:[%s30778_s7 + $0x60] sm:$0xff]  }
 0xa91   : > { %v16527_v63 = vpop.f32.mrb[239].mxu1  ;;  %21519 = vmatpush3.bf16.msra.mxu1 %v24602_v46 }
 0xa92   : > { %21520 = vmatprep.subr.bf16.mxu1 %v24603_v44 }
 0xa95   : > { %21521 = vmatpush3.bf16.msra.mxu1 %v24604_v35 }
 0xa96   : > { %21522 = vmatprep.subr.bf16.mxu1 %v24605_v52 }
 0xa99   : > { %21523 = vmatpush3.bf16.msra.mxu1 %v24606_v61 }
 0xa9a   : > { %21524 = vmatprep.subr.bf16.mxu1 %v24607_v5  ;;  %v18036_v5 = vld [vmem:[%s30779_s8] sm:$0x1] }
 0xa9d   : > { %21525 = vmatpush3.bf16.msra.mxu1 %v24608_v60 }
 0xaae   : > { %v16762_v56 = vpop.f32.mrb[240].mxu1 }
 0xaaf   : > { %v30656_v45 = vadd.f32 %v16762_v56, %v16529_v41  ;;  %v16764_v43 = vpop.f32.mrb[241].mxu1 }
 0xab0   : > { %v30658_v38 = vadd.f32 %v16764_v43, %v16530_v57  ;;  %v16766_v28 = vpop.f32.mrb[242].mxu1 }
 0xab1   : > { %v16767_v12 = vpop.f32.mrb[243].mxu1 }
 0xab2   : > { %v17942_v12 = vsub.s32 0, %v17941_v62 }
 0xace   : > { %v16803_v48 = vpop.f32.mrb[244].mxu1 }
 0xacf   : > { %v16812_v18 = vadd.f32 %v16803_v48, %v16531_v23  ;;  %v16805_v13 = vpop.f32.mrb[245].mxu1 }
 0xad0   : > { %v16813_v58 = vadd.f32 %v16805_v13, %v16532_v19  ;;  %v16807_v20 = vpop.f32.mrb[246].mxu1 }
 0xad1   : > { %v17093_v40 = vadd.f32 %v29469_v42, %v16812_v18  ;;  %v16808_v21 = vpop.f32.mrb[247].mxu1  ;;  %v24609_v42 = vld [vmem:[%s30778_s7 + $0x78] sm:$0xff]  }
 0xad2   : > { %v17094_v36 = vadd.f32 %v29473_v25, %v16813_v58  ;;  %21526 = vmatprep.subr.bf16.mxu1 %v24609_v42 }
 0xad3   : > { %v17374_v22 = vadd.f32 %v29526_v2, %v17093_v40  ;;  %21527 = vmatpush3.bf16.msra.mxu1 %v24610_v33 }
 0xad4   : > { %v17375_v39 = vadd.f32 %v29530_v30, %v17094_v36 }
 0xad5   : > { %v17655_v15 = vadd.f32 %v29582_v3, %v17374_v22 }
 0xad6   : > { %v17656_v25 = vadd.f32 %v29587_v6, %v17375_v39 }
 0xad7   : > { %v17936_v2 = vadd.f32 %v29641_v55, %v17655_v15 }
 0xad8   : > { %v17937_v30 = vadd.f32 %v29646_v29, %v17656_v25 }
 0xad9   : > { %v17962_v54 = vadd.f32 %v17951_v59, %v17936_v2 }
 0xada   : > { %v17963_v47 = vadd.f32 %v17955_v50, %v17937_v30 }
 0xadb   : > { %v17966_v1 = vmax.f32 %v17962_v54, 0.0 }
 0xadc   : > { %v17967_v41 = vmax.f32 %v17963_v47, 0.0 }
 0xadd   : > { %v17970_v3 = vpack.c.bf16 %v17966_v1, %v17966_v1 }
 0xade   : > { %v17971_v0 = vpack.c.bf16 %v17967_v41, %v17967_v41 }
 0xae0   : > { %18301 = vmatprep.mubr.bf16.mxu0 %v17971_v0 }
 0xae1   : > { %18302 = vmatmul.mubr.bf16.vlgmr.msra.gmra.mrb[160].mxu0 %v17970_v3 }
 0xaee   : > { %v17043_v57 = vpop.f32.mrb[248].mxu1 }
 0xaef   : > { %v17091_v4 = vadd.f32 %v17043_v57, %v30656_v45  ;;  %v17045_v31 = vpop.f32.mrb[249].mxu1  ;;  %v17943_v45 = vrot.slane %v17938_v17, %v17942_v12 }
 0xaf0   : > { %v17092_v6 = vadd.f32 %v17045_v31, %v30658_v38  ;;  %v17047_v26 = vpop.f32.mrb[250].mxu1 }
 0xaf1   : > { %v17048_v8 = vpop.f32.mrb[251].mxu1 }
 0xb0e   : > { %v17324_v55 = vpop.f32.mrb[252].mxu1 }
 0xb0f   : > { %v17372_v34 = vadd.f32 %v17324_v55, %v17091_v4  ;;  %v17326_v7 = vpop.f32.mrb[253].mxu1 }
 0xb10   : > { %v17373_v29 = vadd.f32 %v17326_v7, %v17092_v6  ;;  %v17328_v23 = vpop.f32.mrb[254].mxu1 }
 0xb11   : > { %v17329_v51 = vpop.f32.mrb[255].mxu1 }
 0xb2e   : > { %v17605_v19 = vpop.f32.mrb[0].mxu1 }
 0xb2f   : > { %v17653_v37 = vadd.f32 %v17605_v19, %v17372_v34  ;;  %v17607_v63 = vpop.f32.mrb[1].mxu1 }
 0xb30   : > { %v17654_v56 = vadd.f32 %v17607_v63, %v17373_v29  ;;  %v17609_v43 = vpop.f32.mrb[2].mxu1 }
 0xb31   : > { %v17610_v28 = vpop.f32.mrb[3].mxu1 }
 0xb4e   : > { %v17886_v49 = vpop.f32.mrb[4].mxu1 }
 0xb4f   : > { %v17934_v38 = vadd.f32 %v17886_v49, %v17653_v37  ;;  %v17888_v9 = vpop.f32.mrb[5].mxu1 }
 0xb50   : > { %v17935_v11 = vadd.f32 %v17888_v9, %v17654_v56  ;;  %v17890_v24 = vpop.f32.mrb[6].mxu1 }
 0xb51   : > { %v17960_v32 = vadd.f32 %v17943_v45, %v17934_v38  ;;  %v17891_v46 = vpop.f32.mrb[7].mxu1 }
 0xb52   : > { %v17961_v44 = vadd.f32 %v17947_v10, %v17935_v11 }
 0xb53   : > { %v17964_v35 = vmax.f32 %v17960_v32, 0.0 }
 0xb54   : > { %v17965_v52 = vmax.f32 %v17961_v44, 0.0 }
 0xb55   : > { %v17968_v61 = vpack.c.bf16 %v17964_v35, %v17964_v35 }
 0xb56   : > { %v17969_v53 = vpack.c.bf16 %v17965_v52, %v17965_v52 }
 0xb58   : > { %18261 = vmatprep.mubr.bf16.mxu1 %v17969_v53 }
 0xb59   : > { %18262 = vmatmul.mubr.bf16.vlgmr.msra.gmra.mrb[8].mxu1 %v17968_v61 }
 0xbb4   : > { %v21550_v48 = vpop.f32.mrb[160].mxu0 }
 0xbb5   : > { %v21551_v18 = vpop.f32.mrb[161].mxu0 }
 0xbb6   : > { %v21552_v13 = vadd.f32 %v21551_v18, %v21550_v48  ;;  %v21553_v62 = vpop.f32.mrb[162].mxu0 }
 0xbb7   : > { %v21554_v58 = vpop.f32.mrb[163].mxu0 }
 0xc2c   : > { %v21528_v20 = vpop.f32.mrb[8].mxu1 }
 0xc2d   : > { %v21529_v40 = vpop.f32.mrb[9].mxu1 }
 0xc2e   : > { %v21530_v16 = vadd.f32 %v21529_v40, %v21528_v20  ;;  %v21531_v21 = vpop.f32.mrb[10].mxu1 }
 0xc2f   : > { %v21532_v60 = vpop.f32.mrb[11].mxu1 }
 0xc30   : > { %v18264_v17 = vadd.f32 %v21530_v16, %v18036_v5 }
 0xc32   : > { %v18304_v36 = vadd.f32 %v21552_v13, %v18264_v17 }
 0xc34   : > { %v18309_v14 = vsub.f32 0.0, %v18304_v36 }
 0xc36   : > { %v18310_v22 = vmul.f32 1.442695, %v18309_v14 }
 0xc38   : > { %24611 = vpow2.f32 %v18310_v22 }
 0xc42   : > { %v24612_v39 = vpop.eup %24611 }
 0xc43   : > { %v18312_v42 = vadd.f32 1.0, %v24612_v39 }
 0xc45   : > { %24613 = vrcp.f32 %v18312_v42 }
 0xc4f   : > { %v24614_v15 = vpop.eup %24613 }
 0xc50   : > { %18315 = vst [vmem:[%s324_s17] sm:$0x1] %v24614_v15 }
 0xc51   : > { %24640 = shalt.err (!%p24637_p3)
}
 0xc52   : > { %s24641_s28 = scalar_lea.hbm %s30729_s29, 16  ;;  %s24645_s17 = scalar_lea.hbm %s30780_s9, 32 }
 0xc53   : > { %p24642_p4 = scmp.ne.s32.totalorder %s30729_s29, %s24641_s28  ;;  %p24646_p9 = scmp.lt.u32.totalorder %s30729_s29, %s30780_s9 }
 0xc54   : > { %p24647_p10 = scmp.lt.u32.totalorder %s24645_s17, %s24641_s28  ;;  %p24649_p12 = scmp.lt.u32.totalorder %s24641_s28, %s30729_s29 }
 0xc55   : > { %p24643_p7 = pnand %p24642_p4, %p24781_p5 }
 0xc56   : > { %p24648_p11 = por %p24647_p10, %p24646_p9 }
 0xc57   : > { %p24644_p8 = pneg %p24643_p7 }
 0xc58   : > { %p24650_p13 = por %p24649_p12, %p24648_p11 }
 0xc5a   : > { %p24651_p0 = pnand %p24650_p13, %p24644_p8 }
 0xc5c   : > { %24654 = shalt.err (!%p24651_p0)
}
 0xc5d   : > { %23169 = dma.vmem_to_hbm [thread:$0]  (%p24781_p5), %s30731_s21, 16, %s30729_s29, %s18317_s24  }
 0xc5e PF: > { %p23175_p1 = scmp.ge.s32.totalorder %s24689_s12, 2  ;;  %s18341_s25 = sand.u32 1, %s24677_s30  }
 0xc5f   : > { %s18342_s13 = scalar_lea.sflag [#allocation4], %s18341_s25 }
 0xc60   : > { %p23172_p2 = pnand %p23175_p1, %p24785_p6 }
 0xc62   : > { %24672 = dma.done.wait (!%p23172_p2), %s18342_s13, 16  }
 0xc63   : > { %24674 = vsyncadd (!%p23172_p2), %s18342_s13, 4294967280  ;;  %p19_p3 = scmp.ge.s32.totalorder %s24768_s15, 4   ;;  %s31855_s30 = smov %s24681_s10 }
 0xc64   : > { %s31856_s10 = smov %s24685_s11  ;;  %s31857_s11 = smov %s24779_s18 }
 0xc65   : > { %s31858_s12 = smov %s24768_s15  ;;  %21 = sbr.rel (!%p19_p3) target bundleno = 3 (0x3), region = 130 }
 0xc6c   :  { %18346 = vsyncpa [#allocation4], 1 }
 0xc6d   :  { %18348 = vsyncpa [#allocation4 + $0x1], 1 }

</bundles_post_ra>
